<compile_context>
chip_gen: v7x
topology: tpu7x:2x2x1
jax: 0.10.0
libtpu: 0.0.40
codegen_flags: <defaults>
</compile_context>

<pallas_src>
import functools
import math

import numpy as np
import jax
import jax.numpy as jnp
from jax.experimental import pallas as pl
from jax.experimental.pallas import tpu as pltpu


# ---------------------------------- kernel ------------------------------------

def value_head_kernel(*refs):
    (x_ref,
     rb1_s1, rb1_t1, rb1_w1, rb1_b1,
     rb1_s2, rb1_t2, rb1_w2, rb1_b2,
     cv1_w, cv1_b,
     rb2_s1, rb2_t1, rb2_w1, rb2_b1,
     rb2_s2, rb2_t2, rb2_w2, rb2_b2,
     cv2_w, cv2_b,
     fc_w, fc_b,
     out_ref) = refs

    def mm(a, w):
        # bf16 MXU operands, f32 accumulation (elementwise math stays f32).
        return jnp.dot(a.astype(jnp.bfloat16), w,
                       preferred_element_type=jnp.float32)

    x = x_ref[...]                                       # (BB, H0*W0*C1) f32

    # --- rb_1: residual RConv(C1, feature=1): (BN -> ReLU -> 1x1 conv) x2 + x
    for i in range(rb1_w1.shape[0]):                     # static unroll over n_id
        h = jnp.maximum(x * rb1_s1[i] + rb1_t1[i], 0.0)
        h = mm(h, rb1_w1[i]) + rb1_b1[i]
        h = jnp.maximum(h * rb1_s2[i] + rb1_t2[i], 0.0)
        h = mm(h, rb1_w2[i]) + rb1_b2[i]
        x = h + x

    # --- ln_1 + MaxUnpool2d(3) + cv_1: one host-folded dense operator
    x = mm(x, cv1_w[...]) + cv1_b[...]                   # (BB, G*G*Cs)

    # --- rb_2: residual RConv(C2, feature=3) with host-folded 3x3 'same' convs
    for i in range(rb2_w1.shape[0]):                     # static unroll over n_layer
        h = jnp.maximum(x * rb2_s1[i] + rb2_t1[i], 0.0)
        h = mm(h, rb2_w1[i]) + rb2_b1[i]
        h = jnp.maximum(h * rb2_s2[i] + rb2_t2[i], 0.0)
        h = mm(h, rb2_w2[i]) + rb2_b2[i]
        x = h + x

    # --- ln_2 + cv_2 + ln_f (folded), then ReLU
    x = jnp.maximum(mm(x, cv2_w[...]) + cv2_b[...], 0.0)  # (BB, G*G*Cf)

    # --- fc_o + tanh: lane-padded matvec; column 0 carries the value
    out_ref[...] = jnp.tanh(mm(x, fc_w[...]) + fc_b[...])  # (BB, 128)


# ------------------------------ host-side glue ---------------------------------

PARAM_ORDER = [
    "rb1_s1", "rb1_t1", "rb1_w1", "rb1_b1",
    "rb1_s2", "rb1_t2", "rb1_w2", "rb1_b2",
    "cv1_w", "cv1_b",
    "rb2_s1", "rb2_t1", "rb2_w1", "rb2_b1",
    "rb2_s2", "rb2_t2", "rb2_w2", "rb2_b2",
    "cv2_w", "cv2_b",
    "fc_w", "fc_b",
]


def _replicated_spec(shape):
    # Full-array block with a constant index_map: fetched once, VMEM-resident
    # across the (parallel) batch-block grid.
    nd = len(shape)
    return pl.BlockSpec(shape, lambda i, _nd=nd: (0,) * _nd)


def value_head_forward(x, params, y=None, *, hparams, block_b=8):
    """ValueHead.forward.  x: (B, seq, C1*H0*W0) f32  ->  (B, 1) f32."""
    b = x.shape[0]
    f_base = hparams["convcoder"]["f_base"]
    f_scale = hparams["convcoder"]["f_scale"]
    gf_n = hparams["gf_n"]
    c1 = f_base * f_scale
    h0 = gf_n // 3
    k_in = h0 * h0 * c1

    # Host-side layout plumbing (free): x = x[:, -1, :].view(B, C1, H0, W0) [+ y],
    # then NCHW -> per-board (pos, chan)-flattened rows (B, H0*W0*C1).
    x0 = x[:, -1, :].reshape(b, c1, h0, h0)
    if y is not None:
        x0 = x0 + y
    x0 = jnp.transpose(x0, (0, 2, 3, 1)).reshape(b, k_in)

    # Block the batch: BB boards per grid step (pad B up to a multiple of BB).
    bb = block_b
    b_pad = ((b + bb - 1) // bb) * bb
    if b_pad != b:
        x0 = jnp.pad(x0, ((0, b_pad - b), (0, 0)))

    n_out = params["fc_w"].shape[-1]                     # lane-dense 128
    in_specs = [pl.BlockSpec((bb, k_in), lambda i: (i, 0))]
    in_specs += [_replicated_spec(params[k].shape) for k in PARAM_ORDER]

    out = pl.pallas_call(
        value_head_kernel,
        grid=(b_pad // bb,),
        in_specs=in_specs,
        out_specs=pl.BlockSpec((bb, n_out), lambda i: (i, 0)),
        out_shape=jax.ShapeDtypeStruct((b_pad, n_out), jnp.float32),
        compiler_params=pltpu.CompilerParams(
            dimension_semantics=("parallel",)),
    )(x0, *[params[k] for k in PARAM_ORDER])
    return out[:b, :1]                                   # (B, 1)


# --------------------------- parameter construction ----------------------------

def _bn_fold(rng, c, eps=1e-5):
    gamma = (1.0 + 0.1 * rng.standard_normal(c)).astype(np.float32)
    beta = (0.1 * rng.standard_normal(c)).astype(np.float32)
    running_mean = np.zeros(c, np.float32)
    running_var = np.ones(c, np.float32)
    scale = gamma / np.sqrt(running_var + eps)
    shift = beta - running_mean * scale
    return scale, shift


def _conv_init(rng, ci, co, k):
    bound = 1.0 / math.sqrt(ci * k * k)
    w = rng.uniform(-bound, bound, size=(co, ci, k, k)).astype(np.float32)
    b = rng.uniform(-bound, bound, size=(co,)).astype(np.float32)
    return w, b


def _fold_conv1x1(w, b, n_pos):
    # torch (Co, Ci, 1, 1) -> dense (n_pos*Ci, n_pos*Co) right-multiply operator
    # on the (pos, chan)-flattened activation (block-diagonal per position).
    wm = w[:, :, 0, 0].T                                  # (Ci, Co)
    return np.kron(np.eye(n_pos, dtype=np.float32), wm), np.tile(b, n_pos)


def _fold_conv3x3(w, b, g):
    # torch (Co, Ci, 3, 3) zero-padded 'same' conv on a (g, g) board -> dense
    # (g*g*Ci, g*g*Co) right-multiply operator on (pos, chan)-flattened rows.
    co, ci = w.shape[0], w.shape[1]
    wf = np.zeros((g * g * ci, g * g * co), np.float32)
    for r in range(g):
        for c in range(g):
            po = r * g + c
            for ky in range(3):
                for kx in range(3):
                    ri, cj = r + ky - 1, c + kx - 1
                    if 0 <= ri < g and 0 <= cj < g:
                        pi = ri * g + cj
                        wf[pi * ci:(pi + 1) * ci, po * co:(po + 1) * co] = w[:, :, ky, kx].T
    return wf, np.tile(b, g * g)


def _fold_unpool(h0, c, factor=3):
    # MaxUnpool-style x3 upsample (value at top-left of each 3x3 window, zeros
    # elsewhere) as a dense (h0*h0*c, g*g*c) operator on flattened rows.
    g = h0 * factor
    u = np.zeros((h0 * h0 * c, g * g * c), np.float32)
    for r in range(h0):
        for col in range(h0):
            pc = r * h0 + col
            pf = (r * factor) * g + (col * factor)
            for ch in range(c):
                u[pc * c + ch, pf * c + ch] = 1.0
    return u


def init_params(seed, hparams):
    n_id = hparams["value"]["n_id"]
    n_layer = hparams["value"]["n_layer"]
    f_base = hparams["convcoder"]["f_base"]
    f_scale = hparams["convcoder"]["f_scale"]
    f_final = hparams["value"]["f_final"]
    gf_n = hparams["gf_n"]
    c1 = f_base * f_scale
    # cv_1 outputs f_scale channels but rb_2 / ln_2 / cv_2 expect f_base channels;
    # the reference only type-checks when f_scale == f_base.
    assert f_scale == f_base, "reference requires f_scale == f_base after cv_1"
    assert gf_n % 3 == 0, "MaxUnpool(3) must map gf_n//3 back to gf_n"
    c2 = f_base
    h0 = gf_n // 3
    n_pos0 = h0 * h0
    g2 = gf_n * gf_n

    rng = np.random.default_rng(seed)
    p = {}

    # --- rb_1: n_id x RConv(c1, feature=1) -- 1x1 convs folded to (256, 256)
    acc = {k: [] for k in ("s1", "t1", "w1", "b1", "s2", "t2", "w2", "b2")}
    for _ in range(n_id):
        s, t = _bn_fold(rng, c1)
        acc["s1"].append(np.tile(s, n_pos0)[None]); acc["t1"].append(np.tile(t, n_pos0)[None])
        wf, bf = _fold_conv1x1(*_conv_init(rng, c1, c1, 1), n_pos0)
        acc["w1"].append(wf); acc["b1"].append(bf[None])
        s, t = _bn_fold(rng, c1)
        acc["s2"].append(np.tile(s, n_pos0)[None]); acc["t2"].append(np.tile(t, n_pos0)[None])
        wf, bf = _fold_conv1x1(*_conv_init(rng, c1, c1, 1), n_pos0)
        acc["w2"].append(wf); acc["b2"].append(bf[None])
    for k, v in acc.items():
        p["rb1_" + k] = np.stack(v, axis=0)

    # --- ln_1 + MaxUnpool2d(3) + cv_1 folded into one (n_pos0*c1, g2*f_scale) op
    s, t = _bn_fold(rng, c1)
    sv, tv = np.tile(s, n_pos0), np.tile(t, n_pos0)
    w3, b3 = _fold_conv3x3(*_conv_init(rng, c1, f_scale, 3), gf_n)
    uw = _fold_unpool(h0, c1) @ w3                        # (n_pos0*c1, g2*f_scale)
    p["cv1_w"] = sv[:, None] * uw
    p["cv1_b"] = (tv @ uw + b3)[None]

    # --- rb_2: n_layer x RConv(c2, feature=3) -- 3x3 convs folded to (576, 576)
    acc = {k: [] for k in ("s1", "t1", "w1", "b1", "s2", "t2", "w2", "b2")}
    for _ in range(n_layer):
        s, t = _bn_fold(rng, c2)
        acc["s1"].append(np.tile(s, g2)[None]); acc["t1"].append(np.tile(t, g2)[None])
        wf, bf = _fold_conv3x3(*_conv_init(rng, c2, c2, 3), gf_n)
        acc["w1"].append(wf); acc["b1"].append(bf[None])
        s, t = _bn_fold(rng, c2)
        acc["s2"].append(np.tile(s, g2)[None]); acc["t2"].append(np.tile(t, g2)[None])
        wf, bf = _fold_conv3x3(*_conv_init(rng, c2, c2, 3), gf_n)
        acc["w2"].append(wf); acc["b2"].append(bf[None])
    for k, v in acc.items():
        p["rb2_" + k] = np.stack(v, axis=0)

    # --- ln_2 + cv_2 + ln_f folded into one (g2*c2, g2*f_final) op
    s2, t2 = _bn_fold(rng, c2)
    s2v, t2v = np.tile(s2, g2), np.tile(t2, g2)
    w3, b3 = _fold_conv3x3(*_conv_init(rng, c2, f_final, 3), gf_n)
    sf, tf = _bn_fold(rng, f_final)
    sfv, tfv = np.tile(sf, g2), np.tile(tf, g2)
    p["cv2_w"] = (s2v[:, None] * w3) * sfv[None, :]
    p["cv2_b"] = ((t2v @ w3 + b3) * sfv + tfv)[None]

    # --- fc_o: torch Linear(f_final*g2, 1); torch flattens the NCHW tensor in
    #     (c, h, w) order, the kernel activation is flattened (h, w, c) ->
    #     permute once on the host and lane-pad N to 128 (value in column 0).
    nf = f_final * g2
    bound = 1.0 / math.sqrt(nf)
    fcw = rng.uniform(-bound, bound, size=(1, nf)).astype(np.float32)
    fcb = rng.uniform(-bound, bound, size=(1,)).astype(np.float32)
    fcw_perm = fcw.reshape(f_final, gf_n, gf_n).transpose(1, 2, 0).reshape(nf)
    fc_w = np.zeros((nf, 128), np.float32); fc_w[:, 0] = fcw_perm
    fc_b = np.zeros((1, 128), np.float32); fc_b[0, 0] = fcb[0]
    p["fc_w"] = fc_w
    p["fc_b"] = fc_b

    # dtypes: matmul operands bf16 (MXU), affines / biases f32 (VPU).
    out = {}
    for k, v in p.items():
        if k.endswith("_w") or k[-2:] in ("w1", "w2"):
            out[k] = jnp.asarray(v, jnp.bfloat16)
        else:
            out[k] = jnp.asarray(v, jnp.float32)
    return out


# ------------------------------------ main -------------------------------------

if __name__ == "__main__":
    hparams = {
        "value": {"n_id": 2, "n_layer": 2, "f_final": 4},
        "convcoder": {"f_base": 4, "f_scale": 4},
        "gf_n": 12,
    }
    B, seq = 2, 8
    c1 = hparams["convcoder"]["f_base"] * hparams["convcoder"]["f_scale"]
    h0 = hparams["gf_n"] // 3

    x = jax.random.normal(jax.random.PRNGKey(0), (B, seq, c1 * h0 * h0), jnp.float32)
    params = init_params(0, hparams)

    fwd = jax.jit(functools.partial(value_head_forward, hparams=hparams))
    out = fwd(x, params)               # y=None path of forward(x, y=None)
    out = jax.block_until_ready(out)
    assert out.shape == (B, 1)
    assert bool(jnp.all(jnp.isfinite(out)))
    print("KERNEL_OK")
</pallas_src>

<mosaic_0001>
module attributes {stable_mosaic.version = 11 : i64} {
  func.func @value_head_kernel(%arg0: i32, %arg1: memref<8x256xf32, #tpu.memory_space<vmem>>, %arg2: memref<2x1x256xf32, #tpu.memory_space<vmem>>, %arg3: memref<2x1x256xf32, #tpu.memory_space<vmem>>, %arg4: memref<2x256x256xbf16, #tpu.memory_space<vmem>>, %arg5: memref<2x1x256xf32, #tpu.memory_space<vmem>>, %arg6: memref<2x1x256xf32, #tpu.memory_space<vmem>>, %arg7: memref<2x1x256xf32, #tpu.memory_space<vmem>>, %arg8: memref<2x256x256xbf16, #tpu.memory_space<vmem>>, %arg9: memref<2x1x256xf32, #tpu.memory_space<vmem>>, %arg10: memref<256x576xbf16, #tpu.memory_space<vmem>>, %arg11: memref<1x576xf32, #tpu.memory_space<vmem>>, %arg12: memref<2x1x576xf32, #tpu.memory_space<vmem>>, %arg13: memref<2x1x576xf32, #tpu.memory_space<vmem>>, %arg14: memref<2x576x576xbf16, #tpu.memory_space<vmem>>, %arg15: memref<2x1x576xf32, #tpu.memory_space<vmem>>, %arg16: memref<2x1x576xf32, #tpu.memory_space<vmem>>, %arg17: memref<2x1x576xf32, #tpu.memory_space<vmem>>, %arg18: memref<2x576x576xbf16, #tpu.memory_space<vmem>>, %arg19: memref<2x1x576xf32, #tpu.memory_space<vmem>>, %arg20: memref<576x576xbf16, #tpu.memory_space<vmem>>, %arg21: memref<1x576xf32, #tpu.memory_space<vmem>>, %arg22: memref<576x128xbf16, #tpu.memory_space<vmem>>, %arg23: memref<1x128xf32, #tpu.memory_space<vmem>>, %arg24: memref<8x128xf32, #tpu.memory_space<vmem>>) attributes {dimension_semantics = [#tpu.dimension_semantics<parallel>], iteration_bounds = array<i64: 1>, scalar_prefetch = 0 : i64, scratch_operands = 0 : i64, tpu.core_type = #tpu.core_type<tc>, window_params = [{transform_indices = @transform_0, window_bounds = array<i64: 8, 256>}, {pipeline_mode = #tpu.pipeline_mode<synchronous>, transform_indices = @transform_1, window_bounds = array<i64: 2, 1, 256>}, {pipeline_mode = #tpu.pipeline_mode<synchronous>, transform_indices = @transform_2, window_bounds = array<i64: 2, 1, 256>}, {pipeline_mode = #tpu.pipeline_mode<synchronous>, transform_indices = @transform_3, window_bounds = array<i64: 2, 256, 256>}, {pipeline_mode = #tpu.pipeline_mode<synchronous>, transform_indices = @transform_4, window_bounds = array<i64: 2, 1, 256>}, {pipeline_mode = #tpu.pipeline_mode<synchronous>, transform_indices = @transform_5, window_bounds = array<i64: 2, 1, 256>}, {pipeline_mode = #tpu.pipeline_mode<synchronous>, transform_indices = @transform_6, window_bounds = array<i64: 2, 1, 256>}, {pipeline_mode = #tpu.pipeline_mode<synchronous>, transform_indices = @transform_7, window_bounds = array<i64: 2, 256, 256>}, {pipeline_mode = #tpu.pipeline_mode<synchronous>, transform_indices = @transform_8, window_bounds = array<i64: 2, 1, 256>}, {pipeline_mode = #tpu.pipeline_mode<synchronous>, transform_indices = @transform_9, window_bounds = array<i64: 256, 576>}, {pipeline_mode = #tpu.pipeline_mode<synchronous>, transform_indices = @transform_10, window_bounds = array<i64: 1, 576>}, {pipeline_mode = #tpu.pipeline_mode<synchronous>, transform_indices = @transform_11, window_bounds = array<i64: 2, 1, 576>}, {pipeline_mode = #tpu.pipeline_mode<synchronous>, transform_indices = @transform_12, window_bounds = array<i64: 2, 1, 576>}, {pipeline_mode = #tpu.pipeline_mode<synchronous>, transform_indices = @transform_13, window_bounds = array<i64: 2, 576, 576>}, {pipeline_mode = #tpu.pipeline_mode<synchronous>, transform_indices = @transform_14, window_bounds = array<i64: 2, 1, 576>}, {pipeline_mode = #tpu.pipeline_mode<synchronous>, transform_indices = @transform_15, window_bounds = array<i64: 2, 1, 576>}, {pipeline_mode = #tpu.pipeline_mode<synchronous>, transform_indices = @transform_16, window_bounds = array<i64: 2, 1, 576>}, {pipeline_mode = #tpu.pipeline_mode<synchronous>, transform_indices = @transform_17, window_bounds = array<i64: 2, 576, 576>}, {pipeline_mode = #tpu.pipeline_mode<synchronous>, transform_indices = @transform_18, window_bounds = array<i64: 2, 1, 576>}, {pipeline_mode = #tpu.pipeline_mode<synchronous>, transform_indices = @transform_19, window_bounds = array<i64: 576, 576>}, {pipeline_mode = #tpu.pipeline_mode<synchronous>, transform_indices = @transform_20, window_bounds = array<i64: 1, 576>}, {pipeline_mode = #tpu.pipeline_mode<synchronous>, transform_indices = @transform_21, window_bounds = array<i64: 576, 128>}, {pipeline_mode = #tpu.pipeline_mode<synchronous>, transform_indices = @transform_22, window_bounds = array<i64: 1, 128>}, {transform_indices = @transform_23, window_bounds = array<i64: 8, 128>}]} {
    %c0 = arith.constant 0 : index
    %c0_0 = arith.constant 0 : index
    %0 = vector.load %arg1[%c0, %c0_0] : memref<8x256xf32, #tpu.memory_space<vmem>>, vector<8x256xf32>
    %c0_1 = arith.constant 0 : index
    %c0_2 = arith.constant 0 : index
    %c0_3 = arith.constant 0 : index
    %1 = vector.load %arg2[%c0_1, %c0_2, %c0_3] : memref<2x1x256xf32, #tpu.memory_space<vmem>>, vector<1x1x256xf32>
    %2 = vector.shape_cast %1 : vector<1x1x256xf32> to vector<1x256xf32>
    %3 = vector.broadcast %2 : vector<1x256xf32> to vector<8x256xf32>
    %4 = arith.mulf %0, %3 : vector<8x256xf32>
    %c0_4 = arith.constant 0 : index
    %c0_5 = arith.constant 0 : index
    %c0_6 = arith.constant 0 : index
    %5 = vector.load %arg3[%c0_4, %c0_5, %c0_6] : memref<2x1x256xf32, #tpu.memory_space<vmem>>, vector<1x1x256xf32>
    %6 = vector.shape_cast %5 : vector<1x1x256xf32> to vector<1x256xf32>
    %7 = vector.broadcast %6 : vector<1x256xf32> to vector<8x256xf32>
    %8 = arith.addf %4, %7 : vector<8x256xf32>
    %cst = arith.constant 0.000000e+00 : f32
    %9 = vector.broadcast %cst : f32 to vector<8x256xf32>
    %10 = arith.maximumf %8, %9 : vector<8x256xf32>
    %c0_7 = arith.constant 0 : index
    %c0_8 = arith.constant 0 : index
    %c0_9 = arith.constant 0 : index
    %11 = vector.load %arg4[%c0_7, %c0_8, %c0_9] : memref<2x256x256xbf16, #tpu.memory_space<vmem>>, vector<1x256x256xbf16>
    %12 = vector.shape_cast %11 : vector<1x256x256xbf16> to vector<256x256xbf16>
    %13 = arith.truncf %10 : vector<8x256xf32> to vector<8x256xbf16>
    %cst_10 = arith.constant dense<0.000000e+00> : vector<8x256xf32>
    %14 = tpu.matmul %13, %12, %cst_10 {dimension_numbers = #tpu.dot_dimension_numbers<[1], [0], [0], [1], [0, 0, 1, 1], [], []>} : vector<8x256xbf16>, vector<256x256xbf16>, vector<8x256xf32> -> vector<8x256xf32>
    %c0_11 = arith.constant 0 : index
    %c0_12 = arith.constant 0 : index
    %c0_13 = arith.constant 0 : index
    %15 = vector.load %arg5[%c0_11, %c0_12, %c0_13] : memref<2x1x256xf32, #tpu.memory_space<vmem>>, vector<1x1x256xf32>
    %16 = vector.shape_cast %15 : vector<1x1x256xf32> to vector<1x256xf32>
    %17 = vector.broadcast %16 : vector<1x256xf32> to vector<8x256xf32>
    %18 = arith.addf %14, %17 : vector<8x256xf32>
    %c0_14 = arith.constant 0 : index
    %c0_15 = arith.constant 0 : index
    %c0_16 = arith.constant 0 : index
    %19 = vector.load %arg6[%c0_14, %c0_15, %c0_16] : memref<2x1x256xf32, #tpu.memory_space<vmem>>, vector<1x1x256xf32>
    %20 = vector.shape_cast %19 : vector<1x1x256xf32> to vector<1x256xf32>
    %21 = vector.broadcast %20 : vector<1x256xf32> to vector<8x256xf32>
    %22 = arith.mulf %18, %21 : vector<8x256xf32>
    %c0_17 = arith.constant 0 : index
    %c0_18 = arith.constant 0 : index
    %c0_19 = arith.constant 0 : index
    %23 = vector.load %arg7[%c0_17, %c0_18, %c0_19] : memref<2x1x256xf32, #tpu.memory_space<vmem>>, vector<1x1x256xf32>
    %24 = vector.shape_cast %23 : vector<1x1x256xf32> to vector<1x256xf32>
    %25 = vector.broadcast %24 : vector<1x256xf32> to vector<8x256xf32>
    %26 = arith.addf %22, %25 : vector<8x256xf32>
    %cst_20 = arith.constant 0.000000e+00 : f32
    %27 = vector.broadcast %cst_20 : f32 to vector<8x256xf32>
    %28 = arith.maximumf %26, %27 : vector<8x256xf32>
    %c0_21 = arith.constant 0 : index
    %c0_22 = arith.constant 0 : index
    %c0_23 = arith.constant 0 : index
    %29 = vector.load %arg8[%c0_21, %c0_22, %c0_23] : memref<2x256x256xbf16, #tpu.memory_space<vmem>>, vector<1x256x256xbf16>
    %30 = vector.shape_cast %29 : vector<1x256x256xbf16> to vector<256x256xbf16>
    %31 = arith.truncf %28 : vector<8x256xf32> to vector<8x256xbf16>
    %cst_24 = arith.constant dense<0.000000e+00> : vector<8x256xf32>
    %32 = tpu.matmul %31, %30, %cst_24 {dimension_numbers = #tpu.dot_dimension_numbers<[1], [0], [0], [1], [0, 0, 1, 1], [], []>} : vector<8x256xbf16>, vector<256x256xbf16>, vector<8x256xf32> -> vector<8x256xf32>
    %c0_25 = arith.constant 0 : index
    %c0_26 = arith.constant 0 : index
    %c0_27 = arith.constant 0 : index
    %33 = vector.load %arg9[%c0_25, %c0_26, %c0_27] : memref<2x1x256xf32, #tpu.memory_space<vmem>>, vector<1x1x256xf32>
    %34 = vector.shape_cast %33 : vector<1x1x256xf32> to vector<1x256xf32>
    %35 = vector.broadcast %34 : vector<1x256xf32> to vector<8x256xf32>
    %36 = arith.addf %32, %35 : vector<8x256xf32>
    %37 = arith.addf %36, %0 : vector<8x256xf32>
    %c1 = arith.constant 1 : index
    %c0_28 = arith.constant 0 : index
    %c0_29 = arith.constant 0 : index
    %38 = vector.load %arg2[%c1, %c0_28, %c0_29] : memref<2x1x256xf32, #tpu.memory_space<vmem>>, vector<1x1x256xf32>
    %39 = vector.shape_cast %38 : vector<1x1x256xf32> to vector<1x256xf32>
    %40 = vector.broadcast %39 : vector<1x256xf32> to vector<8x256xf32>
    %41 = arith.mulf %37, %40 : vector<8x256xf32>
    %c1_30 = arith.constant 1 : index
    %c0_31 = arith.constant 0 : index
    %c0_32 = arith.constant 0 : index
    %42 = vector.load %arg3[%c1_30, %c0_31, %c0_32] : memref<2x1x256xf32, #tpu.memory_space<vmem>>, vector<1x1x256xf32>
    %43 = vector.shape_cast %42 : vector<1x1x256xf32> to vector<1x256xf32>
    %44 = vector.broadcast %43 : vector<1x256xf32> to vector<8x256xf32>
    %45 = arith.addf %41, %44 : vector<8x256xf32>
    %cst_33 = arith.constant 0.000000e+00 : f32
    %46 = vector.broadcast %cst_33 : f32 to vector<8x256xf32>
    %47 = arith.maximumf %45, %46 : vector<8x256xf32>
    %c1_34 = arith.constant 1 : index
    %c0_35 = arith.constant 0 : index
    %c0_36 = arith.constant 0 : index
    %48 = vector.load %arg4[%c1_34, %c0_35, %c0_36] : memref<2x256x256xbf16, #tpu.memory_space<vmem>>, vector<1x256x256xbf16>
    %49 = vector.shape_cast %48 : vector<1x256x256xbf16> to vector<256x256xbf16>
    %50 = arith.truncf %47 : vector<8x256xf32> to vector<8x256xbf16>
    %cst_37 = arith.constant dense<0.000000e+00> : vector<8x256xf32>
    %51 = tpu.matmul %50, %49, %cst_37 {dimension_numbers = #tpu.dot_dimension_numbers<[1], [0], [0], [1], [0, 0, 1, 1], [], []>} : vector<8x256xbf16>, vector<256x256xbf16>, vector<8x256xf32> -> vector<8x256xf32>
    %c1_38 = arith.constant 1 : index
    %c0_39 = arith.constant 0 : index
    %c0_40 = arith.constant 0 : index
    %52 = vector.load %arg5[%c1_38, %c0_39, %c0_40] : memref<2x1x256xf32, #tpu.memory_space<vmem>>, vector<1x1x256xf32>
    %53 = vector.shape_cast %52 : vector<1x1x256xf32> to vector<1x256xf32>
    %54 = vector.broadcast %53 : vector<1x256xf32> to vector<8x256xf32>
    %55 = arith.addf %51, %54 : vector<8x256xf32>
    %c1_41 = arith.constant 1 : index
    %c0_42 = arith.constant 0 : index
    %c0_43 = arith.constant 0 : index
    %56 = vector.load %arg6[%c1_41, %c0_42, %c0_43] : memref<2x1x256xf32, #tpu.memory_space<vmem>>, vector<1x1x256xf32>
    %57 = vector.shape_cast %56 : vector<1x1x256xf32> to vector<1x256xf32>
    %58 = vector.broadcast %57 : vector<1x256xf32> to vector<8x256xf32>
    %59 = arith.mulf %55, %58 : vector<8x256xf32>
    %c1_44 = arith.constant 1 : index
    %c0_45 = arith.constant 0 : index
    %c0_46 = arith.constant 0 : index
    %60 = vector.load %arg7[%c1_44, %c0_45, %c0_46] : memref<2x1x256xf32, #tpu.memory_space<vmem>>, vector<1x1x256xf32>
    %61 = vector.shape_cast %60 : vector<1x1x256xf32> to vector<1x256xf32>
    %62 = vector.broadcast %61 : vector<1x256xf32> to vector<8x256xf32>
    %63 = arith.addf %59, %62 : vector<8x256xf32>
    %cst_47 = arith.constant 0.000000e+00 : f32
    %64 = vector.broadcast %cst_47 : f32 to vector<8x256xf32>
    %65 = arith.maximumf %63, %64 : vector<8x256xf32>
    %c1_48 = arith.constant 1 : index
    %c0_49 = arith.constant 0 : index
    %c0_50 = arith.constant 0 : index
    %66 = vector.load %arg8[%c1_48, %c0_49, %c0_50] : memref<2x256x256xbf16, #tpu.memory_space<vmem>>, vector<1x256x256xbf16>
    %67 = vector.shape_cast %66 : vector<1x256x256xbf16> to vector<256x256xbf16>
    %68 = arith.truncf %65 : vector<8x256xf32> to vector<8x256xbf16>
    %cst_51 = arith.constant dense<0.000000e+00> : vector<8x256xf32>
    %69 = tpu.matmul %68, %67, %cst_51 {dimension_numbers = #tpu.dot_dimension_numbers<[1], [0], [0], [1], [0, 0, 1, 1], [], []>} : vector<8x256xbf16>, vector<256x256xbf16>, vector<8x256xf32> -> vector<8x256xf32>
    %c1_52 = arith.constant 1 : index
    %c0_53 = arith.constant 0 : index
    %c0_54 = arith.constant 0 : index
    %70 = vector.load %arg9[%c1_52, %c0_53, %c0_54] : memref<2x1x256xf32, #tpu.memory_space<vmem>>, vector<1x1x256xf32>
    %71 = vector.shape_cast %70 : vector<1x1x256xf32> to vector<1x256xf32>
    %72 = vector.broadcast %71 : vector<1x256xf32> to vector<8x256xf32>
    %73 = arith.addf %69, %72 : vector<8x256xf32>
    %74 = arith.addf %73, %37 : vector<8x256xf32>
    %c0_55 = arith.constant 0 : index
    %c0_56 = arith.constant 0 : index
    %75 = vector.load %arg10[%c0_55, %c0_56] : memref<256x576xbf16, #tpu.memory_space<vmem>>, vector<256x576xbf16>
    %76 = arith.truncf %74 : vector<8x256xf32> to vector<8x256xbf16>
    %cst_57 = arith.constant dense<0.000000e+00> : vector<8x576xf32>
    %77 = tpu.matmul %76, %75, %cst_57 {dimension_numbers = #tpu.dot_dimension_numbers<[1], [0], [0], [1], [0, 0, 1, 1], [], []>} : vector<8x256xbf16>, vector<256x576xbf16>, vector<8x576xf32> -> vector<8x576xf32>
    %c0_58 = arith.constant 0 : index
    %c0_59 = arith.constant 0 : index
    %78 = vector.load %arg11[%c0_58, %c0_59] : memref<1x576xf32, #tpu.memory_space<vmem>>, vector<1x576xf32>
    %79 = vector.broadcast %78 : vector<1x576xf32> to vector<8x576xf32>
    %80 = arith.addf %77, %79 : vector<8x576xf32>
    %c0_60 = arith.constant 0 : index
    %c0_61 = arith.constant 0 : index
    %c0_62 = arith.constant 0 : index
    %81 = vector.load %arg12[%c0_60, %c0_61, %c0_62] : memref<2x1x576xf32, #tpu.memory_space<vmem>>, vector<1x1x576xf32>
    %82 = vector.shape_cast %81 : vector<1x1x576xf32> to vector<1x576xf32>
    %83 = vector.broadcast %82 : vector<1x576xf32> to vector<8x576xf32>
    %84 = arith.mulf %80, %83 : vector<8x576xf32>
    %c0_63 = arith.constant 0 : index
    %c0_64 = arith.constant 0 : index
    %c0_65 = arith.constant 0 : index
    %85 = vector.load %arg13[%c0_63, %c0_64, %c0_65] : memref<2x1x576xf32, #tpu.memory_space<vmem>>, vector<1x1x576xf32>
    %86 = vector.shape_cast %85 : vector<1x1x576xf32> to vector<1x576xf32>
    %87 = vector.broadcast %86 : vector<1x576xf32> to vector<8x576xf32>
    %88 = arith.addf %84, %87 : vector<8x576xf32>
    %cst_66 = arith.constant 0.000000e+00 : f32
    %89 = vector.broadcast %cst_66 : f32 to vector<8x576xf32>
    %90 = arith.maximumf %88, %89 : vector<8x576xf32>
    %c0_67 = arith.constant 0 : index
    %c0_68 = arith.constant 0 : index
    %c0_69 = arith.constant 0 : index
    %91 = vector.load %arg14[%c0_67, %c0_68, %c0_69] : memref<2x576x576xbf16, #tpu.memory_space<vmem>>, vector<1x576x576xbf16>
    %92 = vector.shape_cast %91 : vector<1x576x576xbf16> to vector<576x576xbf16>
    %93 = arith.truncf %90 : vector<8x576xf32> to vector<8x576xbf16>
    %cst_70 = arith.constant dense<0.000000e+00> : vector<8x576xf32>
    %94 = tpu.matmul %93, %92, %cst_70 {dimension_numbers = #tpu.dot_dimension_numbers<[1], [0], [0], [1], [0, 0, 1, 1], [], []>} : vector<8x576xbf16>, vector<576x576xbf16>, vector<8x576xf32> -> vector<8x576xf32>
    %c0_71 = arith.constant 0 : index
    %c0_72 = arith.constant 0 : index
    %c0_73 = arith.constant 0 : index
    %95 = vector.load %arg15[%c0_71, %c0_72, %c0_73] : memref<2x1x576xf32, #tpu.memory_space<vmem>>, vector<1x1x576xf32>
    %96 = vector.shape_cast %95 : vector<1x1x576xf32> to vector<1x576xf32>
    %97 = vector.broadcast %96 : vector<1x576xf32> to vector<8x576xf32>
    %98 = arith.addf %94, %97 : vector<8x576xf32>
    %c0_74 = arith.constant 0 : index
    %c0_75 = arith.constant 0 : index
    %c0_76 = arith.constant 0 : index
    %99 = vector.load %arg16[%c0_74, %c0_75, %c0_76] : memref<2x1x576xf32, #tpu.memory_space<vmem>>, vector<1x1x576xf32>
    %100 = vector.shape_cast %99 : vector<1x1x576xf32> to vector<1x576xf32>
    %101 = vector.broadcast %100 : vector<1x576xf32> to vector<8x576xf32>
    %102 = arith.mulf %98, %101 : vector<8x576xf32>
    %c0_77 = arith.constant 0 : index
    %c0_78 = arith.constant 0 : index
    %c0_79 = arith.constant 0 : index
    %103 = vector.load %arg17[%c0_77, %c0_78, %c0_79] : memref<2x1x576xf32, #tpu.memory_space<vmem>>, vector<1x1x576xf32>
    %104 = vector.shape_cast %103 : vector<1x1x576xf32> to vector<1x576xf32>
    %105 = vector.broadcast %104 : vector<1x576xf32> to vector<8x576xf32>
    %106 = arith.addf %102, %105 : vector<8x576xf32>
    %cst_80 = arith.constant 0.000000e+00 : f32
    %107 = vector.broadcast %cst_80 : f32 to vector<8x576xf32>
    %108 = arith.maximumf %106, %107 : vector<8x576xf32>
    %c0_81 = arith.constant 0 : index
    %c0_82 = arith.constant 0 : index
    %c0_83 = arith.constant 0 : index
    %109 = vector.load %arg18[%c0_81, %c0_82, %c0_83] : memref<2x576x576xbf16, #tpu.memory_space<vmem>>, vector<1x576x576xbf16>
    %110 = vector.shape_cast %109 : vector<1x576x576xbf16> to vector<576x576xbf16>
    %111 = arith.truncf %108 : vector<8x576xf32> to vector<8x576xbf16>
    %cst_84 = arith.constant dense<0.000000e+00> : vector<8x576xf32>
    %112 = tpu.matmul %111, %110, %cst_84 {dimension_numbers = #tpu.dot_dimension_numbers<[1], [0], [0], [1], [0, 0, 1, 1], [], []>} : vector<8x576xbf16>, vector<576x576xbf16>, vector<8x576xf32> -> vector<8x576xf32>
    %c0_85 = arith.constant 0 : index
    %c0_86 = arith.constant 0 : index
    %c0_87 = arith.constant 0 : index
    %113 = vector.load %arg19[%c0_85, %c0_86, %c0_87] : memref<2x1x576xf32, #tpu.memory_space<vmem>>, vector<1x1x576xf32>
    %114 = vector.shape_cast %113 : vector<1x1x576xf32> to vector<1x576xf32>
    %115 = vector.broadcast %114 : vector<1x576xf32> to vector<8x576xf32>
    %116 = arith.addf %112, %115 : vector<8x576xf32>
    %117 = arith.addf %116, %80 : vector<8x576xf32>
    %c1_88 = arith.constant 1 : index
    %c0_89 = arith.constant 0 : index
    %c0_90 = arith.constant 0 : index
    %118 = vector.load %arg12[%c1_88, %c0_89, %c0_90] : memref<2x1x576xf32, #tpu.memory_space<vmem>>, vector<1x1x576xf32>
    %119 = vector.shape_cast %118 : vector<1x1x576xf32> to vector<1x576xf32>
    %120 = vector.broadcast %119 : vector<1x576xf32> to vector<8x576xf32>
    %121 = arith.mulf %117, %120 : vector<8x576xf32>
    %c1_91 = arith.constant 1 : index
    %c0_92 = arith.constant 0 : index
    %c0_93 = arith.constant 0 : index
    %122 = vector.load %arg13[%c1_91, %c0_92, %c0_93] : memref<2x1x576xf32, #tpu.memory_space<vmem>>, vector<1x1x576xf32>
    %123 = vector.shape_cast %122 : vector<1x1x576xf32> to vector<1x576xf32>
    %124 = vector.broadcast %123 : vector<1x576xf32> to vector<8x576xf32>
    %125 = arith.addf %121, %124 : vector<8x576xf32>
    %cst_94 = arith.constant 0.000000e+00 : f32
    %126 = vector.broadcast %cst_94 : f32 to vector<8x576xf32>
    %127 = arith.maximumf %125, %126 : vector<8x576xf32>
    %c1_95 = arith.constant 1 : index
    %c0_96 = arith.constant 0 : index
    %c0_97 = arith.constant 0 : index
    %128 = vector.load %arg14[%c1_95, %c0_96, %c0_97] : memref<2x576x576xbf16, #tpu.memory_space<vmem>>, vector<1x576x576xbf16>
    %129 = vector.shape_cast %128 : vector<1x576x576xbf16> to vector<576x576xbf16>
    %130 = arith.truncf %127 : vector<8x576xf32> to vector<8x576xbf16>
    %cst_98 = arith.constant dense<0.000000e+00> : vector<8x576xf32>
    %131 = tpu.matmul %130, %129, %cst_98 {dimension_numbers = #tpu.dot_dimension_numbers<[1], [0], [0], [1], [0, 0, 1, 1], [], []>} : vector<8x576xbf16>, vector<576x576xbf16>, vector<8x576xf32> -> vector<8x576xf32>
    %c1_99 = arith.constant 1 : index
    %c0_100 = arith.constant 0 : index
    %c0_101 = arith.constant 0 : index
    %132 = vector.load %arg15[%c1_99, %c0_100, %c0_101] : memref<2x1x576xf32, #tpu.memory_space<vmem>>, vector<1x1x576xf32>
    %133 = vector.shape_cast %132 : vector<1x1x576xf32> to vector<1x576xf32>
    %134 = vector.broadcast %133 : vector<1x576xf32> to vector<8x576xf32>
    %135 = arith.addf %131, %134 : vector<8x576xf32>
    %c1_102 = arith.constant 1 : index
    %c0_103 = arith.constant 0 : index
    %c0_104 = arith.constant 0 : index
    %136 = vector.load %arg16[%c1_102, %c0_103, %c0_104] : memref<2x1x576xf32, #tpu.memory_space<vmem>>, vector<1x1x576xf32>
    %137 = vector.shape_cast %136 : vector<1x1x576xf32> to vector<1x576xf32>
    %138 = vector.broadcast %137 : vector<1x576xf32> to vector<8x576xf32>
    %139 = arith.mulf %135, %138 : vector<8x576xf32>
    %c1_105 = arith.constant 1 : index
    %c0_106 = arith.constant 0 : index
    %c0_107 = arith.constant 0 : index
    %140 = vector.load %arg17[%c1_105, %c0_106, %c0_107] : memref<2x1x576xf32, #tpu.memory_space<vmem>>, vector<1x1x576xf32>
    %141 = vector.shape_cast %140 : vector<1x1x576xf32> to vector<1x576xf32>
    %142 = vector.broadcast %141 : vector<1x576xf32> to vector<8x576xf32>
    %143 = arith.addf %139, %142 : vector<8x576xf32>
    %cst_108 = arith.constant 0.000000e+00 : f32
    %144 = vector.broadcast %cst_108 : f32 to vector<8x576xf32>
    %145 = arith.maximumf %143, %144 : vector<8x576xf32>
    %c1_109 = arith.constant 1 : index
    %c0_110 = arith.constant 0 : index
    %c0_111 = arith.constant 0 : index
    %146 = vector.load %arg18[%c1_109, %c0_110, %c0_111] : memref<2x576x576xbf16, #tpu.memory_space<vmem>>, vector<1x576x576xbf16>
    %147 = vector.shape_cast %146 : vector<1x576x576xbf16> to vector<576x576xbf16>
    %148 = arith.truncf %145 : vector<8x576xf32> to vector<8x576xbf16>
    %cst_112 = arith.constant dense<0.000000e+00> : vector<8x576xf32>
    %149 = tpu.matmul %148, %147, %cst_112 {dimension_numbers = #tpu.dot_dimension_numbers<[1], [0], [0], [1], [0, 0, 1, 1], [], []>} : vector<8x576xbf16>, vector<576x576xbf16>, vector<8x576xf32> -> vector<8x576xf32>
    %c1_113 = arith.constant 1 : index
    %c0_114 = arith.constant 0 : index
    %c0_115 = arith.constant 0 : index
    %150 = vector.load %arg19[%c1_113, %c0_114, %c0_115] : memref<2x1x576xf32, #tpu.memory_space<vmem>>, vector<1x1x576xf32>
    %151 = vector.shape_cast %150 : vector<1x1x576xf32> to vector<1x576xf32>
    %152 = vector.broadcast %151 : vector<1x576xf32> to vector<8x576xf32>
    %153 = arith.addf %149, %152 : vector<8x576xf32>
    %154 = arith.addf %153, %117 : vector<8x576xf32>
    %c0_116 = arith.constant 0 : index
    %c0_117 = arith.constant 0 : index
    %155 = vector.load %arg20[%c0_116, %c0_117] : memref<576x576xbf16, #tpu.memory_space<vmem>>, vector<576x576xbf16>
    %156 = arith.truncf %154 : vector<8x576xf32> to vector<8x576xbf16>
    %cst_118 = arith.constant dense<0.000000e+00> : vector<8x576xf32>
    %157 = tpu.matmul %156, %155, %cst_118 {dimension_numbers = #tpu.dot_dimension_numbers<[1], [0], [0], [1], [0, 0, 1, 1], [], []>} : vector<8x576xbf16>, vector<576x576xbf16>, vector<8x576xf32> -> vector<8x576xf32>
    %c0_119 = arith.constant 0 : index
    %c0_120 = arith.constant 0 : index
    %158 = vector.load %arg21[%c0_119, %c0_120] : memref<1x576xf32, #tpu.memory_space<vmem>>, vector<1x576xf32>
    %159 = vector.broadcast %158 : vector<1x576xf32> to vector<8x576xf32>
    %160 = arith.addf %157, %159 : vector<8x576xf32>
    %cst_121 = arith.constant 0.000000e+00 : f32
    %161 = vector.broadcast %cst_121 : f32 to vector<8x576xf32>
    %162 = arith.maximumf %160, %161 : vector<8x576xf32>
    %c0_122 = arith.constant 0 : index
    %c0_123 = arith.constant 0 : index
    %163 = vector.load %arg22[%c0_122, %c0_123] : memref<576x128xbf16, #tpu.memory_space<vmem>>, vector<576x128xbf16>
    %164 = arith.truncf %162 : vector<8x576xf32> to vector<8x576xbf16>
    %cst_124 = arith.constant dense<0.000000e+00> : vector<8x128xf32>
    %165 = tpu.matmul %164, %163, %cst_124 {dimension_numbers = #tpu.dot_dimension_numbers<[1], [0], [0], [1], [0, 0, 1, 1], [], []>} : vector<8x576xbf16>, vector<576x128xbf16>, vector<8x128xf32> -> vector<8x128xf32>
    %c0_125 = arith.constant 0 : index
    %c0_126 = arith.constant 0 : index
    %166 = vector.load %arg23[%c0_125, %c0_126] : memref<1x128xf32, #tpu.memory_space<vmem>>, vector<1x128xf32>
    %167 = vector.broadcast %166 : vector<1x128xf32> to vector<8x128xf32>
    %168 = arith.addf %165, %167 : vector<8x128xf32>
    %169 = math.tanh %168 : vector<8x128xf32>
    %c0_127 = arith.constant 0 : index
    %c0_128 = arith.constant 0 : index
    %170 = vector.load %arg24[%c0_127, %c0_128] : memref<8x128xf32, #tpu.memory_space<vmem>>, vector<8x128xf32>
    tpu.vector_store %arg24[%c0_127, %c0_128], %169 {strides = array<i32>} : memref<8x128xf32, #tpu.memory_space<vmem>>, vector<8x128xf32>,
    return
  }
  func.func @transform_0(%arg0: i32) -> (i32, i32) {
    %c0_i32 = arith.constant 0 : i32
    %c0_i32_0 = arith.constant 0 : i32
    return %arg0, %c0_i32 : i32, i32
  }
  func.func @transform_1(%arg0: i32) -> (i32, i32, i32) {
    %c0_i32 = arith.constant 0 : i32
    %c0_i32_0 = arith.constant 0 : i32
    %c0_i32_1 = arith.constant 0 : i32
    %c0_i32_2 = arith.constant 0 : i32
    return %c0_i32, %c0_i32_0, %c0_i32_1 : i32, i32, i32
  }
  func.func @transform_2(%arg0: i32) -> (i32, i32, i32) {
    %c0_i32 = arith.constant 0 : i32
    %c0_i32_0 = arith.constant 0 : i32
    %c0_i32_1 = arith.constant 0 : i32
    %c0_i32_2 = arith.constant 0 : i32
    return %c0_i32, %c0_i32_0, %c0_i32_1 : i32, i32, i32
  }
  func.func @transform_3(%arg0: i32) -> (i32, i32, i32) {
    %c0_i32 = arith.constant 0 : i32
    %c0_i32_0 = arith.constant 0 : i32
    %c0_i32_1 = arith.constant 0 : i32
    %c0_i32_2 = arith.constant 0 : i32
    return %c0_i32, %c0_i32_0, %c0_i32_1 : i32, i32, i32
  }
  func.func @transform_4(%arg0: i32) -> (i32, i32, i32) {
    %c0_i32 = arith.constant 0 : i32
    %c0_i32_0 = arith.constant 0 : i32
    %c0_i32_1 = arith.constant 0 : i32
    %c0_i32_2 = arith.constant 0 : i32
    return %c0_i32, %c0_i32_0, %c0_i32_1 : i32, i32, i32
  }
  func.func @transform_5(%arg0: i32) -> (i32, i32, i32) {
    %c0_i32 = arith.constant 0 : i32
    %c0_i32_0 = arith.constant 0 : i32
    %c0_i32_1 = arith.constant 0 : i32
    %c0_i32_2 = arith.constant 0 : i32
    return %c0_i32, %c0_i32_0, %c0_i32_1 : i32, i32, i32
  }
  func.func @transform_6(%arg0: i32) -> (i32, i32, i32) {
    %c0_i32 = arith.constant 0 : i32
    %c0_i32_0 = arith.constant 0 : i32
    %c0_i32_1 = arith.constant 0 : i32
    %c0_i32_2 = arith.constant 0 : i32
    return %c0_i32, %c0_i32_0, %c0_i32_1 : i32, i32, i32
  }
  func.func @transform_7(%arg0: i32) -> (i32, i32, i32) {
    %c0_i32 = arith.constant 0 : i32
    %c0_i32_0 = arith.constant 0 : i32
    %c0_i32_1 = arith.constant 0 : i32
    %c0_i32_2 = arith.constant 0 : i32
    return %c0_i32, %c0_i32_0, %c0_i32_1 : i32, i32, i32
  }
  func.func @transform_8(%arg0: i32) -> (i32, i32, i32) {
    %c0_i32 = arith.constant 0 : i32
    %c0_i32_0 = arith.constant 0 : i32
    %c0_i32_1 = arith.constant 0 : i32
    %c0_i32_2 = arith.constant 0 : i32
    return %c0_i32, %c0_i32_0, %c0_i32_1 : i32, i32, i32
  }
  func.func @transform_9(%arg0: i32) -> (i32, i32) {
    %c0_i32 = arith.constant 0 : i32
    %c0_i32_0 = arith.constant 0 : i32
    %c0_i32_1 = arith.constant 0 : i32
    return %c0_i32, %c0_i32_0 : i32, i32
  }
  func.func @transform_10(%arg0: i32) -> (i32, i32) {
    %c0_i32 = arith.constant 0 : i32
    %c0_i32_0 = arith.constant 0 : i32
    %c0_i32_1 = arith.constant 0 : i32
    return %c0_i32, %c0_i32_0 : i32, i32
  }
  func.func @transform_11(%arg0: i32) -> (i32, i32, i32) {
    %c0_i32 = arith.constant 0 : i32
    %c0_i32_0 = arith.constant 0 : i32
    %c0_i32_1 = arith.constant 0 : i32
    %c0_i32_2 = arith.constant 0 : i32
    return %c0_i32, %c0_i32_0, %c0_i32_1 : i32, i32, i32
  }
  func.func @transform_12(%arg0: i32) -> (i32, i32, i32) {
    %c0_i32 = arith.constant 0 : i32
    %c0_i32_0 = arith.constant 0 : i32
    %c0_i32_1 = arith.constant 0 : i32
    %c0_i32_2 = arith.constant 0 : i32
    return %c0_i32, %c0_i32_0, %c0_i32_1 : i32, i32, i32
  }
  func.func @transform_13(%arg0: i32) -> (i32, i32, i32) {
    %c0_i32 = arith.constant 0 : i32
    %c0_i32_0 = arith.constant 0 : i32
    %c0_i32_1 = arith.constant 0 : i32
    %c0_i32_2 = arith.constant 0 : i32
    return %c0_i32, %c0_i32_0, %c0_i32_1 : i32, i32, i32
  }
  func.func @transform_14(%arg0: i32) -> (i32, i32, i32) {
    %c0_i32 = arith.constant 0 : i32
    %c0_i32_0 = arith.constant 0 : i32
    %c0_i32_1 = arith.constant 0 : i32
    %c0_i32_2 = arith.constant 0 : i32
    return %c0_i32, %c0_i32_0, %c0_i32_1 : i32, i32, i32
  }
  func.func @transform_15(%arg0: i32) -> (i32, i32, i32) {
    %c0_i32 = arith.constant 0 : i32
    %c0_i32_0 = arith.constant 0 : i32
    %c0_i32_1 = arith.constant 0 : i32
    %c0_i32_2 = arith.constant 0 : i32
    return %c0_i32, %c0_i32_0, %c0_i32_1 : i32, i32, i32
  }
  func.func @transform_16(%arg0: i32) -> (i32, i32, i32) {
    %c0_i32 = arith.constant 0 : i32
    %c0_i32_0 = arith.constant 0 : i32
    %c0_i32_1 = arith.constant 0 : i32
    %c0_i32_2 = arith.constant 0 : i32
    return %c0_i32, %c0_i32_0, %c0_i32_1 : i32, i32, i32
  }
  func.func @transform_17(%arg0: i32) -> (i32, i32, i32) {
    %c0_i32 = arith.constant 0 : i32
    %c0_i32_0 = arith.constant 0 : i32
    %c0_i32_1 = arith.constant 0 : i32
    %c0_i32_2 = arith.constant 0 : i32
    return %c0_i32, %c0_i32_0, %c0_i32_1 : i32, i32, i32
  }
  func.func @transform_18(%arg0: i32) -> (i32, i32, i32) {
    %c0_i32 = arith.constant 0 : i32
    %c0_i32_0 = arith.constant 0 : i32
    %c0_i32_1 = arith.constant 0 : i32
    %c0_i32_2 = arith.constant 0 : i32
    return %c0_i32, %c0_i32_0, %c0_i32_1 : i32, i32, i32
  }
  func.func @transform_19(%arg0: i32) -> (i32, i32) {
    %c0_i32 = arith.constant 0 : i32
    %c0_i32_0 = arith.constant 0 : i32
    %c0_i32_1 = arith.constant 0 : i32
    return %c0_i32, %c0_i32_0 : i32, i32
  }
  func.func @transform_20(%arg0: i32) -> (i32, i32) {
    %c0_i32 = arith.constant 0 : i32
    %c0_i32_0 = arith.constant 0 : i32
    %c0_i32_1 = arith.constant 0 : i32
    return %c0_i32, %c0_i32_0 : i32, i32
  }
  func.func @transform_21(%arg0: i32) -> (i32, i32) {
    %c0_i32 = arith.constant 0 : i32
    %c0_i32_0 = arith.constant 0 : i32
    %c0_i32_1 = arith.constant 0 : i32
    return %c0_i32, %c0_i32_0 : i32, i32
  }
  func.func @transform_22(%arg0: i32) -> (i32, i32) {
    %c0_i32 = arith.constant 0 : i32
    %c0_i32_0 = arith.constant 0 : i32
    %c0_i32_1 = arith.constant 0 : i32
    return %c0_i32, %c0_i32_0 : i32, i32
  }
  func.func @transform_23(%arg0: i32) -> (i32, i32) {
    %c0_i32 = arith.constant 0 : i32
    %c0_i32_0 = arith.constant 0 : i32
    return %arg0, %c0_i32 : i32, i32
  }
}

</mosaic_0001>

<bundles_post_ra>
// kernel: squeeze.1
= control target key start
LH: loop header
LB: loop body
LE: loop exit
PB: predicated region body
PF: predicated region fallthrough
CT: control target
= control target key end

     0   :  { %s679_s10 = smov 116   ;;  %vm11_vm0 = vcmask 31744   ;;  %s680_s11 = smov 120   ;;  %s982_s0 = inlined_call_operand.vmem [shape: f32[2,256], index: 0, kind: input, shape index: {}]   ;;  %s983_s1 = inlined_call_operand.vmem [shape: f32[2,16,4,4], index: 1, kind: output, shape index: {}]  }
   0x1   :  { %v615_v0 = vld [vmem:[%s982_s0 + $0x2] sm:$0x3]  ;;  %v8_v1 = vld [vmem:[%s982_s0] sm:$0x3]  ;;  %s678_s0 = smov 124   ;;  %s681_s12 = smov 112  }
   0x2   :  { %7 = vst [vmem:[#allocation1 + $0x8] sm:$0x3] %v615_v0  ;;  %9 = vst [vmem:[#allocation1] sm:$0x3] %v8_v1  ;;  %s682_s13 = smov 108   ;;  %s683_s14 = smov 104  }
   0x3   :  { %s684_s15 = smov 100   ;;  %s685_s16 = smov 96  }
   0x4   :  { %s686_s17 = smov 92   ;;  %s687_s18 = smov 88  }
   0x5   :  { %s688_s19 = smov 84   ;;  %s689_s20 = smov 80  }
   0x6   :  { %s690_s21 = smov 76   ;;  %s691_s22 = smov 72  }
   0x7   :  { %s692_s23 = smov 68   ;;  %s693_s24 = smov 64  }
   0x8   :  { %s694_s25 = smov 60   ;;  %s695_s26 = smov 56  }
   0x9   :  { %v725_v2 = vld.sshfl [vmem:[#allocation1] sm:$0xff pattern:$0x99999810]   ;;  %s696_s27 = smov 52   ;;  %s697_s28 = smov 48  }
   0xa   :  { %23 = vrot.lane.b32.xlu0 %v725_v2, %s678_s0  ;;  %47 = vrot.lane.b32.xlu1 %v725_v2, %s679_s10  ;;  %v16_v3 = vld [vmem:[#allocation1 + $0x8] sm:$0x3]   ;;  %v10_v4 = vld [vmem:[#allocation1] sm:$0x3]   ;;  %s698_s29 = smov 44   ;;  %s699_s30 = smov 40  }
   0xb   :  { %19 = vst.msk [vmem:[#allocation0 + $0x40] sm:$0x1] %vm11_vm0, %v16_v3   ;;  %21 = vst.msk [vmem:[#allocation0 + $0xbf] sm:$0x2] %vm11_vm0, %v16_v3   ;;  %s700_s2 = smov 36   ;;  %s701_s3 = smov 32  }
   0xc   :  { %12 = vst.msk [vmem:[#allocation0] sm:$0x1] %vm11_vm0, %v10_v4   ;;  %14 = vst.msk [vmem:[#allocation0 + $0x7f] sm:$0x2] %vm11_vm0, %v10_v4   ;;  %s702_s4 = smov 28   ;;  %s703_s5 = smov 24  }
   0xd   :  { %s704_s6 = smov 20   ;;  %s705_s7 = smov 16  }
   0xe   :  { %35 = vrot.lane.b32.xlu0 %v725_v2, %s680_s11  ;;  %59 = vrot.lane.b32.xlu1 %v725_v2, %s681_s12  ;;  %s706_s8 = smov 12   ;;  %s707_s9 = smov 8  }
   0xf   :  { %s708_s0 = smov 4  }
  0x12   :  { %71 = vrot.lane.b32.xlu0 %v725_v2, %s682_s13  ;;  %83 = vrot.lane.b32.xlu1 %v725_v2, %s683_s14 }
  0x16   :  { %95 = vrot.lane.b32.xlu0 %v725_v2, %s684_s15  ;;  %107 = vrot.lane.b32.xlu1 %v725_v2, %s685_s16 }
  0x1a   :  { %119 = vrot.lane.b32.xlu0 %v725_v2, %s686_s17  ;;  %131 = vrot.lane.b32.xlu1 %v725_v2, %s687_s18 }
  0x1e   :  { %143 = vrot.lane.b32.xlu0 %v725_v2, %s688_s19  ;;  %155 = vrot.lane.b32.xlu1 %v725_v2, %s689_s20 }
  0x22   :  { %167 = vrot.lane.b32.xlu0 %v725_v2, %s690_s21  ;;  %179 = vrot.lane.b32.xlu1 %v725_v2, %s691_s22 }
  0x26   :  { %191 = vrot.lane.b32.xlu0 %v725_v2, %s692_s23  ;;  %203 = vrot.lane.b32.xlu1 %v725_v2, %s693_s24 }
  0x2a   :  { %215 = vrot.lane.b32.xlu0 %v725_v2, %s694_s25  ;;  %227 = vrot.lane.b32.xlu1 %v725_v2, %s695_s26 }
  0x2e   :  { %239 = vrot.lane.b32.xlu0 %v725_v2, %s696_s27  ;;  %251 = vrot.lane.b32.xlu1 %v725_v2, %s697_s28 }
  0x32   :  { %263 = vrot.lane.b32.xlu0 %v725_v2, %s698_s29  ;;  %275 = vrot.lane.b32.xlu1 %v725_v2, %s699_s30 }
  0x36   :  { %287 = vrot.lane.b32.xlu0 %v725_v2, %s700_s2  ;;  %299 = vrot.lane.b32.xlu1 %v725_v2, %s701_s3 }
  0x3a   :  { %311 = vrot.lane.b32.xlu0 %v725_v2, %s702_s4  ;;  %323 = vrot.lane.b32.xlu1 %v725_v2, %s703_s5 }
  0x3e   :  { %335 = vrot.lane.b32.xlu0 %v725_v2, %s704_s6  ;;  %347 = vrot.lane.b32.xlu1 %v725_v2, %s705_s7 }
  0x42   :  { %359 = vrot.lane.b32.xlu0 %v725_v2, %s706_s8  ;;  %371 = vrot.lane.b32.xlu1 %v725_v2, %s707_s9 }
  0x46   :  { %383 = vrot.lane.b32.xlu0 %v725_v2, %s708_s0 }
  0x7c   :  { %v24_v5 = vpop.permute.xlu0 %23   ;;  %v48_v6 = vpop.permute.xlu1 %47  }
  0x7d   :  { %27 = vst.msk [vmem:[#allocation0 + $0x1] sm:$0x1] %vm11_vm0, %v24_v5   ;;  %29 = vst.msk [vmem:[#allocation0 + $0x80] sm:$0x2] %vm11_vm0, %v24_v5  }
  0x7e   :  { %31 = vst.msk [vmem:[#allocation0 + $0x3f] sm:$0x4] %vm11_vm0, %v24_v5   ;;  %33 = vst.msk [vmem:[#allocation0 + $0xbe] sm:$0x8] %vm11_vm0, %v24_v5  }
  0x7f   :  { %51 = vst.msk [vmem:[#allocation0 + $0x3] sm:$0x1] %vm11_vm0, %v48_v6   ;;  %53 = vst.msk [vmem:[#allocation0 + $0x82] sm:$0x2] %vm11_vm0, %v48_v6  }
  0x80   :  { %55 = vst.msk [vmem:[#allocation0 + $0x41] sm:$0x4] %vm11_vm0, %v48_v6   ;;  %57 = vst.msk [vmem:[#allocation0 + $0xc0] sm:$0x8] %vm11_vm0, %v48_v6   ;;  %v36_v7 = vpop.permute.xlu0 %35   ;;  %v60_v8 = vpop.permute.xlu1 %59  }
  0x81   :  { %39 = vst.msk [vmem:[#allocation0 + $0x2] sm:$0x1] %vm11_vm0, %v36_v7   ;;  %41 = vst.msk [vmem:[#allocation0 + $0x81] sm:$0x2] %vm11_vm0, %v36_v7  }
  0x82   :  { %43 = vst.msk [vmem:[#allocation0 + $0x40] sm:$0x4] %vm11_vm0, %v36_v7   ;;  %45 = vst.msk [vmem:[#allocation0 + $0xbf] sm:$0x8] %vm11_vm0, %v36_v7  }
  0x83   :  { %63 = vst.msk [vmem:[#allocation0 + $0x8] sm:$0x1] %vm11_vm0, %v60_v8   ;;  %65 = vst.msk [vmem:[#allocation0 + $0x87] sm:$0x2] %vm11_vm0, %v60_v8  }
  0x84   :  { %67 = vst.msk [vmem:[#allocation0 + $0x46] sm:$0x4] %vm11_vm0, %v60_v8   ;;  %69 = vst.msk [vmem:[#allocation0 + $0xc5] sm:$0x8] %vm11_vm0, %v60_v8   ;;  %v72_v9 = vpop.permute.xlu0 %71   ;;  %v84_v10 = vpop.permute.xlu1 %83  }
  0x85   :  { %75 = vst.msk [vmem:[#allocation0 + $0x9] sm:$0x1] %vm11_vm0, %v72_v9   ;;  %77 = vst.msk [vmem:[#allocation0 + $0x88] sm:$0x2] %vm11_vm0, %v72_v9  }
  0x86   :  { %79 = vst.msk [vmem:[#allocation0 + $0x47] sm:$0x4] %vm11_vm0, %v72_v9   ;;  %81 = vst.msk [vmem:[#allocation0 + $0xc6] sm:$0x8] %vm11_vm0, %v72_v9  }
  0x87   :  { %87 = vst.msk [vmem:[#allocation0 + $0xa] sm:$0x1] %vm11_vm0, %v84_v10   ;;  %89 = vst.msk [vmem:[#allocation0 + $0x89] sm:$0x2] %vm11_vm0, %v84_v10  }
  0x88   :  { %91 = vst.msk [vmem:[#allocation0 + $0x48] sm:$0x4] %vm11_vm0, %v84_v10   ;;  %93 = vst.msk [vmem:[#allocation0 + $0xc7] sm:$0x8] %vm11_vm0, %v84_v10   ;;  %v397_v11 = vld [vmem:[#allocation0] sm:$0xf]  ;;  %v96_v14 = vpop.permute.xlu0 %95   ;;  %v108_v15 = vpop.permute.xlu1 %107  }
  0x89   :  { %v442_v12 = vld [vmem:[#allocation0 + $0x40] sm:$0xf]  ;;  %399 = vst [vmem:[%s983_s1] sm:$0xf] %v397_v11  ;;  %99 = vst.msk [vmem:[#allocation0 + $0xb] sm:$0x1] %vm11_vm0, %v96_v14  }
  0x8a   :  { %v490_v13 = vld [vmem:[#allocation0 + $0x80] sm:$0xf]  ;;  %623 = vst [vmem:[%s983_s1 + $0x20] sm:$0xf] %v442_v12  ;;  %101 = vst.msk [vmem:[#allocation0 + $0x8a] sm:$0x2] %vm11_vm0, %v96_v14  }
  0x8b   :  { %v538_v16 = vld [vmem:[#allocation0 + $0xc0] sm:$0xf]  ;;  %631 = vst [vmem:[%s983_s1 + $0x40] sm:$0xf] %v490_v13  ;;  %103 = vst.msk [vmem:[#allocation0 + $0x49] sm:$0x4] %vm11_vm0, %v96_v14  }
  0x8c   :  { %105 = vst.msk [vmem:[#allocation0 + $0xc8] sm:$0x8] %vm11_vm0, %v96_v14   ;;  %111 = vst.msk [vmem:[#allocation0 + $0x10] sm:$0x1] %vm11_vm0, %v108_v15   ;;  %v120_v17 = vpop.permute.xlu0 %119   ;;  %v132_v18 = vpop.permute.xlu1 %131  }
  0x8d   :  { %113 = vst.msk [vmem:[#allocation0 + $0x8f] sm:$0x2] %vm11_vm0, %v108_v15   ;;  %115 = vst.msk [vmem:[#allocation0 + $0x4e] sm:$0x4] %vm11_vm0, %v108_v15  }
  0x8e   :  { %117 = vst.msk [vmem:[#allocation0 + $0xcd] sm:$0x8] %vm11_vm0, %v108_v15   ;;  %639 = vst [vmem:[%s983_s1 + $0x60] sm:$0xf] %v538_v16 }
  0x8f   :  { %123 = vst.msk [vmem:[#allocation0 + $0x11] sm:$0x1] %vm11_vm0, %v120_v17   ;;  %125 = vst.msk [vmem:[#allocation0 + $0x90] sm:$0x2] %vm11_vm0, %v120_v17  }
  0x90   :  { %127 = vst.msk [vmem:[#allocation0 + $0x4f] sm:$0x4] %vm11_vm0, %v120_v17   ;;  %129 = vst.msk [vmem:[#allocation0 + $0xce] sm:$0x8] %vm11_vm0, %v120_v17   ;;  %v144_v22 = vpop.permute.xlu0 %143   ;;  %v156_v23 = vpop.permute.xlu1 %155   ;;  %v401_v24 = vld [vmem:[#allocation0 + $0x8] sm:$0xf] }
  0x91   :  { %135 = vst.msk [vmem:[#allocation0 + $0x12] sm:$0x1] %vm11_vm0, %v132_v18   ;;  %137 = vst.msk [vmem:[#allocation0 + $0x91] sm:$0x2] %vm11_vm0, %v132_v18   ;;  %v496_v20 = vld [vmem:[#allocation0 + $0x88] sm:$0xf] }
  0x92   :  { %139 = vst.msk [vmem:[#allocation0 + $0x50] sm:$0x4] %vm11_vm0, %v132_v18   ;;  %141 = vst.msk [vmem:[#allocation0 + $0xcf] sm:$0x8] %vm11_vm0, %v132_v18   ;;  %v448_v19 = vld [vmem:[#allocation0 + $0x48] sm:$0xf] }
  0x93   :  { %v544_v21 = vld [vmem:[#allocation0 + $0xc8] sm:$0xf]  ;;  %624 = vst [vmem:[%s983_s1 + $0x24] sm:$0xf] %v448_v19  ;;  %632 = vst [vmem:[%s983_s1 + $0x44] sm:$0xf] %v496_v20 }
  0x94   :  { %640 = vst [vmem:[%s983_s1 + $0x64] sm:$0xf] %v544_v21  ;;  %147 = vst.msk [vmem:[#allocation0 + $0x13] sm:$0x1] %vm11_vm0, %v144_v22   ;;  %v168_v25 = vpop.permute.xlu0 %167   ;;  %v180_v26 = vpop.permute.xlu1 %179  }
  0x95   :  { %149 = vst.msk [vmem:[#allocation0 + $0x92] sm:$0x2] %vm11_vm0, %v144_v22   ;;  %151 = vst.msk [vmem:[#allocation0 + $0x51] sm:$0x4] %vm11_vm0, %v144_v22  }
  0x96   :  { %153 = vst.msk [vmem:[#allocation0 + $0xd0] sm:$0x8] %vm11_vm0, %v144_v22   ;;  %159 = vst.msk [vmem:[#allocation0 + $0x18] sm:$0x1] %vm11_vm0, %v156_v23  }
  0x97   :  { %161 = vst.msk [vmem:[#allocation0 + $0x97] sm:$0x2] %vm11_vm0, %v156_v23   ;;  %163 = vst.msk [vmem:[#allocation0 + $0x56] sm:$0x4] %vm11_vm0, %v156_v23  }
  0x98   :  { %165 = vst.msk [vmem:[#allocation0 + $0xd5] sm:$0x8] %vm11_vm0, %v156_v23   ;;  %616 = vst [vmem:[%s983_s1 + $0x4] sm:$0xf] %v401_v24  ;;  %v192_v30 = vpop.permute.xlu0 %191   ;;  %v204_v31 = vpop.permute.xlu1 %203  }
  0x99   :  { %171 = vst.msk [vmem:[#allocation0 + $0x19] sm:$0x1] %vm11_vm0, %v168_v25   ;;  %173 = vst.msk [vmem:[#allocation0 + $0x98] sm:$0x2] %vm11_vm0, %v168_v25  }
  0x9a   :  { %175 = vst.msk [vmem:[#allocation0 + $0x57] sm:$0x4] %vm11_vm0, %v168_v25   ;;  %177 = vst.msk [vmem:[#allocation0 + $0xd6] sm:$0x8] %vm11_vm0, %v168_v25  }
  0x9b   :  { %183 = vst.msk [vmem:[#allocation0 + $0x1a] sm:$0x1] %vm11_vm0, %v180_v26   ;;  %185 = vst.msk [vmem:[#allocation0 + $0x99] sm:$0x2] %vm11_vm0, %v180_v26   ;;  %v406_v28 = vld [vmem:[#allocation0 + $0x10] sm:$0xf] }
  0x9c   :  { %187 = vst.msk [vmem:[#allocation0 + $0x58] sm:$0x4] %vm11_vm0, %v180_v26   ;;  %189 = vst.msk [vmem:[#allocation0 + $0xd7] sm:$0x8] %vm11_vm0, %v180_v26   ;;  %v454_v27 = vld [vmem:[#allocation0 + $0x50] sm:$0xf]  ;;  %v216_v33 = vpop.permute.xlu0 %215   ;;  %v228_v34 = vpop.permute.xlu1 %227  }
  0x9d   :  { %v502_v29 = vld [vmem:[#allocation0 + $0x90] sm:$0xf]  ;;  %625 = vst [vmem:[%s983_s1 + $0x28] sm:$0xf] %v454_v27  ;;  %617 = vst [vmem:[%s983_s1 + $0x8] sm:$0xf] %v406_v28 }
  0x9e   :  { %v550_v32 = vld [vmem:[#allocation0 + $0xd0] sm:$0xf]  ;;  %633 = vst [vmem:[%s983_s1 + $0x48] sm:$0xf] %v502_v29  ;;  %195 = vst.msk [vmem:[#allocation0 + $0x1b] sm:$0x1] %vm11_vm0, %v192_v30  }
  0x9f   :  { %197 = vst.msk [vmem:[#allocation0 + $0x9a] sm:$0x2] %vm11_vm0, %v192_v30   ;;  %199 = vst.msk [vmem:[#allocation0 + $0x59] sm:$0x4] %vm11_vm0, %v192_v30  }
  0xa0   :  { %201 = vst.msk [vmem:[#allocation0 + $0xd8] sm:$0x8] %vm11_vm0, %v192_v30   ;;  %207 = vst.msk [vmem:[#allocation0 + $0x20] sm:$0x1] %vm11_vm0, %v204_v31   ;;  %v240_v38 = vpop.permute.xlu0 %239   ;;  %v252_v39 = vpop.permute.xlu1 %251  }
  0xa1   :  { %209 = vst.msk [vmem:[#allocation0 + $0x9f] sm:$0x2] %vm11_vm0, %v204_v31   ;;  %211 = vst.msk [vmem:[#allocation0 + $0x5e] sm:$0x4] %vm11_vm0, %v204_v31  }
  0xa2   :  { %213 = vst.msk [vmem:[#allocation0 + $0xdd] sm:$0x8] %vm11_vm0, %v204_v31   ;;  %641 = vst [vmem:[%s983_s1 + $0x68] sm:$0xf] %v550_v32 }
  0xa3   :  { %219 = vst.msk [vmem:[#allocation0 + $0x21] sm:$0x1] %vm11_vm0, %v216_v33   ;;  %221 = vst.msk [vmem:[#allocation0 + $0xa0] sm:$0x2] %vm11_vm0, %v216_v33  }
  0xa4   :  { %223 = vst.msk [vmem:[#allocation0 + $0x5f] sm:$0x4] %vm11_vm0, %v216_v33   ;;  %225 = vst.msk [vmem:[#allocation0 + $0xde] sm:$0x8] %vm11_vm0, %v216_v33   ;;  %v264_v41 = vpop.permute.xlu0 %263   ;;  %v276_v42 = vpop.permute.xlu1 %275  }
  0xa5   :  { %231 = vst.msk [vmem:[#allocation0 + $0x22] sm:$0x1] %vm11_vm0, %v228_v34   ;;  %233 = vst.msk [vmem:[#allocation0 + $0xa1] sm:$0x2] %vm11_vm0, %v228_v34   ;;  %v412_v37 = vld [vmem:[#allocation0 + $0x18] sm:$0xf] }
  0xa6   :  { %235 = vst.msk [vmem:[#allocation0 + $0x60] sm:$0x4] %vm11_vm0, %v228_v34   ;;  %237 = vst.msk [vmem:[#allocation0 + $0xdf] sm:$0x8] %vm11_vm0, %v228_v34   ;;  %v508_v35 = vld [vmem:[#allocation0 + $0x98] sm:$0xf] }
  0xa7   :  { %v556_v36 = vld [vmem:[#allocation0 + $0xd8] sm:$0xf]  ;;  %634 = vst [vmem:[%s983_s1 + $0x4c] sm:$0xf] %v508_v35  ;;  %618 = vst [vmem:[%s983_s1 + $0xc] sm:$0xf] %v412_v37 }
  0xa8   :  { %642 = vst [vmem:[%s983_s1 + $0x6c] sm:$0xf] %v556_v36  ;;  %v460_v40 = vld [vmem:[#allocation0 + $0x58] sm:$0xf]  ;;  %243 = vst.msk [vmem:[#allocation0 + $0x23] sm:$0x1] %vm11_vm0, %v240_v38   ;;  %v288_v46 = vpop.permute.xlu0 %287   ;;  %v300_v47 = vpop.permute.xlu1 %299  }
  0xa9   :  { %245 = vst.msk [vmem:[#allocation0 + $0xa2] sm:$0x2] %vm11_vm0, %v240_v38   ;;  %247 = vst.msk [vmem:[#allocation0 + $0x61] sm:$0x4] %vm11_vm0, %v240_v38  }
  0xaa   :  { %249 = vst.msk [vmem:[#allocation0 + $0xe0] sm:$0x8] %vm11_vm0, %v240_v38   ;;  %255 = vst.msk [vmem:[#allocation0 + $0x28] sm:$0x1] %vm11_vm0, %v252_v39  }
  0xab   :  { %257 = vst.msk [vmem:[#allocation0 + $0xa7] sm:$0x2] %vm11_vm0, %v252_v39   ;;  %259 = vst.msk [vmem:[#allocation0 + $0x66] sm:$0x4] %vm11_vm0, %v252_v39  }
  0xac   :  { %261 = vst.msk [vmem:[#allocation0 + $0xe5] sm:$0x8] %vm11_vm0, %v252_v39   ;;  %626 = vst [vmem:[%s983_s1 + $0x2c] sm:$0xf] %v460_v40  ;;  %v312_v49 = vpop.permute.xlu0 %311   ;;  %v324_v50 = vpop.permute.xlu1 %323  }
  0xad   :  { %267 = vst.msk [vmem:[#allocation0 + $0x29] sm:$0x1] %vm11_vm0, %v264_v41   ;;  %269 = vst.msk [vmem:[#allocation0 + $0xa8] sm:$0x2] %vm11_vm0, %v264_v41  }
  0xae   :  { %271 = vst.msk [vmem:[#allocation0 + $0x67] sm:$0x4] %vm11_vm0, %v264_v41   ;;  %273 = vst.msk [vmem:[#allocation0 + $0xe6] sm:$0x8] %vm11_vm0, %v264_v41  }
  0xaf   :  { %279 = vst.msk [vmem:[#allocation0 + $0x2a] sm:$0x1] %vm11_vm0, %v276_v42   ;;  %281 = vst.msk [vmem:[#allocation0 + $0xa9] sm:$0x2] %vm11_vm0, %v276_v42   ;;  %v418_v44 = vld [vmem:[#allocation0 + $0x20] sm:$0xf] }
  0xb0   :  { %283 = vst.msk [vmem:[#allocation0 + $0x68] sm:$0x4] %vm11_vm0, %v276_v42   ;;  %285 = vst.msk [vmem:[#allocation0 + $0xe7] sm:$0x8] %vm11_vm0, %v276_v42   ;;  %v466_v45 = vld [vmem:[#allocation0 + $0x60] sm:$0xf]  ;;  %v336_v54 = vpop.permute.xlu0 %335   ;;  %v348_v55 = vpop.permute.xlu1 %347  }
  0xb1   :  { %v562_v43 = vld [vmem:[#allocation0 + $0xe0] sm:$0xf]  ;;  %619 = vst [vmem:[%s983_s1 + $0x10] sm:$0xf] %v418_v44  ;;  %627 = vst [vmem:[%s983_s1 + $0x30] sm:$0xf] %v466_v45 }
  0xb2   :  { %643 = vst [vmem:[%s983_s1 + $0x70] sm:$0xf] %v562_v43  ;;  %v514_v48 = vld [vmem:[#allocation0 + $0xa0] sm:$0xf]  ;;  %291 = vst.msk [vmem:[#allocation0 + $0x2b] sm:$0x1] %vm11_vm0, %v288_v46  }
  0xb3   :  { %293 = vst.msk [vmem:[#allocation0 + $0xaa] sm:$0x2] %vm11_vm0, %v288_v46   ;;  %295 = vst.msk [vmem:[#allocation0 + $0x69] sm:$0x4] %vm11_vm0, %v288_v46  }
  0xb4   :  { %297 = vst.msk [vmem:[#allocation0 + $0xe8] sm:$0x8] %vm11_vm0, %v288_v46   ;;  %303 = vst.msk [vmem:[#allocation0 + $0x30] sm:$0x1] %vm11_vm0, %v300_v47   ;;  %v360_v57 = vpop.permute.xlu0 %359   ;;  %v372_v58 = vpop.permute.xlu1 %371  }
  0xb5   :  { %305 = vst.msk [vmem:[#allocation0 + $0xaf] sm:$0x2] %vm11_vm0, %v300_v47   ;;  %307 = vst.msk [vmem:[#allocation0 + $0x6e] sm:$0x4] %vm11_vm0, %v300_v47  }
  0xb6   :  { %309 = vst.msk [vmem:[#allocation0 + $0xed] sm:$0x8] %vm11_vm0, %v300_v47   ;;  %635 = vst [vmem:[%s983_s1 + $0x50] sm:$0xf] %v514_v48 }
  0xb7   :  { %315 = vst.msk [vmem:[#allocation0 + $0x31] sm:$0x1] %vm11_vm0, %v312_v49   ;;  %317 = vst.msk [vmem:[#allocation0 + $0xb0] sm:$0x2] %vm11_vm0, %v312_v49  }
  0xb8   :  { %319 = vst.msk [vmem:[#allocation0 + $0x6f] sm:$0x4] %vm11_vm0, %v312_v49   ;;  %321 = vst.msk [vmem:[#allocation0 + $0xee] sm:$0x8] %vm11_vm0, %v312_v49   ;;  %v384_v62 = vpop.permute.xlu0 %383  }
  0xb9   :  { %327 = vst.msk [vmem:[#allocation0 + $0x32] sm:$0x1] %vm11_vm0, %v324_v50   ;;  %329 = vst.msk [vmem:[#allocation0 + $0xb1] sm:$0x2] %vm11_vm0, %v324_v50   ;;  %v424_v53 = vld [vmem:[#allocation0 + $0x28] sm:$0xf] }
  0xba   :  { %331 = vst.msk [vmem:[#allocation0 + $0x70] sm:$0x4] %vm11_vm0, %v324_v50   ;;  %333 = vst.msk [vmem:[#allocation0 + $0xef] sm:$0x8] %vm11_vm0, %v324_v50   ;;  %v472_v51 = vld [vmem:[#allocation0 + $0x68] sm:$0xf] }
  0xbb   :  { %v520_v52 = vld [vmem:[#allocation0 + $0xa8] sm:$0xf]  ;;  %628 = vst [vmem:[%s983_s1 + $0x34] sm:$0xf] %v472_v51  ;;  %620 = vst [vmem:[%s983_s1 + $0x14] sm:$0xf] %v424_v53 }
  0xbc   :  { %636 = vst [vmem:[%s983_s1 + $0x54] sm:$0xf] %v520_v52  ;;  %v568_v56 = vld [vmem:[#allocation0 + $0xe8] sm:$0xf]  ;;  %339 = vst.msk [vmem:[#allocation0 + $0x33] sm:$0x1] %vm11_vm0, %v336_v54  }
  0xbd   :  { %341 = vst.msk [vmem:[#allocation0 + $0xb2] sm:$0x2] %vm11_vm0, %v336_v54   ;;  %343 = vst.msk [vmem:[#allocation0 + $0x71] sm:$0x4] %vm11_vm0, %v336_v54  }
  0xbe   :  { %345 = vst.msk [vmem:[#allocation0 + $0xf0] sm:$0x8] %vm11_vm0, %v336_v54   ;;  %351 = vst.msk [vmem:[#allocation0 + $0x38] sm:$0x1] %vm11_vm0, %v348_v55  }
  0xbf   :  { %353 = vst.msk [vmem:[#allocation0 + $0xb7] sm:$0x2] %vm11_vm0, %v348_v55   ;;  %355 = vst.msk [vmem:[#allocation0 + $0x76] sm:$0x4] %vm11_vm0, %v348_v55  }
  0xc0   :  { %357 = vst.msk [vmem:[#allocation0 + $0xf5] sm:$0x8] %vm11_vm0, %v348_v55   ;;  %644 = vst [vmem:[%s983_s1 + $0x74] sm:$0xf] %v568_v56 }
  0xc1   :  { %363 = vst.msk [vmem:[#allocation0 + $0x39] sm:$0x1] %vm11_vm0, %v360_v57   ;;  %365 = vst.msk [vmem:[#allocation0 + $0xb8] sm:$0x2] %vm11_vm0, %v360_v57  }
  0xc2   :  { %367 = vst.msk [vmem:[#allocation0 + $0x77] sm:$0x4] %vm11_vm0, %v360_v57   ;;  %369 = vst.msk [vmem:[#allocation0 + $0xf6] sm:$0x8] %vm11_vm0, %v360_v57  }
  0xc3   :  { %375 = vst.msk [vmem:[#allocation0 + $0x3a] sm:$0x1] %vm11_vm0, %v372_v58   ;;  %377 = vst.msk [vmem:[#allocation0 + $0xb9] sm:$0x2] %vm11_vm0, %v372_v58   ;;  %v430_v59 = vld [vmem:[#allocation0 + $0x30] sm:$0xf] }
  0xc4   :  { %379 = vst.msk [vmem:[#allocation0 + $0x78] sm:$0x4] %vm11_vm0, %v372_v58   ;;  %381 = vst.msk [vmem:[#allocation0 + $0xf7] sm:$0x8] %vm11_vm0, %v372_v58   ;;  %v478_v60 = vld [vmem:[#allocation0 + $0x70] sm:$0xf] }
  0xc5   :  { %v526_v61 = vld [vmem:[#allocation0 + $0xb0] sm:$0xf]  ;;  %621 = vst [vmem:[%s983_s1 + $0x18] sm:$0xf] %v430_v59  ;;  %629 = vst [vmem:[%s983_s1 + $0x38] sm:$0xf] %v478_v60 }
  0xc6   :  { %v574_v63 = vld [vmem:[#allocation0 + $0xf0] sm:$0xf]  ;;  %637 = vst [vmem:[%s983_s1 + $0x58] sm:$0xf] %v526_v61  ;;  %387 = vst.msk [vmem:[#allocation0 + $0x3b] sm:$0x1] %vm11_vm0, %v384_v62  }
  0xc7   :  { %389 = vst.msk [vmem:[#allocation0 + $0xba] sm:$0x2] %vm11_vm0, %v384_v62   ;;  %391 = vst.msk [vmem:[#allocation0 + $0x79] sm:$0x4] %vm11_vm0, %v384_v62  }
  0xc8   :  { %393 = vst.msk [vmem:[#allocation0 + $0xf8] sm:$0x8] %vm11_vm0, %v384_v62   ;;  %645 = vst [vmem:[%s983_s1 + $0x78] sm:$0xf] %v574_v63 }
  0xcd   :  { %v436_v0 = vld [vmem:[#allocation0 + $0x38] sm:$0xf] }
  0xce   :  { %v484_v1 = vld [vmem:[#allocation0 + $0x78] sm:$0xf]  ;;  %622 = vst [vmem:[%s983_s1 + $0x1c] sm:$0xf] %v436_v0 }
  0xcf   :  { %v532_v2 = vld [vmem:[#allocation0 + $0xb8] sm:$0xf]  ;;  %630 = vst [vmem:[%s983_s1 + $0x3c] sm:$0xf] %v484_v1 }
  0xd0   :  { %638 = vst [vmem:[%s983_s1 + $0x5c] sm:$0xf] %v532_v2  ;;  %v580_v3 = vld [vmem:[#allocation0 + $0xf8] sm:$0xf] }
  0xd1   :  { %646 = vst [vmem:[%s983_s1 + $0x7c] sm:$0xf] %v580_v3 }

// kernel: value_head_forward.1
= control target key start
LH: loop header
LB: loop body
LE: loop exit
PB: predicated region body
PF: predicated region fallthrough
CT: control target
= control target key end

     0   :  { %s15625_s0 = inlined_call_operand.vmem [shape: f32[8,256], index: 0, kind: input, shape index: {}]   ;;  %s15626_s1 = inlined_call_operand.hbm [shape: f32[2,1,256], index: 1, kind: input, shape index: {}]   ;;  %s15627_s2 = inlined_call_operand.hbm [shape: f32[2,1,256], index: 2, kind: input, shape index: {}]   ;;  %s15628_s3 = inlined_call_operand.hbm [shape: bf16[2,256,256], index: 3, kind: input, shape index: {}]   ;;  %s15629_s4 = inlined_call_operand.hbm [shape: f32[2,1,256], index: 4, kind: input, shape index: {}]   ;;  %s15630_s5 = inlined_call_operand.hbm [shape: f32[2,1,256], index: 5, kind: input, shape index: {}]   ;;  %s15631_s6 = inlined_call_operand.hbm [shape: f32[2,1,256], index: 6, kind: input, shape index: {}]   ;;  %s15632_s7 = inlined_call_operand.hbm [shape: bf16[2,256,256], index: 7, kind: input, shape index: {}]   ;;  %s15633_s8 = inlined_call_operand.hbm [shape: f32[2,1,256], index: 8, kind: input, shape index: {}]   ;;  %s15634_s9 = inlined_call_operand.vmem [shape: bf16[256,576], index: 9, kind: input, shape index: {}]   ;;  %s15635_s10 = inlined_call_operand.hbm [shape: f32[1,576], index: 10, kind: input, shape index: {}]   ;;  %s15636_s11 = inlined_call_operand.hbm [shape: f32[2,1,576], index: 11, kind: input, shape index: {}]   ;;  %s15637_s12 = inlined_call_operand.hbm [shape: f32[2,1,576], index: 12, kind: input, shape index: {}]   ;;  %s15638_s13 = inlined_call_operand.hbm [shape: bf16[2,576,576], index: 13, kind: input, shape index: {}]   ;;  %s15639_s14 = inlined_call_operand.hbm [shape: f32[2,1,576], index: 14, kind: input, shape index: {}]   ;;  %s15640_s15 = inlined_call_operand.hbm [shape: f32[2,1,576], index: 15, kind: input, shape index: {}]   ;;  %s15641_s16 = inlined_call_operand.hbm [shape: f32[2,1,576], index: 16, kind: input, shape index: {}]   ;;  %s15642_s17 = inlined_call_operand.hbm [shape: bf16[2,576,576], index: 17, kind: input, shape index: {}]   ;;  %s15643_s18 = inlined_call_operand.hbm [shape: f32[2,1,576], index: 18, kind: input, shape index: {}]   ;;  %s15644_s19 = inlined_call_operand.hbm [shape: bf16[576,576], index: 19, kind: input, shape index: {}]   ;;  %s15645_s20 = inlined_call_operand.hbm [shape: f32[1,576], index: 20, kind: input, shape index: {}]   ;;  %s15646_s21 = inlined_call_operand.hbm [shape: bf16[576,128], index: 21, kind: input, shape index: {}]   ;;  %s15647_s22 = inlined_call_operand.hbm [shape: f32[1,128], index: 22, kind: input, shape index: {}]   ;;  %s15648_s23 = inlined_call_operand.vmem [shape: f32[8,128], index: 23, kind: output, shape index: {}]  }
   0x1   :  { %15659 = sst [smem:[#allocation45_spill]] %s15625_s0 }
   0x2   :  { %15660 = sst [smem:[#allocation46_spill]] %s15626_s1 }
   0x3   :  { %15661 = sst [smem:[#allocation47_spill]] %s15627_s2 }
   0x4   :  { %15662 = sst [smem:[#allocation48_spill]] %s15628_s3 }
   0x5   :  { %15663 = sst [smem:[#allocation49_spill]] %s15629_s4 }
   0x6   :  { %15664 = sst [smem:[#allocation50_spill]] %s15630_s5 }
   0x7   :  { %15665 = sst [smem:[#allocation51_spill]] %s15631_s6 }
   0x8   :  { %15666 = sst [smem:[#allocation52_spill]] %s15632_s7 }
   0x9   :  { %15667 = sst [smem:[#allocation53_spill]] %s15634_s9 }
   0xa   :  { %15668 = sst [smem:[#allocation54_spill]] %s15647_s22 }
   0xb   :  { %15669 = sst [smem:[#allocation55_spill]] %s15648_s23 }
   0xc   :  { %28 = vsyncpa [#allocation3], 0 }
   0xd   :  { %29 = vsyncpa [#allocation5], 0 }
   0xe   :  { %30 = vsyncpa [#allocation8], 0 }
   0xf   :  { %31 = vsyncpa [#allocation11], 0 }
  0x10   :  { %32 = vsyncpa [#allocation14], 0 }
  0x11   :  { %33 = vsyncpa [#allocation17], 0 }
  0x12   :  { %34 = vsyncpa [#allocation20], 0 }
  0x13   :  { %35 = vsyncpa [#allocation23], 0 }
  0x14   :  { %36 = vsyncpa [#allocation26], 0 }
  0x15   :  { %37 = vsyncpa [#allocation29], 0 }
  0x16   :  { %38 = vsyncpa [#allocation32], 0  ;;  %s14374_s4 = smov [#allocation4]   ;;  %s14375_s24 = smov [#allocation7]  }
  0x17   :  { %s58_s30 = sshll.u32 %s14374_s4, 4  ;;  %s82_s25 = sshll.u32 %s14375_s24, 4  ;;  %s59_s30 = int_to_ptr.vmem [resolvable:$true] %s58_s30  ;;  %s14528_s25 = int_to_ptr.vmem [resolvable:$true] %s82_s25 }
  0x18   :  { %s15670_s26 = sld [smem:[#allocation47_spill]] }
  0x1e   :  { %s13890_s2 = scalar_lea.hbm %s15670_s26, 64 }
  0x1f   :  { %p13891_p0 = scmp.ne.s32.totalorder %s15670_s26, %s13890_s2  ;;  %p13894_p1 = scmp.lt.u32.totalorder %s13890_s2, %s15670_s26 }
  0x21   :  { %p13896_p2 = pnand %p13894_p1, %p13891_p0 }
  0x23   :  { %13899 = shalt.err (!%p13896_p2)
}
  0x24   :  { %s13900_s29 = scalar_lea.vmem %s59_s30, 64  ;;  %p13905_p4 = scmp.lt.s32.totalorder %s59_s30, %s59_s30 }
  0x25   :  { %p13901_p3 = scmp.ne.s32.totalorder %s59_s30, %s13900_s29  ;;  %p13906_p5 = scmp.lt.s32.totalorder %s13900_s29, %s13900_s29 }
  0x27   :  { %p13907_p6 = por %p13906_p5, %p13905_p4 }
  0x29   :  { %p13908_p7 = pnand %p13907_p6, %p13901_p3 }
  0x2b   :  { %13911 = shalt.err (!%p13908_p7)
}
  0x2c   :  { %s14376_s3 = smov 32   ;;  %s14377_s0 = smov 2  }
  0x2d   :  { %64 = dma.hbm_to_vmem [thread:$0]  %s15670_s26, 64, %s59_s30, [#allocation5], %s14376_s3, %s14376_s3, %s14377_s0  }
  0x2e   :  { %s15671_s2 = sld [smem:[#allocation49_spill]] }
  0x34   :  { %s13912_s6 = scalar_lea.hbm %s15671_s2, 64 }
  0x35   :  { %p13913_p8 = scmp.ne.s32.totalorder %s15671_s2, %s13912_s6  ;;  %p13916_p9 = scmp.lt.u32.totalorder %s13912_s6, %s15671_s2 }
  0x37   :  { %p13918_p10 = pnand %p13916_p9, %p13913_p8 }
  0x39   :  { %13921 = shalt.err (!%p13918_p10)
}
  0x3a   :  { %s13922_s23 = scalar_lea.vmem %s14528_s25, 64  ;;  %p13927_p12 = scmp.lt.s32.totalorder %s14528_s25, %s14528_s25 }
  0x3b   :  { %p13923_p11 = scmp.ne.s32.totalorder %s14528_s25, %s13922_s23  ;;  %p13928_p13 = scmp.lt.s32.totalorder %s13922_s23, %s13922_s23 }
  0x3d   :  { %p13929_p0 = por %p13928_p13, %p13927_p12 }
  0x3f   :  { %p13930_p1 = pnand %p13929_p0, %p13923_p11 }
  0x41   :  { %13933 = shalt.err (!%p13930_p1)
}
  0x42   :  { %88 = dma.hbm_to_vmem [thread:$0]  %s15671_s2, 64, %s14528_s25, [#allocation8], %s14376_s3, %s14376_s3, %s14377_s0  }
  0x43   :  { %s14378_s4 = smov [#allocation10]   ;;  %s14379_s5 = smov [#allocation13]  }
  0x44   :  { %s106_s24 = sshll.u32 %s14378_s4, 4  ;;  %s130_s1 = sshll.u32 %s14379_s5, 4  ;;  %s107_s24 = int_to_ptr.vmem [resolvable:$true] %s106_s24  ;;  %s14565_s1 = int_to_ptr.vmem [resolvable:$true] %s130_s1 }
  0x45   :  { %s15672_s27 = sld [smem:[#allocation51_spill]] }
  0x4b   :  { %s13934_s7 = scalar_lea.hbm %s15672_s27, 64 }
  0x4c   :  { %p13935_p2 = scmp.ne.s32.totalorder %s15672_s27, %s13934_s7  ;;  %p13938_p3 = scmp.lt.u32.totalorder %s13934_s7, %s15672_s27 }
  0x4e   :  { %p13940_p4 = pnand %p13938_p3, %p13935_p2 }
  0x50   :  { %13943 = shalt.err (!%p13940_p4)
}
  0x51   :  { %s13944_s25 = scalar_lea.vmem %s107_s24, 64  ;;  %p13949_p6 = scmp.lt.s32.totalorder %s107_s24, %s107_s24 }
  0x52   :  { %p13945_p5 = scmp.ne.s32.totalorder %s107_s24, %s13944_s25  ;;  %p13950_p7 = scmp.lt.s32.totalorder %s13944_s25, %s13944_s25 }
  0x54   :  { %p13951_p8 = por %p13950_p7, %p13949_p6 }
  0x56   :  { %p13952_p9 = pnand %p13951_p8, %p13945_p5 }
  0x58   :  { %13955 = shalt.err (!%p13952_p9)
}
  0x59   :  { %112 = dma.hbm_to_vmem [thread:$0]  %s15672_s27, 64, %s107_s24, [#allocation11], %s14376_s3, %s14376_s3, %s14377_s0  }
  0x5a   :  { %s13956_s9 = scalar_lea.hbm %s15633_s8, 64 }
  0x5b   :  { %p13957_p10 = scmp.ne.s32.totalorder %s15633_s8, %s13956_s9  ;;  %p13960_p11 = scmp.lt.u32.totalorder %s13956_s9, %s15633_s8 }
  0x5d   :  { %p13962_p12 = pnand %p13960_p11, %p13957_p10 }
  0x5f   :  { %13965 = shalt.err (!%p13962_p12)
}
  0x60   :  { %s13966_s7 = scalar_lea.vmem %s14565_s1, 64  ;;  %p13971_p0 = scmp.lt.s32.totalorder %s14565_s1, %s14565_s1 }
  0x61   :  { %p13967_p13 = scmp.ne.s32.totalorder %s14565_s1, %s13966_s7  ;;  %p13972_p1 = scmp.lt.s32.totalorder %s13966_s7, %s13966_s7 }
  0x63   :  { %p13973_p2 = por %p13972_p1, %p13971_p0 }
  0x65   :  { %p13974_p3 = pnand %p13973_p2, %p13967_p13 }
  0x67   :  { %13977 = shalt.err (!%p13974_p3)
}
  0x68   :  { %136 = dma.hbm_to_vmem [thread:$0]  %s15633_s8, 64, %s14565_s1, [#allocation14], %s14376_s3, %s14376_s3, %s14377_s0  }
  0x69   :  { %s14380_s28 = smov [#allocation16]   ;;  %s13978_s30 = scalar_lea.hbm %s15636_s11, 160 }
  0x6a   :  { %s154_s29 = sshll.u32 %s14380_s28, 4  ;;  %p13979_p4 = scmp.ne.s32.totalorder %s15636_s11, %s13978_s30  ;;  %s155_s29 = int_to_ptr.vmem [resolvable:$true] %s154_s29 }
  0x6b   :  { %p13982_p5 = scmp.lt.u32.totalorder %s13978_s30, %s15636_s11 }
  0x6d   :  { %p13984_p6 = pnand %p13982_p5, %p13979_p4 }
  0x6f   :  { %13987 = shalt.err (!%p13984_p6)
}
  0x70   :  { %s13988_s5 = scalar_lea.vmem %s155_s29, 160  ;;  %p13993_p8 = scmp.lt.s32.totalorder %s155_s29, %s155_s29 }
  0x71   :  { %p13989_p7 = scmp.ne.s32.totalorder %s155_s29, %s13988_s5  ;;  %p13994_p9 = scmp.lt.s32.totalorder %s13988_s5, %s13988_s5 }
  0x73   :  { %p13995_p10 = por %p13994_p9, %p13993_p8 }
  0x75   :  { %p13996_p11 = pnand %p13995_p10, %p13989_p7 }
  0x77   :  { %13999 = shalt.err (!%p13996_p11)
}
  0x78   :  { %s14381_s8 = smov 80   ;;  %s14382_s1 = smov 5  }
  0x79   :  { %160 = dma.hbm_to_vmem [thread:$0]  %s15636_s11, 160, %s155_s29, [#allocation17], %s14381_s8, %s14381_s8, %s14382_s1  }
  0x7a   :  { %s14383_s7 = smov [#allocation19]   ;;  %s14000_s25 = scalar_lea.hbm %s15638_s13, 46080 }
  0x7b   :  { %s178_s24 = sshll.u32 %s14383_s7, 4  ;;  %p14001_p12 = scmp.ne.s32.totalorder %s15638_s13, %s14000_s25  ;;  %s179_s24 = int_to_ptr.vmem [resolvable:$true] %s178_s24 }
  0x7c   :  { %p14004_p13 = scmp.lt.u32.totalorder %s14000_s25, %s15638_s13 }
  0x7e   :  { %p14006_p0 = pnand %p14004_p13, %p14001_p12 }
  0x80   :  { %14009 = shalt.err (!%p14006_p0)
}
  0x81   :  { %s14010_s9 = scalar_lea.vmem %s179_s24, 46080  ;;  %p14015_p2 = scmp.lt.s32.totalorder %s179_s24, %s179_s24 }
  0x82   :  { %p14011_p1 = scmp.ne.s32.totalorder %s179_s24, %s14010_s9  ;;  %p14016_p3 = scmp.lt.s32.totalorder %s14010_s9, %s14010_s9 }
  0x84   :  { %p14017_p4 = por %p14016_p3, %p14015_p2 }
  0x86   :  { %p14018_p5 = pnand %p14017_p4, %p14011_p1 }
  0x88   :  { %14021 = shalt.err (!%p14018_p5)
}
  0x89   :  { %s14384_s11 = smov 320   ;;  %s14385_s29 = smov 20  }
  0x8a   :  { %184 = dma.hbm_to_vmem [thread:$0]  %s15638_s13, 46080, %s179_s24, [#allocation20], %s14384_s11, %s14384_s11, %s14385_s29  }
  0x8b   :  { %s14386_s6 = smov [#allocation22]   ;;  %s14387_s7 = smov [#allocation25]  }
  0x8c   :  { %s202_s23 = sshll.u32 %s14386_s6, 4  ;;  %s226_s27 = sshll.u32 %s14387_s7, 4  ;;  %s203_s23 = int_to_ptr.vmem [resolvable:$true] %s202_s23  ;;  %s14632_s27 = int_to_ptr.vmem [resolvable:$true] %s226_s27 }
  0x8d   :  { %s14022_s2 = scalar_lea.hbm %s15640_s15, 160 }
  0x8e   :  { %p14023_p6 = scmp.ne.s32.totalorder %s15640_s15, %s14022_s2  ;;  %p14026_p7 = scmp.lt.u32.totalorder %s14022_s2, %s15640_s15 }
  0x90   :  { %p14028_p8 = pnand %p14026_p7, %p14023_p6 }
  0x92   :  { %14031 = shalt.err (!%p14028_p8)
}
  0x93   :  { %s14032_s13 = scalar_lea.vmem %s203_s23, 160  ;;  %p14037_p10 = scmp.lt.s32.totalorder %s203_s23, %s203_s23 }
  0x94   :  { %p14033_p9 = scmp.ne.s32.totalorder %s203_s23, %s14032_s13  ;;  %p14038_p11 = scmp.lt.s32.totalorder %s14032_s13, %s14032_s13 }
  0x96   :  { %p14039_p12 = por %p14038_p11, %p14037_p10 }
  0x98   :  { %p14040_p13 = pnand %p14039_p12, %p14033_p9 }
  0x9a   :  { %14043 = shalt.err (!%p14040_p13)
}
  0x9b   :  { %208 = dma.hbm_to_vmem [thread:$0]  %s15640_s15, 160, %s203_s23, [#allocation23], %s14381_s8, %s14381_s8, %s14382_s1  }
  0x9c   :  { %s14044_s7 = scalar_lea.hbm %s15642_s17, 46080 }
  0x9d   :  { %p14045_p0 = scmp.ne.s32.totalorder %s15642_s17, %s14044_s7  ;;  %p14048_p1 = scmp.lt.u32.totalorder %s14044_s7, %s15642_s17 }
  0x9f   :  { %p14050_p2 = pnand %p14048_p1, %p14045_p0 }
  0xa1   :  { %14053 = shalt.err (!%p14050_p2)
}
  0xa2   :  { %s14054_s26 = scalar_lea.vmem %s14632_s27, 46080  ;;  %p14059_p4 = scmp.lt.s32.totalorder %s14632_s27, %s14632_s27 }
  0xa3   :  { %p14055_p3 = scmp.ne.s32.totalorder %s14632_s27, %s14054_s26  ;;  %p14060_p5 = scmp.lt.s32.totalorder %s14054_s26, %s14054_s26 }
  0xa5   :  { %p14061_p6 = por %p14060_p5, %p14059_p4 }
  0xa7   :  { %p14062_p7 = pnand %p14061_p6, %p14055_p3 }
  0xa9   :  { %14065 = shalt.err (!%p14062_p7)
}
  0xaa   :  { %232 = dma.hbm_to_vmem [thread:$0]  %s15642_s17, 46080, %s14632_s27, [#allocation26], %s14384_s11, %s14384_s11, %s14385_s29  }
  0xab   :  { %s14388_s4 = smov [#allocation28]   ;;  %s14389_s13 = smov [#allocation31]  }
  0xac   :  { %s250_s9 = sshll.u32 %s14388_s4, 4  ;;  %s272_s24 = sshll.u32 %s14389_s13, 4  ;;  %s251_s9 = int_to_ptr.vmem [resolvable:$true] %s250_s9  ;;  %s14669_s24 = int_to_ptr.vmem [resolvable:$true] %s272_s24 }
  0xad   :  { %s14066_s6 = scalar_lea.hbm %s15644_s19, 23040 }
  0xae   :  { %p14067_p8 = scmp.ne.s32.totalorder %s15644_s19, %s14066_s6  ;;  %p14070_p9 = scmp.lt.u32.totalorder %s14066_s6, %s15644_s19 }
  0xb0   :  { %p14072_p10 = pnand %p14070_p9, %p14067_p8 }
  0xb2   :  { %14075 = shalt.err (!%p14072_p10)
}
  0xb3   :  { %s14076_s17 = scalar_lea.vmem %s251_s9, 23040  ;;  %p14081_p12 = scmp.lt.s32.totalorder %s251_s9, %s251_s9 }
  0xb4   :  { %p14077_p11 = scmp.ne.s32.totalorder %s251_s9, %s14076_s17  ;;  %p14082_p13 = scmp.lt.s32.totalorder %s14076_s17, %s14076_s17 }
  0xb6   :  { %p14083_p0 = por %p14082_p13, %p14081_p12 }
  0xb8   :  { %p14084_p1 = pnand %p14083_p0, %p14077_p11 }
  0xba   :  { %14087 = shalt.err (!%p14084_p1)
}
  0xbb   :  { %256 = dma.hbm_to_vmem [thread:$0]  %s15644_s19, 23040, %s251_s9, [#allocation29], %s14384_s11, %s14384_s11, %s14385_s29  }
  0xbc   :  { %s14088_s23 = scalar_lea.hbm %s15646_s21, 4608 }
  0xbd   :  { %p14089_p2 = scmp.ne.s32.totalorder %s15646_s21, %s14088_s23  ;;  %p14092_p3 = scmp.lt.u32.totalorder %s14088_s23, %s15646_s21 }
  0xbf   :  { %p14094_p4 = pnand %p14092_p3, %p14089_p2 }
  0xc1   :  { %14097 = shalt.err (!%p14094_p4)
}
  0xc2   :  { %s14098_s6 = scalar_lea.vmem %s14669_s24, 4608  ;;  %p14103_p6 = scmp.lt.s32.totalorder %s14669_s24, %s14669_s24 }
  0xc3   :  { %p14099_p5 = scmp.ne.s32.totalorder %s14669_s24, %s14098_s6  ;;  %p14104_p7 = scmp.lt.s32.totalorder %s14098_s6, %s14098_s6 }
  0xc5   :  { %p14105_p8 = por %p14104_p7, %p14103_p6 }
  0xc7   :  { %p14106_p9 = pnand %p14105_p8, %p14099_p5 }
  0xc9   :  { %14109 = shalt.err (!%p14106_p9)
}
  0xca   :  { %s14390_s19 = smov 64   ;;  %s14391_s11 = smov 4  }
  0xcb   :  { %278 = dma.hbm_to_vmem [thread:$0]  %s15646_s21, 4608, %s14669_s24, [#allocation32], %s14390_s19, %s14390_s19, %s14391_s11  }
  0xcc   :  { %s14392_s7 = smov [#allocation2]   ;;  %s14393_s25 = smov [#allocation6]  }
  0xcd   :  { %s46_s28 = sshll.u32 %s14392_s7, 4  ;;  %s70_s2 = sshll.u32 %s14393_s25, 4  ;;  %s47_s28 = int_to_ptr.vmem [resolvable:$true] %s46_s28  ;;  %s14703_s2 = int_to_ptr.vmem [resolvable:$true] %s70_s2 }
  0xce   :  { %s15673_s30 = sld [smem:[#allocation46_spill]] }
  0xd4   :  { %s14110_s26 = scalar_lea.hbm %s15673_s30, 64 }
  0xd5   :  { %p14111_p10 = scmp.ne.s32.totalorder %s15673_s30, %s14110_s26  ;;  %p14114_p11 = scmp.lt.u32.totalorder %s14110_s26, %s15673_s30 }
  0xd7   :  { %p14116_p12 = pnand %p14114_p11, %p14111_p10 }
  0xd9   :  { %14119 = shalt.err (!%p14116_p12)
}
  0xda   :  { %s14120_s21 = scalar_lea.vmem %s47_s28, 64  ;;  %p14125_p0 = scmp.lt.s32.totalorder %s47_s28, %s47_s28 }
  0xdb   :  { %p14121_p13 = scmp.ne.s32.totalorder %s47_s28, %s14120_s21  ;;  %p14126_p1 = scmp.lt.s32.totalorder %s14120_s21, %s14120_s21 }
  0xdd   :  { %p14127_p2 = por %p14126_p1, %p14125_p0 }
  0xdf   :  { %p14128_p3 = pnand %p14127_p2, %p14121_p13 }
  0xe1   :  { %14131 = shalt.err (!%p14128_p3)
}
  0xe2   :  { %52 = dma.hbm_to_vmem [thread:$0]  %s15673_s30, 64, %s47_s28, [#allocation3], %s14376_s3, %s14376_s3, %s14377_s0  }
  0xe3   :  { %s15674_s19 = sld [smem:[#allocation48_spill]] }
  0xe9   :  { %s14132_s11 = scalar_lea.hbm %s15674_s19, 8192 }
  0xea   :  { %p14133_p4 = scmp.ne.s32.totalorder %s15674_s19, %s14132_s11  ;;  %p14136_p5 = scmp.lt.u32.totalorder %s14132_s11, %s15674_s19 }
  0xec   :  { %p14138_p6 = pnand %p14136_p5, %p14133_p4 }
  0xee   :  { %14141 = shalt.err (!%p14138_p6)
}
  0xef   :  { %s14142_s17 = scalar_lea.vmem %s14703_s2, 8192  ;;  %p14147_p8 = scmp.lt.s32.totalorder %s14703_s2, %s14703_s2 }
  0xf0   :  { %p14143_p7 = scmp.ne.s32.totalorder %s14703_s2, %s14142_s17  ;;  %p14148_p9 = scmp.lt.s32.totalorder %s14142_s17, %s14142_s17 }
  0xf2   :  { %p14149_p10 = por %p14148_p9, %p14147_p8 }
  0xf4   :  { %p14150_p11 = pnand %p14149_p10, %p14143_p7 }
  0xf6   :  { %14153 = shalt.err (!%p14150_p11)
}
  0xf7   :  { %s14394_s28 = smov 128   ;;  %s14395_s27 = smov 8  }
  0xf8   :  { %76 = dma.hbm_to_vmem [thread:$0]  %s15674_s19, 8192, %s14703_s2, [#allocation5], %s14394_s28, %s14394_s28, %s14395_s27  }
  0xf9   :  { %s14396_s15 = smov [#allocation9]   ;;  %s14397_s4 = smov [#allocation12]  }
  0xfa   :  { %s94_s23 = sshll.u32 %s14396_s15, 4  ;;  %s118_s13 = sshll.u32 %s14397_s4, 4  ;;  %s95_s23 = int_to_ptr.vmem [resolvable:$true] %s94_s23  ;;  %s14740_s13 = int_to_ptr.vmem [resolvable:$true] %s118_s13 }
  0xfb   :  { %s15675_s22 = sld [smem:[#allocation50_spill]] }
 0x101   :  { %s14154_s5 = scalar_lea.hbm %s15675_s22, 64 }
 0x102   :  { %p14155_p12 = scmp.ne.s32.totalorder %s15675_s22, %s14154_s5  ;;  %p14158_p13 = scmp.lt.u32.totalorder %s14154_s5, %s15675_s22 }
 0x104   :  { %p14160_p0 = pnand %p14158_p13, %p14155_p12 }
 0x106   :  { %14163 = shalt.err (!%p14160_p0)
}
 0x107   :  { %s14164_s2 = scalar_lea.vmem %s95_s23, 64  ;;  %p14169_p2 = scmp.lt.s32.totalorder %s95_s23, %s95_s23 }
 0x108   :  { %p14165_p1 = scmp.ne.s32.totalorder %s95_s23, %s14164_s2  ;;  %p14170_p3 = scmp.lt.s32.totalorder %s14164_s2, %s14164_s2 }
 0x10a   :  { %p14171_p4 = por %p14170_p3, %p14169_p2 }
 0x10c   :  { %p14172_p5 = pnand %p14171_p4, %p14165_p1 }
 0x10e   :  { %14175 = shalt.err (!%p14172_p5)
}
 0x10f   :  { %100 = dma.hbm_to_vmem [thread:$0]  %s15675_s22, 64, %s95_s23, [#allocation8], %s14376_s3, %s14376_s3, %s14377_s0  }
 0x110   :  { %s15676_s30 = sld [smem:[#allocation52_spill]] }
 0x116   :  { %s14176_s26 = scalar_lea.hbm %s15676_s30, 8192 }
 0x117   :  { %p14177_p6 = scmp.ne.s32.totalorder %s15676_s30, %s14176_s26  ;;  %p14180_p7 = scmp.lt.u32.totalorder %s14176_s26, %s15676_s30 }
 0x119   :  { %p14182_p8 = pnand %p14180_p7, %p14177_p6 }
 0x11b   :  { %14185 = shalt.err (!%p14182_p8)
}
 0x11c   :  { %s14186_s5 = scalar_lea.vmem %s14740_s13, 8192  ;;  %p14191_p10 = scmp.lt.s32.totalorder %s14740_s13, %s14740_s13 }
 0x11d   :  { %p14187_p9 = scmp.ne.s32.totalorder %s14740_s13, %s14186_s5  ;;  %p14192_p11 = scmp.lt.s32.totalorder %s14186_s5, %s14186_s5 }
 0x11f   :  { %p14193_p12 = por %p14192_p11, %p14191_p10 }
 0x121   :  { %p14194_p13 = pnand %p14193_p12, %p14187_p9 }
 0x123   :  { %14197 = shalt.err (!%p14194_p13)
}
 0x124   :  { %124 = dma.hbm_to_vmem [thread:$0]  %s15676_s30, 8192, %s14740_s13, [#allocation11], %s14394_s28, %s14394_s28, %s14395_s27  }
 0x125   :  { %s14398_s23 = smov [#allocation15]   ;;  %s14399_s6 = smov [#allocation18]  }
 0x126   :  { %s145_s22 = sshll.u32 %s14398_s23, 4  ;;  %s166_s11 = sshll.u32 %s14399_s6, 4  ;;  %s146_s22 = int_to_ptr.vmem [resolvable:$true] %s145_s22  ;;  %s14777_s11 = int_to_ptr.vmem [resolvable:$true] %s166_s11 }
 0x127   :  { %s14198_s2 = scalar_lea.hbm %s15635_s10, 80 }
 0x128   :  { %p14199_p0 = scmp.ne.s32.totalorder %s15635_s10, %s14198_s2  ;;  %p14202_p1 = scmp.lt.u32.totalorder %s14198_s2, %s15635_s10 }
 0x12a   :  { %p14204_p2 = pnand %p14202_p1, %p14199_p0 }
 0x12c   :  { %14207 = shalt.err (!%p14204_p2)
}
 0x12d   :  { %s14208_s28 = scalar_lea.vmem %s146_s22, 80  ;;  %s14212_s27 = scalar_lea.vmem %s146_s22, 96 }
 0x12e   :  { %p14209_p3 = scmp.ne.s32.totalorder %s146_s22, %s14208_s28  ;;  %p14213_p4 = scmp.lt.s32.totalorder %s146_s22, %s146_s22 }
 0x12f   :  { %p14214_p5 = scmp.lt.s32.totalorder %s14212_s27, %s14208_s28 }
 0x131   :  { %p14215_p6 = por %p14214_p5, %p14213_p4 }
 0x133   :  { %p14216_p7 = pnand %p14215_p6, %p14209_p3 }
 0x135   :  { %14219 = shalt.err (!%p14216_p7)
}
 0x136   :  { %148 = dma.hbm_to_vmem [thread:$0]  %s15635_s10, 80, %s146_s22, [#allocation14]  }
 0x137   :  { %s14220_s4 = scalar_lea.hbm %s15637_s12, 160 }
 0x138   :  { %p14221_p8 = scmp.ne.s32.totalorder %s15637_s12, %s14220_s4  ;;  %p14224_p9 = scmp.lt.u32.totalorder %s14220_s4, %s15637_s12 }
 0x13a   :  { %p14226_p10 = pnand %p14224_p9, %p14221_p8 }
 0x13c   :  { %14229 = shalt.err (!%p14226_p10)
}
 0x13d   :  { %s14230_s0 = scalar_lea.vmem %s14777_s11, 160  ;;  %p14235_p12 = scmp.lt.s32.totalorder %s14777_s11, %s14777_s11 }
 0x13e   :  { %p14231_p11 = scmp.ne.s32.totalorder %s14777_s11, %s14230_s0  ;;  %p14236_p13 = scmp.lt.s32.totalorder %s14230_s0, %s14230_s0 }
 0x140   :  { %p14237_p0 = por %p14236_p13, %p14235_p12 }
 0x142   :  { %p14238_p1 = pnand %p14237_p0, %p14231_p11 }
 0x144   :  { %14241 = shalt.err (!%p14238_p1)
}
 0x145   :  { %172 = dma.hbm_to_vmem [thread:$0]  %s15637_s12, 160, %s14777_s11, [#allocation17], %s14381_s8, %s14381_s8, %s14382_s1  }
 0x146   :  { %s14400_s22 = smov [#allocation21]   ;;  %s14401_s29 = smov [#allocation24]  }
 0x147   :  { %s190_s6 = sshll.u32 %s14400_s22, 4  ;;  %s214_s9 = sshll.u32 %s14401_s29, 4  ;;  %s191_s6 = int_to_ptr.vmem [resolvable:$true] %s190_s6  ;;  %s14811_s9 = int_to_ptr.vmem [resolvable:$true] %s214_s9 }
 0x148   :  { %s14242_s7 = scalar_lea.hbm %s15639_s14, 160 }
 0x149   :  { %p14243_p2 = scmp.ne.s32.totalorder %s15639_s14, %s14242_s7  ;;  %p14246_p3 = scmp.lt.u32.totalorder %s14242_s7, %s15639_s14 }
 0x14b   :  { %p14248_p4 = pnand %p14246_p3, %p14243_p2 }
 0x14d   :  { %14251 = shalt.err (!%p14248_p4)
}
 0x14e   :  { %s14252_s12 = scalar_lea.vmem %s191_s6, 160  ;;  %p14257_p6 = scmp.lt.s32.totalorder %s191_s6, %s191_s6 }
 0x14f   :  { %p14253_p5 = scmp.ne.s32.totalorder %s191_s6, %s14252_s12  ;;  %p14258_p7 = scmp.lt.s32.totalorder %s14252_s12, %s14252_s12 }
 0x151   :  { %p14259_p8 = por %p14258_p7, %p14257_p6 }
 0x153   :  { %p14260_p9 = pnand %p14259_p8, %p14253_p5 }
 0x155   :  { %14263 = shalt.err (!%p14260_p9)
}
 0x156   :  { %196 = dma.hbm_to_vmem [thread:$0]  %s15639_s14, 160, %s191_s6, [#allocation20], %s14381_s8, %s14381_s8, %s14382_s1  }
 0x157   :  { %s14264_s15 = scalar_lea.hbm %s15641_s16, 160 }
 0x158   :  { %p14265_p10 = scmp.ne.s32.totalorder %s15641_s16, %s14264_s15  ;;  %p14268_p11 = scmp.lt.u32.totalorder %s14264_s15, %s15641_s16 }
 0x15a   :  { %p14270_p12 = pnand %p14268_p11, %p14265_p10 }
 0x15c   :  { %14273 = shalt.err (!%p14270_p12)
}
 0x15d   :  { %s14274_s3 = scalar_lea.vmem %s14811_s9, 160  ;;  %p14279_p0 = scmp.lt.s32.totalorder %s14811_s9, %s14811_s9 }
 0x15e   :  { %p14275_p13 = scmp.ne.s32.totalorder %s14811_s9, %s14274_s3  ;;  %p14280_p1 = scmp.lt.s32.totalorder %s14274_s3, %s14274_s3 }
 0x160   :  { %p14281_p2 = por %p14280_p1, %p14279_p0 }
 0x162   :  { %p14282_p3 = pnand %p14281_p2, %p14275_p13 }
 0x164   :  { %14285 = shalt.err (!%p14282_p3)
}
 0x165   :  { %220 = dma.hbm_to_vmem [thread:$0]  %s15641_s16, 160, %s14811_s9, [#allocation23], %s14381_s8, %s14381_s8, %s14382_s1  }
 0x166   :  { %s14402_s10 = smov [#allocation27]   ;;  %s14403_s22 = smov [#allocation30]  }
 0x167   :  { %s238_s23 = sshll.u32 %s14402_s10, 4  ;;  %s263_s6 = sshll.u32 %s14403_s22, 4  ;;  %s239_s23 = int_to_ptr.vmem [resolvable:$true] %s238_s23  ;;  %s264_s6 = int_to_ptr.vmem [resolvable:$true] %s263_s6 }
 0x168   :  { %s14286_s19 = scalar_lea.hbm %s15643_s18, 160 }
 0x169   :  { %p14287_p4 = scmp.ne.s32.totalorder %s15643_s18, %s14286_s19  ;;  %p14290_p5 = scmp.lt.u32.totalorder %s14286_s19, %s15643_s18 }
 0x16b   :  { %p14292_p6 = pnand %p14290_p5, %p14287_p4 }
 0x16d   :  { %14295 = shalt.err (!%p14292_p6)
}
 0x16e   :  { %s14296_s16 = scalar_lea.vmem %s239_s23, 160  ;;  %p14301_p8 = scmp.lt.s32.totalorder %s239_s23, %s239_s23 }
 0x16f   :  { %p14297_p7 = scmp.ne.s32.totalorder %s239_s23, %s14296_s16  ;;  %p14302_p9 = scmp.lt.s32.totalorder %s14296_s16, %s14296_s16 }
 0x171   :  { %p14303_p10 = por %p14302_p9, %p14301_p8 }
 0x173   :  { %p14304_p11 = pnand %p14303_p10, %p14297_p7 }
 0x175   :  { %14307 = shalt.err (!%p14304_p11)
}
 0x176   :  { %244 = dma.hbm_to_vmem [thread:$0]  %s15643_s18, 160, %s239_s23, [#allocation26], %s14381_s8, %s14381_s8, %s14382_s1  }
 0x177   :  { %s14308_s13 = scalar_lea.hbm %s15645_s20, 80 }
 0x178   :  { %p14309_p12 = scmp.ne.s32.totalorder %s15645_s20, %s14308_s13  ;;  %p14312_p13 = scmp.lt.u32.totalorder %s14308_s13, %s15645_s20 }
 0x17a   :  { %p14314_p0 = pnand %p14312_p13, %p14309_p12 }
 0x17c   :  { %14317 = shalt.err (!%p14314_p0)
}
 0x17d   :  { %s14318_s21 = scalar_lea.vmem %s264_s6, 80  ;;  %s14322_s24 = scalar_lea.vmem %s264_s6, 96 }
 0x17e   :  { %p14319_p1 = scmp.ne.s32.totalorder %s264_s6, %s14318_s21  ;;  %p14323_p2 = scmp.lt.s32.totalorder %s264_s6, %s264_s6 }
 0x17f   :  { %p14324_p3 = scmp.lt.s32.totalorder %s14322_s24, %s14318_s21 }
 0x181   :  { %p14325_p4 = por %p14324_p3, %p14323_p2 }
 0x183   :  { %p14326_p5 = pnand %p14325_p4, %p14319_p1 }
 0x185   :  { %14329 = shalt.err (!%p14326_p5)
}
 0x186   :  { %266 = dma.hbm_to_vmem [thread:$0]  %s15645_s20, 80, %s264_s6, [#allocation29]  }
 0x187   :  { %s14404_s1 = smov [#allocation33]   ;;  %s15677_s0 = sld [smem:[#allocation54_spill]] }
 0x188   :  { %s285_s5 = sshll.u32 %s14404_s1, 4  ;;  %s286_s5 = int_to_ptr.vmem [resolvable:$true] %s285_s5 }
 0x18d   :  { %s14330_s10 = scalar_lea.hbm %s15677_s0, 16 }
 0x18e   :  { %p14331_p6 = scmp.ne.s32.totalorder %s15677_s0, %s14330_s10  ;;  %p14334_p7 = scmp.lt.u32.totalorder %s14330_s10, %s15677_s0 }
 0x190   :  { %p14336_p8 = pnand %p14334_p7, %p14331_p6 }
 0x192   :  { %14339 = shalt.err (!%p14336_p8)
}
 0x193   :  { %s14340_s19 = scalar_lea.vmem %s286_s5, 16  ;;  %s14344_s20 = scalar_lea.vmem %s286_s5, 32 }
 0x194   :  { %p14341_p9 = scmp.ne.s32.totalorder %s286_s5, %s14340_s19  ;;  %p14345_p10 = scmp.lt.s32.totalorder %s286_s5, %s286_s5 }
 0x195   :  { %p14346_p11 = scmp.lt.s32.totalorder %s14344_s20, %s14340_s19 }
 0x197   :  { %p14347_p12 = por %p14346_p11, %p14345_p10 }
 0x199   :  { %p14348_p13 = pnand %p14347_p12, %p14341_p9 }
 0x19b   :  { %14351 = shalt.err (!%p14348_p13)
}
 0x19c   :  { %288 = dma.hbm_to_vmem [thread:$0]  %s15677_s0, 16, %s286_s5, [#allocation32]  }
 0x19d   :  { %14352 = dma.done.wait [#allocation3], 64  }
 0x19e   :  { %14353 = vsyncadd [#allocation3], 4294967232 }
 0x19f   :  { %14354 = dma.done.wait [#allocation5], 8256  }
 0x1a0   :  { %14355 = vsyncadd [#allocation5], 4294959040 }
 0x1a1   :  { %14356 = dma.done.wait [#allocation8], 128  }
 0x1a2   :  { %14357 = vsyncadd [#allocation8], 4294967168 }
 0x1a3   :  { %14358 = dma.done.wait [#allocation11], 8256  }
 0x1a4   :  { %14359 = vsyncadd [#allocation11], 4294959040 }
 0x1a5   :  { %14360 = dma.done.wait [#allocation14], 144  }
 0x1a6   :  { %14361 = vsyncadd [#allocation14], 4294967152 }
 0x1a7   :  { %14362 = dma.done.wait [#allocation17], 320  }
 0x1a8   :  { %14363 = vsyncadd [#allocation17], 4294966976 }
 0x1a9   :  { %14364 = dma.done.wait [#allocation20], 46240  }
 0x1aa   :  { %14365 = vsyncadd [#allocation20], 4294921056 }
 0x1ab   :  { %14366 = dma.done.wait [#allocation23], 320  }
 0x1ac   :  { %14367 = vsyncadd [#allocation23], 4294966976 }
 0x1ad   :  { %14368 = dma.done.wait [#allocation26], 46240  }
 0x1ae   :  { %14369 = vsyncadd [#allocation26], 4294921056 }
 0x1af   :  { %14370 = dma.done.wait [#allocation29], 23120  }
 0x1b0   :  { %14371 = vsyncadd [#allocation29], 4294944176 }
 0x1b1   :  { %14372 = dma.done.wait [#allocation32], 4624  }
 0x1b2   :  { %14373 = vsyncadd [#allocation32], 4294962672  ;;  %v12286_v0 = vld [vmem:[#allocation6 + $0x4] ss:$8 sps:$4 sm:$0xff]   ;;  %v12288_v1 = vld [vmem:[#allocation6] ss:$8 sps:$4 sm:$0xff]   ;;  %v357_v7 = vlaneseq }
 0x1b3   :  { %591 = vmatprep.subr.bf16.mxu0 %v12286_v0  ;;  %v12289_v2 = vld [vmem:[#allocation6 + $0x14] ss:$8 sps:$4 sm:$0xff]   ;;  %v12291_v3 = vld [vmem:[#allocation6 + $0x10] ss:$8 sps:$4 sm:$0xff]   ;;  %v12292_v4 = vld [vmem:[#allocation6 + $0x24] ss:$8 sps:$4 sm:$0xff]  }
 0x1b4   :  { %592 = vmatpush1.bf16.msra.mxu0 %v12288_v1  ;;  %v12294_v5 = vld [vmem:[#allocation6 + $0x20] ss:$8 sps:$4 sm:$0xff]   ;;  %v12295_v6 = vld [vmem:[#allocation6 + $0x34] ss:$8 sps:$4 sm:$0xff]   ;;  %v12297_v8 = vld [vmem:[#allocation6 + $0x30] ss:$8 sps:$4 sm:$0xff]  }
 0x1b5   :  { %593 = vmatprep.subr.bf16.mxu0 %v12289_v2  ;;  %v12298_v9 = vld [vmem:[#allocation6 + $0x44] ss:$8 sps:$4 sm:$0xff]   ;;  %v14887_v10 = vshrl.u32 %v357_v7, 7  ;;  %v12300_v11 = vld [vmem:[#allocation6 + $0x40] ss:$8 sps:$4 sm:$0xff]   ;;  %s15678_s28 = sld [smem:[#allocation45_spill]] }
 0x1b6   :  { %v12301_v12 = vld [vmem:[#allocation6 + $0x54] ss:$8 sps:$4 sm:$0xff]   ;;  %v12303_v14 = vld [vmem:[#allocation6 + $0x50] ss:$8 sps:$4 sm:$0xff]   ;;  %v12304_v15 = vld [vmem:[#allocation6 + $0x64] ss:$8 sps:$4 sm:$0xff]  }
 0x1b7   :  { %v14890_v13 = vsub.s32 1, %v14887_v10  ;;  %v12306_v16 = vld [vmem:[#allocation6 + $0x60] ss:$8 sps:$4 sm:$0xff]   ;;  %v14895_v18 = vld [vmem:[#allocation2] sm:$0x3]  ;;  %v14904_v50 = vsub.s32 0, %v14887_v10 }
 0x1b8   :  { %594 = vmatpush1.bf16.msra.mxu0 %v12291_v3  ;;  %v12307_v19 = vld [vmem:[#allocation6 + $0x74] ss:$8 sps:$4 sm:$0xff]   ;;  %v12334_v23 = vld [vmem:[#allocation12 + $0x4] ss:$8 sps:$4 sm:$0xff]   ;;  %v12337_v26 = vld [vmem:[#allocation12 + $0x14] ss:$8 sps:$4 sm:$0xff]  }
 0x1b9   :  { %595 = vmatprep.subr.bf16.mxu0 %v12292_v4  ;;  %v364_v20 = vrot.slane %v14895_v18, %v14890_v13  ;;  %v14899_v21 = vld [vmem:[#allocation4] sm:$0x3]  ;;  %v12336_v24 = vld [vmem:[#allocation12] ss:$8 sps:$4 sm:$0xff]   ;;  %868 = vmatprep.subr.bf16.mxu1 %v12334_v23  ;;  %v12309_v29 = vld [vmem:[#allocation6 + $0x70] ss:$8 sps:$4 sm:$0xff]   ;;  %v360_v56 = vrot.slane %v14895_v18, %v14904_v50 }
 0x1ba   :  { %v378_v22 = vrot.slane %v14899_v21, %v14890_v13  ;;  %869 = vmatpush1.bf16.msra.mxu1 %v12336_v24  ;;  %v12339_v28 = vld [vmem:[#allocation12 + $0x10] ss:$8 sps:$4 sm:$0xff]   ;;  %v12340_v30 = vld [vmem:[#allocation12 + $0x24] ss:$8 sps:$4 sm:$0xff]   ;;  %v12342_v34 = vld [vmem:[#allocation12 + $0x20] ss:$8 sps:$4 sm:$0xff]   ;;  %v374_v61 = vrot.slane %v14899_v21, %v14904_v50 }
 0x1bb   :  { %v354_v17 = vld [vmem:[%s15678_s28 + $0x8] sm:$0xff]  ;;  %870 = vmatprep.subr.bf16.mxu1 %v12337_v26  ;;  %v12313_v37 = vld [vmem:[#allocation6 + $0x94] ss:$8 sps:$4 sm:$0xff]   ;;  %v12315_v39 = vld [vmem:[#allocation6 + $0x90] ss:$8 sps:$4 sm:$0xff]   ;;  %s15679_s15 = sld [smem:[#allocation53_spill]] }
 0x1bc   :  { %596 = vmatpush1.bf16.msra.mxu0 %v12294_v5  ;;  %v368_v25 = vmul.f32 %v364_v20, %v354_v17  ;;  %v12310_v31 = vld [vmem:[#allocation6 + $0x84] ss:$8 sps:$4 sm:$0xff]   ;;  %v12312_v35 = vld [vmem:[#allocation6 + $0x80] ss:$8 sps:$4 sm:$0xff]   ;;  %v12346_v40 = vld [vmem:[#allocation12 + $0x44] ss:$8 sps:$4 sm:$0xff]  }
 0x1bd   :  { %597 = vmatprep.subr.bf16.mxu0 %v12295_v6  ;;  %v12343_v36 = vld [vmem:[#allocation12 + $0x34] ss:$8 sps:$4 sm:$0xff]   ;;  %v12345_v38 = vld [vmem:[#allocation12 + $0x30] ss:$8 sps:$4 sm:$0xff]   ;;  %v12348_v43 = vld [vmem:[#allocation12 + $0x40] ss:$8 sps:$4 sm:$0xff]  }
 0x1be   :  { %v382_v27 = vadd.f32 %v378_v22, %v368_v25  ;;  %871 = vmatpush1.bf16.msra.mxu1 %v12339_v28  ;;  %v12316_v41 = vld [vmem:[#allocation6 + $0xa4] ss:$8 sps:$4 sm:$0xff]   ;;  %v12318_v42 = vld [vmem:[#allocation6 + $0xa0] ss:$8 sps:$4 sm:$0xff]   ;;  %v12319_v44 = vld [vmem:[#allocation6 + $0xb4] ss:$8 sps:$4 sm:$0xff]  }
 0x1bf   :  { %872 = vmatprep.subr.bf16.mxu1 %v12340_v30  ;;  %v12349_v45 = vld [vmem:[#allocation12 + $0x54] ss:$8 sps:$4 sm:$0xff]   ;;  %v12351_v46 = vld [vmem:[#allocation12 + $0x50] ss:$8 sps:$4 sm:$0xff]   ;;  %v12321_v47 = vld [vmem:[#allocation6 + $0xb0] ss:$8 sps:$4 sm:$0xff]  }
 0x1c0   :  { %598 = vmatpush1.bf16.msra.mxu0 %v12297_v8  ;;  %v384_v32 = vmax.f32 %v382_v27, 0.0  ;;  %v12352_v48 = vld [vmem:[#allocation12 + $0x64] ss:$8 sps:$4 sm:$0xff]   ;;  %v12322_v49 = vld [vmem:[#allocation6 + $0xc4] ss:$8 sps:$4 sm:$0xff]   ;;  %vm3391_vm0 = vcmask 523264  }
 0x1c1   :  { %599 = vmatprep.subr.bf16.mxu0 %v12298_v9  ;;  %v12354_v51 = vld [vmem:[#allocation12 + $0x60] ss:$8 sps:$4 sm:$0xff]   ;;  %v12324_v52 = vld [vmem:[#allocation6 + $0xc0] ss:$8 sps:$4 sm:$0xff]   ;;  %v353_v53 = vld [vmem:[%s15678_s28] sm:$0xff]  ;;  %vm14407_vm1 = vmmov 0  }
 0x1c2   :  { %v418_v33 = vpack.c.bf16 %v384_v32, %v384_v32  ;;  %873 = vmatpush1.bf16.msra.mxu1 %v12342_v34  ;;  %v12355_v54 = vld [vmem:[#allocation12 + $0x74] ss:$8 sps:$4 sm:$0xff]   ;;  %v12325_v55 = vld [vmem:[#allocation6 + $0xd4] ss:$8 sps:$4 sm:$0xff]   ;;  %v12327_v58 = vld [vmem:[#allocation6 + $0xd0] ss:$8 sps:$4 sm:$0xff]   ;;  %v367_v62 = vmul.f32 %v360_v56, %v353_v53 }
 0x1c3   :  { %874 = vmatprep.subr.bf16.mxu1 %v12343_v36  ;;  %v12357_v57 = vld [vmem:[#allocation12 + $0x70] ss:$8 sps:$4 sm:$0xff]   ;;  %v12358_v59 = vld [vmem:[#allocation12 + $0x84] ss:$8 sps:$4 sm:$0xff]   ;;  %v12360_v63 = vld [vmem:[#allocation12 + $0x80] ss:$8 sps:$4 sm:$0xff]  }
 0x1c4   :  { %600 = vmatpush1.bf16.msra.mxu0 %v12300_v11  ;;  %623 = vmatprep.mubr.bf16.mxu0 %v418_v33  ;;  %v12328_v60 = vld [vmem:[#allocation6 + $0xe4] ss:$8 sps:$4 sm:$0xff]   ;;  %v12330_v0 = vld [vmem:[#allocation6 + $0xe0] ss:$8 sps:$4 sm:$0xff]   ;;  %v12331_v2 = vld [vmem:[#allocation6 + $0xf4] ss:$8 sps:$4 sm:$0xff]   ;;  %v381_v3 = vadd.f32 %v374_v61, %v367_v62 }
 0x1c5   :  { %601 = vmatprep.subr.bf16.mxu0 %v12301_v12  ;;  %v12361_v1 = vld [vmem:[#allocation12 + $0x94] ss:$8 sps:$4 sm:$0xff]   ;;  %v12363_v4 = vld [vmem:[#allocation12 + $0x90] ss:$8 sps:$4 sm:$0xff]   ;;  %v12333_v5 = vld [vmem:[#allocation6 + $0xf0] ss:$8 sps:$4 sm:$0xff]  }
 0x1c6   :  { %875 = vmatpush1.bf16.msra.mxu1 %v12345_v38  ;;  %v12364_v6 = vld [vmem:[#allocation12 + $0xa4] ss:$8 sps:$4 sm:$0xff]   ;;  %v383_v7 = vmax.f32 %v381_v3, 0.0  ;;  %v12366_v8 = vld [vmem:[#allocation12 + $0xa0] ss:$8 sps:$4 sm:$0xff]   ;;  %s15680_s0 = sld [smem:[#allocation55_spill]] }
 0x1c7   :  { %876 = vmatprep.subr.bf16.mxu1 %v12346_v40  ;;  %v12367_v9 = vld [vmem:[#allocation12 + $0xb4] ss:$8 sps:$4 sm:$0xff]   ;;  %v12369_v12 = vld [vmem:[#allocation12 + $0xb0] ss:$8 sps:$4 sm:$0xff]   ;;  %v12376_v18 = vld [vmem:[#allocation12 + $0xe4] ss:$8 sps:$4 sm:$0xff]  }
 0x1c8   :  { %602 = vmatpush1.bf16.msra.mxu0 %v12303_v14  ;;  %v417_v11 = vpack.c.bf16 %v383_v7, %v383_v7  ;;  %v12370_v14 = vld [vmem:[#allocation12 + $0xc4] ss:$8 sps:$4 sm:$0xff]   ;;  %v12375_v17 = vld [vmem:[#allocation12 + $0xd0] ss:$8 sps:$4 sm:$0xff]   ;;  %v12379_v20 = vld [vmem:[#allocation12 + $0xf4] ss:$8 sps:$4 sm:$0xff]  }
 0x1c9   :  { %603 = vmatprep.subr.bf16.mxu0 %v12304_v15  ;;  %v12372_v15 = vld [vmem:[#allocation12 + $0xc0] ss:$8 sps:$4 sm:$0xff]   ;;  %v12381_v21 = vld [vmem:[#allocation12 + $0xf0] ss:$8 sps:$4 sm:$0xff]   ;;  %v12382_v22 = vld [vmem:[#allocation6 + $0x100] ss:$8 sps:$4 sm:$0xff]  }
 0x1ca   :  { %877 = vmatpush1.bf16.msra.mxu1 %v12348_v43  ;;  %v12384_v23 = vld [vmem:[#allocation6 + $0x104] ss:$8 sps:$4 sm:$0xff]   ;;  %v12387_v24 = vld [vmem:[#allocation6 + $0x114] ss:$8 sps:$4 sm:$0xff]   ;;  %v12385_v25 = vld [vmem:[#allocation6 + $0x110] ss:$8 sps:$4 sm:$0xff]  }
 0x1cb   :  { %878 = vmatprep.subr.bf16.mxu1 %v12349_v45  ;;  %v12390_v26 = vld [vmem:[#allocation6 + $0x124] ss:$8 sps:$4 sm:$0xff]   ;;  %v12388_v27 = vld [vmem:[#allocation6 + $0x120] ss:$8 sps:$4 sm:$0xff]   ;;  %v12393_v28 = vld [vmem:[#allocation6 + $0x134] ss:$8 sps:$4 sm:$0xff]  }
 0x1cc   :  { %604 = vmatpush1.bf16.msra.mxu0 %v12306_v16  ;;  %v12373_v16 = vld [vmem:[#allocation12 + $0xd4] ss:$8 sps:$4 sm:$0xff]   ;;  %v12396_v30 = vld [vmem:[#allocation6 + $0x144] ss:$8 sps:$4 sm:$0xff]   ;;  %v12399_v32 = vld [vmem:[#allocation6 + $0x154] ss:$8 sps:$4 sm:$0xff]  }
 0x1cd   :  { %605 = vmatprep.subr.bf16.mxu0 %v12307_v19  ;;  %v12378_v19 = vld [vmem:[#allocation12 + $0xe0] ss:$8 sps:$4 sm:$0xff]   ;;  %v12397_v33 = vld [vmem:[#allocation6 + $0x150] ss:$8 sps:$4 sm:$0xff]   ;;  %v12412_v43 = vld [vmem:[#allocation6 + $0x1a0] ss:$8 sps:$4 sm:$0xff]  }
 0x1ce   :  { %879 = vmatpush1.bf16.msra.mxu1 %v12351_v46  ;;  %v12402_v34 = vld [vmem:[#allocation6 + $0x164] ss:$8 sps:$4 sm:$0xff]   ;;  %v12405_v36 = vld [vmem:[#allocation6 + $0x174] ss:$8 sps:$4 sm:$0xff]   ;;  %v12415_v45 = vld [vmem:[#allocation6 + $0x1b0] ss:$8 sps:$4 sm:$0xff]  }
 0x1cf   :  { %880 = vmatprep.subr.bf16.mxu1 %v12352_v48  ;;  %v12408_v38 = vld [vmem:[#allocation6 + $0x184] ss:$8 sps:$4 sm:$0xff]   ;;  %v12411_v40 = vld [vmem:[#allocation6 + $0x194] ss:$8 sps:$4 sm:$0xff]   ;;  %v419_v48 = vld [vmem:[#allocation7] sm:$0x3] }
 0x1d0   :  { %606 = vmatpush1.bf16.msra.mxu0 %v12309_v29  ;;  %v12391_v29 = vld [vmem:[#allocation6 + $0x130] ss:$8 sps:$4 sm:$0xff]   ;;  %v12420_v46 = vld [vmem:[#allocation6 + $0x1c4] ss:$8 sps:$4 sm:$0xff]   ;;  %v428_v53 = vrot.slane %v419_v48, %v14890_v13 }
 0x1d1   :  { %607 = vmatprep.subr.bf16.mxu0 %v12310_v31  ;;  %v12394_v31 = vld [vmem:[#allocation6 + $0x140] ss:$8 sps:$4 sm:$0xff]  }
 0x1d2   :  { %881 = vmatpush1.bf16.msra.mxu1 %v12354_v51  ;;  %v646_v51 = vld [vmem:[#allocation10] sm:$0x3] }
 0x1d3   :  { %882 = vmatprep.subr.bf16.mxu1 %v12355_v54  ;;  %v655_v62 = vrot.slane %v646_v51, %v14890_v13 }
 0x1d4   :  { %608 = vmatpush1.bf16.msra.mxu0 %v12312_v35  ;;  %v12400_v35 = vld [vmem:[#allocation6 + $0x160] ss:$8 sps:$4 sm:$0xff]  }
 0x1d5   :  { %609 = vmatprep.subr.bf16.mxu0 %v12313_v37  ;;  %v12403_v37 = vld [vmem:[#allocation6 + $0x170] ss:$8 sps:$4 sm:$0xff]  }
 0x1d6   :  { %883 = vmatpush1.bf16.msra.mxu1 %v12357_v57 }
 0x1d7   :  { %884 = vmatprep.subr.bf16.mxu1 %v12358_v59  ;;  %v651_v59 = vrot.slane %v646_v51, %v14904_v50 }
 0x1d8   :  { %610 = vmatpush1.bf16.msra.mxu0 %v12315_v39  ;;  %v12406_v39 = vld [vmem:[#allocation6 + $0x180] ss:$8 sps:$4 sm:$0xff]  }
 0x1d9   :  { %611 = vmatprep.subr.bf16.mxu0 %v12316_v41  ;;  %v12409_v41 = vld [vmem:[#allocation6 + $0x190] ss:$8 sps:$4 sm:$0xff]  }
 0x1da   :  { %885 = vmatpush1.bf16.msra.mxu1 %v12360_v63 }
 0x1db   :  { %886 = vmatprep.subr.bf16.mxu1 %v12361_v1 }
 0x1dc   :  { %612 = vmatpush1.bf16.msra.mxu0 %v12318_v42  ;;  %v12414_v42 = vld [vmem:[#allocation6 + $0x1a4] ss:$8 sps:$4 sm:$0xff]  }
 0x1dd   :  { %613 = vmatprep.subr.bf16.mxu0 %v12319_v44  ;;  %v12417_v44 = vld [vmem:[#allocation6 + $0x1b4] ss:$8 sps:$4 sm:$0xff]  }
 0x1de   :  { %887 = vmatpush1.bf16.msra.mxu1 %v12363_v4 }
 0x1df   :  { %888 = vmatprep.subr.bf16.mxu1 %v12364_v6 }
 0x1e0   :  { %614 = vmatpush1.bf16.msra.mxu0 %v12321_v47  ;;  %v12418_v47 = vld [vmem:[#allocation6 + $0x1c0] ss:$8 sps:$4 sm:$0xff]  }
 0x1e1   :  { %615 = vmatprep.subr.bf16.mxu0 %v12322_v49  ;;  %v632_v49 = vld [vmem:[#allocation9] sm:$0x3] }
 0x1e2   :  { %889 = vmatpush1.bf16.msra.mxu1 %v12366_v8  ;;  %v637_v54 = vrot.slane %v632_v49, %v14904_v50  ;;  %v641_v56 = vrot.slane %v632_v49, %v14890_v13  ;;  %v12423_v8 = vld [vmem:[#allocation6 + $0x1d4] ss:$8 sps:$4 sm:$0xff]  }
 0x1e3   :  { %890 = vmatprep.subr.bf16.mxu1 %v12367_v9  ;;  %v12421_v9 = vld [vmem:[#allocation6 + $0x1d0] ss:$8 sps:$4 sm:$0xff]  }
 0x1e4   :  { %616 = vmatpush1.bf16.msra.mxu0 %v12324_v52  ;;  %v424_v52 = vrot.slane %v419_v48, %v14904_v50 }
 0x1e5   :  { %617 = vmatprep.subr.bf16.mxu0 %v12325_v55 }
 0x1e6   :  { %891 = vmatpush1.bf16.msra.mxu1 %v12369_v12  ;;  %v12424_v12 = vld [vmem:[#allocation6 + $0x1e0] ss:$8 sps:$4 sm:$0xff]  }
 0x1e7   :  { %892 = vmatprep.subr.bf16.mxu1 %v12370_v14  ;;  %v12427_v14 = vld [vmem:[#allocation6 + $0x1f0] ss:$8 sps:$4 sm:$0xff]  }
 0x1e8   :  { %618 = vmatpush1.bf16.msra.mxu0 %v12327_v58 }
 0x1e9   :  { %619 = vmatprep.subr.bf16.mxu0 %v12328_v60 }
 0x1ea   :  { %893 = vmatpush1.bf16.msra.mxu1 %v12372_v15  ;;  %v12429_v15 = vld [vmem:[#allocation6 + $0x1f4] ss:$8 sps:$4 sm:$0xff]  }
 0x1eb   :  { %894 = vmatprep.subr.bf16.mxu1 %v12373_v16  ;;  %v12430_v16 = vld [vmem:[#allocation12 + $0x100] ss:$8 sps:$4 sm:$0xff]  }
 0x1ec   :  { %620 = vmatpush1.bf16.msra.mxu0 %v12330_v0 }
 0x1ed   :  { %621 = vmatprep.subr.bf16.mxu0 %v12331_v2 }
 0x1ee   :  { %895 = vmatpush1.bf16.msra.mxu1 %v12375_v17  ;;  %v12432_v17 = vld [vmem:[#allocation12 + $0x104] ss:$8 sps:$4 sm:$0xff]  }
 0x1ef   :  { %896 = vmatprep.subr.bf16.mxu1 %v12376_v18  ;;  %v12435_v18 = vld [vmem:[#allocation12 + $0x114] ss:$8 sps:$4 sm:$0xff]  }
 0x1f0   :  { %622 = vmatpush1.bf16.msra.mxu0 %v12333_v5 }
 0x1f1   :  { %1151 = vmatprep.subr.bf16.mxu0 %v12384_v23  ;;  %v12439_v23 = vld [vmem:[#allocation12 + $0x130] ss:$8 sps:$4 sm:$0xff]  }
 0x1f2   :  { %897 = vmatpush1.bf16.msra.mxu1 %v12378_v19  ;;  %v12433_v19 = vld [vmem:[#allocation12 + $0x110] ss:$8 sps:$4 sm:$0xff]  }
 0x1f3   :  { %624 = vmatmul.mubr.bf16.vlgmr.msra.gmra.mrb[0].mxu0 %v417_v11  ;;  %898 = vmatprep.subr.bf16.mxu1 %v12379_v20  ;;  %v12426_v11 = vld [vmem:[#allocation6 + $0x1e4] ss:$8 sps:$4 sm:$0xff]   ;;  %v12438_v20 = vld [vmem:[#allocation12 + $0x124] ss:$8 sps:$4 sm:$0xff]  }
 0x1f4   :  { %1152 = vmatpush1.bf16.msra.mxu0 %v12382_v22  ;;  %v12441_v22 = vld [vmem:[#allocation12 + $0x134] ss:$8 sps:$4 sm:$0xff]  }
 0x1f5   :  { %1153 = vmatprep.subr.bf16.mxu0 %v12387_v24  ;;  %v12444_v24 = vld [vmem:[#allocation12 + $0x144] ss:$8 sps:$4 sm:$0xff]  }
 0x1f6   :  { %899 = vmatpush1.bf16.msra.mxu1 %v12381_v21  ;;  %v12436_v21 = vld [vmem:[#allocation12 + $0x120] ss:$8 sps:$4 sm:$0xff]  }
 0x1f7   :  { %1432 = vmatprep.subr.bf16.mxu1 %v12432_v17  ;;  %v12486_v17 = vld [vmem:[%s15679_s15 + $0x2c] ss:$20 sps:$4 sm:$0xff]  }
 0x1f8   :  { %1154 = vmatpush1.bf16.msra.mxu0 %v12385_v25  ;;  %v12442_v25 = vld [vmem:[#allocation12 + $0x140] ss:$8 sps:$4 sm:$0xff]  }
 0x1f9   :  { %1155 = vmatprep.subr.bf16.mxu0 %v12390_v26  ;;  %v12447_v26 = vld [vmem:[#allocation12 + $0x154] ss:$8 sps:$4 sm:$0xff]  }
 0x1fc   :  { %1156 = vmatpush1.bf16.msra.mxu0 %v12388_v27  ;;  %v12445_v27 = vld [vmem:[#allocation12 + $0x150] ss:$8 sps:$4 sm:$0xff]  }
 0x1fd   :  { %1157 = vmatprep.subr.bf16.mxu0 %v12393_v28  ;;  %v12450_v28 = vld [vmem:[#allocation12 + $0x164] ss:$8 sps:$4 sm:$0xff]  }
 0x200   :  { %1158 = vmatpush1.bf16.msra.mxu0 %v12391_v29  ;;  %v12448_v29 = vld [vmem:[#allocation12 + $0x160] ss:$8 sps:$4 sm:$0xff]  }
 0x201   :  { %1159 = vmatprep.subr.bf16.mxu0 %v12396_v30  ;;  %v12453_v30 = vld [vmem:[#allocation12 + $0x174] ss:$8 sps:$4 sm:$0xff]  }
 0x204   :  { %1160 = vmatpush1.bf16.msra.mxu0 %v12394_v31  ;;  %v12451_v31 = vld [vmem:[#allocation12 + $0x170] ss:$8 sps:$4 sm:$0xff]  }
 0x205   :  { %1161 = vmatprep.subr.bf16.mxu0 %v12399_v32  ;;  %v12456_v32 = vld [vmem:[#allocation12 + $0x184] ss:$8 sps:$4 sm:$0xff]  }
 0x208   :  { %1162 = vmatpush1.bf16.msra.mxu0 %v12397_v33  ;;  %v12454_v33 = vld [vmem:[#allocation12 + $0x180] ss:$8 sps:$4 sm:$0xff]  }
 0x209   :  { %1163 = vmatprep.subr.bf16.mxu0 %v12402_v34  ;;  %v12459_v34 = vld [vmem:[#allocation12 + $0x194] ss:$8 sps:$4 sm:$0xff]  }
 0x20c   :  { %1164 = vmatpush1.bf16.msra.mxu0 %v12400_v35  ;;  %v12457_v35 = vld [vmem:[#allocation12 + $0x190] ss:$8 sps:$4 sm:$0xff]  }
 0x20d   :  { %1165 = vmatprep.subr.bf16.mxu0 %v12405_v36  ;;  %v12462_v36 = vld [vmem:[#allocation12 + $0x1a4] ss:$8 sps:$4 sm:$0xff]  }
 0x210   :  { %1166 = vmatpush1.bf16.msra.mxu0 %v12403_v37  ;;  %v12460_v37 = vld [vmem:[#allocation12 + $0x1a0] ss:$8 sps:$4 sm:$0xff]  }
 0x211   :  { %1167 = vmatprep.subr.bf16.mxu0 %v12408_v38  ;;  %v12465_v38 = vld [vmem:[#allocation12 + $0x1b4] ss:$8 sps:$4 sm:$0xff]  }
 0x214   :  { %1168 = vmatpush1.bf16.msra.mxu0 %v12406_v39  ;;  %v12463_v39 = vld [vmem:[#allocation12 + $0x1b0] ss:$8 sps:$4 sm:$0xff]  }
 0x215   :  { %1169 = vmatprep.subr.bf16.mxu0 %v12411_v40  ;;  %v12468_v40 = vld [vmem:[#allocation12 + $0x1c4] ss:$8 sps:$4 sm:$0xff]  }
 0x218   :  { %1170 = vmatpush1.bf16.msra.mxu0 %v12409_v41  ;;  %v12466_v41 = vld [vmem:[#allocation12 + $0x1c0] ss:$8 sps:$4 sm:$0xff]  }
 0x219   :  { %1171 = vmatprep.subr.bf16.mxu0 %v12414_v42  ;;  %v696_v42 = vld [vmem:[#allocation13] sm:$0x3] }
 0x21c   :  { %1172 = vmatpush1.bf16.msra.mxu0 %v12412_v43  ;;  %v912_v43 = vld [vmem:[#allocation2 + $0x2] sm:$0x3] }
 0x21d   :  { %1173 = vmatprep.subr.bf16.mxu0 %v12417_v44  ;;  %v701_v44 = vrot.slane %v696_v42, %v14904_v50  ;;  %v917_v49 = vrot.slane %v912_v43, %v14904_v50 }
 0x220   :  { %1174 = vmatpush1.bf16.msra.mxu0 %v12415_v45  ;;  %v927_v45 = vld [vmem:[#allocation4 + $0x2] sm:$0x3] }
 0x221   :  { %1175 = vmatprep.subr.bf16.mxu0 %v12420_v46  ;;  %v705_v46 = vrot.slane %v696_v42, %v14890_v13  ;;  %v12556_v42 = vld [vmem:[%s15679_s15 + $0x208] ss:$20 sps:$4 sm:$0xff]  }
 0x224   :  { %1176 = vmatpush1.bf16.msra.mxu0 %v12418_v47 }
 0x225   :  { %1177 = vmatprep.subr.bf16.mxu0 %v12423_v8  ;;  %v12474_v8 = vld [vmem:[#allocation12 + $0x1e4] ss:$8 sps:$4 sm:$0xff]  }
 0x228   :  { %1178 = vmatpush1.bf16.msra.mxu0 %v12421_v9  ;;  %v12472_v9 = vld [vmem:[#allocation12 + $0x1e0] ss:$8 sps:$4 sm:$0xff]  }
 0x229   :  { %1179 = vmatprep.subr.bf16.mxu0 %v12426_v11  ;;  %v12477_v11 = vld [vmem:[#allocation12 + $0x1f4] ss:$8 sps:$4 sm:$0xff]  }
 0x22c   :  { %1180 = vmatpush1.bf16.msra.mxu0 %v12424_v12  ;;  %v12475_v12 = vld [vmem:[#allocation12 + $0x1f0] ss:$8 sps:$4 sm:$0xff]  }
 0x22d   :  { %1181 = vmatprep.subr.bf16.mxu0 %v12429_v15  ;;  %v12480_v15 = vld [vmem:[%s15679_s15 + $0x4] ss:$20 sps:$4 sm:$0xff]  }
 0x230   :  { %1182 = vmatpush1.bf16.msra.mxu0 %v12427_v14  ;;  %v12478_v14 = vld [vmem:[%s15679_s15] ss:$20 sps:$4 sm:$0xff]  }
 0x231   :  { %2016 = vmatprep.subr.bf16.mxu0 %v12480_v15  ;;  %v12505_v15 = vld [vmem:[%s15679_s15 + $0xa8] ss:$20 sps:$4 sm:$0xff]  }
 0x2c6   :  { %v625_v55 = vpop.f32.mrb[0].mxu0 }
 0x2c7   :  { %v626_v57 = vadd.f32 %v625_v55, %v424_v52  ;;  %v627_v58 = vpop.f32.mrb[1].mxu0  ;;  %v13888_v55 = vld [vmem:[%s15678_s28] sm:$0xff] }
 0x2c8   :  { %v628_v60 = vadd.f32 %v627_v58, %v428_v53  ;;  %v629_v61 = vpop.f32.mrb[2].mxu0  ;;  %v921_v53 = vrot.slane %v912_v43, %v14890_v13  ;;  %v979_v43 = vld [vmem:[#allocation7 + $0x2] sm:$0x3] }
 0x2c9   :  { %v644_v63 = vmul.f32 %v637_v54, %v626_v57  ;;  %v630_v0 = vpop.f32.mrb[3].mxu0  ;;  %v932_v57 = vrot.slane %v927_v45, %v14904_v50  ;;  %v936_v61 = vrot.slane %v927_v45, %v14890_v13  ;;  %v984_v45 = vrot.slane %v979_v43, %v14904_v50 }
 0x2ca   :  { %v645_v1 = vmul.f32 %v641_v56, %v628_v60 }
 0x2cb   :  { %v658_v2 = vadd.f32 %v651_v59, %v644_v63  ;;  %v13889_v59 = vld [vmem:[%s15678_s28 + $0x8] sm:$0xff] }
 0x2cc   :  { %v659_v3 = vadd.f32 %v655_v62, %v645_v1 }
 0x2cd   :  { %v660_v4 = vmax.f32 %v658_v2, 0.0 }
 0x2ce   :  { %v661_v5 = vmax.f32 %v659_v3, 0.0 }
 0x2cf   :  { %v694_v7 = vpack.c.bf16 %v660_v4, %v660_v4 }
 0x2d0   :  { %v695_v6 = vpack.c.bf16 %v661_v5, %v661_v5 }
 0x2d2   :  { %900 = vmatprep.mubr.bf16.mxu1 %v695_v6  ;;  %v12471_v6 = vld [vmem:[#allocation12 + $0x1d4] ss:$8 sps:$4 sm:$0xff]  }
 0x2d3   :  { %901 = vmatmul.mubr.bf16.vlgmr.msra.gmra.mrb[0].mxu1 %v694_v7  ;;  %v12469_v7 = vld [vmem:[#allocation12 + $0x1d0] ss:$8 sps:$4 sm:$0xff]  }
 0x2d4   :  { %1433 = vmatpush1.bf16.msra.mxu1 %v12430_v16  ;;  %v12483_v16 = vld [vmem:[%s15679_s15 + $0xc] ss:$20 sps:$4 sm:$0xff]  }
 0x2d5   :  { %1434 = vmatprep.subr.bf16.mxu1 %v12435_v18  ;;  %v12484_v18 = vld [vmem:[%s15679_s15 + $0x28] ss:$20 sps:$4 sm:$0xff]  }
 0x2d8   :  { %1435 = vmatpush1.bf16.msra.mxu1 %v12433_v19  ;;  %v12492_v19 = vld [vmem:[%s15679_s15 + $0x54] ss:$20 sps:$4 sm:$0xff]  }
 0x2d9   :  { %1436 = vmatprep.subr.bf16.mxu1 %v12438_v20  ;;  %v12490_v20 = vld [vmem:[%s15679_s15 + $0x50] ss:$20 sps:$4 sm:$0xff]  }
 0x2dc   :  { %1437 = vmatpush1.bf16.msra.mxu1 %v12436_v21  ;;  %v12498_v21 = vld [vmem:[%s15679_s15 + $0x7c] ss:$20 sps:$4 sm:$0xff]  }
 0x2dd   :  { %1438 = vmatprep.subr.bf16.mxu1 %v12441_v22  ;;  %v12496_v22 = vld [vmem:[%s15679_s15 + $0x78] ss:$20 sps:$4 sm:$0xff]  }
 0x2e0   :  { %1439 = vmatpush1.bf16.msra.mxu1 %v12439_v23  ;;  %v12504_v23 = vld [vmem:[%s15679_s15 + $0xa4] ss:$20 sps:$4 sm:$0xff]  }
 0x2e1   :  { %1440 = vmatprep.subr.bf16.mxu1 %v12444_v24  ;;  %v12502_v24 = vld [vmem:[%s15679_s15 + $0xa0] ss:$20 sps:$4 sm:$0xff]  }
 0x2e4   :  { %1441 = vmatpush1.bf16.msra.mxu1 %v12442_v25  ;;  %v12510_v25 = vld [vmem:[%s15679_s15 + $0xcc] ss:$20 sps:$4 sm:$0xff]  }
 0x2e5   :  { %1442 = vmatprep.subr.bf16.mxu1 %v12447_v26  ;;  %v12508_v26 = vld [vmem:[%s15679_s15 + $0xc8] ss:$20 sps:$4 sm:$0xff]  }
 0x2e8   :  { %1443 = vmatpush1.bf16.msra.mxu1 %v12445_v27  ;;  %v12516_v27 = vld [vmem:[%s15679_s15 + $0xf4] ss:$20 sps:$4 sm:$0xff]  }
 0x2e9   :  { %1444 = vmatprep.subr.bf16.mxu1 %v12450_v28  ;;  %v12514_v28 = vld [vmem:[%s15679_s15 + $0xf0] ss:$20 sps:$4 sm:$0xff]  }
 0x2ec   :  { %1445 = vmatpush1.bf16.msra.mxu1 %v12448_v29  ;;  %v12522_v29 = vld [vmem:[%s15679_s15 + $0x11c] ss:$20 sps:$4 sm:$0xff]  }
 0x2ed   :  { %1446 = vmatprep.subr.bf16.mxu1 %v12453_v30  ;;  %v12520_v30 = vld [vmem:[%s15679_s15 + $0x118] ss:$20 sps:$4 sm:$0xff]  }
 0x2f0   :  { %1447 = vmatpush1.bf16.msra.mxu1 %v12451_v31  ;;  %v12528_v31 = vld [vmem:[%s15679_s15 + $0x144] ss:$20 sps:$4 sm:$0xff]  }
 0x2f1   :  { %1448 = vmatprep.subr.bf16.mxu1 %v12456_v32  ;;  %v12526_v32 = vld [vmem:[%s15679_s15 + $0x140] ss:$20 sps:$4 sm:$0xff]  }
 0x2f4   :  { %1449 = vmatpush1.bf16.msra.mxu1 %v12454_v33  ;;  %v12534_v33 = vld [vmem:[%s15679_s15 + $0x16c] ss:$20 sps:$4 sm:$0xff]  }
 0x2f5   :  { %1450 = vmatprep.subr.bf16.mxu1 %v12459_v34  ;;  %v12532_v34 = vld [vmem:[%s15679_s15 + $0x168] ss:$20 sps:$4 sm:$0xff]  }
 0x2f8   :  { %1451 = vmatpush1.bf16.msra.mxu1 %v12457_v35  ;;  %v12540_v35 = vld [vmem:[%s15679_s15 + $0x194] ss:$20 sps:$4 sm:$0xff]  }
 0x2f9   :  { %1452 = vmatprep.subr.bf16.mxu1 %v12462_v36  ;;  %v12538_v36 = vld [vmem:[%s15679_s15 + $0x190] ss:$20 sps:$4 sm:$0xff]  }
 0x2fc   :  { %1453 = vmatpush1.bf16.msra.mxu1 %v12460_v37  ;;  %v12546_v37 = vld [vmem:[%s15679_s15 + $0x1bc] ss:$20 sps:$4 sm:$0xff]  }
 0x2fd   :  { %1454 = vmatprep.subr.bf16.mxu1 %v12465_v38  ;;  %v12544_v38 = vld [vmem:[%s15679_s15 + $0x1b8] ss:$20 sps:$4 sm:$0xff]  }
 0x300   :  { %1455 = vmatpush1.bf16.msra.mxu1 %v12463_v39  ;;  %v12552_v39 = vld [vmem:[%s15679_s15 + $0x1e4] ss:$20 sps:$4 sm:$0xff]  }
 0x301   :  { %1456 = vmatprep.subr.bf16.mxu1 %v12468_v40  ;;  %v12550_v40 = vld [vmem:[%s15679_s15 + $0x1e0] ss:$20 sps:$4 sm:$0xff]  }
 0x304   :  { %1457 = vmatpush1.bf16.msra.mxu1 %v12466_v41  ;;  %v12558_v41 = vld [vmem:[%s15679_s15 + $0x20c] ss:$20 sps:$4 sm:$0xff]  }
 0x305   :  { %1458 = vmatprep.subr.bf16.mxu1 %v12471_v6  ;;  %v12489_v6 = vld [vmem:[%s15679_s15 + $0x34] ss:$20 sps:$4 sm:$0xff]  }
 0x308   :  { %1459 = vmatpush1.bf16.msra.mxu1 %v12469_v7  ;;  %v12487_v7 = vld [vmem:[%s15679_s15 + $0x30] ss:$20 sps:$4 sm:$0xff]  }
 0x309   :  { %1460 = vmatprep.subr.bf16.mxu1 %v12474_v8  ;;  %v12495_v8 = vld [vmem:[%s15679_s15 + $0x5c] ss:$20 sps:$4 sm:$0xff]  }
 0x30c   :  { %1461 = vmatpush1.bf16.msra.mxu1 %v12472_v9  ;;  %v12493_v9 = vld [vmem:[%s15679_s15 + $0x58] ss:$20 sps:$4 sm:$0xff]  }
 0x30d   :  { %1462 = vmatprep.subr.bf16.mxu1 %v12477_v11  ;;  %v12501_v11 = vld [vmem:[%s15679_s15 + $0x84] ss:$20 sps:$4 sm:$0xff]  }
 0x310   :  { %1463 = vmatpush1.bf16.msra.mxu1 %v12475_v12  ;;  %v12499_v12 = vld [vmem:[%s15679_s15 + $0x80] ss:$20 sps:$4 sm:$0xff]  }
 0x311   :  { %2057 = vmatprep.subr.bf16.mxu1 %v12483_v16  ;;  %v12513_v16 = vld [vmem:[%s15679_s15 + $0xd4] ss:$20 sps:$4 sm:$0xff]  }
 0x3a6   :  { %v902_v47 = vpop.f32.mrb[0].mxu1 }
 0x3a7   :  { %v903_v48 = vadd.f32 %v902_v47, %v701_v44  ;;  %v904_v51 = vpop.f32.mrb[1].mxu1  ;;  %v1193_v44 = vld [vmem:[#allocation9 + $0x2] sm:$0x3]  ;;  %v988_v47 = vrot.slane %v979_v43, %v14890_v13  ;;  %v12592_v43 = vld [vmem:[#allocation19 + $0x4] ss:$20 sps:$4 sm:$0xff]  }
 0x3a8   :  { %v905_v52 = vadd.f32 %v904_v51, %v705_v46  ;;  %v906_v54 = vpop.f32.mrb[2].mxu1  ;;  %v1208_v46 = vld [vmem:[#allocation10 + $0x2] sm:$0x3]  ;;  %v1202_v51 = vrot.slane %v1193_v44, %v14890_v13 }
 0x3a9   :  { %v14926_v56 = vadd.f32 %v13888_v55, %v903_v48  ;;  %v907_v58 = vpop.f32.mrb[3].mxu1  ;;  %v1198_v48 = vrot.slane %v1193_v44, %v14904_v50  ;;  %v1260_v44 = vld [vmem:[#allocation13 + $0x2] sm:$0x3] }
 0x3aa   :  { %v14932_v60 = vadd.f32 %v13889_v59, %v905_v52 }
 0x3ab   :  { %v924_v62 = vmul.f32 %v917_v49, %v14926_v56 }
 0x3ac   :  { %v925_v63 = vmul.f32 %v921_v53, %v14932_v60  ;;  %v1213_v53 = vrot.slane %v1208_v46, %v14904_v50 }
 0x3ad   :  { %v939_v0 = vadd.f32 %v932_v57, %v924_v62  ;;  %v1217_v57 = vrot.slane %v1208_v46, %v14890_v13  ;;  %v1269_v46 = vrot.slane %v1260_v44, %v14890_v13 }
 0x3ae   :  { %v940_v1 = vadd.f32 %v936_v61, %v925_v63 }
 0x3af   :  { %v941_v2 = vmax.f32 %v939_v0, 0.0 }
 0x3b0   :  { %v942_v3 = vmax.f32 %v940_v1, 0.0 }
 0x3b1   :  { %v976_v5 = vpack.c.bf16 %v941_v2, %v941_v2 }
 0x3b2   :  { %v977_v4 = vpack.c.bf16 %v942_v3, %v942_v3 }
 0x3b4   :  { %1183 = vmatprep.mubr.bf16.mxu0 %v977_v4  ;;  %v12481_v4 = vld [vmem:[%s15679_s15 + $0x8] ss:$20 sps:$4 sm:$0xff]  }
 0x3b5   :  { %1184 = vmatmul.mubr.bf16.vlgmr.msra.gmra.mrb[4].mxu0 %v976_v5 }
 0x3b6   :  { %2017 = vmatpush1.bf16.msra.mxu0 %v12478_v14  ;;  %v12507_v14 = vld [vmem:[%s15679_s15 + $0xac] ss:$20 sps:$4 sm:$0xff]  }
 0x3b7   :  { %2018 = vmatprep.subr.bf16.mxu0 %v12486_v17  ;;  %v12511_v17 = vld [vmem:[%s15679_s15 + $0xd0] ss:$20 sps:$4 sm:$0xff]  }
 0x3ba   :  { %2019 = vmatpush1.bf16.msra.mxu0 %v12484_v18  ;;  %v12519_v18 = vld [vmem:[%s15679_s15 + $0xfc] ss:$20 sps:$4 sm:$0xff]  }
 0x3bb   :  { %2020 = vmatprep.subr.bf16.mxu0 %v12492_v19  ;;  %v12517_v19 = vld [vmem:[%s15679_s15 + $0xf8] ss:$20 sps:$4 sm:$0xff]  }
 0x3be   :  { %2021 = vmatpush1.bf16.msra.mxu0 %v12490_v20  ;;  %v12525_v20 = vld [vmem:[%s15679_s15 + $0x124] ss:$20 sps:$4 sm:$0xff]  }
 0x3bf   :  { %2022 = vmatprep.subr.bf16.mxu0 %v12498_v21  ;;  %v12523_v21 = vld [vmem:[%s15679_s15 + $0x120] ss:$20 sps:$4 sm:$0xff]  }
 0x3c2   :  { %2023 = vmatpush1.bf16.msra.mxu0 %v12496_v22  ;;  %v12531_v22 = vld [vmem:[%s15679_s15 + $0x14c] ss:$20 sps:$4 sm:$0xff]  }
 0x3c3   :  { %2024 = vmatprep.subr.bf16.mxu0 %v12504_v23  ;;  %v12529_v23 = vld [vmem:[%s15679_s15 + $0x148] ss:$20 sps:$4 sm:$0xff]  }
 0x3c6   :  { %2025 = vmatpush1.bf16.msra.mxu0 %v12502_v24  ;;  %v12537_v24 = vld [vmem:[%s15679_s15 + $0x174] ss:$20 sps:$4 sm:$0xff]  }
 0x3c7   :  { %2026 = vmatprep.subr.bf16.mxu0 %v12510_v25  ;;  %v12535_v25 = vld [vmem:[%s15679_s15 + $0x170] ss:$20 sps:$4 sm:$0xff]  }
 0x3ca   :  { %2027 = vmatpush1.bf16.msra.mxu0 %v12508_v26  ;;  %v12543_v26 = vld [vmem:[%s15679_s15 + $0x19c] ss:$20 sps:$4 sm:$0xff]  }
 0x3cb   :  { %2028 = vmatprep.subr.bf16.mxu0 %v12516_v27  ;;  %v12541_v27 = vld [vmem:[%s15679_s15 + $0x198] ss:$20 sps:$4 sm:$0xff]  }
 0x3ce   :  { %2029 = vmatpush1.bf16.msra.mxu0 %v12514_v28  ;;  %v12549_v28 = vld [vmem:[%s15679_s15 + $0x1c4] ss:$20 sps:$4 sm:$0xff]  }
 0x3cf   :  { %2030 = vmatprep.subr.bf16.mxu0 %v12522_v29  ;;  %v12547_v29 = vld [vmem:[%s15679_s15 + $0x1c0] ss:$20 sps:$4 sm:$0xff]  }
 0x3d2   :  { %2031 = vmatpush1.bf16.msra.mxu0 %v12520_v30  ;;  %v12555_v30 = vld [vmem:[%s15679_s15 + $0x1ec] ss:$20 sps:$4 sm:$0xff]  }
 0x3d3   :  { %2032 = vmatprep.subr.bf16.mxu0 %v12528_v31  ;;  %v12553_v31 = vld [vmem:[%s15679_s15 + $0x1e8] ss:$20 sps:$4 sm:$0xff]  }
 0x3d6   :  { %2033 = vmatpush1.bf16.msra.mxu0 %v12526_v32  ;;  %v12561_v32 = vld [vmem:[%s15679_s15 + $0x214] ss:$20 sps:$4 sm:$0xff]  }
 0x3d7   :  { %2034 = vmatprep.subr.bf16.mxu0 %v12534_v33  ;;  %v12559_v33 = vld [vmem:[%s15679_s15 + $0x210] ss:$20 sps:$4 sm:$0xff]  }
 0x3da   :  { %2035 = vmatpush1.bf16.msra.mxu0 %v12532_v34  ;;  %v12564_v34 = vld [vmem:[%s15679_s15 + $0x234] ss:$20 sps:$4 sm:$0xff]  }
 0x3db   :  { %2036 = vmatprep.subr.bf16.mxu0 %v12540_v35  ;;  %v12562_v35 = vld [vmem:[%s15679_s15 + $0x230] ss:$20 sps:$4 sm:$0xff]  }
 0x3de   :  { %2037 = vmatpush1.bf16.msra.mxu0 %v12538_v36  ;;  %v12567_v36 = vld [vmem:[%s15679_s15 + $0x23c] ss:$20 sps:$4 sm:$0xff]  }
 0x3df   :  { %2038 = vmatprep.subr.bf16.mxu0 %v12546_v37  ;;  %v12565_v37 = vld [vmem:[%s15679_s15 + $0x238] ss:$20 sps:$4 sm:$0xff]  }
 0x3e2   :  { %2039 = vmatpush1.bf16.msra.mxu0 %v12544_v38  ;;  %v12570_v38 = vld [vmem:[%s15679_s15 + $0x25c] ss:$20 sps:$4 sm:$0xff]  }
 0x3e3   :  { %2040 = vmatprep.subr.bf16.mxu0 %v12552_v39  ;;  %v12568_v39 = vld [vmem:[%s15679_s15 + $0x258] ss:$20 sps:$4 sm:$0xff]  }
 0x3e6   :  { %2041 = vmatpush1.bf16.msra.mxu0 %v12550_v40  ;;  %v12573_v40 = vld [vmem:[%s15679_s15 + $0x264] ss:$20 sps:$4 sm:$0xff]  }
 0x3e7   :  { %2042 = vmatprep.subr.bf16.mxu0 %v12558_v41  ;;  %v12571_v41 = vld [vmem:[%s15679_s15 + $0x260] ss:$20 sps:$4 sm:$0xff]  }
 0x3ea   :  { %2043 = vmatpush1.bf16.msra.mxu0 %v12556_v42  ;;  %v12574_v42 = vld [vmem:[%s15679_s15 + $0x150] ss:$20 sps:$4 sm:$0xff]  }
 0x3eb   :  { %2044 = vmatprep.subr.bf16.mxu0 %v12564_v34  ;;  %v12644_v34 = vld [vmem:[#allocation19 + $0x168] ss:$20 sps:$4 sm:$0xff]  }
 0x3ee   :  { %2045 = vmatpush1.bf16.msra.mxu0 %v12562_v35  ;;  %v12652_v35 = vld [vmem:[#allocation19 + $0x194] ss:$20 sps:$4 sm:$0xff]  }
 0x3ef   :  { %2046 = vmatprep.subr.bf16.mxu0 %v12570_v38  ;;  %v12650_v38 = vld [vmem:[#allocation19 + $0x190] ss:$20 sps:$4 sm:$0xff]  }
 0x3f2   :  { %2047 = vmatpush1.bf16.msra.mxu0 %v12568_v39  ;;  %v12658_v39 = vld [vmem:[#allocation19 + $0x1bc] ss:$20 sps:$4 sm:$0xff]  }
 0x3f3   :  { %11804 = vmatprep.subr.bf16.mxu0 %v12574_v42  ;;  %v12656_v42 = vld [vmem:[#allocation19 + $0x1b8] ss:$20 sps:$4 sm:$0xff]  }
 0x488   :  { %v1185_v49 = vpop.f32.mrb[4].mxu0 }
 0x489   :  { %v1186_v52 = vadd.f32 %v1185_v49, %v984_v45  ;;  %v1187_v54 = vpop.f32.mrb[5].mxu0  ;;  %v1265_v45 = vrot.slane %v1260_v44, %v14904_v50  ;;  %v12617_v44 = vld [vmem:[#allocation19 + $0xa8] ss:$20 sps:$4 sm:$0xff]  }
 0x48a   :  { %v1188_v55 = vadd.f32 %v1187_v54, %v988_v47  ;;  %v1189_v58 = vpop.f32.mrb[6].mxu0 }
 0x48b   :  { %v1205_v59 = vmul.f32 %v1198_v48, %v1186_v52  ;;  %v1190_v61 = vpop.f32.mrb[7].mxu0  ;;  %v12575_v58 = vld [vmem:[%s15679_s15 + $0x10] ss:$20 sps:$4 sm:$0xff]  }
 0x48c   :  { %v1206_v62 = vmul.f32 %v1202_v51, %v1188_v55  ;;  %v12576_v61 = vld [vmem:[%s15679_s15 + $0x178] ss:$20 sps:$4 sm:$0xff]  }
 0x48d   :  { %v1220_v63 = vadd.f32 %v1213_v53, %v1205_v59 }
 0x48e   :  { %v1221_v0 = vadd.f32 %v1217_v57, %v1206_v62  ;;  %v12590_v62 = vld [vmem:[#allocation19] ss:$20 sps:$4 sm:$0xff]  }
 0x48f   :  { %v1222_v1 = vmax.f32 %v1220_v63, 0.0  ;;  %v12598_v63 = vld [vmem:[#allocation19 + $0x2c] ss:$20 sps:$4 sm:$0xff]  }
 0x490   :  { %v1223_v2 = vmax.f32 %v1221_v0, 0.0  ;;  %v12596_v0 = vld [vmem:[#allocation19 + $0x28] ss:$20 sps:$4 sm:$0xff]  }
 0x491   :  { %v1257_v5 = vpack.c.bf16 %v1222_v1, %v1222_v1  ;;  %v12604_v1 = vld [vmem:[#allocation19 + $0x54] ss:$20 sps:$4 sm:$0xff]  }
 0x492   :  { %v1258_v3 = vpack.c.bf16 %v1223_v2, %v1223_v2  ;;  %v12579_v2 = vld [vmem:[%s15679_s15 + $0x60] ss:$20 sps:$4 sm:$0xff]  }
 0x494   :  { %1464 = vmatprep.mubr.bf16.mxu1 %v1258_v3  ;;  %v12580_v3 = vld [vmem:[%s15679_s15 + $0x1c8] ss:$20 sps:$4 sm:$0xff]  }
 0x495   :  { %1465 = vmatmul.mubr.bf16.vlgmr.msra.gmra.mrb[4].mxu1 %v1257_v5  ;;  %v12610_v5 = vld [vmem:[#allocation19 + $0x7c] ss:$20 sps:$4 sm:$0xff]  }
 0x496   :  { %2058 = vmatpush1.bf16.msra.mxu1 %v12481_v4  ;;  %v12602_v4 = vld [vmem:[#allocation19 + $0x50] ss:$20 sps:$4 sm:$0xff]  }
 0x497   :  { %2059 = vmatprep.subr.bf16.mxu1 %v12489_v6  ;;  %v12581_v6 = vld [vmem:[%s15679_s15 + $0x88] ss:$20 sps:$4 sm:$0xff]  }
 0x49a   :  { %2060 = vmatpush1.bf16.msra.mxu1 %v12487_v7  ;;  %v12582_v7 = vld [vmem:[%s15679_s15 + $0x1f0] ss:$20 sps:$4 sm:$0xff]  }
 0x49b   :  { %2061 = vmatprep.subr.bf16.mxu1 %v12495_v8  ;;  %v12608_v8 = vld [vmem:[#allocation19 + $0x78] ss:$20 sps:$4 sm:$0xff]  }
 0x49e   :  { %2062 = vmatpush1.bf16.msra.mxu1 %v12493_v9  ;;  %v12616_v9 = vld [vmem:[#allocation19 + $0xa4] ss:$20 sps:$4 sm:$0xff]  }
 0x49f   :  { %2063 = vmatprep.subr.bf16.mxu1 %v12501_v11  ;;  %v12583_v11 = vld [vmem:[%s15679_s15 + $0xb0] ss:$20 sps:$4 sm:$0xff]  }
 0x4a2   :  { %2064 = vmatpush1.bf16.msra.mxu1 %v12499_v12  ;;  %v12584_v12 = vld [vmem:[%s15679_s15 + $0x218] ss:$20 sps:$4 sm:$0xff]  }
 0x4a3   :  { %2065 = vmatprep.subr.bf16.mxu1 %v12507_v14  ;;  %v12614_v14 = vld [vmem:[#allocation19 + $0xa0] ss:$20 sps:$4 sm:$0xff]  }
 0x4a6   :  { %2066 = vmatpush1.bf16.msra.mxu1 %v12505_v15  ;;  %v12622_v15 = vld [vmem:[#allocation19 + $0xcc] ss:$20 sps:$4 sm:$0xff]  }
 0x4a7   :  { %2067 = vmatprep.subr.bf16.mxu1 %v12513_v16  ;;  %v12585_v16 = vld [vmem:[%s15679_s15 + $0xd8] ss:$20 sps:$4 sm:$0xff]  }
 0x4aa   :  { %2068 = vmatpush1.bf16.msra.mxu1 %v12511_v17  ;;  %v12586_v17 = vld [vmem:[%s15679_s15 + $0x240] ss:$20 sps:$4 sm:$0xff]  }
 0x4ab   :  { %2069 = vmatprep.subr.bf16.mxu1 %v12519_v18  ;;  %v12620_v18 = vld [vmem:[#allocation19 + $0xc8] ss:$20 sps:$4 sm:$0xff]  }
 0x4ae   :  { %2070 = vmatpush1.bf16.msra.mxu1 %v12517_v19  ;;  %v12628_v19 = vld [vmem:[#allocation19 + $0xf4] ss:$20 sps:$4 sm:$0xff]  }
 0x4af   :  { %2071 = vmatprep.subr.bf16.mxu1 %v12525_v20  ;;  %v12587_v20 = vld [vmem:[%s15679_s15 + $0x100] ss:$20 sps:$4 sm:$0xff]  }
 0x4b2   :  { %2072 = vmatpush1.bf16.msra.mxu1 %v12523_v21  ;;  %v12588_v21 = vld [vmem:[%s15679_s15 + $0x268] ss:$20 sps:$4 sm:$0xff]  }
 0x4b3   :  { %2073 = vmatprep.subr.bf16.mxu1 %v12531_v22  ;;  %v12626_v22 = vld [vmem:[#allocation19 + $0xf0] ss:$20 sps:$4 sm:$0xff]  }
 0x4b6   :  { %2074 = vmatpush1.bf16.msra.mxu1 %v12529_v23  ;;  %v12634_v23 = vld [vmem:[#allocation19 + $0x11c] ss:$20 sps:$4 sm:$0xff]  }
 0x4b7   :  { %2075 = vmatprep.subr.bf16.mxu1 %v12537_v24  ;;  %v12589_v24 = vld [vmem:[%s15679_s15 + $0x128] ss:$20 sps:$4 sm:$0xff]  }
 0x4ba   :  { %2076 = vmatpush1.bf16.msra.mxu1 %v12535_v25  ;;  %v12595_v25 = vld [vmem:[#allocation19 + $0xc] ss:$20 sps:$4 sm:$0xff]  }
 0x4bb   :  { %2077 = vmatprep.subr.bf16.mxu1 %v12543_v26  ;;  %v12632_v26 = vld [vmem:[#allocation19 + $0x118] ss:$20 sps:$4 sm:$0xff]  }
 0x4be   :  { %2078 = vmatpush1.bf16.msra.mxu1 %v12541_v27  ;;  %v12640_v27 = vld [vmem:[#allocation19 + $0x144] ss:$20 sps:$4 sm:$0xff]  }
 0x4bf   :  { %2079 = vmatprep.subr.bf16.mxu1 %v12549_v28  ;;  %v12593_v28 = vld [vmem:[#allocation19 + $0x8] ss:$20 sps:$4 sm:$0xff]  }
 0x4c2   :  { %2080 = vmatpush1.bf16.msra.mxu1 %v12547_v29  ;;  %v12601_v29 = vld [vmem:[#allocation19 + $0x34] ss:$20 sps:$4 sm:$0xff]  }
 0x4c3   :  { %2081 = vmatprep.subr.bf16.mxu1 %v12555_v30  ;;  %v12638_v30 = vld [vmem:[#allocation19 + $0x140] ss:$20 sps:$4 sm:$0xff]  }
 0x4c6   :  { %2082 = vmatpush1.bf16.msra.mxu1 %v12553_v31  ;;  %v12646_v31 = vld [vmem:[#allocation19 + $0x16c] ss:$20 sps:$4 sm:$0xff]  }
 0x4c7   :  { %2083 = vmatprep.subr.bf16.mxu1 %v12561_v32  ;;  %v12599_v32 = vld [vmem:[#allocation19 + $0x30] ss:$20 sps:$4 sm:$0xff]  }
 0x4ca   :  { %2084 = vmatpush1.bf16.msra.mxu1 %v12559_v33  ;;  %v12607_v33 = vld [vmem:[#allocation19 + $0x5c] ss:$20 sps:$4 sm:$0xff]  }
 0x4cb   :  { %2085 = vmatprep.subr.bf16.mxu1 %v12567_v36  ;;  %v12605_v36 = vld [vmem:[#allocation19 + $0x58] ss:$20 sps:$4 sm:$0xff]  }
 0x4ce   :  { %2086 = vmatpush1.bf16.msra.mxu1 %v12565_v37  ;;  %v12613_v37 = vld [vmem:[#allocation19 + $0x84] ss:$20 sps:$4 sm:$0xff]  }
 0x4cf   :  { %2087 = vmatprep.subr.bf16.mxu1 %v12573_v40  ;;  %v12611_v40 = vld [vmem:[#allocation19 + $0x80] ss:$20 sps:$4 sm:$0xff]  }
 0x4d2   :  { %2088 = vmatpush1.bf16.msra.mxu1 %v12571_v41  ;;  %v12619_v41 = vld [vmem:[#allocation19 + $0xac] ss:$20 sps:$4 sm:$0xff]  }
 0x4d3   :  { %3395 = vmatprep.subr.bf16.mxu1 %v12592_v43  ;;  %v12664_v43 = vld [vmem:[#allocation19 + $0x1e4] ss:$20 sps:$4 sm:$0xff]  }
 0x568   :  { %v1466_v47 = vpop.f32.mrb[4].mxu1 }
 0x569   :  { %v1467_v48 = vadd.f32 %v1466_v47, %v1265_v45  ;;  %v1468_v49 = vpop.f32.mrb[5].mxu1  ;;  %v12625_v45 = vld [vmem:[#allocation19 + $0xd4] ss:$20 sps:$4 sm:$0xff]   ;;  %v12623_v47 = vld [vmem:[#allocation19 + $0xd0] ss:$20 sps:$4 sm:$0xff]  }
 0x56a   :  { %v1469_v51 = vadd.f32 %v1468_v49, %v1269_v46  ;;  %v1470_v52 = vpop.f32.mrb[6].mxu1  ;;  %v12662_v46 = vld [vmem:[#allocation19 + $0x1e0] ss:$20 sps:$4 sm:$0xff]   ;;  %v12629_v49 = vld [vmem:[#allocation19 + $0xf8] ss:$20 sps:$4 sm:$0xff]  }
 0x56b   :  { %v1473_v53 = vadd.f32 %v1467_v48, %v14926_v56  ;;  %v1471_v54 = vpop.f32.mrb[7].mxu1  ;;  %v12577_v56 = vld [vmem:[%s15679_s15 + $0x38] ss:$20 sps:$4 sm:$0xff]   ;;  %v12635_v52 = vld [vmem:[#allocation19 + $0x120] ss:$20 sps:$4 sm:$0xff]  }
 0x56c   :  { %v1474_v55 = vadd.f32 %v1469_v51, %v14932_v60  ;;  %v12578_v60 = vld [vmem:[%s15679_s15 + $0x1a0] ss:$20 sps:$4 sm:$0xff]   ;;  %v12641_v54 = vld [vmem:[#allocation19 + $0x148] ss:$20 sps:$4 sm:$0xff]  }
 0x56d   :  { %v15145_v59 = vpack.c.bf16 %v1473_v53, %v1473_v53  ;;  %v12631_v48 = vld [vmem:[#allocation19 + $0xfc] ss:$20 sps:$4 sm:$0xff]   ;;  %v12637_v51 = vld [vmem:[#allocation19 + $0x124] ss:$20 sps:$4 sm:$0xff]   ;;  %v12643_v53 = vld [vmem:[#allocation19 + $0x14c] ss:$20 sps:$4 sm:$0xff]  }
 0x56e   :  { %v1572_v57 = vpack.c.bf16 %v1474_v55, %v1474_v55  ;;  %v12649_v55 = vld [vmem:[#allocation19 + $0x174] ss:$20 sps:$4 sm:$0xff]  }
 0x570   :  { %2048 = vmatprep.mubr.bf16.mxu0 %v1572_v57  ;;  %2089 = vmatprep.mubr.bf16.mxu1 %v1572_v57 }
 0x571   :  { %2049 = vmatmul.mubr.bf16.vlgmr.msra.gmra.mrb[8].mxu0 %v15145_v59  ;;  %2090 = vmatmul.mubr.bf16.vlgmr.msra.gmra.mrb[8].mxu1 %v15145_v59 }
 0x572   :  { %11805 = vmatpush3.bf16.msra.mxu0 %v12575_v58  ;;  %2130 = vmatprep.mubr.bf16.mxu0 %v1572_v57  ;;  %v12647_v57 = vld [vmem:[#allocation19 + $0x170] ss:$20 sps:$4 sm:$0xff]  }
 0x573   :  { %11806 = vmatprep.subr.bf16.mxu0 %v12576_v61  ;;  %3396 = vmatpush1.bf16.msra.mxu1 %v12590_v62  ;;  %v12655_v58 = vld [vmem:[#allocation19 + $0x19c] ss:$20 sps:$4 sm:$0xff]   ;;  %v12661_v61 = vld [vmem:[#allocation19 + $0x1c4] ss:$20 sps:$4 sm:$0xff]   ;;  %v12659_v62 = vld [vmem:[#allocation19 + $0x1c0] ss:$20 sps:$4 sm:$0xff]  }
 0x574   :  { %3397 = vmatprep.subr.bf16.mxu1 %v12598_v63  ;;  %v12667_v63 = vld [vmem:[#allocation19 + $0x1ec] ss:$20 sps:$4 sm:$0xff]  }
 0x576   :  { %11807 = vmatpush3.bf16.msra.mxu0 %v12577_v56  ;;  %v12665_v56 = vld [vmem:[#allocation19 + $0x1e8] ss:$20 sps:$4 sm:$0xff]  }
 0x577   :  { %11808 = vmatprep.subr.bf16.mxu0 %v12578_v60  ;;  %3398 = vmatpush1.bf16.msra.mxu1 %v12596_v0  ;;  %v12670_v60 = vld [vmem:[#allocation19 + $0x20c] ss:$20 sps:$4 sm:$0xff]   ;;  %v12673_v0 = vld [vmem:[#allocation19 + $0x214] ss:$20 sps:$4 sm:$0xff]  }
 0x578   :  { %3399 = vmatprep.subr.bf16.mxu1 %v12604_v1  ;;  %v12668_v1 = vld [vmem:[#allocation19 + $0x208] ss:$20 sps:$4 sm:$0xff]  }
 0x57a   :  { %11809 = vmatpush3.bf16.msra.mxu0 %v12579_v2  ;;  %v12671_v2 = vld [vmem:[#allocation19 + $0x210] ss:$20 sps:$4 sm:$0xff]  }
 0x57b   :  { %11810 = vmatprep.subr.bf16.mxu0 %v12580_v3  ;;  %3400 = vmatpush1.bf16.msra.mxu1 %v12602_v4  ;;  %v12676_v3 = vld [vmem:[#allocation19 + $0x234] ss:$20 sps:$4 sm:$0xff]   ;;  %v12679_v4 = vld [vmem:[#allocation19 + $0x23c] ss:$20 sps:$4 sm:$0xff]  }
 0x57c   :  { %3401 = vmatprep.subr.bf16.mxu1 %v12610_v5  ;;  %v12674_v5 = vld [vmem:[#allocation19 + $0x230] ss:$20 sps:$4 sm:$0xff]  }
 0x57e   :  { %11811 = vmatpush3.bf16.msra.mxu0 %v12581_v6  ;;  %v12677_v6 = vld [vmem:[#allocation19 + $0x238] ss:$20 sps:$4 sm:$0xff]  }
 0x57f   :  { %11812 = vmatprep.subr.bf16.mxu0 %v12582_v7  ;;  %3402 = vmatpush1.bf16.msra.mxu1 %v12608_v8  ;;  %v12682_v7 = vld [vmem:[#allocation19 + $0x25c] ss:$20 sps:$4 sm:$0xff]   ;;  %v12685_v8 = vld [vmem:[#allocation19 + $0x264] ss:$20 sps:$4 sm:$0xff]  }
 0x580   :  { %3403 = vmatprep.subr.bf16.mxu1 %v12616_v9  ;;  %v12680_v9 = vld [vmem:[#allocation19 + $0x258] ss:$20 sps:$4 sm:$0xff]  }
 0x582   :  { %11813 = vmatpush3.bf16.msra.mxu0 %v12583_v11  ;;  %v12683_v11 = vld [vmem:[#allocation19 + $0x260] ss:$20 sps:$4 sm:$0xff]  }
 0x583   :  { %11814 = vmatprep.subr.bf16.mxu0 %v12584_v12  ;;  %3404 = vmatpush1.bf16.msra.mxu1 %v12614_v14  ;;  %v12688_v12 = vld [vmem:[#allocation19 + $0x284] ss:$20 sps:$4 sm:$0xff]   ;;  %v12691_v14 = vld [vmem:[#allocation19 + $0x28c] ss:$20 sps:$4 sm:$0xff]  }
 0x584   :  { %3405 = vmatprep.subr.bf16.mxu1 %v12622_v15  ;;  %v15193_v15 = vsub.s32 2, %v14887_v10 }
 0x586   :  { %11815 = vmatpush3.bf16.msra.mxu0 %v12585_v16  ;;  %v15195_v16 = vld [vmem:[#allocation15] sm:$0x1f] }
 0x587   :  { %11816 = vmatprep.subr.bf16.mxu0 %v12586_v17  ;;  %3406 = vmatpush1.bf16.msra.mxu1 %v12620_v18  ;;  %v15198_v17 = vsub.s32 3, %v14887_v10  ;;  %v15200_v18 = vld [vmem:[#allocation16] sm:$0x1f] }
 0x588   :  { %3407 = vmatprep.subr.bf16.mxu1 %v12628_v19  ;;  %v1578_v19 = vrot.slane %v15195_v16, %v14904_v50 }
 0x58a   :  { %11817 = vmatpush3.bf16.msra.mxu0 %v12587_v20  ;;  %v1586_v20 = vrot.slane %v15195_v16, %v15193_v15 }
 0x58b   :  { %11818 = vmatprep.subr.bf16.mxu0 %v12588_v21  ;;  %3408 = vmatpush1.bf16.msra.mxu1 %v12626_v22  ;;  %v15206_v21 = vld [vmem:[#allocation18] sm:$0x1f]  ;;  %v1582_v22 = vrot.slane %v15195_v16, %v14890_v13 }
 0x58c   :  { %3409 = vmatprep.subr.bf16.mxu1 %v12634_v23  ;;  %v1590_v23 = vrot.slane %v15195_v16, %v15198_v17 }
 0x58e   :  { %11819 = vmatpush3.bf16.msra.mxu0 %v12589_v24  ;;  %v2143_v24 = vrot.slane %v15200_v18, %v14904_v50 }
 0x58f   :  { %3518 = vmatprep.subr.bf16.mxu0 %v12595_v25  ;;  %3410 = vmatpush1.bf16.msra.mxu1 %v12632_v26  ;;  %v2151_v25 = vrot.slane %v15200_v18, %v15193_v15 }
 0x590   :  { %3411 = vmatprep.subr.bf16.mxu1 %v12640_v27 }
 0x591   :  { %2131 = vmatmul.mubr.bf16.vlgmr.msra.gmra.mrb[12].mxu0 %v15145_v59  ;;  %v12653_v59 = vld [vmem:[#allocation19 + $0x198] ss:$20 sps:$4 sm:$0xff]  }
 0x592   :  { %3519 = vmatpush1.bf16.msra.mxu0 %v12593_v28  ;;  %v2147_v28 = vrot.slane %v15200_v18, %v14890_v13 }
 0x593   :  { %3520 = vmatprep.subr.bf16.mxu0 %v12601_v29  ;;  %3412 = vmatpush1.bf16.msra.mxu1 %v12638_v30  ;;  %v2155_v29 = vrot.slane %v15200_v18, %v15198_v17 }
 0x594   :  { %3413 = vmatprep.subr.bf16.mxu1 %v12646_v31  ;;  %v2175_v31 = vrot.slane %v15206_v21, %v14904_v50 }
 0x596   :  { %3521 = vmatpush1.bf16.msra.mxu0 %v12599_v32 }
 0x597   :  { %3522 = vmatprep.subr.bf16.mxu0 %v12607_v33  ;;  %3414 = vmatpush1.bf16.msra.mxu1 %v12644_v34  ;;  %v2183_v33 = vrot.slane %v15206_v21, %v15193_v15 }
 0x598   :  { %3415 = vmatprep.subr.bf16.mxu1 %v12652_v35 }
 0x59a   :  { %3523 = vmatpush1.bf16.msra.mxu0 %v12605_v36 }
 0x59b   :  { %3524 = vmatprep.subr.bf16.mxu0 %v12613_v37  ;;  %3416 = vmatpush1.bf16.msra.mxu1 %v12650_v38  ;;  %v2179_v37 = vrot.slane %v15206_v21, %v14890_v13 }
 0x59c   :  { %3417 = vmatprep.subr.bf16.mxu1 %v12658_v39  ;;  %v2187_v39 = vrot.slane %v15206_v21, %v15198_v17 }
 0x59e   :  { %3525 = vmatpush1.bf16.msra.mxu0 %v12611_v40 }
 0x59f   :  { %3526 = vmatprep.subr.bf16.mxu0 %v12619_v41  ;;  %3418 = vmatpush1.bf16.msra.mxu1 %v12656_v42 }
 0x5a0   :  { %3419 = vmatprep.subr.bf16.mxu1 %v12664_v43 }
 0x5a2   :  { %3527 = vmatpush1.bf16.msra.mxu0 %v12617_v44 }
 0x5a3   :  { %3528 = vmatprep.subr.bf16.mxu0 %v12625_v45  ;;  %3420 = vmatpush1.bf16.msra.mxu1 %v12662_v46 }
 0x5a4   :  { %3421 = vmatprep.subr.bf16.mxu1 %v12670_v60  ;;  %v12692_v60 = vld [vmem:[#allocation19 + $0x2a8] ss:$20 sps:$4 sm:$0xff]  }
 0x5a6   :  { %3529 = vmatpush1.bf16.msra.mxu0 %v12623_v47 }
 0x5a7   :  { %3530 = vmatprep.subr.bf16.mxu0 %v12631_v48  ;;  %3422 = vmatpush1.bf16.msra.mxu1 %v12668_v1  ;;  %v12700_v1 = vld [vmem:[#allocation19 + $0x2d4] ss:$20 sps:$4 sm:$0xff]  }
 0x5a8   :  { %3423 = vmatprep.subr.bf16.mxu1 %v12676_v3  ;;  %v12698_v3 = vld [vmem:[#allocation19 + $0x2d0] ss:$20 sps:$4 sm:$0xff]  }
 0x5aa   :  { %3531 = vmatpush1.bf16.msra.mxu0 %v12629_v49 }
 0x5ab   :  { %3532 = vmatprep.subr.bf16.mxu0 %v12637_v51  ;;  %3424 = vmatpush1.bf16.msra.mxu1 %v12674_v5  ;;  %v12706_v5 = vld [vmem:[#allocation19 + $0x2fc] ss:$20 sps:$4 sm:$0xff]  }
 0x5ac   :  { %3425 = vmatprep.subr.bf16.mxu1 %v12682_v7  ;;  %v12704_v7 = vld [vmem:[#allocation19 + $0x2f8] ss:$20 sps:$4 sm:$0xff]  }
 0x5ae   :  { %3533 = vmatpush1.bf16.msra.mxu0 %v12635_v52 }
 0x5af   :  { %3534 = vmatprep.subr.bf16.mxu0 %v12643_v53  ;;  %3426 = vmatpush1.bf16.msra.mxu1 %v12680_v9  ;;  %v12712_v9 = vld [vmem:[#allocation19 + $0x324] ss:$20 sps:$4 sm:$0xff]  }
 0x5b0   :  { %3436 = vmatprep.subr.bf16.mxu1 %v12688_v12  ;;  %v12710_v12 = vld [vmem:[#allocation19 + $0x320] ss:$20 sps:$4 sm:$0xff]  }
 0x5b2   :  { %3535 = vmatpush1.bf16.msra.mxu0 %v12641_v54 }
 0x5b3   :  { %3536 = vmatprep.subr.bf16.mxu0 %v12649_v55 }
 0x5b6   :  { %3537 = vmatpush1.bf16.msra.mxu0 %v12647_v57 }
 0x5b7   :  { %3538 = vmatprep.subr.bf16.mxu0 %v12655_v58  ;;  %v12686_v58 = vld [vmem:[#allocation19 + $0x280] ss:$20 sps:$4 sm:$0xff]  }
 0x5ba   :  { %3539 = vmatpush1.bf16.msra.mxu0 %v12653_v59  ;;  %v12689_v59 = vld [vmem:[#allocation19 + $0x288] ss:$20 sps:$4 sm:$0xff]  }
 0x5bb   :  { %3540 = vmatprep.subr.bf16.mxu0 %v12661_v61 }
 0x5be   :  { %3541 = vmatpush1.bf16.msra.mxu0 %v12659_v62  ;;  %v12694_v62 = vld [vmem:[#allocation19 + $0x2ac] ss:$20 sps:$4 sm:$0xff]  }
 0x5bf   :  { %3542 = vmatprep.subr.bf16.mxu0 %v12667_v63  ;;  %v12697_v63 = vld [vmem:[#allocation19 + $0x2b4] ss:$20 sps:$4 sm:$0xff]  }
 0x5c2   :  { %3543 = vmatpush1.bf16.msra.mxu0 %v12665_v56 }
 0x5c3   :  { %3544 = vmatprep.subr.bf16.mxu0 %v12673_v0  ;;  %v12695_v0 = vld [vmem:[#allocation19 + $0x2b0] ss:$20 sps:$4 sm:$0xff]  }
 0x5c6   :  { %3545 = vmatpush1.bf16.msra.mxu0 %v12671_v2  ;;  %v12703_v2 = vld [vmem:[#allocation19 + $0x2dc] ss:$20 sps:$4 sm:$0xff]  }
 0x5c7   :  { %3546 = vmatprep.subr.bf16.mxu0 %v12679_v4  ;;  %v12701_v4 = vld [vmem:[#allocation19 + $0x2d8] ss:$20 sps:$4 sm:$0xff]  }
 0x5ca   :  { %3547 = vmatpush1.bf16.msra.mxu0 %v12677_v6  ;;  %v12709_v6 = vld [vmem:[#allocation19 + $0x304] ss:$20 sps:$4 sm:$0xff]  }
 0x5cb   :  { %3548 = vmatprep.subr.bf16.mxu0 %v12685_v8  ;;  %v12707_v8 = vld [vmem:[#allocation19 + $0x300] ss:$20 sps:$4 sm:$0xff]  }
 0x5ce   :  { %3549 = vmatpush1.bf16.msra.mxu0 %v12683_v11  ;;  %v12715_v11 = vld [vmem:[#allocation19 + $0x32c] ss:$20 sps:$4 sm:$0xff]  }
 0x5cf   :  { %3559 = vmatprep.subr.bf16.mxu0 %v12691_v14  ;;  %v12713_v14 = vld [vmem:[#allocation19 + $0x328] ss:$20 sps:$4 sm:$0xff]  }
 0x644   :  { %v2050_v26 = vpop.f32.mrb[8].mxu0  ;;  %v2091_v27 = vpop.f32.mrb[8].mxu1 }
 0x645   :  { %v15220_v30 = vadd.f32 %v2050_v26, %v1578_v19  ;;  %v15224_v32 = vadd.f32 %v2091_v27, %v1586_v20  ;;  %v2052_v34 = vpop.f32.mrb[9].mxu0  ;;  %v2093_v35 = vpop.f32.mrb[9].mxu1  ;;  %v12718_v19 = vld [vmem:[#allocation19 + $0x34c] ss:$20 sps:$4 sm:$0xff]   ;;  %v12721_v20 = vld [vmem:[#allocation19 + $0x354] ss:$20 sps:$4 sm:$0xff]  }
 0x646   :  { %v15228_v36 = vadd.f32 %v2052_v34, %v1582_v22  ;;  %v15232_v38 = vadd.f32 %v2093_v35, %v1590_v23  ;;  %v2054_v40 = vpop.f32.mrb[10].mxu0  ;;  %v2095_v41 = vpop.f32.mrb[10].mxu1  ;;  %v15255_v22 = vsub.s32 4, %v14887_v10  ;;  %v12716_v23 = vld [vmem:[#allocation19 + $0x348] ss:$20 sps:$4 sm:$0xff]  }
 0x647   :  { %v2165_v42 = vmul.f32 %v2143_v24, %v15220_v30  ;;  %v2167_v43 = vmul.f32 %v2151_v25, %v15224_v32  ;;  %v2055_v44 = vpop.f32.mrb[11].mxu0  ;;  %v2096_v45 = vpop.f32.mrb[11].mxu1  ;;  %v12719_v24 = vld [vmem:[#allocation19 + $0x350] ss:$20 sps:$4 sm:$0xff]   ;;  %v12724_v25 = vld [vmem:[#allocation19 + $0x374] ss:$20 sps:$4 sm:$0xff]  }
 0x648   :  { %v2166_v46 = vmul.f32 %v2147_v28, %v15228_v36  ;;  %v2168_v47 = vmul.f32 %v2155_v29, %v15232_v38  ;;  %v12727_v26 = vld [vmem:[#allocation19 + $0x37c] ss:$20 sps:$4 sm:$0xff]   ;;  %v1594_v28 = vrot.slane %v15195_v16, %v15255_v22  ;;  %v12725_v35 = vld [vmem:[#allocation19 + $0x378] ss:$20 sps:$4 sm:$0xff]   ;;  %v2191_v16 = vrot.slane %v15206_v21, %v15255_v22  ;;  %v12745_v21 = vld [vmem:[#allocation19 + $0x3f4] ss:$20 sps:$4 sm:$0xff]  }
 0x649   :  { %v2197_v48 = vadd.f32 %v2175_v31, %v2165_v42  ;;  %v15240_v49 = vadd.f32 %v2183_v33, %v2167_v43  ;;  %v2159_v33 = vrot.slane %v15200_v18, %v15255_v22  ;;  %v12722_v10 = vld [vmem:[#allocation19 + $0x370] ss:$20 sps:$4 sm:$0xff]   ;;  %v12728_v18 = vld [vmem:[#allocation19 + $0x398] ss:$20 sps:$4 sm:$0xff]   ;;  %v12731_v43 = vld [vmem:[#allocation19 + $0x3a0] ss:$20 sps:$4 sm:$0xff]  }
 0x64a   :  { %v2198_v51 = vadd.f32 %v2179_v37, %v2166_v46  ;;  %v2200_v52 = vadd.f32 %v2187_v39, %v2168_v47  ;;  %v12730_v39 = vld [vmem:[#allocation19 + $0x39c] ss:$20 sps:$4 sm:$0xff]   ;;  %v12733_v40 = vld [vmem:[#allocation19 + $0x3a4] ss:$20 sps:$4 sm:$0xff]   ;;  %v12739_v45 = vld [vmem:[#allocation19 + $0x3cc] ss:$20 sps:$4 sm:$0xff]  }
 0x64b   :  { %v2202_v53 = vmax.f32 %v2197_v48, 0.0  ;;  %v12736_v44 = vld [vmem:[#allocation19 + $0x3c4] ss:$20 sps:$4 sm:$0xff]   ;;  %v12734_v47 = vld [vmem:[#allocation19 + $0x3c0] ss:$20 sps:$4 sm:$0xff]  }
 0x64c   :  { %v2203_v54 = vmax.f32 %v2198_v51, 0.0  ;;  %v2205_v55 = vmax.f32 %v2200_v52, 0.0  ;;  %v12737_v48 = vld [vmem:[#allocation19 + $0x3c8] ss:$20 sps:$4 sm:$0xff]   ;;  %v12742_v51 = vld [vmem:[#allocation19 + $0x3ec] ss:$20 sps:$4 sm:$0xff]  }
 0x64d   :  { %v15244_v61 = vpack.c.bf16 %v2202_v53, %v2202_v53  ;;  %v12740_v52 = vld [vmem:[#allocation19 + $0x3e8] ss:$20 sps:$4 sm:$0xff]   ;;  %v12743_v53 = vld [vmem:[#allocation19 + $0x3f0] ss:$20 sps:$4 sm:$0xff]  }
 0x64e   :  { %v15242_v57 = vpack.c.bf16 %v2203_v54, %v2203_v54  ;;  %v15250_v56 = vpack.c.bf16 %v2205_v55, %v2205_v55  ;;  %v12748_v54 = vld [vmem:[#allocation19 + $0x414] ss:$20 sps:$4 sm:$0xff]   ;;  %v12751_v55 = vld [vmem:[#allocation19 + $0x41c] ss:$20 sps:$4 sm:$0xff]  }
 0x650   :  { %3427 = vmatprep.mubr.bf16.mxu1 %v15242_v57  ;;  %3550 = vmatprep.mubr.bf16.mxu0 %v15242_v57 }
 0x651   :  { %3428 = vmatmul.mubr.bf16.vlgmr.msra.gmra.mrb[12].mxu1 %v15244_v61  ;;  %3551 = vmatmul.mubr.bf16.vlgmr.msra.gmra.mrb[16].mxu0 %v15244_v61 }
 0x652   :  { %3437 = vmatpush1.bf16.msra.mxu1 %v12686_v58  ;;  %3560 = vmatpush1.bf16.msra.mxu0 %v12689_v59  ;;  %v12746_v58 = vld [vmem:[#allocation19 + $0x410] ss:$20 sps:$4 sm:$0xff]   ;;  %v12749_v59 = vld [vmem:[#allocation19 + $0x418] ss:$20 sps:$4 sm:$0xff]  }
 0x653   :  { %3468 = vmatprep.mubr.bf16.mxu1 %v15250_v56  ;;  %3591 = vmatprep.mubr.bf16.mxu0 %v15250_v56 }
 0x654   :  { %3438 = vmatprep.subr.bf16.mxu1 %v12694_v62  ;;  %3561 = vmatprep.subr.bf16.mxu0 %v12697_v63  ;;  %v12754_v62 = vld [vmem:[#allocation19 + $0x43c] ss:$20 sps:$4 sm:$0xff]   ;;  %v12757_v63 = vld [vmem:[#allocation19 + $0x444] ss:$20 sps:$4 sm:$0xff]  }
 0x656   :  { %3439 = vmatpush1.bf16.msra.mxu1 %v12692_v60  ;;  %3562 = vmatpush1.bf16.msra.mxu0 %v12695_v0  ;;  %v12752_v60 = vld [vmem:[#allocation19 + $0x438] ss:$20 sps:$4 sm:$0xff]   ;;  %v12755_v0 = vld [vmem:[#allocation19 + $0x440] ss:$20 sps:$4 sm:$0xff]  }
 0x657   :  { %3440 = vmatprep.subr.bf16.mxu1 %v12700_v1  ;;  %3563 = vmatprep.subr.bf16.mxu0 %v12703_v2  ;;  %v12760_v1 = vld [vmem:[#allocation19 + $0x464] ss:$20 sps:$4 sm:$0xff]   ;;  %v12763_v2 = vld [vmem:[#allocation19 + $0x46c] ss:$20 sps:$4 sm:$0xff]  }
 0x65a   :  { %3441 = vmatpush1.bf16.msra.mxu1 %v12698_v3  ;;  %3564 = vmatpush1.bf16.msra.mxu0 %v12701_v4  ;;  %v12758_v3 = vld [vmem:[#allocation19 + $0x460] ss:$20 sps:$4 sm:$0xff]   ;;  %v12761_v4 = vld [vmem:[#allocation19 + $0x468] ss:$20 sps:$4 sm:$0xff]  }
 0x65b   :  { %3442 = vmatprep.subr.bf16.mxu1 %v12706_v5  ;;  %3565 = vmatprep.subr.bf16.mxu0 %v12709_v6  ;;  %v12766_v5 = vld [vmem:[#allocation19 + $0x48c] ss:$20 sps:$4 sm:$0xff]   ;;  %v12769_v6 = vld [vmem:[#allocation19 + $0x494] ss:$20 sps:$4 sm:$0xff]  }
 0x65e   :  { %3443 = vmatpush1.bf16.msra.mxu1 %v12704_v7  ;;  %3566 = vmatpush1.bf16.msra.mxu0 %v12707_v8  ;;  %v12764_v7 = vld [vmem:[#allocation19 + $0x488] ss:$20 sps:$4 sm:$0xff]   ;;  %v12767_v8 = vld [vmem:[#allocation19 + $0x490] ss:$20 sps:$4 sm:$0xff]  }
 0x65f   :  { %3444 = vmatprep.subr.bf16.mxu1 %v12712_v9  ;;  %3567 = vmatprep.subr.bf16.mxu0 %v12715_v11  ;;  %v12772_v9 = vld [vmem:[#allocation19 + $0x4b4] ss:$20 sps:$4 sm:$0xff]   ;;  %v12775_v11 = vld [vmem:[#allocation19 + $0x4bc] ss:$20 sps:$4 sm:$0xff]  }
 0x662   :  { %3445 = vmatpush1.bf16.msra.mxu1 %v12710_v12  ;;  %3568 = vmatpush1.bf16.msra.mxu0 %v12713_v14  ;;  %v12770_v12 = vld [vmem:[#allocation19 + $0x4b0] ss:$20 sps:$4 sm:$0xff]   ;;  %v12773_v14 = vld [vmem:[#allocation19 + $0x4b8] ss:$20 sps:$4 sm:$0xff]  }
 0x663   :  { %3446 = vmatprep.subr.bf16.mxu1 %v12718_v19  ;;  %3569 = vmatprep.subr.bf16.mxu0 %v12721_v20  ;;  %v12778_v19 = vld [vmem:[#allocation19 + $0x4dc] ss:$20 sps:$4 sm:$0xff]   ;;  %v12781_v20 = vld [vmem:[#allocation19 + $0x4e4] ss:$20 sps:$4 sm:$0xff]  }
 0x664   :  { %v11820_v27 = vpop.f32.mrb[12].mxu0 }
 0x665   :  { %v11821_v29 = vpop.f32.mrb[13].mxu0 }
 0x666   :  { %v11822_v31 = vadd.f32 %v11821_v29, %v11820_v27  ;;  %v11823_v34 = vpop.f32.mrb[14].mxu0  ;;  %3447 = vmatpush1.bf16.msra.mxu1 %v12716_v23  ;;  %3570 = vmatpush1.bf16.msra.mxu0 %v12719_v24  ;;  %v12776_v23 = vld [vmem:[#allocation19 + $0x4d8] ss:$20 sps:$4 sm:$0xff]   ;;  %v12779_v24 = vld [vmem:[#allocation19 + $0x4e0] ss:$20 sps:$4 sm:$0xff]  }
 0x667   :  { %v11824_v37 = vpop.f32.mrb[15].mxu0  ;;  %3448 = vmatprep.subr.bf16.mxu1 %v12724_v25  ;;  %3571 = vmatprep.subr.bf16.mxu0 %v12727_v26  ;;  %v2204_v25 = vmax.f32 %v15240_v49, 0.0  ;;  %v12784_v26 = vld [vmem:[#allocation19 + $0x504] ss:$20 sps:$4 sm:$0xff]   ;;  %v12787_v27 = vld [vmem:[#allocation19 + $0x50c] ss:$20 sps:$4 sm:$0xff]  }
 0x668   :  { %v15261_v41 = vadd.f32 %v11822_v31, %v1594_v28  ;;  %v12782_v28 = vld [vmem:[#allocation19 + $0x500] ss:$20 sps:$4 sm:$0xff]   ;;  %v12785_v29 = vld [vmem:[#allocation19 + $0x508] ss:$20 sps:$4 sm:$0xff]  }
 0x669   :  { %v15269_v31 = vpack.c.bf16 %v2204_v25, %v2204_v25  ;;  %v12793_v34 = vld [vmem:[#allocation19 + $0x534] ss:$20 sps:$4 sm:$0xff]   ;;  %v12799_v37 = vld [vmem:[#allocation19 + $0x55c] ss:$20 sps:$4 sm:$0xff]  }
 0x66a   :  { %v2169_v42 = vmul.f32 %v2159_v33, %v15261_v41  ;;  %3449 = vmatpush1.bf16.msra.mxu1 %v12722_v10  ;;  %3572 = vmatpush1.bf16.msra.mxu0 %v12725_v35  ;;  %v12790_v33 = vld [vmem:[#allocation19 + $0x52c] ss:$20 sps:$4 sm:$0xff]   ;;  %v12788_v49 = vld [vmem:[#allocation19 + $0x528] ss:$20 sps:$4 sm:$0xff]   ;;  %v12791_v10 = vld [vmem:[#allocation19 + $0x530] ss:$20 sps:$4 sm:$0xff]  }
 0x66b   :  { %3450 = vmatprep.subr.bf16.mxu1 %v12730_v39  ;;  %3573 = vmatprep.subr.bf16.mxu0 %v12733_v40  ;;  %v12796_v35 = vld [vmem:[#allocation19 + $0x554] ss:$20 sps:$4 sm:$0xff]   ;;  %v14405_v39 = vmov 0   ;;  %v12794_v40 = vld [vmem:[#allocation19 + $0x550] ss:$20 sps:$4 sm:$0xff]  }
 0x66c   :  { %v15266_v46 = vadd.f32 %v2191_v16, %v2169_v42  ;;  %v12797_v16 = vld [vmem:[#allocation19 + $0x558] ss:$20 sps:$4 sm:$0xff]   ;;  %v12802_v42 = vld [vmem:[#allocation19 + $0x57c] ss:$20 sps:$4 sm:$0xff]  }
 0x66d   :  { %v12844_v25 = vld [vmem:[#allocation25 + $0x284] ss:$20 sps:$4 sm:$0xff]  }
 0x66e   :  { %3451 = vmatpush1.bf16.msra.mxu1 %v12728_v18  ;;  %3574 = vmatpush1.bf16.msra.mxu0 %v12731_v43  ;;  %v12805_v18 = vld [vmem:[#allocation19 + $0x584] ss:$20 sps:$4 sm:$0xff]  }
 0x66f   :  { %3452 = vmatprep.subr.bf16.mxu1 %v12736_v44  ;;  %3575 = vmatprep.subr.bf16.mxu0 %v12739_v45  ;;  %v12800_v43 = vld [vmem:[#allocation19 + $0x578] ss:$20 sps:$4 sm:$0xff]   ;;  %v12803_v44 = vld [vmem:[#allocation19 + $0x580] ss:$20 sps:$4 sm:$0xff]   ;;  %v2206_v45 = vmax.f32 %v15266_v46, 0.0 }
 0x670   :  { %v12812_v46 = vld [vmem:[#allocation19 + $0x38] ss:$20 sps:$4 sm:$0xff]  }
 0x672   :  { %3453 = vmatpush1.bf16.msra.mxu1 %v12734_v47  ;;  %3576 = vmatpush1.bf16.msra.mxu0 %v12737_v48  ;;  %v12806_v47 = vld [vmem:[#allocation19 + $0x150] ss:$20 sps:$4 sm:$0xff]  }
 0x673   :  { %3454 = vmatprep.subr.bf16.mxu1 %v12742_v51  ;;  %3577 = vmatprep.subr.bf16.mxu0 %v12745_v21  ;;  %v12807_v48 = vld [vmem:[#allocation19 + $0x3d0] ss:$20 sps:$4 sm:$0xff]   ;;  %v15276_v21 = vpack.c.bf16 %v2206_v45, %v2206_v45 }
 0x674   :  { %v12808_v51 = vld [vmem:[#allocation19 + $0x10] ss:$20 sps:$4 sm:$0xff]  }
 0x675   :  { %v12851_v45 = vld [vmem:[#allocation25 + $0x28] ss:$20 sps:$4 sm:$0xff]  }
 0x676   :  { %3455 = vmatpush1.bf16.msra.mxu1 %v12740_v52  ;;  %3578 = vmatpush1.bf16.msra.mxu0 %v12743_v53  ;;  %v12809_v52 = vld [vmem:[#allocation19 + $0x290] ss:$20 sps:$4 sm:$0xff]   ;;  %v12810_v53 = vld [vmem:[#allocation19 + $0x178] ss:$20 sps:$4 sm:$0xff]  }
 0x677   :  { %3456 = vmatprep.subr.bf16.mxu1 %v12748_v54  ;;  %3579 = vmatprep.subr.bf16.mxu0 %v12751_v55  ;;  %v12811_v54 = vld [vmem:[#allocation19 + $0x3f8] ss:$20 sps:$4 sm:$0xff]  }
 0x678   :  { %v12813_v55 = vld [vmem:[#allocation19 + $0x2b8] ss:$20 sps:$4 sm:$0xff]  }
 0x67a   :  { %3457 = vmatpush1.bf16.msra.mxu1 %v12746_v58  ;;  %3580 = vmatpush1.bf16.msra.mxu0 %v12749_v59  ;;  %v12814_v58 = vld [vmem:[#allocation19 + $0x1a0] ss:$20 sps:$4 sm:$0xff]  }
 0x67b   :  { %3458 = vmatprep.subr.bf16.mxu1 %v12754_v62  ;;  %3581 = vmatprep.subr.bf16.mxu0 %v12757_v63  ;;  %v12815_v59 = vld [vmem:[#allocation19 + $0x420] ss:$20 sps:$4 sm:$0xff]  }
 0x67c   :  { %v12816_v62 = vld [vmem:[#allocation19 + $0x60] ss:$20 sps:$4 sm:$0xff]  }
 0x67d   :  { %v12817_v63 = vld [vmem:[#allocation19 + $0x2e0] ss:$20 sps:$4 sm:$0xff]  }
 0x67e   :  { %3459 = vmatpush1.bf16.msra.mxu1 %v12752_v60  ;;  %3582 = vmatpush1.bf16.msra.mxu0 %v12755_v0  ;;  %v12818_v60 = vld [vmem:[#allocation19 + $0x1c8] ss:$20 sps:$4 sm:$0xff]  }
 0x67f   :  { %3460 = vmatprep.subr.bf16.mxu1 %v12760_v1  ;;  %3583 = vmatprep.subr.bf16.mxu0 %v12763_v2  ;;  %v12819_v0 = vld [vmem:[#allocation19 + $0x448] ss:$20 sps:$4 sm:$0xff]   ;;  %v12822_v2 = vld [vmem:[#allocation19 + $0x1f0] ss:$20 sps:$4 sm:$0xff]  }
 0x680   :  { %v12820_v1 = vld [vmem:[#allocation19 + $0x88] ss:$20 sps:$4 sm:$0xff]  }
 0x682   :  { %3461 = vmatpush1.bf16.msra.mxu1 %v12758_v3  ;;  %3584 = vmatpush1.bf16.msra.mxu0 %v12761_v4  ;;  %v12824_v3 = vld [vmem:[#allocation19 + $0xb0] ss:$20 sps:$4 sm:$0xff]  }
 0x683   :  { %3462 = vmatprep.subr.bf16.mxu1 %v12766_v5  ;;  %3585 = vmatprep.subr.bf16.mxu0 %v12769_v6  ;;  %v12825_v4 = vld [vmem:[#allocation19 + $0x330] ss:$20 sps:$4 sm:$0xff]   ;;  %v12826_v5 = vld [vmem:[#allocation19 + $0x218] ss:$20 sps:$4 sm:$0xff]  }
 0x684   :  { %v12827_v6 = vld [vmem:[#allocation19 + $0x498] ss:$20 sps:$4 sm:$0xff]  }
 0x686   :  { %3463 = vmatpush1.bf16.msra.mxu1 %v12764_v7  ;;  %3586 = vmatpush1.bf16.msra.mxu0 %v12767_v8  ;;  %v12828_v7 = vld [vmem:[#allocation19 + $0xd8] ss:$20 sps:$4 sm:$0xff]  }
 0x687   :  { %3464 = vmatprep.subr.bf16.mxu1 %v12772_v9  ;;  %3587 = vmatprep.subr.bf16.mxu0 %v12775_v11  ;;  %v12829_v8 = vld [vmem:[#allocation19 + $0x358] ss:$20 sps:$4 sm:$0xff]   ;;  %v12830_v9 = vld [vmem:[#allocation19 + $0x240] ss:$20 sps:$4 sm:$0xff]  }
 0x688   :  { %v12831_v11 = vld [vmem:[#allocation19 + $0x4c0] ss:$20 sps:$4 sm:$0xff]  }
 0x68a   :  { %3465 = vmatpush1.bf16.msra.mxu1 %v12770_v12  ;;  %3588 = vmatpush1.bf16.msra.mxu0 %v12773_v14  ;;  %v12832_v12 = vld [vmem:[#allocation19 + $0x100] ss:$20 sps:$4 sm:$0xff]  }
 0x68b   :  { %3466 = vmatprep.subr.bf16.mxu1 %v12778_v19  ;;  %3589 = vmatprep.subr.bf16.mxu0 %v12781_v20  ;;  %v12833_v14 = vld [vmem:[#allocation19 + $0x380] ss:$20 sps:$4 sm:$0xff]   ;;  %v12834_v19 = vld [vmem:[#allocation19 + $0x268] ss:$20 sps:$4 sm:$0xff]  }
 0x68c   :  { %v12835_v20 = vld [vmem:[#allocation19 + $0x4e8] ss:$20 sps:$4 sm:$0xff]  }
 0x68e   :  { %3467 = vmatpush1.bf16.msra.mxu1 %v12776_v23  ;;  %3590 = vmatpush1.bf16.msra.mxu0 %v12779_v24  ;;  %v12836_v23 = vld [vmem:[#allocation19 + $0x128] ss:$20 sps:$4 sm:$0xff]  }
 0x68f   :  { %3477 = vmatprep.subr.bf16.mxu1 %v12784_v26  ;;  %3600 = vmatprep.subr.bf16.mxu0 %v12787_v27  ;;  %v12837_v24 = vld [vmem:[#allocation19 + $0x3a8] ss:$20 sps:$4 sm:$0xff]   ;;  %v12838_v26 = vld [vmem:[#allocation19 + $0x510] ss:$20 sps:$4 sm:$0xff]   ;;  %v14406_v27 = vmov 0.0  }
 0x691   :  { %3469 = vmatmul.mubr.bf16.vlgmr.msra.gmra.mrb[12].mxu1 %v15269_v31  ;;  %3592 = vmatmul.mubr.bf16.vlgmr.msra.gmra.mrb[16].mxu0 %v15269_v31 }
 0x692   :  { %3478 = vmatpush1.bf16.msra.mxu1 %v12782_v28  ;;  %3601 = vmatpush1.bf16.msra.mxu0 %v12785_v29  ;;  %v12842_v28 = vld [vmem:[#allocation25 + $0x280] ss:$20 sps:$4 sm:$0xff]  }
 0x693   :  { %3479 = vmatprep.subr.bf16.mxu1 %v12790_v33  ;;  %3602 = vmatprep.subr.bf16.mxu0 %v12793_v34  ;;  %v12850_v29 = vld [vmem:[#allocation25 + $0x2ac] ss:$20 sps:$4 sm:$0xff]   ;;  %v12848_v34 = vld [vmem:[#allocation25 + $0x2a8] ss:$20 sps:$4 sm:$0xff]  }
 0x694   :  { %3509 = vmatprep.mubr.bf16.mxu1 %v14405_v39  ;;  %3632 = vmatprep.mubr.bf16.mxu0 %v14405_v39  ;;  %v12839_v33 = vld [vmem:[#allocation19 + $0x538] ss:$20 sps:$4 sm:$0xff]  }
 0x696   :  { %3480 = vmatpush1.bf16.msra.mxu1 %v12788_v49  ;;  %3603 = vmatpush1.bf16.msra.mxu0 %v12791_v10  ;;  %v12856_v49 = vld [vmem:[#allocation25 + $0x2d4] ss:$20 sps:$4 sm:$0xff]  }
 0x697   :  { %3481 = vmatprep.subr.bf16.mxu1 %v12796_v35  ;;  %3604 = vmatprep.subr.bf16.mxu0 %v12799_v37  ;;  %v12840_v10 = vld [vmem:[#allocation19 + $0x560] ss:$20 sps:$4 sm:$0xff]   ;;  %v12841_v35 = vld [vmem:[#allocation19 + $0x588] ss:$20 sps:$4 sm:$0xff]  }
 0x698   :  { %v12847_v37 = vld [vmem:[#allocation25 + $0x4] ss:$20 sps:$4 sm:$0xff]  }
 0x69a   :  { %3482 = vmatpush1.bf16.msra.mxu1 %v12794_v40  ;;  %3605 = vmatpush1.bf16.msra.mxu0 %v12797_v16  ;;  %v12860_v40 = vld [vmem:[#allocation25 + $0x2f8] ss:$20 sps:$4 sm:$0xff]  }
 0x69b   :  { %3483 = vmatprep.subr.bf16.mxu1 %v12802_v42  ;;  %3606 = vmatprep.subr.bf16.mxu0 %v12805_v18  ;;  %v12868_v16 = vld [vmem:[#allocation25 + $0x324] ss:$20 sps:$4 sm:$0xff]   ;;  %v12845_v42 = vld [vmem:[#allocation25] ss:$20 sps:$4 sm:$0xff]  }
 0x69c   :  { %v12853_v18 = vld [vmem:[#allocation25 + $0x2c] ss:$20 sps:$4 sm:$0xff]  }
 0x69e   :  { %3484 = vmatpush1.bf16.msra.mxu1 %v12800_v43  ;;  %3607 = vmatpush1.bf16.msra.mxu0 %v12803_v44  ;;  %v12866_v43 = vld [vmem:[#allocation25 + $0x320] ss:$20 sps:$4 sm:$0xff]  }
 0x69f   :  { %11826 = vmatprep.subr.bf16.mxu1 %v12806_v47  ;;  %11848 = vmatprep.subr.bf16.mxu0 %v12807_v48  ;;  %v12874_v44 = vld [vmem:[#allocation25 + $0x34c] ss:$20 sps:$4 sm:$0xff]   ;;  %v12859_v47 = vld [vmem:[#allocation25 + $0x54] ss:$20 sps:$4 sm:$0xff]  }
 0x6a0   :  { %v12872_v48 = vld [vmem:[#allocation25 + $0x348] ss:$20 sps:$4 sm:$0xff]  }
 0x6a1   :  { %11031 = vmatmul.mubr.msk.bf16.vlgmr.msra.gmra.mrb[12].mxu1 %vm3391_vm0, %v15276_v21  ;;  %11032 = vmatmul.mubr.msk.bf16.vlgmr.msra.gmra.mrb[16].mxu0 %vm3391_vm0, %v15276_v21 }
 0x6a2   :  { %11827 = vmatpush3.bf16.msra.mxu1 %v12808_v51  ;;  %3673 = vmatprep.mubr.bf16.mxu1 %v15242_v57  ;;  %v12821_v57 = vld [vmem:[#allocation19 + $0x308] ss:$20 sps:$4 sm:$0xff]  }
 0x6a3   :  { %11849 = vmatpush3.bf16.msra.mxu0 %v12809_v52  ;;  %3713 = vmatprep.mubr.bf16.mxu0 %v15250_v56  ;;  %v12823_v56 = vld [vmem:[#allocation19 + $0x470] ss:$20 sps:$4 sm:$0xff]  }
 0x6a4   :  { %11828 = vmatprep.subr.bf16.mxu1 %v12810_v53  ;;  %11850 = vmatprep.subr.bf16.mxu0 %v12811_v54  ;;  %v12880_v51 = vld [vmem:[#allocation25 + $0x374] ss:$20 sps:$4 sm:$0xff]   ;;  %v12857_v52 = vld [vmem:[#allocation25 + $0x50] ss:$20 sps:$4 sm:$0xff]  }
 0x6a5   :  { %v12865_v53 = vld [vmem:[#allocation25 + $0x7c] ss:$20 sps:$4 sm:$0xff]  }
 0x6a6   :  { %11829 = vmatpush3.bf16.msra.mxu1 %v12812_v46  ;;  %v12878_v54 = vld [vmem:[#allocation25 + $0x370] ss:$20 sps:$4 sm:$0xff]  }
 0x6a7   :  { %11851 = vmatpush3.bf16.msra.mxu0 %v12813_v55  ;;  %11830 = vmatprep.subr.bf16.mxu1 %v12814_v58  ;;  %v12886_v46 = vld [vmem:[#allocation25 + $0x39c] ss:$20 sps:$4 sm:$0xff]   ;;  %v12871_v55 = vld [vmem:[#allocation25 + $0xa4] ss:$20 sps:$4 sm:$0xff]  }
 0x6a8   :  { %11852 = vmatprep.subr.bf16.mxu0 %v12815_v59  ;;  %v12884_v58 = vld [vmem:[#allocation25 + $0x398] ss:$20 sps:$4 sm:$0xff]  }
 0x6a9   :  { %v12892_v59 = vld [vmem:[#allocation25 + $0x3c4] ss:$20 sps:$4 sm:$0xff]  }
 0x6aa   :  { %11831 = vmatpush3.bf16.msra.mxu1 %v12816_v62  ;;  %v12869_v62 = vld [vmem:[#allocation25 + $0xa0] ss:$20 sps:$4 sm:$0xff]  }
 0x6ab   :  { %11853 = vmatpush3.bf16.msra.mxu0 %v12817_v63  ;;  %11832 = vmatprep.subr.bf16.mxu1 %v12818_v60  ;;  %v12877_v63 = vld [vmem:[#allocation25 + $0xcc] ss:$20 sps:$4 sm:$0xff]  }
 0x6ac   :  { %11854 = vmatprep.subr.bf16.mxu0 %v12819_v0  ;;  %v12890_v60 = vld [vmem:[#allocation25 + $0x3c0] ss:$20 sps:$4 sm:$0xff]  }
 0x6ad   :  { %v12898_v0 = vld [vmem:[#allocation25 + $0x3ec] ss:$20 sps:$4 sm:$0xff]  }
 0x6ae   :  { %11833 = vmatpush3.bf16.msra.mxu1 %v12820_v1  ;;  %v12875_v1 = vld [vmem:[#allocation25 + $0xc8] ss:$20 sps:$4 sm:$0xff]  }
 0x6af   :  { %11855 = vmatpush3.bf16.msra.mxu0 %v12821_v57  ;;  %11834 = vmatprep.subr.bf16.mxu1 %v12822_v2  ;;  %v12883_v57 = vld [vmem:[#allocation25 + $0xf4] ss:$20 sps:$4 sm:$0xff]  }
 0x6b0   :  { %11856 = vmatprep.subr.bf16.mxu0 %v12823_v56  ;;  %v12896_v2 = vld [vmem:[#allocation25 + $0x3e8] ss:$20 sps:$4 sm:$0xff]  }
 0x6b1   :  { %v12904_v56 = vld [vmem:[#allocation25 + $0x414] ss:$20 sps:$4 sm:$0xff]  }
 0x6b2   :  { %11835 = vmatpush3.bf16.msra.mxu1 %v12824_v3  ;;  %v12881_v3 = vld [vmem:[#allocation25 + $0xf0] ss:$20 sps:$4 sm:$0xff]  }
 0x6b3   :  { %11857 = vmatpush3.bf16.msra.mxu0 %v12825_v4  ;;  %11836 = vmatprep.subr.bf16.mxu1 %v12826_v5  ;;  %v12889_v4 = vld [vmem:[#allocation25 + $0x11c] ss:$20 sps:$4 sm:$0xff]  }
 0x6b4   :  { %11858 = vmatprep.subr.bf16.mxu0 %v12827_v6  ;;  %v12902_v5 = vld [vmem:[#allocation25 + $0x410] ss:$20 sps:$4 sm:$0xff]  }
 0x6b5   :  { %v12910_v6 = vld [vmem:[#allocation25 + $0x43c] ss:$20 sps:$4 sm:$0xff]  }
 0x6b6   :  { %11837 = vmatpush3.bf16.msra.mxu1 %v12828_v7  ;;  %v12887_v7 = vld [vmem:[#allocation25 + $0x118] ss:$20 sps:$4 sm:$0xff]  }
 0x6b7   :  { %11859 = vmatpush3.bf16.msra.mxu0 %v12829_v8  ;;  %11838 = vmatprep.subr.bf16.mxu1 %v12830_v9  ;;  %v12895_v8 = vld [vmem:[#allocation25 + $0x144] ss:$20 sps:$4 sm:$0xff]  }
 0x6b8   :  { %11860 = vmatprep.subr.bf16.mxu0 %v12831_v11  ;;  %v12908_v9 = vld [vmem:[#allocation25 + $0x438] ss:$20 sps:$4 sm:$0xff]  }
 0x6b9   :  { %v12916_v11 = vld [vmem:[#allocation25 + $0x464] ss:$20 sps:$4 sm:$0xff]  }
 0x6ba   :  { %11839 = vmatpush3.bf16.msra.mxu1 %v12832_v12  ;;  %v12893_v12 = vld [vmem:[#allocation25 + $0x140] ss:$20 sps:$4 sm:$0xff]  }
 0x6bb   :  { %11861 = vmatpush3.bf16.msra.mxu0 %v12833_v14  ;;  %11840 = vmatprep.subr.bf16.mxu1 %v12834_v19  ;;  %v12901_v14 = vld [vmem:[#allocation25 + $0x16c] ss:$20 sps:$4 sm:$0xff]  }
 0x6bc   :  { %11862 = vmatprep.subr.bf16.mxu0 %v12835_v20  ;;  %v12914_v19 = vld [vmem:[#allocation25 + $0x460] ss:$20 sps:$4 sm:$0xff]   ;;  %v12899_v20 = vld [vmem:[#allocation25 + $0x168] ss:$20 sps:$4 sm:$0xff]  }
 0x6be   :  { %11841 = vmatpush3.bf16.msra.mxu1 %v12836_v23  ;;  %v12907_v23 = vld [vmem:[#allocation25 + $0x194] ss:$20 sps:$4 sm:$0xff]  }
 0x6bf   :  { %11863 = vmatpush3.bf16.msra.mxu0 %v12837_v24  ;;  %12120 = vmatprep.subr.bf16.mxu1 %v14406_v27  ;;  %v12922_v24 = vld [vmem:[#allocation25 + $0x48c] ss:$20 sps:$4 sm:$0xff]  }
 0x6c0   :  { %5058 = vmatprep.subr.bf16.mxu0 %v12844_v25  ;;  %v12920_v25 = vld [vmem:[#allocation25 + $0x488] ss:$20 sps:$4 sm:$0xff]  }
 0x6c1   :  { %3674 = vmatmul.mubr.bf16.vlgmr.msra.gmra.mrb[16].mxu1 %v15244_v61  ;;  %v12854_v61 = vld [vmem:[#allocation25 + $0x2d0] ss:$20 sps:$4 sm:$0xff]  }
 0x6c2   :  { %3714 = vmatmul.mubr.bf16.vlgmr.msra.gmra.mrb[20].mxu0 %v15269_v31  ;;  %12121 = vmatpush3.bf16.msra.mxu1 %v12838_v26  ;;  %v12862_v31 = vld [vmem:[#allocation25 + $0x2fc] ss:$20 sps:$4 sm:$0xff]  }
 0x6c3   :  { %12122 = vmatprep.subr.bf16.mxu1 %v14406_v27  ;;  %12128 = vmatprep.mubr.msk.bf16.mxu1 %vm14407_vm1, %v14406_v27  ;;  %v12905_v26 = vld [vmem:[#allocation25 + $0x190] ss:$20 sps:$4 sm:$0xff]  }
 0x6c4   :  { %5059 = vmatpush1.bf16.msra.mxu0 %v12842_v28  ;;  %v12913_v28 = vld [vmem:[#allocation25 + $0x1bc] ss:$20 sps:$4 sm:$0xff]  }
 0x6c5   :  { %5060 = vmatprep.subr.bf16.mxu0 %v12850_v29  ;;  %v12928_v29 = vld [vmem:[#allocation25 + $0x4b4] ss:$20 sps:$4 sm:$0xff]  }
 0x6c6   :  { %12123 = vmatpush3.bf16.msra.mxu1 %v12839_v33  ;;  %v12926_v33 = vld [vmem:[#allocation25 + $0x4b0] ss:$20 sps:$4 sm:$0xff]  }
 0x6c7   :  { %12124 = vmatprep.subr.bf16.mxu1 %v14406_v27 }
 0x6c8   :  { %5061 = vmatpush1.bf16.msra.mxu0 %v12848_v34  ;;  %v12911_v34 = vld [vmem:[#allocation25 + $0x1b8] ss:$20 sps:$4 sm:$0xff]  }
 0x6c9   :  { %5062 = vmatprep.subr.bf16.mxu0 %v12856_v49  ;;  %v12919_v49 = vld [vmem:[#allocation25 + $0x1e4] ss:$20 sps:$4 sm:$0xff]  }
 0x6ca   :  { %12125 = vmatpush3.bf16.msra.mxu1 %v12840_v10  ;;  %v12934_v10 = vld [vmem:[#allocation25 + $0x4dc] ss:$20 sps:$4 sm:$0xff]  }
 0x6cb   :  { %12126 = vmatprep.subr.bf16.mxu1 %v14406_v27 }
 0x6cc   :  { %5063 = vmatpush1.bf16.msra.mxu0 %v12854_v61  ;;  %v12932_v61 = vld [vmem:[#allocation25 + $0x4d8] ss:$20 sps:$4 sm:$0xff]  }
 0x6cd   :  { %5064 = vmatprep.subr.bf16.mxu0 %v12862_v31  ;;  %v12917_v31 = vld [vmem:[#allocation25 + $0x1e0] ss:$20 sps:$4 sm:$0xff]  }
 0x6ce   :  { %12127 = vmatpush3.bf16.msra.mxu1 %v12841_v35  ;;  %v12925_v35 = vld [vmem:[#allocation25 + $0x20c] ss:$20 sps:$4 sm:$0xff]  }
 0x6cf   :  { %5017 = vmatprep.subr.bf16.mxu1 %v12847_v37  ;;  %v12940_v37 = vld [vmem:[#allocation25 + $0xc] ss:$20 sps:$4 sm:$0xff]  }
 0x6d0   :  { %5065 = vmatpush1.bf16.msra.mxu0 %v12860_v40  ;;  %v12923_v40 = vld [vmem:[#allocation25 + $0x208] ss:$20 sps:$4 sm:$0xff]  }
 0x6d1   :  { %12129 = vmatmul.mubr.msk.bf16.vlgmr.msra.gmra.mrb[20].mxu1 %vm3391_vm0, %v15276_v21  ;;  %5066 = vmatprep.subr.bf16.mxu0 %v12868_v16  ;;  %v12863_v21 = vld [vmem:[#allocation25 + $0x78] ss:$20 sps:$4 sm:$0xff]   ;;  %v12931_v16 = vld [vmem:[#allocation25 + $0x234] ss:$20 sps:$4 sm:$0xff]  }
 0x6d2   :  { %5018 = vmatpush1.bf16.msra.mxu1 %v12845_v42  ;;  %v12929_v42 = vld [vmem:[#allocation25 + $0x230] ss:$20 sps:$4 sm:$0xff]  }
 0x6d3   :  { %5019 = vmatprep.subr.bf16.mxu1 %v12853_v18  ;;  %v12937_v18 = vld [vmem:[#allocation25 + $0x25c] ss:$20 sps:$4 sm:$0xff]  }
 0x6d4   :  { %5067 = vmatpush1.bf16.msra.mxu0 %v12866_v43  ;;  %v12935_v43 = vld [vmem:[#allocation25 + $0x258] ss:$20 sps:$4 sm:$0xff]  }
 0x6d5   :  { %5068 = vmatprep.subr.bf16.mxu0 %v12874_v44  ;;  %v12964_v44 = vld [vmem:[#allocation25 + $0x504] ss:$20 sps:$4 sm:$0xff]  }
 0x6d6   :  { %5020 = vmatpush1.bf16.msra.mxu1 %v12851_v45  ;;  %v15294_v45 = vld [vmem:[#allocation21] sm:$0x1f] }
 0x6d7   :  { %5021 = vmatprep.subr.bf16.mxu1 %v12859_v47  ;;  %v15296_v47 = vld [vmem:[#allocation22] sm:$0x1f] }
 0x6d8   :  { %5069 = vmatpush1.bf16.msra.mxu0 %v12872_v48  ;;  %v2433_v48 = vrot.slane %v15294_v45, %v14904_v50 }
 0x6d9   :  { %5070 = vmatprep.subr.bf16.mxu0 %v12880_v51  ;;  %v2441_v51 = vrot.slane %v15294_v45, %v15193_v15 }
 0x6da   :  { %5022 = vmatpush1.bf16.msra.mxu1 %v12857_v52  ;;  %v15302_v52 = vld [vmem:[#allocation24] sm:$0x1f] }
 0x6db   :  { %5023 = vmatprep.subr.bf16.mxu1 %v12865_v53  ;;  %v2437_v53 = vrot.slane %v15294_v45, %v14890_v13 }
 0x6dc   :  { %5071 = vmatpush1.bf16.msra.mxu0 %v12878_v54  ;;  %v2445_v54 = vrot.slane %v15294_v45, %v15198_v17 }
 0x6dd   :  { %5072 = vmatprep.subr.bf16.mxu0 %v12886_v46  ;;  %v3766_v46 = vrot.slane %v15296_v47, %v14904_v50 }
 0x6de   :  { %5024 = vmatpush1.bf16.msra.mxu1 %v12863_v21  ;;  %v3774_v21 = vrot.slane %v15296_v47, %v15193_v15 }
 0x6df   :  { %5025 = vmatprep.subr.bf16.mxu1 %v12871_v55 }
 0x6e0   :  { %5073 = vmatpush1.bf16.msra.mxu0 %v12884_v58 }
 0x6e1   :  { %5074 = vmatprep.subr.bf16.mxu0 %v12892_v59  ;;  %v3770_v59 = vrot.slane %v15296_v47, %v14890_v13 }
 0x6e2   :  { %5026 = vmatpush1.bf16.msra.mxu1 %v12869_v62  ;;  %v3778_v62 = vrot.slane %v15296_v47, %v15198_v17 }
 0x6e3   :  { %5027 = vmatprep.subr.bf16.mxu1 %v12877_v63 }
 0x6e4   :  { %5075 = vmatpush1.bf16.msra.mxu0 %v12890_v60  ;;  %v3798_v60 = vrot.slane %v15302_v52, %v14904_v50 }
 0x6e5   :  { %5076 = vmatprep.subr.bf16.mxu0 %v12898_v0 }
 0x6e6   :  { %5028 = vmatpush1.bf16.msra.mxu1 %v12875_v1  ;;  %v3806_v1 = vrot.slane %v15302_v52, %v15193_v15 }
 0x6e7   :  { %5029 = vmatprep.subr.bf16.mxu1 %v12883_v57 }
 0x6e8   :  { %5077 = vmatpush1.bf16.msra.mxu0 %v12896_v2 }
 0x6e9   :  { %5078 = vmatprep.subr.bf16.mxu0 %v12904_v56 }
 0x6ea   :  { %5030 = vmatpush1.bf16.msra.mxu1 %v12881_v3  ;;  %v3802_v3 = vrot.slane %v15302_v52, %v14890_v13 }
 0x6eb   :  { %5031 = vmatprep.subr.bf16.mxu1 %v12889_v4 }
 0x6ec   :  { %5079 = vmatpush1.bf16.msra.mxu0 %v12902_v5  ;;  %v3810_v5 = vrot.slane %v15302_v52, %v15198_v17 }
 0x6ed   :  { %5080 = vmatprep.subr.bf16.mxu0 %v12910_v6 }
 0x6ee   :  { %5032 = vmatpush1.bf16.msra.mxu1 %v12887_v7 }
 0x6ef   :  { %5033 = vmatprep.subr.bf16.mxu1 %v12895_v8 }
 0x6f0   :  { %5081 = vmatpush1.bf16.msra.mxu0 %v12908_v9 }
 0x6f1   :  { %5082 = vmatprep.subr.bf16.mxu0 %v12916_v11 }
 0x6f2   :  { %5034 = vmatpush1.bf16.msra.mxu1 %v12893_v12 }
 0x6f3   :  { %5035 = vmatprep.subr.bf16.mxu1 %v12901_v14 }
 0x6f4   :  { %5083 = vmatpush1.bf16.msra.mxu0 %v12914_v19 }
 0x6f5   :  { %5084 = vmatprep.subr.bf16.mxu0 %v12922_v24 }
 0x6f6   :  { %5036 = vmatpush1.bf16.msra.mxu1 %v12899_v20 }
 0x6f7   :  { %5037 = vmatprep.subr.bf16.mxu1 %v12907_v23 }
 0x6f8   :  { %5085 = vmatpush1.bf16.msra.mxu0 %v12920_v25 }
 0x6f9   :  { %5086 = vmatprep.subr.bf16.mxu0 %v12928_v29 }
 0x6fa   :  { %5038 = vmatpush1.bf16.msra.mxu1 %v12905_v26 }
 0x6fb   :  { %5039 = vmatprep.subr.bf16.mxu1 %v12913_v28 }
 0x6fc   :  { %5087 = vmatpush1.bf16.msra.mxu0 %v12926_v33 }
 0x6fd   :  { %5088 = vmatprep.subr.bf16.mxu0 %v12934_v10  ;;  %v12938_v10 = vld [vmem:[#allocation25 + $0x8] ss:$20 sps:$4 sm:$0xff]  }
 0x6fe   :  { %5040 = vmatpush1.bf16.msra.mxu1 %v12911_v34 }
 0x6ff   :  { %5041 = vmatprep.subr.bf16.mxu1 %v12919_v49 }
 0x700   :  { %5089 = vmatpush1.bf16.msra.mxu0 %v12932_v61 }
 0x701   :  { %5140 = vmatprep.subr.bf16.mxu0 %v12940_v37  ;;  %v12962_v37 = vld [vmem:[#allocation25 + $0x500] ss:$20 sps:$4 sm:$0xff]  }
 0x702   :  { %5042 = vmatpush1.bf16.msra.mxu1 %v12917_v31 }
 0x703   :  { %5043 = vmatprep.subr.bf16.mxu1 %v12925_v35  ;;  %v12943_v35 = vld [vmem:[#allocation25 + $0x34] ss:$20 sps:$4 sm:$0xff]  }
 0x706   :  { %5044 = vmatpush1.bf16.msra.mxu1 %v12923_v40  ;;  %v12970_v40 = vld [vmem:[#allocation25 + $0x52c] ss:$20 sps:$4 sm:$0xff]  }
 0x707   :  { %5045 = vmatprep.subr.bf16.mxu1 %v12931_v16  ;;  %v12941_v16 = vld [vmem:[#allocation25 + $0x30] ss:$20 sps:$4 sm:$0xff]  }
 0x70a   :  { %5046 = vmatpush1.bf16.msra.mxu1 %v12929_v42  ;;  %v12946_v42 = vld [vmem:[#allocation25 + $0x5c] ss:$20 sps:$4 sm:$0xff]  }
 0x70b   :  { %5047 = vmatprep.subr.bf16.mxu1 %v12937_v18  ;;  %v12968_v18 = vld [vmem:[#allocation25 + $0x528] ss:$20 sps:$4 sm:$0xff]  }
 0x70e   :  { %5048 = vmatpush1.bf16.msra.mxu1 %v12935_v43  ;;  %v12976_v43 = vld [vmem:[#allocation25 + $0x554] ss:$20 sps:$4 sm:$0xff]  }
 0x70f   :  { %5099 = vmatprep.subr.bf16.mxu1 %v12964_v44  ;;  %v12944_v44 = vld [vmem:[#allocation25 + $0x58] ss:$20 sps:$4 sm:$0xff]  }
 0x774   :  { %v3511_v55 = vpop.f32.mrb[12].mxu1  ;;  %v3634_v58 = vpop.f32.mrb[16].mxu0 }
 0x775   :  { %v12192_v63 = vadd.f32 %v3511_v55, %v2433_v48  ;;  %v12194_v0 = vadd.f32 %v3634_v58, %v2441_v51  ;;  %v3513_v57 = vpop.f32.mrb[13].mxu1  ;;  %v3636_v2 = vpop.f32.mrb[17].mxu0  ;;  %v12949_v48 = vld [vmem:[#allocation25 + $0x84] ss:$20 sps:$4 sm:$0xff]   ;;  %v12988_v55 = vld [vmem:[#allocation25 + $0x28c] ss:$20 sps:$4 sm:$0xff]  }
 0x776   :  { %v12193_v56 = vadd.f32 %v3513_v57, %v2437_v53  ;;  %v12195_v4 = vadd.f32 %v3636_v2, %v2445_v54  ;;  %v3515_v6 = vpop.f32.mrb[14].mxu1  ;;  %v3638_v7 = vpop.f32.mrb[18].mxu0  ;;  %v12974_v51 = vld [vmem:[#allocation25 + $0x550] ss:$20 sps:$4 sm:$0xff]   ;;  %v12947_v54 = vld [vmem:[#allocation25 + $0x80] ss:$20 sps:$4 sm:$0xff]  }
 0x777   :  { %v3788_v8 = vmul.f32 %v12192_v63, %v3766_v46  ;;  %v3790_v9 = vmul.f32 %v12194_v0, %v3774_v21  ;;  %v3516_v11 = vpop.f32.mrb[15].mxu1  ;;  %v3639_v12 = vpop.f32.mrb[19].mxu0  ;;  %v12982_v53 = vld [vmem:[#allocation25 + $0x57c] ss:$20 sps:$4 sm:$0xff]   ;;  %v12952_v46 = vld [vmem:[#allocation25 + $0xac] ss:$20 sps:$4 sm:$0xff]   ;;  %v2449_v0 = vrot.slane %v15294_v45, %v15255_v22 }
 0x778   :  { %v3789_v14 = vmul.f32 %v12193_v56, %v3770_v59  ;;  %v3791_v19 = vmul.f32 %v12195_v4, %v3778_v62  ;;  %v12980_v21 = vld [vmem:[#allocation25 + $0x578] ss:$20 sps:$4 sm:$0xff]   ;;  %v12950_v58 = vld [vmem:[#allocation25 + $0xa8] ss:$20 sps:$4 sm:$0xff]   ;;  %v12953_v62 = vld [vmem:[#allocation25 + $0xd0] ss:$20 sps:$4 sm:$0xff]  }
 0x779   :  { %v3820_v20 = vadd.f32 %v3798_v60, %v3788_v8  ;;  %v3822_v23 = vadd.f32 %v3806_v1, %v3790_v9  ;;  %v12955_v59 = vld [vmem:[#allocation25 + $0xd4] ss:$20 sps:$4 sm:$0xff]   ;;  %v12958_v63 = vld [vmem:[#allocation25 + $0xfc] ss:$20 sps:$4 sm:$0xff]   ;;  %v12956_v4 = vld [vmem:[#allocation25 + $0xf8] ss:$20 sps:$4 sm:$0xff]  }
 0x77a   :  { %v3821_v24 = vadd.f32 %v3802_v3, %v3789_v14  ;;  %v3823_v25 = vadd.f32 %v3810_v5, %v3791_v19  ;;  %v12961_v8 = vld [vmem:[#allocation25 + $0x124] ss:$20 sps:$4 sm:$0xff]   ;;  %v12959_v12 = vld [vmem:[#allocation25 + $0x120] ss:$20 sps:$4 sm:$0xff]   ;;  %v12965_v45 = vld [vmem:[#allocation25 + $0x148] ss:$20 sps:$4 sm:$0xff]  }
 0x77b   :  { %v3825_v26 = vmax.f32 %v3820_v20, 0.0  ;;  %v3827_v28 = vmax.f32 %v3822_v23, 0.0  ;;  %v12967_v19 = vld [vmem:[#allocation25 + $0x14c] ss:$20 sps:$4 sm:$0xff]   ;;  %v12973_v20 = vld [vmem:[#allocation25 + $0x174] ss:$20 sps:$4 sm:$0xff]  }
 0x77c   :  { %v3826_v29 = vmax.f32 %v3821_v24, 0.0  ;;  %v3828_v33 = vmax.f32 %v3823_v25, 0.0  ;;  %v12971_v23 = vld [vmem:[#allocation25 + $0x170] ss:$20 sps:$4 sm:$0xff]   ;;  %v3782_v24 = vrot.slane %v15296_v47, %v15255_v22  ;;  %v12991_v47 = vld [vmem:[#allocation25 + $0x1ec] ss:$20 sps:$4 sm:$0xff]  }
 0x77d   :  { %v15328_v61 = vpack.c.bf16 %v3825_v26, %v3825_v26  ;;  %v15330_v31 = vpack.c.bf16 %v3827_v28, %v3827_v28  ;;  %v12979_v25 = vld [vmem:[#allocation25 + $0x19c] ss:$20 sps:$4 sm:$0xff]  }
 0x77e   :  { %v15324_v34 = vpack.c.bf16 %v3826_v29, %v3826_v29  ;;  %v15326_v49 = vpack.c.bf16 %v3828_v33, %v3828_v33  ;;  %v3814_v29 = vrot.slane %v15302_v52, %v15255_v22  ;;  %v12989_v52 = vld [vmem:[#allocation25 + $0x1e8] ss:$20 sps:$4 sm:$0xff]  }
 0x780   :  { %5049 = vmatprep.mubr.bf16.mxu1 %v15324_v34  ;;  %5090 = vmatprep.mubr.bf16.mxu0 %v15326_v49 }
 0x781   :  { %5050 = vmatmul.mubr.bf16.vlgmr.msra.gmra.mrb[24].mxu1 %v15328_v61  ;;  %5091 = vmatmul.mubr.bf16.vlgmr.msra.gmra.mrb[24].mxu0 %v15330_v31 }
 0x782   :  { %5141 = vmatpush1.bf16.msra.mxu0 %v12938_v10  ;;  %5172 = vmatprep.mubr.bf16.mxu0 %v15324_v34 }
 0x783   :  { %5142 = vmatprep.subr.bf16.mxu0 %v12943_v35  ;;  %5100 = vmatpush1.bf16.msra.mxu1 %v12962_v37  ;;  %v12977_v35 = vld [vmem:[#allocation25 + $0x198] ss:$20 sps:$4 sm:$0xff]  }
 0x784   :  { %5101 = vmatprep.subr.bf16.mxu1 %v12970_v40  ;;  %5131 = vmatprep.mubr.bf16.mxu1 %v14405_v39 }
 0x786   :  { %5143 = vmatpush1.bf16.msra.mxu0 %v12941_v16  ;;  %v12985_v16 = vld [vmem:[#allocation25 + $0x1c4] ss:$20 sps:$4 sm:$0xff]  }
 0x787   :  { %5144 = vmatprep.subr.bf16.mxu0 %v12946_v42  ;;  %5102 = vmatpush1.bf16.msra.mxu1 %v12968_v18  ;;  %v12983_v18 = vld [vmem:[#allocation25 + $0x1c0] ss:$20 sps:$4 sm:$0xff]  }
 0x788   :  { %5103 = vmatprep.subr.bf16.mxu1 %v12976_v43 }
 0x78a   :  { %5145 = vmatpush1.bf16.msra.mxu0 %v12944_v44  ;;  %v12986_v44 = vld [vmem:[#allocation25 + $0x288] ss:$20 sps:$4 sm:$0xff]  }
 0x78b   :  { %5146 = vmatprep.subr.bf16.mxu0 %v12949_v48  ;;  %5104 = vmatpush1.bf16.msra.mxu1 %v12974_v51  ;;  %v12994_v51 = vld [vmem:[#allocation25 + $0x2b4] ss:$20 sps:$4 sm:$0xff]  }
 0x78c   :  { %5105 = vmatprep.subr.bf16.mxu1 %v12982_v53  ;;  %v12997_v53 = vld [vmem:[#allocation25 + $0x214] ss:$20 sps:$4 sm:$0xff]  }
 0x78e   :  { %5147 = vmatpush1.bf16.msra.mxu0 %v12947_v54  ;;  %v12992_v54 = vld [vmem:[#allocation25 + $0x2b0] ss:$20 sps:$4 sm:$0xff]  }
 0x78f   :  { %5148 = vmatprep.subr.bf16.mxu0 %v12952_v46  ;;  %5106 = vmatpush1.bf16.msra.mxu1 %v12980_v21  ;;  %v13000_v46 = vld [vmem:[#allocation25 + $0x2dc] ss:$20 sps:$4 sm:$0xff]  }
 0x790   :  { %5181 = vmatprep.subr.bf16.mxu1 %v12988_v55  ;;  %v12995_v21 = vld [vmem:[#allocation25 + $0x210] ss:$20 sps:$4 sm:$0xff]  }
 0x791   :  { %v13003_v55 = vld [vmem:[#allocation25 + $0x23c] ss:$20 sps:$4 sm:$0xff]  }
 0x792   :  { %5149 = vmatpush1.bf16.msra.mxu0 %v12950_v58  ;;  %v12998_v58 = vld [vmem:[#allocation25 + $0x2d8] ss:$20 sps:$4 sm:$0xff]  }
 0x793   :  { %5150 = vmatprep.subr.bf16.mxu0 %v12955_v59  ;;  %v13006_v59 = vld [vmem:[#allocation25 + $0x304] ss:$20 sps:$4 sm:$0xff]  }
 0x794   :  { %v11842_v60 = vpop.f32.mrb[16].mxu1 }
 0x795   :  { %v11864_v1 = vpop.f32.mrb[20].mxu0  ;;  %v11843_v57 = vpop.f32.mrb[17].mxu1 }
 0x796   :  { %v11844_v2 = vadd.f32 %v11843_v57, %v11842_v60  ;;  %v11865_v56 = vpop.f32.mrb[21].mxu0  ;;  %5151 = vmatpush1.bf16.msra.mxu0 %v12953_v62  ;;  %v11845_v3 = vpop.f32.mrb[18].mxu1  ;;  %v13001_v62 = vld [vmem:[#allocation25 + $0x238] ss:$20 sps:$4 sm:$0xff]   ;;  %v13004_v60 = vld [vmem:[#allocation25 + $0x300] ss:$20 sps:$4 sm:$0xff]  }
 0x797   :  { %v11866_v5 = vadd.f32 %v11865_v56, %v11864_v1  ;;  %v11867_v6 = vpop.f32.mrb[22].mxu0  ;;  %v11846_v7 = vpop.f32.mrb[19].mxu1  ;;  %5152 = vmatprep.subr.bf16.mxu0 %v12958_v63  ;;  %v13009_v63 = vld [vmem:[#allocation25 + $0x264] ss:$20 sps:$4 sm:$0xff]   ;;  %v13007_v1 = vld [vmem:[#allocation25 + $0x260] ss:$20 sps:$4 sm:$0xff]  }
 0x798   :  { %v3676_v9 = vadd.f32 %v11844_v2, %v2449_v0  ;;  %v11868_v11 = vpop.f32.mrb[23].mxu0  ;;  %v13012_v0 = vld [vmem:[#allocation25 + $0x32c] ss:$20 sps:$4 sm:$0xff]   ;;  %v13010_v2 = vld [vmem:[#allocation25 + $0x328] ss:$20 sps:$4 sm:$0xff]  }
 0x799   :  { %v13015_v57 = vld [vmem:[#allocation25 + $0x50c] ss:$20 sps:$4 sm:$0xff]   ;;  %v13018_v56 = vld [vmem:[#allocation25 + $0x354] ss:$20 sps:$4 sm:$0xff]   ;;  %v13024_v6 = vld [vmem:[#allocation25 + $0x37c] ss:$20 sps:$4 sm:$0xff]  }
 0x79a   :  { %5153 = vmatpush1.bf16.msra.mxu0 %v12956_v4  ;;  %v3716_v14 = vadd.f32 %v11866_v5, %v3676_v9  ;;  %v13013_v3 = vld [vmem:[#allocation25 + $0x508] ss:$20 sps:$4 sm:$0xff]   ;;  %v13016_v5 = vld [vmem:[#allocation25 + $0x350] ss:$20 sps:$4 sm:$0xff]   ;;  %v13022_v9 = vld [vmem:[#allocation25 + $0x378] ss:$20 sps:$4 sm:$0xff]  }
 0x79b   :  { %5154 = vmatprep.subr.bf16.mxu0 %v12961_v8  ;;  %v13021_v4 = vld [vmem:[#allocation25 + $0x534] ss:$20 sps:$4 sm:$0xff]   ;;  %v13019_v7 = vld [vmem:[#allocation25 + $0x530] ss:$20 sps:$4 sm:$0xff]  }
 0x79c   :  { %v13027_v8 = vld [vmem:[#allocation25 + $0x55c] ss:$20 sps:$4 sm:$0xff]   ;;  %v13030_v11 = vld [vmem:[#allocation25 + $0x3a4] ss:$20 sps:$4 sm:$0xff]  }
 0x79e   :  { %5155 = vmatpush1.bf16.msra.mxu0 %v12959_v12  ;;  %v13025_v12 = vld [vmem:[#allocation25 + $0x558] ss:$20 sps:$4 sm:$0xff]  }
 0x79f   :  { %5156 = vmatprep.subr.bf16.mxu0 %v12967_v19  ;;  %v13028_v19 = vld [vmem:[#allocation25 + $0x3a0] ss:$20 sps:$4 sm:$0xff]  }
 0x7a2   :  { %5157 = vmatpush1.bf16.msra.mxu0 %v12965_v45  ;;  %v13036_v45 = vld [vmem:[#allocation25 + $0x3cc] ss:$20 sps:$4 sm:$0xff]  }
 0x7a3   :  { %5158 = vmatprep.subr.bf16.mxu0 %v12973_v20  ;;  %v13031_v20 = vld [vmem:[#allocation25 + $0x580] ss:$20 sps:$4 sm:$0xff]  }
 0x7a4   :  { %v3755_v26 = vpop.f32.mrb[20].mxu1 }
 0x7a5   :  { %v3756_v28 = vadd.f32 %v3755_v26, %v3716_v14  ;;  %v12130_v33 = vpop.f32.mrb[21].mxu1  ;;  %v13033_v14 = vld [vmem:[#allocation25 + $0x584] ss:$20 sps:$4 sm:$0xff]  }
 0x7a6   :  { %5159 = vmatpush1.bf16.msra.mxu0 %v12971_v23  ;;  %v3758_v10 = vpop.f32.mrb[22].mxu1  ;;  %v13037_v23 = vld [vmem:[#allocation25 + $0x3d0] ss:$20 sps:$4 sm:$0xff]  }
 0x7a7   :  { %v3792_v37 = vmul.f32 %v3782_v24, %v3756_v28  ;;  %v12131_v40 = vpop.f32.mrb[23].mxu1  ;;  %5160 = vmatprep.subr.bf16.mxu0 %v12979_v25  ;;  %v13034_v24 = vld [vmem:[#allocation25 + $0x3c8] ss:$20 sps:$4 sm:$0xff]   ;;  %v13038_v26 = vld [vmem:[#allocation25 + $0x290] ss:$20 sps:$4 sm:$0xff]  }
 0x7a8   :  { %v13041_v25 = vld [vmem:[#allocation25 + $0x3f4] ss:$20 sps:$4 sm:$0xff]   ;;  %v13042_v28 = vld [vmem:[#allocation25 + $0x3f8] ss:$20 sps:$4 sm:$0xff]   ;;  %v13046_v33 = vld [vmem:[#allocation25 + $0x41c] ss:$20 sps:$4 sm:$0xff]  }
 0x7a9   :  { %v3824_v42 = vadd.f32 %v3814_v29, %v3792_v37  ;;  %v13039_v29 = vld [vmem:[#allocation25 + $0x3f0] ss:$20 sps:$4 sm:$0xff]   ;;  %v13043_v10 = vld [vmem:[#allocation25 + $0x2b8] ss:$20 sps:$4 sm:$0xff]  }
 0x7aa   :  { %5161 = vmatpush1.bf16.msra.mxu0 %v12977_v35  ;;  %v13047_v35 = vld [vmem:[#allocation25 + $0x420] ss:$20 sps:$4 sm:$0xff]   ;;  %v13044_v37 = vld [vmem:[#allocation25 + $0x418] ss:$20 sps:$4 sm:$0xff]  }
 0x7ab   :  { %v3829_v43 = vmax.f32 %v3824_v42, 0.0  ;;  %5162 = vmatprep.subr.bf16.mxu0 %v12985_v16  ;;  %v13051_v40 = vld [vmem:[#allocation25 + $0x444] ss:$20 sps:$4 sm:$0xff]   ;;  %v13048_v16 = vld [vmem:[#allocation25 + $0x2e0] ss:$20 sps:$4 sm:$0xff]  }
 0x7ac   :  { %v13052_v42 = vld [vmem:[#allocation25 + $0x448] ss:$20 sps:$4 sm:$0xff]  }
 0x7ad   :  { %v15344_v48 = vpack.c.bf16 %v3829_v43, %v3829_v43  ;;  %v13056_v43 = vld [vmem:[#allocation25 + $0x46c] ss:$20 sps:$4 sm:$0xff]  }
 0x7ae   :  { %5163 = vmatpush1.bf16.msra.mxu0 %v12983_v18  ;;  %v13049_v18 = vld [vmem:[#allocation25 + $0x440] ss:$20 sps:$4 sm:$0xff]  }
 0x7af   :  { %11214 = vmatmul.mubr.msk.bf16.vlgmr.msra.gmra.mrb[28].mxu1 %vm3391_vm0, %v15344_v48  ;;  %5164 = vmatprep.subr.bf16.mxu0 %v12991_v47  ;;  %v13053_v47 = vld [vmem:[#allocation25 + $0x308] ss:$20 sps:$4 sm:$0xff]  }
 0x7b0   :  { %5182 = vmatpush1.bf16.msra.mxu1 %v12986_v44  ;;  %5213 = vmatprep.mubr.bf16.mxu1 %v15326_v49  ;;  %v13057_v44 = vld [vmem:[#allocation25 + $0x470] ss:$20 sps:$4 sm:$0xff]  }
 0x7b1   :  { %5183 = vmatprep.subr.bf16.mxu1 %v12994_v51  ;;  %v13061_v51 = vld [vmem:[#allocation25 + $0x494] ss:$20 sps:$4 sm:$0xff]  }
 0x7b2   :  { %5165 = vmatpush1.bf16.msra.mxu0 %v12989_v52  ;;  %v13058_v52 = vld [vmem:[#allocation25 + $0x330] ss:$20 sps:$4 sm:$0xff]  }
 0x7b3   :  { %5166 = vmatprep.subr.bf16.mxu0 %v12997_v53  ;;  %v13062_v53 = vld [vmem:[#allocation25 + $0x498] ss:$20 sps:$4 sm:$0xff]  }
 0x7b4   :  { %5184 = vmatpush1.bf16.msra.mxu1 %v12992_v54  ;;  %v13059_v54 = vld [vmem:[#allocation25 + $0x490] ss:$20 sps:$4 sm:$0xff]  }
 0x7b5   :  { %5185 = vmatprep.subr.bf16.mxu1 %v13000_v46  ;;  %v13066_v46 = vld [vmem:[#allocation25 + $0x4bc] ss:$20 sps:$4 sm:$0xff]  }
 0x7b6   :  { %5167 = vmatpush1.bf16.msra.mxu0 %v12995_v21  ;;  %v13063_v21 = vld [vmem:[#allocation25 + $0x358] ss:$20 sps:$4 sm:$0xff]  }
 0x7b7   :  { %5168 = vmatprep.subr.bf16.mxu0 %v13003_v55  ;;  %v13067_v55 = vld [vmem:[#allocation25 + $0x4c0] ss:$20 sps:$4 sm:$0xff]  }
 0x7b8   :  { %5186 = vmatpush1.bf16.msra.mxu1 %v12998_v58  ;;  %v13064_v58 = vld [vmem:[#allocation25 + $0x4b8] ss:$20 sps:$4 sm:$0xff]  }
 0x7b9   :  { %5187 = vmatprep.subr.bf16.mxu1 %v13006_v59  ;;  %v13071_v59 = vld [vmem:[#allocation25 + $0x4e4] ss:$20 sps:$4 sm:$0xff]  }
 0x7ba   :  { %5169 = vmatpush1.bf16.msra.mxu0 %v13001_v62  ;;  %v13068_v62 = vld [vmem:[#allocation25 + $0x380] ss:$20 sps:$4 sm:$0xff]  }
 0x7bb   :  { %5170 = vmatprep.subr.bf16.mxu0 %v13009_v63  ;;  %v13072_v63 = vld [vmem:[#allocation25 + $0x4e8] ss:$20 sps:$4 sm:$0xff]  }
 0x7bc   :  { %5188 = vmatpush1.bf16.msra.mxu1 %v13004_v60  ;;  %v13069_v60 = vld [vmem:[#allocation25 + $0x4e0] ss:$20 sps:$4 sm:$0xff]  }
 0x7bd   :  { %5189 = vmatprep.subr.bf16.mxu1 %v13012_v0  ;;  %v13074_v0 = vld [vmem:[#allocation25 + $0x150] ss:$20 sps:$4 sm:$0xff]  }
 0x7be   :  { %5171 = vmatpush1.bf16.msra.mxu0 %v13007_v1  ;;  %v13073_v1 = vld [vmem:[#allocation25 + $0x3a8] ss:$20 sps:$4 sm:$0xff]  }
 0x7bf   :  { %5222 = vmatprep.subr.bf16.mxu0 %v13015_v57  ;;  %v13096_v57 = vld [vmem:[#allocation19 + $0x5a4] ss:$20 sps:$4 sm:$0xff]  }
 0x7c0   :  { %5190 = vmatpush1.bf16.msra.mxu1 %v13010_v2  ;;  %v13075_v2 = vld [vmem:[#allocation25 + $0x10] ss:$20 sps:$4 sm:$0xff]  }
 0x7c1   :  { %5173 = vmatmul.mubr.bf16.vlgmr.msra.gmra.mrb[28].mxu0 %v15328_v61  ;;  %5191 = vmatprep.subr.bf16.mxu1 %v13018_v56  ;;  %v13076_v56 = vld [vmem:[#allocation25 + $0x178] ss:$20 sps:$4 sm:$0xff]  }
 0x7c2   :  { %5223 = vmatpush1.bf16.msra.mxu0 %v13013_v3  ;;  %5254 = vmatprep.mubr.bf16.mxu0 %v14405_v39  ;;  %v13094_v3 = vld [vmem:[#allocation19 + $0x5a0] ss:$20 sps:$4 sm:$0xff]  }
 0x7c3   :  { %5224 = vmatprep.subr.bf16.mxu0 %v13021_v4  ;;  %v13102_v4 = vld [vmem:[#allocation19 + $0x5cc] ss:$20 sps:$4 sm:$0xff]  }
 0x7c4   :  { %5192 = vmatpush1.bf16.msra.mxu1 %v13016_v5  ;;  %v13077_v5 = vld [vmem:[#allocation25 + $0x38] ss:$20 sps:$4 sm:$0xff]  }
 0x7c5   :  { %5193 = vmatprep.subr.bf16.mxu1 %v13024_v6  ;;  %v13078_v6 = vld [vmem:[#allocation25 + $0x1a0] ss:$20 sps:$4 sm:$0xff]  }
 0x7c6   :  { %5225 = vmatpush1.bf16.msra.mxu0 %v13019_v7  ;;  %v13100_v7 = vld [vmem:[#allocation19 + $0x5c8] ss:$20 sps:$4 sm:$0xff]  }
 0x7c7   :  { %5226 = vmatprep.subr.bf16.mxu0 %v13027_v8  ;;  %v13108_v8 = vld [vmem:[#allocation19 + $0x5f4] ss:$20 sps:$4 sm:$0xff]  }
 0x7c8   :  { %5194 = vmatpush1.bf16.msra.mxu1 %v13022_v9  ;;  %v13079_v9 = vld [vmem:[#allocation25 + $0x60] ss:$20 sps:$4 sm:$0xff]  }
 0x7c9   :  { %5195 = vmatprep.subr.bf16.mxu1 %v13030_v11  ;;  %v13080_v11 = vld [vmem:[#allocation25 + $0x1c8] ss:$20 sps:$4 sm:$0xff]  }
 0x7ca   :  { %5227 = vmatpush1.bf16.msra.mxu0 %v13025_v12  ;;  %v13106_v12 = vld [vmem:[#allocation19 + $0x5f0] ss:$20 sps:$4 sm:$0xff]  }
 0x7cb   :  { %5228 = vmatprep.subr.bf16.mxu0 %v13033_v14  ;;  %v13114_v14 = vld [vmem:[#allocation19 + $0x61c] ss:$20 sps:$4 sm:$0xff]  }
 0x7cc   :  { %5196 = vmatpush1.bf16.msra.mxu1 %v13028_v19  ;;  %v13081_v19 = vld [vmem:[#allocation25 + $0x88] ss:$20 sps:$4 sm:$0xff]  }
 0x7cd   :  { %5197 = vmatprep.subr.bf16.mxu1 %v13036_v45  ;;  %v13120_v45 = vld [vmem:[#allocation19 + $0x644] ss:$20 sps:$4 sm:$0xff]  }
 0x7ce   :  { %5229 = vmatpush1.bf16.msra.mxu0 %v13031_v20  ;;  %v13083_v20 = vld [vmem:[#allocation25 + $0xb0] ss:$20 sps:$4 sm:$0xff]  }
 0x7cf   :  { %11897 = vmatprep.subr.bf16.mxu0 %v13037_v23  ;;  %v13084_v23 = vld [vmem:[#allocation25 + $0x218] ss:$20 sps:$4 sm:$0xff]  }
 0x7d0   :  { %5198 = vmatpush1.bf16.msra.mxu1 %v13034_v24  ;;  %v13118_v24 = vld [vmem:[#allocation19 + $0x640] ss:$20 sps:$4 sm:$0xff]  }
 0x7d1   :  { %11215 = vmatmul.mubr.msk.bf16.vlgmr.msra.gmra.mrb[32].mxu0 %vm3391_vm0, %v15344_v48  ;;  %5199 = vmatprep.subr.bf16.mxu1 %v13041_v25  ;;  %v13126_v25 = vld [vmem:[#allocation19 + $0x66c] ss:$20 sps:$4 sm:$0xff]  }
 0x7d2   :  { %11898 = vmatpush3.bf16.msra.mxu0 %v13038_v26  ;;  %5335 = vmatprep.mubr.bf16.mxu0 %v15326_v49  ;;  %v13054_v49 = vld [vmem:[#allocation25 + $0x468] ss:$20 sps:$4 sm:$0xff]   ;;  %v13085_v26 = vld [vmem:[#allocation25 + $0xd8] ss:$20 sps:$4 sm:$0xff]  }
 0x7d3   :  { %11899 = vmatprep.subr.bf16.mxu0 %v13042_v28  ;;  %v13086_v28 = vld [vmem:[#allocation25 + $0x240] ss:$20 sps:$4 sm:$0xff]  }
 0x7d4   :  { %5200 = vmatpush1.bf16.msra.mxu1 %v13039_v29  ;;  %v13124_v29 = vld [vmem:[#allocation19 + $0x668] ss:$20 sps:$4 sm:$0xff]  }
 0x7d5   :  { %5201 = vmatprep.subr.bf16.mxu1 %v13046_v33  ;;  %v13132_v33 = vld [vmem:[#allocation19 + $0x694] ss:$20 sps:$4 sm:$0xff]  }
 0x7d6   :  { %11900 = vmatpush3.bf16.msra.mxu0 %v13043_v10  ;;  %v13087_v10 = vld [vmem:[#allocation25 + $0x100] ss:$20 sps:$4 sm:$0xff]  }
 0x7d7   :  { %11901 = vmatprep.subr.bf16.mxu0 %v13047_v35  ;;  %v13088_v35 = vld [vmem:[#allocation25 + $0x268] ss:$20 sps:$4 sm:$0xff]  }
 0x7d8   :  { %5202 = vmatpush1.bf16.msra.mxu1 %v13044_v37  ;;  %v13130_v37 = vld [vmem:[#allocation19 + $0x690] ss:$20 sps:$4 sm:$0xff]  }
 0x7d9   :  { %5203 = vmatprep.subr.bf16.mxu1 %v13051_v40  ;;  %v13138_v40 = vld [vmem:[#allocation19 + $0x6bc] ss:$20 sps:$4 sm:$0xff]  }
 0x7da   :  { %11902 = vmatpush3.bf16.msra.mxu0 %v13048_v16  ;;  %v13089_v16 = vld [vmem:[#allocation25 + $0x128] ss:$20 sps:$4 sm:$0xff]  }
 0x7db   :  { %11903 = vmatprep.subr.bf16.mxu0 %v13052_v42  ;;  %v13136_v42 = vld [vmem:[#allocation19 + $0x6b8] ss:$20 sps:$4 sm:$0xff]  }
 0x7dc   :  { %5204 = vmatpush1.bf16.msra.mxu1 %v13049_v18  ;;  %v13144_v18 = vld [vmem:[#allocation19 + $0x6e4] ss:$20 sps:$4 sm:$0xff]  }
 0x7dd   :  { %5205 = vmatprep.subr.bf16.mxu1 %v13056_v43  ;;  %v13090_v43 = vld [vmem:[#allocation25 + $0x510] ss:$20 sps:$4 sm:$0xff]  }
 0x7de   :  { %11904 = vmatpush3.bf16.msra.mxu0 %v13053_v47  ;;  %v13142_v47 = vld [vmem:[#allocation19 + $0x6e0] ss:$20 sps:$4 sm:$0xff]  }
 0x7df   :  { %11905 = vmatprep.subr.bf16.mxu0 %v13057_v44  ;;  %v13150_v44 = vld [vmem:[#allocation19 + $0x70c] ss:$20 sps:$4 sm:$0xff]  }
 0x7e0   :  { %5206 = vmatpush1.bf16.msra.mxu1 %v13054_v49  ;;  %v13091_v49 = vld [vmem:[#allocation25 + $0x538] ss:$20 sps:$4 sm:$0xff]  }
 0x7e1   :  { %5207 = vmatprep.subr.bf16.mxu1 %v13061_v51  ;;  %v13148_v51 = vld [vmem:[#allocation19 + $0x708] ss:$20 sps:$4 sm:$0xff]  }
 0x7e2   :  { %11906 = vmatpush3.bf16.msra.mxu0 %v13058_v52  ;;  %v13156_v52 = vld [vmem:[#allocation19 + $0x734] ss:$20 sps:$4 sm:$0xff]  }
 0x7e3   :  { %11907 = vmatprep.subr.bf16.mxu0 %v13062_v53  ;;  %v13092_v53 = vld [vmem:[#allocation25 + $0x560] ss:$20 sps:$4 sm:$0xff]  }
 0x7e4   :  { %5208 = vmatpush1.bf16.msra.mxu1 %v13059_v54  ;;  %v13154_v54 = vld [vmem:[#allocation19 + $0x730] ss:$20 sps:$4 sm:$0xff]  }
 0x7e5   :  { %5209 = vmatprep.subr.bf16.mxu1 %v13066_v46  ;;  %v13093_v46 = vld [vmem:[#allocation25 + $0x588] ss:$20 sps:$4 sm:$0xff]  }
 0x7e6   :  { %11908 = vmatpush3.bf16.msra.mxu0 %v13063_v21  ;;  %v13099_v21 = vld [vmem:[#allocation19 + $0x5ac] ss:$20 sps:$4 sm:$0xff]  }
 0x7e7   :  { %11909 = vmatprep.subr.bf16.mxu0 %v13067_v55  ;;  %v13160_v55 = vld [vmem:[#allocation19 + $0x758] ss:$20 sps:$4 sm:$0xff]  }
 0x7e8   :  { %5210 = vmatpush1.bf16.msra.mxu1 %v13064_v58  ;;  %v13168_v58 = vld [vmem:[#allocation19 + $0x784] ss:$20 sps:$4 sm:$0xff]  }
 0x7e9   :  { %5211 = vmatprep.subr.bf16.mxu1 %v13071_v59  ;;  %v13097_v59 = vld [vmem:[#allocation19 + $0x5a8] ss:$20 sps:$4 sm:$0xff]  }
 0x7ea   :  { %11910 = vmatpush3.bf16.msra.mxu0 %v13068_v62  ;;  %v13105_v62 = vld [vmem:[#allocation19 + $0x5d4] ss:$20 sps:$4 sm:$0xff]  }
 0x7eb   :  { %11911 = vmatprep.subr.bf16.mxu0 %v13072_v63  ;;  %v13166_v63 = vld [vmem:[#allocation19 + $0x780] ss:$20 sps:$4 sm:$0xff]  }
 0x7ec   :  { %5212 = vmatpush1.bf16.msra.mxu1 %v13069_v60  ;;  %v13174_v60 = vld [vmem:[#allocation19 + $0x7ac] ss:$20 sps:$4 sm:$0xff]  }
 0x7ed   :  { %11875 = vmatprep.subr.bf16.mxu1 %v13074_v0  ;;  %v13103_v0 = vld [vmem:[#allocation19 + $0x5d0] ss:$20 sps:$4 sm:$0xff]  }
 0x7ee   :  { %11912 = vmatpush3.bf16.msra.mxu0 %v13073_v1  ;;  %v13111_v1 = vld [vmem:[#allocation19 + $0x5fc] ss:$20 sps:$4 sm:$0xff]  }
 0x7ef   :  { %5214 = vmatmul.mubr.bf16.vlgmr.msra.gmra.mrb[32].mxu1 %v15330_v31  ;;  %6648 = vmatprep.subr.bf16.mxu0 %v13096_v57  ;;  %v13172_v57 = vld [vmem:[#allocation19 + $0x7a8] ss:$20 sps:$4 sm:$0xff]  }
 0x7f0   :  { %11876 = vmatpush3.bf16.msra.mxu1 %v13075_v2  ;;  %5295 = vmatprep.mubr.bf16.mxu1 %v15324_v34  ;;  %v13082_v34 = vld [vmem:[#allocation25 + $0x1f0] ss:$20 sps:$4 sm:$0xff]   ;;  %v13180_v2 = vld [vmem:[#allocation19 + $0x7d4] ss:$20 sps:$4 sm:$0xff]  }
 0x7f1   :  { %5336 = vmatmul.mubr.bf16.vlgmr.msra.gmra.mrb[36].mxu0 %v15330_v31  ;;  %11877 = vmatprep.subr.bf16.mxu1 %v13076_v56  ;;  %v13112_v31 = vld [vmem:[#allocation19 + $0x618] ss:$20 sps:$4 sm:$0xff]  }
 0x7f2   :  { %6649 = vmatpush1.bf16.msra.mxu0 %v13094_v3  ;;  %v13109_v56 = vld [vmem:[#allocation19 + $0x5f8] ss:$20 sps:$4 sm:$0xff]  }
 0x7f3   :  { %6650 = vmatprep.subr.bf16.mxu0 %v13102_v4  ;;  %v13117_v3 = vld [vmem:[#allocation19 + $0x624] ss:$20 sps:$4 sm:$0xff]  }
 0x7f4   :  { %11878 = vmatpush3.bf16.msra.mxu1 %v13077_v5  ;;  %v13178_v4 = vld [vmem:[#allocation19 + $0x7d0] ss:$20 sps:$4 sm:$0xff]  }
 0x7f5   :  { %11879 = vmatprep.subr.bf16.mxu1 %v13078_v6  ;;  %v13186_v5 = vld [vmem:[#allocation19 + $0x7fc] ss:$20 sps:$4 sm:$0xff]   ;;  %v13123_v6 = vld [vmem:[#allocation19 + $0x64c] ss:$20 sps:$4 sm:$0xff]  }
 0x7f6   :  { %6651 = vmatpush1.bf16.msra.mxu0 %v13100_v7  ;;  %v13184_v7 = vld [vmem:[#allocation19 + $0x7f8] ss:$20 sps:$4 sm:$0xff]  }
 0x7f7   :  { %6652 = vmatprep.subr.bf16.mxu0 %v13108_v8  ;;  %v13192_v8 = vld [vmem:[#allocation19 + $0x824] ss:$20 sps:$4 sm:$0xff]  }
 0x7f8   :  { %11880 = vmatpush3.bf16.msra.mxu1 %v13079_v9  ;;  %v13121_v9 = vld [vmem:[#allocation19 + $0x648] ss:$20 sps:$4 sm:$0xff]  }
 0x7f9   :  { %11881 = vmatprep.subr.bf16.mxu1 %v13080_v11  ;;  %v13129_v11 = vld [vmem:[#allocation19 + $0x674] ss:$20 sps:$4 sm:$0xff]  }
 0x7fa   :  { %6653 = vmatpush1.bf16.msra.mxu0 %v13106_v12  ;;  %v13127_v12 = vld [vmem:[#allocation19 + $0x670] ss:$20 sps:$4 sm:$0xff]  }
 0x7fb   :  { %6654 = vmatprep.subr.bf16.mxu0 %v13114_v14  ;;  %v13135_v14 = vld [vmem:[#allocation19 + $0x69c] ss:$20 sps:$4 sm:$0xff]  }
 0x7fc   :  { %11882 = vmatpush3.bf16.msra.mxu1 %v13081_v19  ;;  %v13133_v19 = vld [vmem:[#allocation19 + $0x698] ss:$20 sps:$4 sm:$0xff]  }
 0x7fd   :  { %11883 = vmatprep.subr.bf16.mxu1 %v13082_v34  ;;  %v13141_v34 = vld [vmem:[#allocation19 + $0x6c4] ss:$20 sps:$4 sm:$0xff]  }
 0x7fe   :  { %6655 = vmatpush1.bf16.msra.mxu0 %v13112_v31  ;;  %v13139_v31 = vld [vmem:[#allocation19 + $0x6c0] ss:$20 sps:$4 sm:$0xff]  }
 0x7ff   :  { %6656 = vmatprep.subr.bf16.mxu0 %v13120_v45  ;;  %v13147_v45 = vld [vmem:[#allocation19 + $0x6ec] ss:$20 sps:$4 sm:$0xff]  }
 0x800   :  { %11884 = vmatpush3.bf16.msra.mxu1 %v13083_v20  ;;  %v13145_v20 = vld [vmem:[#allocation19 + $0x6e8] ss:$20 sps:$4 sm:$0xff]  }
 0x801   :  { %11885 = vmatprep.subr.bf16.mxu1 %v13084_v23  ;;  %v13153_v23 = vld [vmem:[#allocation19 + $0x714] ss:$20 sps:$4 sm:$0xff]  }
 0x802   :  { %6657 = vmatpush1.bf16.msra.mxu0 %v13118_v24  ;;  %v13151_v24 = vld [vmem:[#allocation19 + $0x710] ss:$20 sps:$4 sm:$0xff]  }
 0x803   :  { %6658 = vmatprep.subr.bf16.mxu0 %v13126_v25  ;;  %v13159_v25 = vld [vmem:[#allocation19 + $0x73c] ss:$20 sps:$4 sm:$0xff]  }
 0x804   :  { %11886 = vmatpush3.bf16.msra.mxu1 %v13085_v26  ;;  %v13157_v26 = vld [vmem:[#allocation19 + $0x738] ss:$20 sps:$4 sm:$0xff]  }
 0x805   :  { %11887 = vmatprep.subr.bf16.mxu1 %v13086_v28  ;;  %v13165_v28 = vld [vmem:[#allocation19 + $0x764] ss:$20 sps:$4 sm:$0xff]  }
 0x806   :  { %6659 = vmatpush1.bf16.msra.mxu0 %v13124_v29  ;;  %v13163_v29 = vld [vmem:[#allocation19 + $0x760] ss:$20 sps:$4 sm:$0xff]  }
 0x807   :  { %6660 = vmatprep.subr.bf16.mxu0 %v13132_v33  ;;  %v13171_v33 = vld [vmem:[#allocation19 + $0x78c] ss:$20 sps:$4 sm:$0xff]  }
 0x808   :  { %11888 = vmatpush3.bf16.msra.mxu1 %v13087_v10  ;;  %v13169_v10 = vld [vmem:[#allocation19 + $0x788] ss:$20 sps:$4 sm:$0xff]  }
 0x809   :  { %11889 = vmatprep.subr.bf16.mxu1 %v13088_v35  ;;  %v13177_v35 = vld [vmem:[#allocation19 + $0x7b4] ss:$20 sps:$4 sm:$0xff]  }
 0x80a   :  { %6661 = vmatpush1.bf16.msra.mxu0 %v13130_v37  ;;  %v15366_v37 = vld [vmem:[#allocation27] sm:$0x1f] }
 0x80b   :  { %6662 = vmatprep.subr.bf16.mxu0 %v13138_v40  ;;  %v13175_v40 = vld [vmem:[#allocation19 + $0x7b0] ss:$20 sps:$4 sm:$0xff]  }
 0x80c   :  { %11890 = vmatpush3.bf16.msra.mxu1 %v13089_v16  ;;  %v4056_v16 = vrot.slane %v15366_v37, %v14904_v50 }
 0x80d   :  { %12132 = vmatprep.subr.bf16.mxu1 %v14406_v27 }
 0x80e   :  { %6663 = vmatpush1.bf16.msra.mxu0 %v13136_v42  ;;  %v13183_v42 = vld [vmem:[#allocation19 + $0x7dc] ss:$20 sps:$4 sm:$0xff]  }
 0x80f   :  { %5296 = vmatmul.mubr.bf16.vlgmr.msra.gmra.mrb[36].mxu1 %v15328_v61  ;;  %6664 = vmatprep.subr.bf16.mxu0 %v13144_v18  ;;  %v13162_v61 = vld [vmem:[#allocation19 + $0x75c] ss:$20 sps:$4 sm:$0xff]   ;;  %v4060_v18 = vrot.slane %v15366_v37, %v14890_v13 }
 0x810   :  { %12133 = vmatpush3.bf16.msra.mxu1 %v13090_v43  ;;  %12140 = vmatprep.mubr.msk.bf16.mxu1 %vm14407_vm1, %v14406_v27 }
 0x811   :  { %12134 = vmatprep.subr.bf16.mxu1 %v14406_v27 }
 0x812   :  { %6665 = vmatpush1.bf16.msra.mxu0 %v13142_v47 }
 0x813   :  { %6666 = vmatprep.subr.bf16.mxu0 %v13150_v44  ;;  %v13181_v44 = vld [vmem:[#allocation19 + $0x7d8] ss:$20 sps:$4 sm:$0xff]  }
 0x814   :  { %12135 = vmatpush3.bf16.msra.mxu1 %v13091_v49 }
 0x815   :  { %12136 = vmatprep.subr.bf16.mxu1 %v14406_v27 }
 0x816   :  { %6667 = vmatpush1.bf16.msra.mxu0 %v13148_v51 }
 0x817   :  { %6668 = vmatprep.subr.bf16.mxu0 %v13156_v52 }
 0x818   :  { %12137 = vmatpush3.bf16.msra.mxu1 %v13092_v53  ;;  %v13189_v53 = vld [vmem:[#allocation19 + $0x804] ss:$20 sps:$4 sm:$0xff]  }
 0x819   :  { %12138 = vmatprep.subr.bf16.mxu1 %v14406_v27 }
 0x81a   :  { %6669 = vmatpush1.bf16.msra.mxu0 %v13154_v54 }
 0x81b   :  { %6670 = vmatprep.subr.bf16.mxu0 %v13162_v61 }
 0x81c   :  { %12139 = vmatpush3.bf16.msra.mxu1 %v13093_v46 }
 0x81d   :  { %6771 = vmatprep.subr.bf16.mxu1 %v13099_v21 }
 0x81e   :  { %6671 = vmatpush1.bf16.msra.mxu0 %v13160_v55 }
 0x81f   :  { %12141 = vmatmul.mubr.msk.bf16.vlgmr.msra.gmra.mrb[40].mxu1 %vm3391_vm0, %v15344_v48  ;;  %6672 = vmatprep.subr.bf16.mxu0 %v13168_v58  ;;  %v13115_v48 = vld [vmem:[#allocation19 + $0x620] ss:$20 sps:$4 sm:$0xff]  }
 0x820   :  { %6772 = vmatpush1.bf16.msra.mxu1 %v13097_v59 }
 0x821   :  { %6773 = vmatprep.subr.bf16.mxu1 %v13105_v62  ;;  %v13187_v62 = vld [vmem:[#allocation19 + $0x800] ss:$20 sps:$4 sm:$0xff]  }
 0x822   :  { %6673 = vmatpush1.bf16.msra.mxu0 %v13166_v63  ;;  %v13195_v63 = vld [vmem:[#allocation19 + $0x82c] ss:$20 sps:$4 sm:$0xff]  }
 0x823   :  { %6674 = vmatprep.subr.bf16.mxu0 %v13174_v60  ;;  %v15372_v60 = vld [vmem:[#allocation16 + $0x5] sm:$0x1f] }
 0x824   :  { %6774 = vmatpush1.bf16.msra.mxu1 %v13103_v0 }
 0x825   :  { %6775 = vmatprep.subr.bf16.mxu1 %v13111_v1  ;;  %v15374_v1 = vld [vmem:[#allocation18 + $0x5] sm:$0x1f] }
 0x826   :  { %6675 = vmatpush1.bf16.msra.mxu0 %v13172_v57 }
 0x827   :  { %6676 = vmatprep.subr.bf16.mxu0 %v13180_v2  ;;  %v5394_v2 = vrot.slane %v15372_v60, %v14904_v50 }
 0x828   :  { %6776 = vmatpush1.bf16.msra.mxu1 %v13109_v56 }
 0x829   :  { %6777 = vmatprep.subr.bf16.mxu1 %v13117_v3 }
 0x82a   :  { %6677 = vmatpush1.bf16.msra.mxu0 %v13178_v4  ;;  %v5398_v4 = vrot.slane %v15372_v60, %v14890_v13 }
 0x82b   :  { %6678 = vmatprep.subr.bf16.mxu0 %v13186_v5 }
 0x82c   :  { %6778 = vmatpush1.bf16.msra.mxu1 %v13115_v48 }
 0x82d   :  { %6779 = vmatprep.subr.bf16.mxu1 %v13123_v6  ;;  %v5427_v6 = vrot.slane %v15374_v1, %v14904_v50 }
 0x82e   :  { %6679 = vmatpush1.bf16.msra.mxu0 %v13184_v7 }
 0x82f   :  { %6689 = vmatprep.subr.bf16.mxu0 %v13192_v8 }
 0x830   :  { %6780 = vmatpush1.bf16.msra.mxu1 %v13121_v9  ;;  %v5431_v9 = vrot.slane %v15374_v1, %v14890_v13 }
 0x831   :  { %6781 = vmatprep.subr.bf16.mxu1 %v13129_v11 }
 0x834   :  { %6782 = vmatpush1.bf16.msra.mxu1 %v13127_v12 }
 0x835   :  { %6783 = vmatprep.subr.bf16.mxu1 %v13135_v14 }
 0x838   :  { %6784 = vmatpush1.bf16.msra.mxu1 %v13133_v19 }
 0x839   :  { %6785 = vmatprep.subr.bf16.mxu1 %v13141_v34 }
 0x83c   :  { %6786 = vmatpush1.bf16.msra.mxu1 %v13139_v31 }
 0x83d   :  { %6787 = vmatprep.subr.bf16.mxu1 %v13147_v45  ;;  %v13190_v45 = vld [vmem:[#allocation19 + $0x820] ss:$20 sps:$4 sm:$0xff]  }
 0x840   :  { %6788 = vmatpush1.bf16.msra.mxu1 %v13145_v20  ;;  %v13193_v20 = vld [vmem:[#allocation19 + $0x828] ss:$20 sps:$4 sm:$0xff]  }
 0x841   :  { %6789 = vmatprep.subr.bf16.mxu1 %v13153_v23 }
 0x844   :  { %6790 = vmatpush1.bf16.msra.mxu1 %v13151_v24  ;;  %v13198_v24 = vld [vmem:[#allocation19 + $0x84c] ss:$20 sps:$4 sm:$0xff]  }
 0x845   :  { %6791 = vmatprep.subr.bf16.mxu1 %v13159_v25  ;;  %v13196_v25 = vld [vmem:[#allocation19 + $0x848] ss:$20 sps:$4 sm:$0xff]  }
 0x848   :  { %6792 = vmatpush1.bf16.msra.mxu1 %v13157_v26  ;;  %v13199_v26 = vld [vmem:[#allocation19 + $0x850] ss:$20 sps:$4 sm:$0xff]  }
 0x849   :  { %6793 = vmatprep.subr.bf16.mxu1 %v13165_v28  ;;  %v13204_v28 = vld [vmem:[#allocation19 + $0x874] ss:$20 sps:$4 sm:$0xff]  }
 0x84c   :  { %6794 = vmatpush1.bf16.msra.mxu1 %v13163_v29  ;;  %v13207_v29 = vld [vmem:[#allocation19 + $0x87c] ss:$20 sps:$4 sm:$0xff]  }
 0x84d   :  { %6795 = vmatprep.subr.bf16.mxu1 %v13171_v33 }
 0x850   :  { %6796 = vmatpush1.bf16.msra.mxu1 %v13169_v10 }
 0x851   :  { %6797 = vmatprep.subr.bf16.mxu1 %v13177_v35 }
 0x854   :  { %v5051_v43 = vpop.f32.mrb[24].mxu1  ;;  %v5092_v47 = vpop.f32.mrb[24].mxu0  ;;  %6798 = vmatpush1.bf16.msra.mxu1 %v13175_v40  ;;  %v13202_v40 = vld [vmem:[#allocation19 + $0x870] ss:$20 sps:$4 sm:$0xff]  }
 0x855   :  { %v5052_v49 = vadd.f32 %v5051_v43, %v4056_v16  ;;  %v5053_v51 = vpop.f32.mrb[25].mxu1  ;;  %v5094_v52 = vpop.f32.mrb[25].mxu0  ;;  %6799 = vmatprep.subr.bf16.mxu1 %v13183_v42  ;;  %v13205_v16 = vld [vmem:[#allocation19 + $0x878] ss:$20 sps:$4 sm:$0xff]  }
 0x856   :  { %v5054_v54 = vadd.f32 %v5053_v51, %v4060_v18  ;;  %v5055_v61 = vpop.f32.mrb[26].mxu1  ;;  %v5096_v46 = vpop.f32.mrb[26].mxu0  ;;  %v13210_v18 = vld [vmem:[#allocation19 + $0x89c] ss:$20 sps:$4 sm:$0xff]   ;;  %v13213_v43 = vld [vmem:[#allocation19 + $0x8a4] ss:$20 sps:$4 sm:$0xff]  }
 0x857   :  { %v5093_v21 = vadd.f32 %v5092_v47, %v5052_v49  ;;  %v5056_v55 = vpop.f32.mrb[27].mxu1  ;;  %v5097_v58 = vpop.f32.mrb[27].mxu0  ;;  %v13208_v47 = vld [vmem:[#allocation19 + $0x898] ss:$20 sps:$4 sm:$0xff]   ;;  %v13225_v61 = vld [vmem:[#allocation19 + $0x8f4] ss:$20 sps:$4 sm:$0xff]  }
 0x858   :  { %v5095_v59 = vadd.f32 %v5094_v52, %v5054_v54  ;;  %6800 = vmatpush1.bf16.msra.mxu1 %v13181_v44  ;;  %v13211_v44 = vld [vmem:[#allocation19 + $0x8a0] ss:$20 sps:$4 sm:$0xff]   ;;  %v13216_v49 = vld [vmem:[#allocation19 + $0x8c4] ss:$20 sps:$4 sm:$0xff]   ;;  %v13220_v46 = vld [vmem:[#allocation19 + $0x8e8] ss:$20 sps:$4 sm:$0xff]  }
 0x859   :  { %6801 = vmatprep.subr.bf16.mxu1 %v13189_v53  ;;  %v13219_v51 = vld [vmem:[#allocation19 + $0x8cc] ss:$20 sps:$4 sm:$0xff]   ;;  %v13217_v53 = vld [vmem:[#allocation19 + $0x8c8] ss:$20 sps:$4 sm:$0xff]  }
 0x85a   :  { %v13214_v52 = vld [vmem:[#allocation19 + $0x8c0] ss:$20 sps:$4 sm:$0xff]   ;;  %v13231_v58 = vld [vmem:[#allocation19 + $0x91c] ss:$20 sps:$4 sm:$0xff]  }
 0x85b   :  { %v13222_v54 = vld [vmem:[#allocation19 + $0x8ec] ss:$20 sps:$4 sm:$0xff]   ;;  %v13228_v55 = vld [vmem:[#allocation19 + $0x914] ss:$20 sps:$4 sm:$0xff]  }
 0x85c   :  { %6802 = vmatpush1.bf16.msra.mxu1 %v13187_v62 }
 0x85d   :  { %6812 = vmatprep.subr.bf16.mxu1 %v13195_v63 }
 0x882   :  { %v5133_v0 = vpop.f32.mrb[28].mxu1 }
 0x883   :  { %v5134_v57 = vadd.f32 %v5133_v0, %v5093_v21  ;;  %v5135_v56 = vpop.f32.mrb[29].mxu1  ;;  %v13223_v21 = vld [vmem:[#allocation19 + $0x8f0] ss:$20 sps:$4 sm:$0xff]  }
 0x884   :  { %v5136_v3 = vadd.f32 %v5135_v56, %v5095_v59  ;;  %v5137_v5 = vpop.f32.mrb[30].mxu1  ;;  %v13226_v0 = vld [vmem:[#allocation19 + $0x910] ss:$20 sps:$4 sm:$0xff]  }
 0x885   :  { %v15381_v48 = vadd.f32 %v5134_v57, %v15220_v30  ;;  %v5138_v7 = vpop.f32.mrb[31].mxu1  ;;  %v13229_v57 = vld [vmem:[#allocation19 + $0x918] ss:$20 sps:$4 sm:$0xff]   ;;  %v13234_v56 = vld [vmem:[#allocation19 + $0x93c] ss:$20 sps:$4 sm:$0xff]  }
 0x886   :  { %v15386_v8 = vadd.f32 %v5136_v3, %v15228_v36  ;;  %v13201_v36 = vld [vmem:[#allocation19 + $0x854] ss:$20 sps:$4 sm:$0xff]   ;;  %v13237_v3 = vld [vmem:[#allocation19 + $0x944] ss:$20 sps:$4 sm:$0xff]   ;;  %v13243_v7 = vld [vmem:[#allocation19 + $0x96c] ss:$20 sps:$4 sm:$0xff]  }
 0x887   :  { %v5416_v11 = vmul.f32 %v5394_v2, %v15381_v48  ;;  %v13235_v5 = vld [vmem:[#allocation19 + $0x940] ss:$20 sps:$4 sm:$0xff]  }
 0x888   :  { %v5417_v12 = vmul.f32 %v5398_v4, %v15386_v8  ;;  %v13232_v4 = vld [vmem:[#allocation19 + $0x938] ss:$20 sps:$4 sm:$0xff]  }
 0x889   :  { %v5449_v14 = vadd.f32 %v5427_v6, %v5416_v11  ;;  %v13240_v6 = vld [vmem:[#allocation19 + $0x964] ss:$20 sps:$4 sm:$0xff]   ;;  %v13241_v11 = vld [vmem:[#allocation19 + $0x968] ss:$20 sps:$4 sm:$0xff]  }
 0x88a   :  { %v5450_v19 = vadd.f32 %v5431_v9, %v5417_v12  ;;  %v13238_v9 = vld [vmem:[#allocation19 + $0x960] ss:$20 sps:$4 sm:$0xff]  }
 0x88b   :  { %v5454_v34 = vmax.f32 %v5449_v14, 0.0  ;;  %v13246_v12 = vld [vmem:[#allocation19 + $0x98c] ss:$20 sps:$4 sm:$0xff]   ;;  %v13249_v14 = vld [vmem:[#allocation19 + $0x994] ss:$20 sps:$4 sm:$0xff]  }
 0x88c   :  { %v5455_v31 = vmax.f32 %v5450_v19, 0.0  ;;  %v13244_v19 = vld [vmem:[#allocation19 + $0x988] ss:$20 sps:$4 sm:$0xff]  }
 0x88d   :  { %v15394_v23 = vpack.c.bf16 %v5454_v34, %v5454_v34  ;;  %v13247_v34 = vld [vmem:[#allocation19 + $0x990] ss:$20 sps:$4 sm:$0xff]  }
 0x88e   :  { %v15392_v30 = vpack.c.bf16 %v5455_v31, %v5455_v31  ;;  %v13252_v31 = vld [vmem:[#allocation19 + $0x9b4] ss:$20 sps:$4 sm:$0xff]  }
 0x890   :  { %6680 = vmatprep.mubr.bf16.mxu0 %v15392_v30  ;;  %6803 = vmatprep.mubr.bf16.mxu1 %v15392_v30 }
 0x891   :  { %6681 = vmatmul.mubr.bf16.vlgmr.msra.gmra.mrb[40].mxu0 %v15394_v23  ;;  %6804 = vmatmul.mubr.bf16.vlgmr.msra.gmra.mrb[44].mxu1 %v15394_v23 }
 0x892   :  { %6690 = vmatpush1.bf16.msra.mxu0 %v13190_v45  ;;  %6813 = vmatpush1.bf16.msra.mxu1 %v13193_v20  ;;  %v13255_v45 = vld [vmem:[#allocation19 + $0x9bc] ss:$20 sps:$4 sm:$0xff]  }
 0x893   :  { %6691 = vmatprep.subr.bf16.mxu0 %v13198_v24  ;;  %6814 = vmatprep.subr.bf16.mxu1 %v13201_v36  ;;  %v13250_v20 = vld [vmem:[#allocation19 + $0x9b0] ss:$20 sps:$4 sm:$0xff]   ;;  %v13253_v24 = vld [vmem:[#allocation19 + $0x9b8] ss:$20 sps:$4 sm:$0xff]  }
 0x894   :  { %v15400_v33 = vpop.f32.mrb[28].mxu0  ;;  %v13258_v36 = vld [vmem:[#allocation19 + $0x9dc] ss:$20 sps:$4 sm:$0xff]  }
 0x895   :  { %v15402_v10 = vpop.f32.mrb[29].mxu0 }
 0x896   :  { %v5178_v35 = vpop.f32.mrb[30].mxu0  ;;  %6692 = vmatpush1.bf16.msra.mxu0 %v13196_v25  ;;  %6815 = vmatpush1.bf16.msra.mxu1 %v13199_v26  ;;  %v13261_v25 = vld [vmem:[#allocation19 + $0x9e4] ss:$20 sps:$4 sm:$0xff]  }
 0x897   :  { %v5179_v42 = vpop.f32.mrb[31].mxu0  ;;  %6693 = vmatprep.subr.bf16.mxu0 %v13204_v28  ;;  %6816 = vmatprep.subr.bf16.mxu1 %v13207_v29  ;;  %v13256_v26 = vld [vmem:[#allocation19 + $0x9d8] ss:$20 sps:$4 sm:$0xff]   ;;  %v13259_v28 = vld [vmem:[#allocation19 + $0x9e0] ss:$20 sps:$4 sm:$0xff]  }
 0x898   :  { %v13264_v29 = vld [vmem:[#allocation19 + $0xa04] ss:$20 sps:$4 sm:$0xff]   ;;  %v13267_v35 = vld [vmem:[#allocation19 + $0xa0c] ss:$20 sps:$4 sm:$0xff]  }
 0x899   :  { %v13262_v42 = vld [vmem:[#allocation19 + $0xa00] ss:$20 sps:$4 sm:$0xff]  }
 0x89a   :  { %6694 = vmatpush1.bf16.msra.mxu0 %v13202_v40  ;;  %6817 = vmatpush1.bf16.msra.mxu1 %v13205_v16  ;;  %v4064_v40 = vrot.slane %v15366_v37, %v15193_v15  ;;  %v4068_v16 = vrot.slane %v15366_v37, %v15198_v17 }
 0x89b   :  { %6695 = vmatprep.subr.bf16.mxu0 %v13210_v18  ;;  %6818 = vmatprep.subr.bf16.mxu1 %v13213_v43  ;;  %v13265_v18 = vld [vmem:[#allocation19 + $0xa08] ss:$20 sps:$4 sm:$0xff]   ;;  %v13270_v43 = vld [vmem:[#allocation19 + $0xa2c] ss:$20 sps:$4 sm:$0xff]  }
 0x89e   :  { %6696 = vmatpush1.bf16.msra.mxu0 %v13208_v47  ;;  %6819 = vmatpush1.bf16.msra.mxu1 %v13211_v44  ;;  %v13273_v47 = vld [vmem:[#allocation19 + $0xa34] ss:$20 sps:$4 sm:$0xff]   ;;  %v5175_v44 = vadd.f32 %v15400_v33, %v4064_v40  ;;  %v5402_v33 = vrot.slane %v15372_v60, %v15193_v15  ;;  %v13294_v40 = vld [vmem:[#allocation19 + $0xacc] ss:$20 sps:$4 sm:$0xff]  }
 0x89f   :  { %6697 = vmatprep.subr.bf16.mxu0 %v13216_v49  ;;  %6820 = vmatprep.subr.bf16.mxu1 %v13219_v51  ;;  %v5177_v49 = vadd.f32 %v15402_v10, %v4068_v16  ;;  %v13297_v16 = vld [vmem:[#allocation19 + $0xad4] ss:$20 sps:$4 sm:$0xff]  }
 0x8a2   :  { %6698 = vmatpush1.bf16.msra.mxu0 %v13214_v52  ;;  %6821 = vmatpush1.bf16.msra.mxu1 %v13217_v53  ;;  %v13268_v52 = vld [vmem:[#allocation19 + $0xa28] ss:$20 sps:$4 sm:$0xff]   ;;  %v13271_v53 = vld [vmem:[#allocation19 + $0xa30] ss:$20 sps:$4 sm:$0xff]  }
 0x8a3   :  { %6699 = vmatprep.subr.bf16.mxu0 %v13222_v54  ;;  %6822 = vmatprep.subr.bf16.mxu1 %v13225_v61 }
 0x8a4   :  { %v15404_v59 = vpop.f32.mrb[32].mxu0 }
 0x8a5   :  { %v15406_v62 = vpop.f32.mrb[33].mxu0 }
 0x8a6   :  { %v5260_v63 = vpop.f32.mrb[34].mxu0  ;;  %6700 = vmatpush1.bf16.msra.mxu0 %v13220_v46  ;;  %6823 = vmatpush1.bf16.msra.mxu1 %v13223_v21  ;;  %v13276_v46 = vld [vmem:[#allocation19 + $0xa54] ss:$20 sps:$4 sm:$0xff]   ;;  %v13279_v21 = vld [vmem:[#allocation19 + $0xa5c] ss:$20 sps:$4 sm:$0xff]  }
 0x8a7   :  { %v5261_v2 = vpop.f32.mrb[35].mxu0  ;;  %6701 = vmatprep.subr.bf16.mxu0 %v13228_v55  ;;  %6824 = vmatprep.subr.bf16.mxu1 %v13231_v58 }
 0x8aa   :  { %6702 = vmatpush1.bf16.msra.mxu0 %v13226_v0  ;;  %6825 = vmatpush1.bf16.msra.mxu1 %v13229_v57 }
 0x8ab   :  { %6703 = vmatprep.subr.bf16.mxu0 %v13234_v56  ;;  %6826 = vmatprep.subr.bf16.mxu1 %v13237_v3  ;;  %v5406_v56 = vrot.slane %v15372_v60, %v15198_v17 }
 0x8ae   :  { %6704 = vmatpush1.bf16.msra.mxu0 %v13232_v4  ;;  %6827 = vmatpush1.bf16.msra.mxu1 %v13235_v5  ;;  %v13274_v5 = vld [vmem:[#allocation19 + $0xa50] ss:$20 sps:$4 sm:$0xff]  }
 0x8af   :  { %6705 = vmatprep.subr.bf16.mxu0 %v13240_v6  ;;  %6828 = vmatprep.subr.bf16.mxu1 %v13243_v7  ;;  %v13277_v6 = vld [vmem:[#allocation19 + $0xa58] ss:$20 sps:$4 sm:$0xff]  }
 0x8b2   :  { %6706 = vmatpush1.bf16.msra.mxu0 %v13238_v9  ;;  %6829 = vmatpush1.bf16.msra.mxu1 %v13241_v11  ;;  %v13282_v9 = vld [vmem:[#allocation19 + $0xa7c] ss:$20 sps:$4 sm:$0xff]   ;;  %v13285_v11 = vld [vmem:[#allocation19 + $0xa84] ss:$20 sps:$4 sm:$0xff]  }
 0x8b3   :  { %6707 = vmatprep.subr.bf16.mxu0 %v13246_v12  ;;  %6830 = vmatprep.subr.bf16.mxu1 %v13249_v14  ;;  %v5439_v14 = vrot.slane %v15374_v1, %v15198_v17 }
 0x8b6   :  { %6708 = vmatpush1.bf16.msra.mxu0 %v13244_v19  ;;  %6831 = vmatpush1.bf16.msra.mxu1 %v13247_v34 }
 0x8b7   :  { %6709 = vmatprep.subr.bf16.mxu0 %v13252_v31  ;;  %6832 = vmatprep.subr.bf16.mxu1 %v13255_v45  ;;  %v13283_v31 = vld [vmem:[#allocation19 + $0xa80] ss:$20 sps:$4 sm:$0xff]  }
 0x8ba   :  { %6710 = vmatpush1.bf16.msra.mxu0 %v13250_v20  ;;  %6833 = vmatpush1.bf16.msra.mxu1 %v13253_v24  ;;  %v13288_v20 = vld [vmem:[#allocation19 + $0xaa4] ss:$20 sps:$4 sm:$0xff]   ;;  %v13291_v24 = vld [vmem:[#allocation19 + $0xaac] ss:$20 sps:$4 sm:$0xff]  }
 0x8bb   :  { %6711 = vmatprep.subr.bf16.mxu0 %v13258_v36  ;;  %6834 = vmatprep.subr.bf16.mxu1 %v13261_v25 }
 0x8be   :  { %6712 = vmatpush1.bf16.msra.mxu0 %v13256_v26  ;;  %6835 = vmatpush1.bf16.msra.mxu1 %v13259_v28  ;;  %v13286_v28 = vld [vmem:[#allocation19 + $0xaa0] ss:$20 sps:$4 sm:$0xff]  }
 0x8bf   :  { %6713 = vmatprep.subr.bf16.mxu0 %v13264_v29  ;;  %6836 = vmatprep.subr.bf16.mxu1 %v13267_v35  ;;  %v13289_v29 = vld [vmem:[#allocation19 + $0xaa8] ss:$20 sps:$4 sm:$0xff]  }
 0x8c2   :  { %v5215_v51 = vpop.f32.mrb[32].mxu1  ;;  %6714 = vmatpush1.bf16.msra.mxu0 %v13262_v42  ;;  %6837 = vmatpush1.bf16.msra.mxu1 %v13265_v18  ;;  %v13292_v42 = vld [vmem:[#allocation19 + $0xac8] ss:$20 sps:$4 sm:$0xff]   ;;  %v13295_v18 = vld [vmem:[#allocation19 + $0xad0] ss:$20 sps:$4 sm:$0xff]  }
 0x8c3   :  { %v5216_v54 = vadd.f32 %v5215_v51, %v5175_v44  ;;  %v5217_v61 = vpop.f32.mrb[33].mxu1  ;;  %6715 = vmatprep.subr.bf16.mxu0 %v13270_v43  ;;  %6838 = vmatprep.subr.bf16.mxu1 %v13273_v47  ;;  %v13300_v43 = vld [vmem:[#allocation19 + $0xaf4] ss:$20 sps:$4 sm:$0xff]   ;;  %v13303_v47 = vld [vmem:[#allocation19 + $0xafc] ss:$20 sps:$4 sm:$0xff]  }
 0x8c4   :  { %v5218_v55 = vadd.f32 %v5217_v61, %v5177_v49  ;;  %v5219_v58 = vpop.f32.mrb[34].mxu1  ;;  %v11913_v63 = vpop.f32.mrb[36].mxu0  ;;  %v13298_v44 = vld [vmem:[#allocation19 + $0xaf0] ss:$20 sps:$4 sm:$0xff]   ;;  %v13301_v49 = vld [vmem:[#allocation19 + $0xaf8] ss:$20 sps:$4 sm:$0xff]  }
 0x8c5   :  { %v5257_v0 = vadd.f32 %v15404_v59, %v5216_v54  ;;  %v5220_v10 = vpop.f32.mrb[35].mxu1  ;;  %v11914_v57 = vpop.f32.mrb[37].mxu0  ;;  %v13306_v51 = vld [vmem:[#allocation19 + $0xb1c] ss:$20 sps:$4 sm:$0xff]   ;;  %v13307_v54 = vld [vmem:[#allocation19 + $0xb20] ss:$20 sps:$4 sm:$0xff]  }
 0x8c6   :  { %v5259_v2 = vadd.f32 %v15406_v62, %v5218_v55  ;;  %v15420_v3 = vadd.f32 %v11914_v57, %v11913_v63  ;;  %v11916_v4 = vpop.f32.mrb[38].mxu0  ;;  %6716 = vmatpush1.bf16.msra.mxu0 %v13268_v52  ;;  %6839 = vmatpush1.bf16.msra.mxu1 %v13271_v53  ;;  %v5435_v62 = vrot.slane %v15374_v1, %v15193_v15  ;;  %v13309_v52 = vld [vmem:[#allocation19 + $0xb24] ss:$20 sps:$4 sm:$0xff]  }
 0x8c7   :  { %v15423_v7 = vadd.f32 %v5257_v0, %v15224_v32  ;;  %v11917_v59 = vpop.f32.mrb[39].mxu0  ;;  %6717 = vmatprep.subr.bf16.mxu0 %v13276_v46  ;;  %6840 = vmatprep.subr.bf16.mxu1 %v13279_v21  ;;  %v13280_v32 = vld [vmem:[#allocation19 + $0xa78] ss:$20 sps:$4 sm:$0xff]   ;;  %v13310_v61 = vld [vmem:[#allocation19 + $0x6f0] ss:$20 sps:$4 sm:$0xff]   ;;  %v4072_v55 = vrot.slane %v15366_v37, %v15255_v22  ;;  %v5410_v4 = vrot.slane %v15372_v60, %v15255_v22 }
 0x8c8   :  { %v15428_v12 = vadd.f32 %v5259_v2, %v15232_v38  ;;  %v13304_v53 = vld [vmem:[#allocation19 + $0xb18] ss:$20 sps:$4 sm:$0xff]   ;;  %v13311_v46 = vld [vmem:[#allocation19 + $0x970] ss:$20 sps:$4 sm:$0xff]   ;;  %v5443_v37 = vrot.slane %v15374_v1, %v15255_v22  ;;  %v13318_v1 = vld [vmem:[#allocation19 + $0x740] ss:$20 sps:$4 sm:$0xff]  }
 0x8c9   :  { %v5418_v19 = vmul.f32 %v5402_v33, %v15423_v7  ;;  %v13317_v60 = vld [vmem:[#allocation19 + $0x858] ss:$20 sps:$4 sm:$0xff]  }
 0x8ca   :  { %v5419_v34 = vmul.f32 %v5406_v56, %v15428_v12  ;;  %6718 = vmatpush1.bf16.msra.mxu0 %v13274_v5  ;;  %6841 = vmatpush1.bf16.msra.mxu1 %v13277_v6 }
 0x8cb   :  { %6719 = vmatprep.subr.bf16.mxu0 %v13282_v9  ;;  %6842 = vmatprep.subr.bf16.mxu1 %v13285_v11  ;;  %v5451_v45 = vadd.f32 %v5435_v62, %v5418_v19  ;;  %v13312_v19 = vld [vmem:[#allocation19 + $0x5b0] ss:$20 sps:$4 sm:$0xff]  }
 0x8cc   :  { %v5452_v36 = vadd.f32 %v5439_v14, %v5419_v34 }
 0x8cd   :  { %v5456_v25 = vmax.f32 %v5451_v45, 0.0  ;;  %v13319_v45 = vld [vmem:[#allocation19 + $0x9c0] ss:$20 sps:$4 sm:$0xff]  }
 0x8ce   :  { %6720 = vmatpush1.bf16.msra.mxu0 %v13280_v32  ;;  %6843 = vmatpush1.bf16.msra.mxu1 %v13283_v31  ;;  %v5457_v38 = vmax.f32 %v5452_v36, 0.0  ;;  %v13314_v32 = vld [vmem:[#allocation19 + $0x718] ss:$20 sps:$4 sm:$0xff]   ;;  %v13322_v36 = vld [vmem:[#allocation19 + $0x768] ss:$20 sps:$4 sm:$0xff]  }
 0x8cf   :  { %6730 = vmatprep.subr.bf16.mxu0 %v13288_v20  ;;  %6853 = vmatprep.subr.bf16.mxu1 %v13291_v24  ;;  %v15436_v35 = vpack.c.bf16 %v5456_v25, %v5456_v25  ;;  %v13315_v31 = vld [vmem:[#allocation19 + $0x998] ss:$20 sps:$4 sm:$0xff]   ;;  %v13320_v20 = vld [vmem:[#allocation19 + $0x600] ss:$20 sps:$4 sm:$0xff]   ;;  %v13323_v25 = vld [vmem:[#allocation19 + $0x9e8] ss:$20 sps:$4 sm:$0xff]  }
 0x8d0   :  { %v15434_v26 = vpack.c.bf16 %v5457_v38, %v5457_v38  ;;  %v13321_v24 = vld [vmem:[#allocation19 + $0x880] ss:$20 sps:$4 sm:$0xff]   ;;  %v13324_v38 = vld [vmem:[#allocation19 + $0x628] ss:$20 sps:$4 sm:$0xff]  }
 0x8d2   :  { %6721 = vmatprep.mubr.bf16.mxu0 %v15434_v26  ;;  %6844 = vmatprep.mubr.bf16.mxu1 %v15434_v26 }
 0x8d3   :  { %6722 = vmatmul.mubr.bf16.vlgmr.msra.gmra.mrb[40].mxu0 %v15436_v35  ;;  %6845 = vmatmul.mubr.bf16.vlgmr.msra.gmra.mrb[44].mxu1 %v15436_v35 }
 0x8d4   :  { %6731 = vmatpush1.bf16.msra.mxu0 %v13286_v28  ;;  %6854 = vmatpush1.bf16.msra.mxu1 %v13289_v29  ;;  %v13325_v28 = vld [vmem:[#allocation19 + $0x8a8] ss:$20 sps:$4 sm:$0xff]   ;;  %v13328_v29 = vld [vmem:[#allocation19 + $0x650] ss:$20 sps:$4 sm:$0xff]  }
 0x8d5   :  { %6732 = vmatprep.subr.bf16.mxu0 %v13294_v40  ;;  %6855 = vmatprep.subr.bf16.mxu1 %v13297_v16  ;;  %v13329_v40 = vld [vmem:[#allocation19 + $0x8d0] ss:$20 sps:$4 sm:$0xff]   ;;  %v13330_v16 = vld [vmem:[#allocation19 + $0x7b8] ss:$20 sps:$4 sm:$0xff]  }
 0x8d6   :  { %6762 = vmatprep.mubr.bf16.mxu0 %v14405_v39  ;;  %6885 = vmatprep.mubr.bf16.mxu1 %v14405_v39 }
 0x8d8   :  { %6733 = vmatpush1.bf16.msra.mxu0 %v13292_v42  ;;  %6856 = vmatpush1.bf16.msra.mxu1 %v13295_v18  ;;  %v13331_v42 = vld [vmem:[#allocation19 + $0xa38] ss:$20 sps:$4 sm:$0xff]  }
 0x8d9   :  { %6734 = vmatprep.subr.bf16.mxu0 %v13300_v43  ;;  %6857 = vmatprep.subr.bf16.mxu1 %v13303_v47  ;;  %v13332_v18 = vld [vmem:[#allocation19 + $0x678] ss:$20 sps:$4 sm:$0xff]   ;;  %v13334_v47 = vld [vmem:[#allocation19 + $0x7e0] ss:$20 sps:$4 sm:$0xff]  }
 0x8da   :  { %v13333_v43 = vld [vmem:[#allocation19 + $0x8f8] ss:$20 sps:$4 sm:$0xff]  }
 0x8dc   :  { %6735 = vmatpush1.bf16.msra.mxu0 %v13298_v44  ;;  %6858 = vmatpush1.bf16.msra.mxu1 %v13301_v49  ;;  %v13335_v44 = vld [vmem:[#allocation19 + $0xa60] ss:$20 sps:$4 sm:$0xff]  }
 0x8dd   :  { %6736 = vmatprep.subr.bf16.mxu0 %v13306_v51  ;;  %6859 = vmatprep.subr.bf16.mxu1 %v13309_v52  ;;  %v13336_v49 = vld [vmem:[#allocation19 + $0x6a0] ss:$20 sps:$4 sm:$0xff]   ;;  %v13338_v52 = vld [vmem:[#allocation19 + $0x808] ss:$20 sps:$4 sm:$0xff]  }
 0x8de   :  { %v13337_v51 = vld [vmem:[#allocation19 + $0x920] ss:$20 sps:$4 sm:$0xff]  }
 0x8e0   :  { %6737 = vmatpush1.bf16.msra.mxu0 %v13304_v53  ;;  %6860 = vmatpush1.bf16.msra.mxu1 %v13307_v54  ;;  %v13339_v53 = vld [vmem:[#allocation19 + $0xa88] ss:$20 sps:$4 sm:$0xff]  }
 0x8e1   :  { %11924 = vmatprep.subr.bf16.mxu0 %v13310_v61  ;;  %11946 = vmatprep.subr.bf16.mxu1 %v13311_v46  ;;  %v13340_v54 = vld [vmem:[#allocation19 + $0x6c8] ss:$20 sps:$4 sm:$0xff]   ;;  %v13351_v46 = vld [vmem:[#allocation25 + $0x5a4] ss:$20 sps:$4 sm:$0xff]  }
 0x8e2   :  { %v11891_v21 = vpop.f32.mrb[36].mxu1  ;;  %v13341_v61 = vld [vmem:[#allocation19 + $0x948] ss:$20 sps:$4 sm:$0xff]  }
 0x8e3   :  { %v11892_v58 = vpop.f32.mrb[37].mxu1 }
 0x8e4   :  { %v11893_v63 = vadd.f32 %v11892_v58, %v11891_v21  ;;  %v11894_v0 = vpop.f32.mrb[38].mxu1  ;;  %v13342_v21 = vld [vmem:[#allocation19 + $0xab0] ss:$20 sps:$4 sm:$0xff]   ;;  %v13357_v58 = vld [vmem:[#allocation25 + $0x5cc] ss:$20 sps:$4 sm:$0xff]  }
 0x8e5   :  { %v11895_v33 = vpop.f32.mrb[39].mxu1  ;;  %v13355_v0 = vld [vmem:[#allocation25 + $0x5c8] ss:$20 sps:$4 sm:$0xff]  }
 0x8e6   :  { %v5298_v10 = vadd.f32 %v11893_v63, %v4072_v55  ;;  %v13349_v55 = vld [vmem:[#allocation25 + $0x5a0] ss:$20 sps:$4 sm:$0xff]   ;;  %v13343_v63 = vld [vmem:[#allocation19 + $0xad8] ss:$20 sps:$4 sm:$0xff]  }
 0x8e7   :  { %v13363_v33 = vld [vmem:[#allocation25 + $0x5f4] ss:$20 sps:$4 sm:$0xff]  }
 0x8e8   :  { %v5338_v57 = vadd.f32 %v15420_v3, %v5298_v10  ;;  %v13313_v3 = vld [vmem:[#allocation19 + $0x830] ss:$20 sps:$4 sm:$0xff]   ;;  %v13344_v10 = vld [vmem:[#allocation19 + $0xb00] ss:$20 sps:$4 sm:$0xff]  }
 0x8f2   :  { %v5377_v2 = vpop.f32.mrb[40].mxu1 }
 0x8f3   :  { %v5378_v56 = vadd.f32 %v5377_v2, %v5338_v57  ;;  %v12142_v5 = vpop.f32.mrb[41].mxu1  ;;  %v13361_v57 = vld [vmem:[#allocation25 + $0x5f0] ss:$20 sps:$4 sm:$0xff]  }
 0x8f4   :  { %v5380_v6 = vpop.f32.mrb[42].mxu1  ;;  %v13348_v2 = vld [vmem:[#allocation25 + $0x824] ss:$20 sps:$4 sm:$0xff]   ;;  %v13346_v5 = vld [vmem:[#allocation25 + $0x820] ss:$20 sps:$4 sm:$0xff]  }
 0x8f5   :  { %v15450_v59 = vadd.f32 %v5378_v56, %v15261_v41  ;;  %v12143_v9 = vpop.f32.mrb[43].mxu1  ;;  %v13316_v41 = vld [vmem:[#allocation19 + $0x5d8] ss:$20 sps:$4 sm:$0xff]  }
 0x8f6   :  { %v13367_v56 = vld [vmem:[#allocation25 + $0x618] ss:$20 sps:$4 sm:$0xff]  }
 0x8f7   :  { %v5420_v11 = vmul.f32 %v5410_v4, %v15450_v59  ;;  %v13375_v4 = vld [vmem:[#allocation25 + $0x644] ss:$20 sps:$4 sm:$0xff]   ;;  %v13354_v6 = vld [vmem:[#allocation25 + $0x84c] ss:$20 sps:$4 sm:$0xff]  }
 0x8f8   :  { %v13381_v9 = vld [vmem:[#allocation25 + $0x66c] ss:$20 sps:$4 sm:$0xff]  }
 0x8f9   :  { %v5453_v62 = vadd.f32 %v5443_v37, %v5420_v11  ;;  %v13373_v37 = vld [vmem:[#allocation25 + $0x640] ss:$20 sps:$4 sm:$0xff]   ;;  %v13352_v11 = vld [vmem:[#allocation25 + $0x848] ss:$20 sps:$4 sm:$0xff]  }
 0x8fb   :  { %v5458_v14 = vmax.f32 %v5453_v62, 0.0  ;;  %v13360_v62 = vld [vmem:[#allocation25 + $0x874] ss:$20 sps:$4 sm:$0xff]  }
 0x8fd   :  { %v15455_v34 = vpack.c.bf16 %v5458_v14, %v5458_v14  ;;  %v13379_v14 = vld [vmem:[#allocation25 + $0x668] ss:$20 sps:$4 sm:$0xff]  }
 0x8ff   :  { %11397 = vmatmul.mubr.msk.bf16.vlgmr.msra.gmra.mrb[40].mxu0 %vm3391_vm0, %v15455_v34  ;;  %11398 = vmatmul.mubr.msk.bf16.vlgmr.msra.gmra.mrb[44].mxu1 %vm3391_vm0, %v15455_v34 }
 0x900   :  { %11925 = vmatpush3.bf16.msra.mxu0 %v13312_v19  ;;  %11947 = vmatpush3.bf16.msra.mxu1 %v13313_v3  ;;  %v13387_v19 = vld [vmem:[#allocation25 + $0x694] ss:$20 sps:$4 sm:$0xff]   ;;  %v13358_v3 = vld [vmem:[#allocation25 + $0x870] ss:$20 sps:$4 sm:$0xff]  }
 0x901   :  { %6926 = vmatprep.mubr.bf16.mxu0 %v15392_v30  ;;  %6966 = vmatprep.mubr.bf16.mxu1 %v15434_v26  ;;  %v13326_v30 = vld [vmem:[#allocation19 + $0x790] ss:$20 sps:$4 sm:$0xff]  }
 0x902   :  { %11926 = vmatprep.subr.bf16.mxu0 %v13314_v32  ;;  %11948 = vmatprep.subr.bf16.mxu1 %v13315_v31  ;;  %v13327_v26 = vld [vmem:[#allocation19 + $0xa10] ss:$20 sps:$4 sm:$0xff]  }
 0x903   :  { %v13366_v32 = vld [vmem:[#allocation25 + $0x89c] ss:$20 sps:$4 sm:$0xff]  }
 0x904   :  { %11927 = vmatpush3.bf16.msra.mxu0 %v13316_v41  ;;  %11949 = vmatpush3.bf16.msra.mxu1 %v13317_v60  ;;  %v13385_v31 = vld [vmem:[#allocation25 + $0x690] ss:$20 sps:$4 sm:$0xff]   ;;  %v13364_v60 = vld [vmem:[#allocation25 + $0x898] ss:$20 sps:$4 sm:$0xff]  }
 0x905   :  { %11928 = vmatprep.subr.bf16.mxu0 %v13318_v1  ;;  %11950 = vmatprep.subr.bf16.mxu1 %v13319_v45  ;;  %v13393_v41 = vld [vmem:[#allocation25 + $0x6bc] ss:$20 sps:$4 sm:$0xff]   ;;  %v13391_v1 = vld [vmem:[#allocation25 + $0x6b8] ss:$20 sps:$4 sm:$0xff]  }
 0x906   :  { %v13399_v45 = vld [vmem:[#allocation25 + $0x6e4] ss:$20 sps:$4 sm:$0xff]  }
 0x908   :  { %11929 = vmatpush3.bf16.msra.mxu0 %v13320_v20  ;;  %11951 = vmatpush3.bf16.msra.mxu1 %v13321_v24  ;;  %v13370_v20 = vld [vmem:[#allocation25 + $0x8c0] ss:$20 sps:$4 sm:$0xff]  }
 0x909   :  { %11930 = vmatprep.subr.bf16.mxu0 %v13322_v36  ;;  %11952 = vmatprep.subr.bf16.mxu1 %v13323_v25  ;;  %v13378_v24 = vld [vmem:[#allocation25 + $0x8ec] ss:$20 sps:$4 sm:$0xff]  }
 0x90a   :  { %v13397_v36 = vld [vmem:[#allocation25 + $0x6e0] ss:$20 sps:$4 sm:$0xff]  }
 0x90b   :  { %v13405_v25 = vld [vmem:[#allocation25 + $0x70c] ss:$20 sps:$4 sm:$0xff]  }
 0x90c   :  { %11931 = vmatpush3.bf16.msra.mxu0 %v13324_v38  ;;  %11953 = vmatpush3.bf16.msra.mxu1 %v13325_v28  ;;  %v13376_v38 = vld [vmem:[#allocation25 + $0x8e8] ss:$20 sps:$4 sm:$0xff]  }
 0x90d   :  { %11932 = vmatprep.subr.bf16.mxu0 %v13326_v30  ;;  %11954 = vmatprep.subr.bf16.mxu1 %v13327_v26  ;;  %v13384_v28 = vld [vmem:[#allocation25 + $0x914] ss:$20 sps:$4 sm:$0xff]  }
 0x90e   :  { %v13403_v30 = vld [vmem:[#allocation25 + $0x708] ss:$20 sps:$4 sm:$0xff]  }
 0x90f   :  { %v13411_v26 = vld [vmem:[#allocation25 + $0x734] ss:$20 sps:$4 sm:$0xff]  }
 0x910   :  { %11933 = vmatpush3.bf16.msra.mxu0 %v13328_v29  ;;  %11955 = vmatpush3.bf16.msra.mxu1 %v13329_v40  ;;  %v13382_v29 = vld [vmem:[#allocation25 + $0x910] ss:$20 sps:$4 sm:$0xff]  }
 0x911   :  { %11934 = vmatprep.subr.bf16.mxu0 %v13330_v16  ;;  %11956 = vmatprep.subr.bf16.mxu1 %v13331_v42  ;;  %v13390_v40 = vld [vmem:[#allocation25 + $0x93c] ss:$20 sps:$4 sm:$0xff]  }
 0x912   :  { %v13409_v16 = vld [vmem:[#allocation25 + $0x730] ss:$20 sps:$4 sm:$0xff]  }
 0x913   :  { %v13417_v42 = vld [vmem:[#allocation25 + $0x75c] ss:$20 sps:$4 sm:$0xff]  }
 0x914   :  { %11935 = vmatpush3.bf16.msra.mxu0 %v13332_v18  ;;  %11957 = vmatpush3.bf16.msra.mxu1 %v13333_v43  ;;  %v13388_v18 = vld [vmem:[#allocation25 + $0x938] ss:$20 sps:$4 sm:$0xff]  }
 0x915   :  { %11936 = vmatprep.subr.bf16.mxu0 %v13334_v47  ;;  %11958 = vmatprep.subr.bf16.mxu1 %v13335_v44  ;;  %v13396_v43 = vld [vmem:[#allocation25 + $0x964] ss:$20 sps:$4 sm:$0xff]  }
 0x916   :  { %v13415_v47 = vld [vmem:[#allocation25 + $0x758] ss:$20 sps:$4 sm:$0xff]  }
 0x917   :  { %v13423_v44 = vld [vmem:[#allocation25 + $0x784] ss:$20 sps:$4 sm:$0xff]  }
 0x918   :  { %11937 = vmatpush3.bf16.msra.mxu0 %v13336_v49  ;;  %11959 = vmatpush3.bf16.msra.mxu1 %v13337_v51  ;;  %v13394_v49 = vld [vmem:[#allocation25 + $0x960] ss:$20 sps:$4 sm:$0xff]  }
 0x919   :  { %11938 = vmatprep.subr.bf16.mxu0 %v13338_v52  ;;  %11960 = vmatprep.subr.bf16.mxu1 %v13339_v53  ;;  %v13402_v51 = vld [vmem:[#allocation25 + $0x98c] ss:$20 sps:$4 sm:$0xff]   ;;  %v13400_v53 = vld [vmem:[#allocation25 + $0x988] ss:$20 sps:$4 sm:$0xff]  }
 0x91a   :  { %v13421_v52 = vld [vmem:[#allocation25 + $0x780] ss:$20 sps:$4 sm:$0xff]  }
 0x91c   :  { %11939 = vmatpush3.bf16.msra.mxu0 %v13340_v54  ;;  %11961 = vmatpush3.bf16.msra.mxu1 %v13341_v61  ;;  %v13408_v54 = vld [vmem:[#allocation25 + $0x9b4] ss:$20 sps:$4 sm:$0xff]   ;;  %v13429_v61 = vld [vmem:[#allocation25 + $0x7ac] ss:$20 sps:$4 sm:$0xff]  }
 0x91d   :  { %12144 = vmatprep.subr.bf16.mxu0 %v14406_v27  ;;  %8274 = vmatprep.subr.bf16.mxu1 %v13351_v46  ;;  %v13427_v46 = vld [vmem:[#allocation25 + $0x7a8] ss:$20 sps:$4 sm:$0xff]  }
 0x91f   :  { %6927 = vmatmul.mubr.bf16.vlgmr.msra.gmra.mrb[44].mxu0 %v15394_v23  ;;  %6967 = vmatmul.mubr.bf16.vlgmr.msra.gmra.mrb[48].mxu1 %v15436_v35  ;;  %v13369_v23 = vld [vmem:[#allocation25 + $0x61c] ss:$20 sps:$4 sm:$0xff]  }
 0x920   :  { %12145 = vmatpush3.bf16.msra.mxu0 %v13342_v21  ;;  %12152 = vmatprep.mubr.msk.bf16.mxu0 %vm14407_vm1, %v14406_v27  ;;  %v13345_v35 = vld [vmem:[#allocation19 + $0xb28] ss:$20 sps:$4 sm:$0xff]   ;;  %v13406_v21 = vld [vmem:[#allocation25 + $0x9b0] ss:$20 sps:$4 sm:$0xff]  }
 0x921   :  { %12146 = vmatprep.subr.bf16.mxu0 %v14406_v27  ;;  %8275 = vmatpush1.bf16.msra.mxu1 %v13349_v55  ;;  %v13414_v55 = vld [vmem:[#allocation25 + $0x9dc] ss:$20 sps:$4 sm:$0xff]  }
 0x922   :  { %8276 = vmatprep.subr.bf16.mxu1 %v13357_v58  ;;  %v13435_v58 = vld [vmem:[#allocation25 + $0x7d4] ss:$20 sps:$4 sm:$0xff]  }
 0x924   :  { %12147 = vmatpush3.bf16.msra.mxu0 %v13343_v63  ;;  %v13433_v63 = vld [vmem:[#allocation25 + $0x7d0] ss:$20 sps:$4 sm:$0xff]  }
 0x925   :  { %12148 = vmatprep.subr.bf16.mxu0 %v14406_v27  ;;  %8277 = vmatpush1.bf16.msra.mxu1 %v13355_v0  ;;  %v13412_v0 = vld [vmem:[#allocation25 + $0x9d8] ss:$20 sps:$4 sm:$0xff]  }
 0x926   :  { %8278 = vmatprep.subr.bf16.mxu1 %v13363_v33  ;;  %v13420_v33 = vld [vmem:[#allocation25 + $0xa04] ss:$20 sps:$4 sm:$0xff]  }
 0x928   :  { %12149 = vmatpush3.bf16.msra.mxu0 %v13344_v10  ;;  %v13441_v10 = vld [vmem:[#allocation25 + $0x7fc] ss:$20 sps:$4 sm:$0xff]  }
 0x929   :  { %12150 = vmatprep.subr.bf16.mxu0 %v14406_v27  ;;  %8279 = vmatpush1.bf16.msra.mxu1 %v13361_v57  ;;  %v13439_v57 = vld [vmem:[#allocation25 + $0x7f8] ss:$20 sps:$4 sm:$0xff]  }
 0x92a   :  { %8280 = vmatprep.subr.bf16.mxu1 %v13369_v23  ;;  %v13418_v23 = vld [vmem:[#allocation25 + $0xa00] ss:$20 sps:$4 sm:$0xff]  }
 0x92c   :  { %12151 = vmatpush3.bf16.msra.mxu0 %v13345_v35  ;;  %v13426_v35 = vld [vmem:[#allocation25 + $0xa2c] ss:$20 sps:$4 sm:$0xff]  }
 0x92d   :  { %8315 = vmatprep.subr.bf16.mxu0 %v13348_v2  ;;  %8281 = vmatpush1.bf16.msra.mxu1 %v13367_v56  ;;  %v13424_v2 = vld [vmem:[#allocation25 + $0xa28] ss:$20 sps:$4 sm:$0xff]  }
 0x92e   :  { %8282 = vmatprep.subr.bf16.mxu1 %v13375_v4  ;;  %v13432_v56 = vld [vmem:[#allocation25 + $0xa54] ss:$20 sps:$4 sm:$0xff]   ;;  %v13430_v4 = vld [vmem:[#allocation25 + $0xa50] ss:$20 sps:$4 sm:$0xff]  }
 0x92f   :  { %12153 = vmatmul.mubr.msk.bf16.vlgmr.msra.gmra.mrb[48].mxu0 %vm3391_vm0, %v15455_v34  ;;  %v13372_v34 = vld [vmem:[#allocation25 + $0x8c4] ss:$20 sps:$4 sm:$0xff]  }
 0x930   :  { %8316 = vmatpush1.bf16.msra.mxu0 %v13346_v5  ;;  %v13438_v5 = vld [vmem:[#allocation25 + $0xa7c] ss:$20 sps:$4 sm:$0xff]  }
 0x931   :  { %8317 = vmatprep.subr.bf16.mxu0 %v13354_v6  ;;  %8283 = vmatpush1.bf16.msra.mxu1 %v13373_v37  ;;  %v13436_v6 = vld [vmem:[#allocation25 + $0xa78] ss:$20 sps:$4 sm:$0xff]  }
 0x932   :  { %8284 = vmatprep.subr.bf16.mxu1 %v13381_v9  ;;  %v13444_v37 = vld [vmem:[#allocation25 + $0x5ac] ss:$20 sps:$4 sm:$0xff]   ;;  %v13468_v9 = vld [vmem:[#allocation25 + $0xaa4] ss:$20 sps:$4 sm:$0xff]  }
 0x934   :  { %8318 = vmatpush1.bf16.msra.mxu0 %v13352_v11  ;;  %v15473_v11 = vld [vmem:[#allocation21 + $0x5] sm:$0x1f] }
 0x935   :  { %8319 = vmatprep.subr.bf16.mxu0 %v13360_v62  ;;  %8285 = vmatpush1.bf16.msra.mxu1 %v13379_v14  ;;  %v15475_v62 = vld [vmem:[#allocation22 + $0x5] sm:$0x1f]  ;;  %v5687_v14 = vrot.slane %v15473_v11, %v14904_v50 }
 0x936   :  { %8286 = vmatprep.subr.bf16.mxu1 %v13387_v19  ;;  %v5695_v19 = vrot.slane %v15473_v11, %v15193_v15 }
 0x938   :  { %8320 = vmatpush1.bf16.msra.mxu0 %v13358_v3  ;;  %v15481_v3 = vld [vmem:[#allocation24 + $0x5] sm:$0x1f] }
 0x939   :  { %8321 = vmatprep.subr.bf16.mxu0 %v13366_v32  ;;  %8287 = vmatpush1.bf16.msra.mxu1 %v13385_v31  ;;  %v5691_v32 = vrot.slane %v15473_v11, %v14890_v13  ;;  %v5699_v31 = vrot.slane %v15473_v11, %v15198_v17 }
 0x93a   :  { %8288 = vmatprep.subr.bf16.mxu1 %v13393_v41  ;;  %v7020_v41 = vrot.slane %v15475_v62, %v14904_v50 }
 0x93c   :  { %8322 = vmatpush1.bf16.msra.mxu0 %v13364_v60  ;;  %v7028_v60 = vrot.slane %v15475_v62, %v15193_v15 }
 0x93d   :  { %8323 = vmatprep.subr.bf16.mxu0 %v13372_v34  ;;  %8289 = vmatpush1.bf16.msra.mxu1 %v13391_v1 }
 0x93e   :  { %8290 = vmatprep.subr.bf16.mxu1 %v13399_v45  ;;  %v7024_v45 = vrot.slane %v15475_v62, %v14890_v13 }
 0x940   :  { %8324 = vmatpush1.bf16.msra.mxu0 %v13370_v20  ;;  %v7032_v20 = vrot.slane %v15475_v62, %v15198_v17 }
 0x941   :  { %8325 = vmatprep.subr.bf16.mxu0 %v13378_v24  ;;  %8291 = vmatpush1.bf16.msra.mxu1 %v13397_v36  ;;  %v7053_v36 = vrot.slane %v15481_v3, %v14904_v50 }
 0x942   :  { %8292 = vmatprep.subr.bf16.mxu1 %v13405_v25 }
 0x944   :  { %8326 = vmatpush1.bf16.msra.mxu0 %v13376_v38  ;;  %v7061_v38 = vrot.slane %v15481_v3, %v15193_v15 }
 0x945   :  { %8327 = vmatprep.subr.bf16.mxu0 %v13384_v28  ;;  %8293 = vmatpush1.bf16.msra.mxu1 %v13403_v30 }
 0x946   :  { %8294 = vmatprep.subr.bf16.mxu1 %v13411_v26 }
 0x948   :  { %8328 = vmatpush1.bf16.msra.mxu0 %v13382_v29  ;;  %v7057_v29 = vrot.slane %v15481_v3, %v14890_v13 }
 0x949   :  { %8329 = vmatprep.subr.bf16.mxu0 %v13390_v40  ;;  %8295 = vmatpush1.bf16.msra.mxu1 %v13409_v16  ;;  %v7065_v16 = vrot.slane %v15481_v3, %v15198_v17 }
 0x94a   :  { %8296 = vmatprep.subr.bf16.mxu1 %v13417_v42 }
 0x94c   :  { %8330 = vmatpush1.bf16.msra.mxu0 %v13388_v18 }
 0x94d   :  { %8331 = vmatprep.subr.bf16.mxu0 %v13396_v43  ;;  %8297 = vmatpush1.bf16.msra.mxu1 %v13415_v47 }
 0x94e   :  { %8298 = vmatprep.subr.bf16.mxu1 %v13423_v44 }
 0x950   :  { %8332 = vmatpush1.bf16.msra.mxu0 %v13394_v49 }
 0x951   :  { %8333 = vmatprep.subr.bf16.mxu0 %v13402_v51  ;;  %8299 = vmatpush1.bf16.msra.mxu1 %v13421_v52 }
 0x952   :  { %8300 = vmatprep.subr.bf16.mxu1 %v13429_v61 }
 0x954   :  { %8334 = vmatpush1.bf16.msra.mxu0 %v13400_v53 }
 0x955   :  { %8335 = vmatprep.subr.bf16.mxu0 %v13408_v54  ;;  %8301 = vmatpush1.bf16.msra.mxu1 %v13427_v46 }
 0x956   :  { %8302 = vmatprep.subr.bf16.mxu1 %v13435_v58 }
 0x958   :  { %8336 = vmatpush1.bf16.msra.mxu0 %v13406_v21 }
 0x959   :  { %8337 = vmatprep.subr.bf16.mxu0 %v13414_v55  ;;  %8303 = vmatpush1.bf16.msra.mxu1 %v13433_v63 }
 0x95a   :  { %8304 = vmatprep.subr.bf16.mxu1 %v13441_v10  ;;  %v13442_v10 = vld [vmem:[#allocation25 + $0x5a8] ss:$20 sps:$4 sm:$0xff]  }
 0x95c   :  { %8338 = vmatpush1.bf16.msra.mxu0 %v13412_v0 }
 0x95d   :  { %8339 = vmatprep.subr.bf16.mxu0 %v13420_v33  ;;  %8305 = vmatpush1.bf16.msra.mxu1 %v13439_v57 }
 0x95e   :  { %8356 = vmatprep.subr.bf16.mxu1 %v13468_v9  ;;  %v13448_v9 = vld [vmem:[#allocation25 + $0x5f8] ss:$20 sps:$4 sm:$0xff]  }
 0x960   :  { %8340 = vmatpush1.bf16.msra.mxu0 %v13418_v23 }
 0x961   :  { %8341 = vmatprep.subr.bf16.mxu0 %v13426_v35  ;;  %v13447_v35 = vld [vmem:[#allocation25 + $0x5d4] ss:$20 sps:$4 sm:$0xff]  }
 0x964   :  { %8342 = vmatpush1.bf16.msra.mxu0 %v13424_v2  ;;  %v13466_v2 = vld [vmem:[#allocation25 + $0xaa0] ss:$20 sps:$4 sm:$0xff]  }
 0x965   :  { %8343 = vmatprep.subr.bf16.mxu0 %v13432_v56  ;;  %v13474_v56 = vld [vmem:[#allocation25 + $0xacc] ss:$20 sps:$4 sm:$0xff]  }
 0x968   :  { %8344 = vmatpush1.bf16.msra.mxu0 %v13430_v4  ;;  %v13445_v4 = vld [vmem:[#allocation25 + $0x5d0] ss:$20 sps:$4 sm:$0xff]  }
 0x969   :  { %8345 = vmatprep.subr.bf16.mxu0 %v13438_v5  ;;  %v13450_v5 = vld [vmem:[#allocation25 + $0x5fc] ss:$20 sps:$4 sm:$0xff]  }
 0x96c   :  { %8346 = vmatpush1.bf16.msra.mxu0 %v13436_v6  ;;  %v13472_v6 = vld [vmem:[#allocation25 + $0xac8] ss:$20 sps:$4 sm:$0xff]  }
 0x96d   :  { %8397 = vmatprep.subr.bf16.mxu0 %v13444_v37  ;;  %v13480_v37 = vld [vmem:[#allocation25 + $0xaf4] ss:$20 sps:$4 sm:$0xff]  }
 0x9d2   :  { %v6764_v34 = vpop.f32.mrb[40].mxu0  ;;  %v6887_v1 = vpop.f32.mrb[44].mxu1 }
 0x9d3   :  { %v12196_v24 = vadd.f32 %v6764_v34, %v5687_v14  ;;  %v12198_v25 = vadd.f32 %v6887_v1, %v5695_v19  ;;  %v6766_v28 = vpop.f32.mrb[41].mxu0  ;;  %v6889_v30 = vpop.f32.mrb[45].mxu1  ;;  %v13453_v14 = vld [vmem:[#allocation25 + $0x624] ss:$20 sps:$4 sm:$0xff]   ;;  %v13492_v34 = vld [vmem:[#allocation25 + $0x82c] ss:$20 sps:$4 sm:$0xff]  }
 0x9d4   :  { %v12197_v26 = vadd.f32 %v6766_v28, %v5691_v32  ;;  %v12199_v40 = vadd.f32 %v6889_v30, %v5699_v31  ;;  %v6768_v42 = vpop.f32.mrb[42].mxu0  ;;  %v6891_v18 = vpop.f32.mrb[46].mxu1  ;;  %v13478_v19 = vld [vmem:[#allocation25 + $0xaf0] ss:$20 sps:$4 sm:$0xff]   ;;  %v13451_v31 = vld [vmem:[#allocation25 + $0x620] ss:$20 sps:$4 sm:$0xff]  }
 0x9d5   :  { %v7042_v43 = vmul.f32 %v12196_v24, %v7020_v41  ;;  %v7044_v47 = vmul.f32 %v12198_v25, %v7028_v60  ;;  %v6769_v44 = vpop.f32.mrb[43].mxu0  ;;  %v6892_v49 = vpop.f32.mrb[47].mxu1  ;;  %v13486_v32 = vld [vmem:[#allocation25 + $0xb1c] ss:$20 sps:$4 sm:$0xff]   ;;  %v13456_v41 = vld [vmem:[#allocation25 + $0x64c] ss:$20 sps:$4 sm:$0xff]  }
 0x9d6   :  { %v7043_v51 = vmul.f32 %v12197_v26, %v7024_v45  ;;  %v7045_v52 = vmul.f32 %v12199_v40, %v7032_v20  ;;  %v13484_v60 = vld [vmem:[#allocation25 + $0xb18] ss:$20 sps:$4 sm:$0xff]   ;;  %v13454_v1 = vld [vmem:[#allocation25 + $0x648] ss:$20 sps:$4 sm:$0xff]   ;;  %v13457_v20 = vld [vmem:[#allocation25 + $0x670] ss:$20 sps:$4 sm:$0xff]  }
 0x9d7   :  { %v7075_v53 = vadd.f32 %v7053_v36, %v7042_v43  ;;  %v7077_v54 = vadd.f32 %v7061_v38, %v7044_v47  ;;  %v13459_v45 = vld [vmem:[#allocation25 + $0x674] ss:$20 sps:$4 sm:$0xff]   ;;  %v13462_v24 = vld [vmem:[#allocation25 + $0x69c] ss:$20 sps:$4 sm:$0xff]   ;;  %v5703_v38 = vrot.slane %v15473_v11, %v15255_v22  ;;  %v13460_v42 = vld [vmem:[#allocation25 + $0x698] ss:$20 sps:$4 sm:$0xff]  }
 0x9d8   :  { %v7076_v61 = vadd.f32 %v7057_v29, %v7043_v51  ;;  %v7078_v46 = vadd.f32 %v7065_v16, %v7045_v52  ;;  %v13465_v47 = vld [vmem:[#allocation25 + $0x6c4] ss:$20 sps:$4 sm:$0xff]   ;;  %v13463_v49 = vld [vmem:[#allocation25 + $0x6c0] ss:$20 sps:$4 sm:$0xff]   ;;  %v13469_v11 = vld [vmem:[#allocation25 + $0x6e8] ss:$20 sps:$4 sm:$0xff]  }
 0x9d9   :  { %v7080_v21 = vmax.f32 %v7075_v53, 0.0  ;;  %v7082_v55 = vmax.f32 %v7077_v54, 0.0  ;;  %v13471_v52 = vld [vmem:[#allocation25 + $0x6ec] ss:$20 sps:$4 sm:$0xff]   ;;  %v13477_v53 = vld [vmem:[#allocation25 + $0x714] ss:$20 sps:$4 sm:$0xff]  }
 0x9da   :  { %v7081_v58 = vmax.f32 %v7076_v61, 0.0  ;;  %v7083_v63 = vmax.f32 %v7078_v46, 0.0  ;;  %v13475_v54 = vld [vmem:[#allocation25 + $0x710] ss:$20 sps:$4 sm:$0xff]   ;;  %v7036_v61 = vrot.slane %v15475_v62, %v15255_v22  ;;  %v13495_v62 = vld [vmem:[#allocation25 + $0x78c] ss:$20 sps:$4 sm:$0xff]  }
 0x9db   :  { %v15507_v57 = vpack.c.bf16 %v7080_v21, %v7080_v21  ;;  %v15509_v23 = vpack.c.bf16 %v7082_v55, %v7082_v55  ;;  %v13483_v46 = vld [vmem:[#allocation25 + $0x73c] ss:$20 sps:$4 sm:$0xff]  }
 0x9dc   :  { %v15503_v0 = vpack.c.bf16 %v7081_v58, %v7081_v58  ;;  %v15505_v33 = vpack.c.bf16 %v7083_v63, %v7083_v63  ;;  %v7069_v58 = vrot.slane %v15481_v3, %v15255_v22  ;;  %v13493_v3 = vld [vmem:[#allocation25 + $0x788] ss:$20 sps:$4 sm:$0xff]  }
 0x9de   :  { %8306 = vmatprep.mubr.bf16.mxu1 %v15503_v0  ;;  %8347 = vmatprep.mubr.bf16.mxu0 %v15505_v33 }
 0x9df   :  { %8307 = vmatmul.mubr.bf16.vlgmr.msra.gmra.mrb[52].mxu1 %v15507_v57  ;;  %8348 = vmatmul.mubr.bf16.vlgmr.msra.gmra.mrb[52].mxu0 %v15509_v23 }
 0x9e0   :  { %8398 = vmatpush1.bf16.msra.mxu0 %v13442_v10  ;;  %8429 = vmatprep.mubr.bf16.mxu0 %v15503_v0 }
 0x9e1   :  { %8399 = vmatprep.subr.bf16.mxu0 %v13447_v35  ;;  %8357 = vmatpush1.bf16.msra.mxu1 %v13466_v2  ;;  %v13481_v35 = vld [vmem:[#allocation25 + $0x738] ss:$20 sps:$4 sm:$0xff]  }
 0x9e2   :  { %8358 = vmatprep.subr.bf16.mxu1 %v13474_v56  ;;  %8388 = vmatprep.mubr.bf16.mxu1 %v14405_v39 }
 0x9e4   :  { %8400 = vmatpush1.bf16.msra.mxu0 %v13445_v4  ;;  %v13489_v4 = vld [vmem:[#allocation25 + $0x764] ss:$20 sps:$4 sm:$0xff]  }
 0x9e5   :  { %8401 = vmatprep.subr.bf16.mxu0 %v13450_v5  ;;  %8359 = vmatpush1.bf16.msra.mxu1 %v13472_v6  ;;  %v13487_v6 = vld [vmem:[#allocation25 + $0x760] ss:$20 sps:$4 sm:$0xff]  }
 0x9e6   :  { %8360 = vmatprep.subr.bf16.mxu1 %v13480_v37 }
 0x9e8   :  { %8402 = vmatpush1.bf16.msra.mxu0 %v13448_v9  ;;  %v13490_v9 = vld [vmem:[#allocation25 + $0x828] ss:$20 sps:$4 sm:$0xff]  }
 0x9e9   :  { %8403 = vmatprep.subr.bf16.mxu0 %v13453_v14  ;;  %8361 = vmatpush1.bf16.msra.mxu1 %v13478_v19  ;;  %v13498_v19 = vld [vmem:[#allocation25 + $0x854] ss:$20 sps:$4 sm:$0xff]  }
 0x9ea   :  { %8362 = vmatprep.subr.bf16.mxu1 %v13486_v32  ;;  %v13501_v32 = vld [vmem:[#allocation25 + $0x7b4] ss:$20 sps:$4 sm:$0xff]  }
 0x9ec   :  { %8404 = vmatpush1.bf16.msra.mxu0 %v13451_v31  ;;  %v13496_v31 = vld [vmem:[#allocation25 + $0x850] ss:$20 sps:$4 sm:$0xff]  }
 0x9ed   :  { %8405 = vmatprep.subr.bf16.mxu0 %v13456_v41  ;;  %8363 = vmatpush1.bf16.msra.mxu1 %v13484_v60  ;;  %v13504_v41 = vld [vmem:[#allocation25 + $0x87c] ss:$20 sps:$4 sm:$0xff]  }
 0x9ee   :  { %8438 = vmatprep.subr.bf16.mxu1 %v13492_v34  ;;  %v13499_v60 = vld [vmem:[#allocation25 + $0x7b0] ss:$20 sps:$4 sm:$0xff]  }
 0x9ef   :  { %v13507_v34 = vld [vmem:[#allocation25 + $0x7dc] ss:$20 sps:$4 sm:$0xff]  }
 0x9f0   :  { %8406 = vmatpush1.bf16.msra.mxu0 %v13454_v1  ;;  %v13502_v1 = vld [vmem:[#allocation25 + $0x878] ss:$20 sps:$4 sm:$0xff]  }
 0x9f1   :  { %8407 = vmatprep.subr.bf16.mxu0 %v13459_v45  ;;  %v13510_v45 = vld [vmem:[#allocation25 + $0x8a4] ss:$20 sps:$4 sm:$0xff]  }
 0x9f2   :  { %v11940_v36 = vpop.f32.mrb[44].mxu0  ;;  %v11962_v25 = vpop.f32.mrb[48].mxu1 }
 0x9f3   :  { %v11941_v28 = vpop.f32.mrb[45].mxu0  ;;  %v11963_v30 = vpop.f32.mrb[49].mxu1 }
 0x9f4   :  { %v11942_v26 = vadd.f32 %v11941_v28, %v11940_v36  ;;  %v11964_v29 = vadd.f32 %v11963_v30, %v11962_v25  ;;  %v11943_v40 = vpop.f32.mrb[46].mxu0  ;;  %v11965_v16 = vpop.f32.mrb[50].mxu1  ;;  %8408 = vmatpush1.bf16.msra.mxu0 %v13457_v20  ;;  %v13505_v20 = vld [vmem:[#allocation25 + $0x7d8] ss:$20 sps:$4 sm:$0xff]   ;;  %v13508_v36 = vld [vmem:[#allocation25 + $0x8a0] ss:$20 sps:$4 sm:$0xff]  }
 0x9f5   :  { %v11944_v18 = vpop.f32.mrb[47].mxu0  ;;  %v11966_v43 = vpop.f32.mrb[51].mxu1  ;;  %8409 = vmatprep.subr.bf16.mxu0 %v13462_v24  ;;  %v13513_v24 = vld [vmem:[#allocation25 + $0x804] ss:$20 sps:$4 sm:$0xff]   ;;  %v13516_v25 = vld [vmem:[#allocation25 + $0x8cc] ss:$20 sps:$4 sm:$0xff]  }
 0x9f6   :  { %v6929_v44 = vadd.f32 %v11942_v26, %v5703_v38  ;;  %v13511_v38 = vld [vmem:[#allocation25 + $0x800] ss:$20 sps:$4 sm:$0xff]   ;;  %v13514_v30 = vld [vmem:[#allocation25 + $0x8c8] ss:$20 sps:$4 sm:$0xff]   ;;  %v13520_v16 = vld [vmem:[#allocation25 + $0x8f0] ss:$20 sps:$4 sm:$0xff]  }
 0x9f7   :  { %v13519_v28 = vld [vmem:[#allocation25 + $0xaac] ss:$20 sps:$4 sm:$0xff]   ;;  %v13522_v26 = vld [vmem:[#allocation25 + $0x8f4] ss:$20 sps:$4 sm:$0xff]   ;;  %v13523_v18 = vld [vmem:[#allocation25 + $0xad0] ss:$20 sps:$4 sm:$0xff]  }
 0x9f8   :  { %8410 = vmatpush1.bf16.msra.mxu0 %v13460_v42  ;;  %v6969_v51 = vadd.f32 %v11964_v29, %v6929_v44  ;;  %v13517_v29 = vld [vmem:[#allocation25 + $0xaa8] ss:$20 sps:$4 sm:$0xff]   ;;  %v13534_v44 = vld [vmem:[#allocation25 + $0x944] ss:$20 sps:$4 sm:$0xff]  }
 0x9f9   :  { %8411 = vmatprep.subr.bf16.mxu0 %v13465_v47  ;;  %v13525_v40 = vld [vmem:[#allocation25 + $0xad4] ss:$20 sps:$4 sm:$0xff]   ;;  %v13528_v42 = vld [vmem:[#allocation25 + $0x91c] ss:$20 sps:$4 sm:$0xff]   ;;  %v13526_v47 = vld [vmem:[#allocation25 + $0x918] ss:$20 sps:$4 sm:$0xff]  }
 0x9fa   :  { %v13531_v43 = vld [vmem:[#allocation25 + $0xafc] ss:$20 sps:$4 sm:$0xff]  }
 0x9fc   :  { %8412 = vmatpush1.bf16.msra.mxu0 %v13463_v49  ;;  %v13529_v49 = vld [vmem:[#allocation25 + $0xaf8] ss:$20 sps:$4 sm:$0xff]  }
 0x9fd   :  { %8413 = vmatprep.subr.bf16.mxu0 %v13471_v52  ;;  %v13532_v52 = vld [vmem:[#allocation25 + $0x940] ss:$20 sps:$4 sm:$0xff]  }
 0xa00   :  { %8414 = vmatpush1.bf16.msra.mxu0 %v13469_v11  ;;  %v13540_v11 = vld [vmem:[#allocation25 + $0x96c] ss:$20 sps:$4 sm:$0xff]  }
 0xa01   :  { %8415 = vmatprep.subr.bf16.mxu0 %v13477_v53  ;;  %v13535_v53 = vld [vmem:[#allocation25 + $0xb20] ss:$20 sps:$4 sm:$0xff]  }
 0xa02   :  { %v7008_v21 = vpop.f32.mrb[48].mxu0 }
 0xa03   :  { %v7009_v55 = vadd.f32 %v7008_v21, %v6969_v51  ;;  %v12154_v63 = vpop.f32.mrb[49].mxu0  ;;  %v13537_v51 = vld [vmem:[#allocation25 + $0xb24] ss:$20 sps:$4 sm:$0xff]  }
 0xa04   :  { %v7011_v10 = vpop.f32.mrb[50].mxu0  ;;  %8416 = vmatpush1.bf16.msra.mxu0 %v13475_v54  ;;  %v13541_v54 = vld [vmem:[#allocation25 + $0x970] ss:$20 sps:$4 sm:$0xff]  }
 0xa05   :  { %v7046_v2 = vmul.f32 %v7036_v61, %v7009_v55  ;;  %v12155_v56 = vpop.f32.mrb[51].mxu0  ;;  %8417 = vmatprep.subr.bf16.mxu0 %v13483_v46  ;;  %v13538_v61 = vld [vmem:[#allocation25 + $0x968] ss:$20 sps:$4 sm:$0xff]   ;;  %v13545_v21 = vld [vmem:[#allocation25 + $0x830] ss:$20 sps:$4 sm:$0xff]  }
 0xa06   :  { %v13544_v46 = vld [vmem:[#allocation25 + $0x994] ss:$20 sps:$4 sm:$0xff]   ;;  %v13546_v55 = vld [vmem:[#allocation25 + $0x998] ss:$20 sps:$4 sm:$0xff]   ;;  %v13549_v63 = vld [vmem:[#allocation25 + $0x9bc] ss:$20 sps:$4 sm:$0xff]  }
 0xa07   :  { %v7079_v5 = vadd.f32 %v7069_v58, %v7046_v2  ;;  %v13542_v58 = vld [vmem:[#allocation25 + $0x990] ss:$20 sps:$4 sm:$0xff]   ;;  %v13550_v10 = vld [vmem:[#allocation25 + $0x858] ss:$20 sps:$4 sm:$0xff]  }
 0xa08   :  { %8418 = vmatpush1.bf16.msra.mxu0 %v13481_v35  ;;  %v13551_v35 = vld [vmem:[#allocation25 + $0x9c0] ss:$20 sps:$4 sm:$0xff]   ;;  %v13547_v2 = vld [vmem:[#allocation25 + $0x9b8] ss:$20 sps:$4 sm:$0xff]  }
 0xa09   :  { %v7084_v37 = vmax.f32 %v7079_v5, 0.0  ;;  %8419 = vmatprep.subr.bf16.mxu0 %v13489_v4  ;;  %v13554_v56 = vld [vmem:[#allocation25 + $0x9e4] ss:$20 sps:$4 sm:$0xff]   ;;  %v13555_v4 = vld [vmem:[#allocation25 + $0x880] ss:$20 sps:$4 sm:$0xff]  }
 0xa0a   :  { %v13556_v5 = vld [vmem:[#allocation25 + $0x9e8] ss:$20 sps:$4 sm:$0xff]  }
 0xa0b   :  { %v15523_v14 = vpack.c.bf16 %v7084_v37, %v7084_v37  ;;  %v13559_v37 = vld [vmem:[#allocation25 + $0xa0c] ss:$20 sps:$4 sm:$0xff]  }
 0xa0c   :  { %8420 = vmatpush1.bf16.msra.mxu0 %v13487_v6  ;;  %v13552_v6 = vld [vmem:[#allocation25 + $0x9e0] ss:$20 sps:$4 sm:$0xff]  }
 0xa0d   :  { %11580 = vmatmul.mubr.msk.bf16.vlgmr.msra.gmra.mrb[56].mxu1 %vm3391_vm0, %v15523_v14  ;;  %8421 = vmatprep.subr.bf16.mxu0 %v13495_v62  ;;  %v13560_v62 = vld [vmem:[#allocation25 + $0x8a8] ss:$20 sps:$4 sm:$0xff]  }
 0xa0e   :  { %8439 = vmatpush1.bf16.msra.mxu1 %v13490_v9  ;;  %8470 = vmatprep.mubr.bf16.mxu1 %v15505_v33  ;;  %v13561_v9 = vld [vmem:[#allocation25 + $0xa10] ss:$20 sps:$4 sm:$0xff]  }
 0xa0f   :  { %8440 = vmatprep.subr.bf16.mxu1 %v13498_v19  ;;  %v13564_v19 = vld [vmem:[#allocation25 + $0xa34] ss:$20 sps:$4 sm:$0xff]  }
 0xa10   :  { %8422 = vmatpush1.bf16.msra.mxu0 %v13493_v3  ;;  %v13565_v3 = vld [vmem:[#allocation25 + $0x8d0] ss:$20 sps:$4 sm:$0xff]  }
 0xa11   :  { %8423 = vmatprep.subr.bf16.mxu0 %v13501_v32  ;;  %v13566_v32 = vld [vmem:[#allocation25 + $0xa38] ss:$20 sps:$4 sm:$0xff]  }
 0xa12   :  { %8441 = vmatpush1.bf16.msra.mxu1 %v13496_v31  ;;  %v13562_v31 = vld [vmem:[#allocation25 + $0xa30] ss:$20 sps:$4 sm:$0xff]  }
 0xa13   :  { %8442 = vmatprep.subr.bf16.mxu1 %v13504_v41  ;;  %v13569_v41 = vld [vmem:[#allocation25 + $0xa5c] ss:$20 sps:$4 sm:$0xff]  }
 0xa14   :  { %8424 = vmatpush1.bf16.msra.mxu0 %v13499_v60  ;;  %v13570_v60 = vld [vmem:[#allocation25 + $0x8f8] ss:$20 sps:$4 sm:$0xff]  }
 0xa15   :  { %8425 = vmatprep.subr.bf16.mxu0 %v13507_v34  ;;  %v13571_v34 = vld [vmem:[#allocation25 + $0xa60] ss:$20 sps:$4 sm:$0xff]  }
 0xa16   :  { %8443 = vmatpush1.bf16.msra.mxu1 %v13502_v1  ;;  %v13567_v1 = vld [vmem:[#allocation25 + $0xa58] ss:$20 sps:$4 sm:$0xff]  }
 0xa17   :  { %8444 = vmatprep.subr.bf16.mxu1 %v13510_v45  ;;  %v13574_v45 = vld [vmem:[#allocation25 + $0xa84] ss:$20 sps:$4 sm:$0xff]  }
 0xa18   :  { %8426 = vmatpush1.bf16.msra.mxu0 %v13505_v20  ;;  %v13575_v20 = vld [vmem:[#allocation25 + $0x920] ss:$20 sps:$4 sm:$0xff]  }
 0xa19   :  { %8427 = vmatprep.subr.bf16.mxu0 %v13513_v24  ;;  %v13576_v24 = vld [vmem:[#allocation25 + $0xa88] ss:$20 sps:$4 sm:$0xff]  }
 0xa1a   :  { %8445 = vmatpush1.bf16.msra.mxu1 %v13508_v36  ;;  %v13572_v36 = vld [vmem:[#allocation25 + $0xa80] ss:$20 sps:$4 sm:$0xff]  }
 0xa1b   :  { %8446 = vmatprep.subr.bf16.mxu1 %v13516_v25  ;;  %v13577_v25 = vld [vmem:[#allocation25 + $0x6f0] ss:$20 sps:$4 sm:$0xff]  }
 0xa1c   :  { %8428 = vmatpush1.bf16.msra.mxu0 %v13511_v38  ;;  %v13578_v38 = vld [vmem:[#allocation25 + $0x948] ss:$20 sps:$4 sm:$0xff]  }
 0xa1d   :  { %8479 = vmatprep.subr.bf16.mxu0 %v13519_v28  ;;  %v13600_v28 = vld [vmem:[#allocation28 + $0x4] ss:$20 sps:$4 sm:$0xff]  }
 0xa1e   :  { %8447 = vmatpush1.bf16.msra.mxu1 %v13514_v30  ;;  %v13579_v30 = vld [vmem:[#allocation25 + $0x5b0] ss:$20 sps:$4 sm:$0xff]  }
 0xa1f   :  { %8430 = vmatmul.mubr.bf16.vlgmr.msra.gmra.mrb[56].mxu0 %v15507_v57  ;;  %8448 = vmatprep.subr.bf16.mxu1 %v13522_v26  ;;  %v13580_v26 = vld [vmem:[#allocation25 + $0x718] ss:$20 sps:$4 sm:$0xff]  }
 0xa20   :  { %8480 = vmatpush1.bf16.msra.mxu0 %v13517_v29  ;;  %8511 = vmatprep.mubr.bf16.mxu0 %v14405_v39  ;;  %v13598_v29 = vld [vmem:[#allocation28] ss:$20 sps:$4 sm:$0xff]  }
 0xa21   :  { %8481 = vmatprep.subr.bf16.mxu0 %v13525_v40  ;;  %v13606_v40 = vld [vmem:[#allocation28 + $0x2c] ss:$20 sps:$4 sm:$0xff]  }
 0xa22   :  { %8449 = vmatpush1.bf16.msra.mxu1 %v13520_v16  ;;  %v13581_v16 = vld [vmem:[#allocation25 + $0x5d8] ss:$20 sps:$4 sm:$0xff]  }
 0xa23   :  { %8450 = vmatprep.subr.bf16.mxu1 %v13528_v42  ;;  %v13582_v42 = vld [vmem:[#allocation25 + $0x740] ss:$20 sps:$4 sm:$0xff]  }
 0xa24   :  { %8482 = vmatpush1.bf16.msra.mxu0 %v13523_v18  ;;  %v13604_v18 = vld [vmem:[#allocation28 + $0x28] ss:$20 sps:$4 sm:$0xff]  }
 0xa25   :  { %8483 = vmatprep.subr.bf16.mxu0 %v13531_v43  ;;  %v13612_v43 = vld [vmem:[#allocation28 + $0x54] ss:$20 sps:$4 sm:$0xff]  }
 0xa26   :  { %8451 = vmatpush1.bf16.msra.mxu1 %v13526_v47  ;;  %v13583_v47 = vld [vmem:[#allocation25 + $0x600] ss:$20 sps:$4 sm:$0xff]  }
 0xa27   :  { %8452 = vmatprep.subr.bf16.mxu1 %v13534_v44  ;;  %v13584_v44 = vld [vmem:[#allocation25 + $0x768] ss:$20 sps:$4 sm:$0xff]  }
 0xa28   :  { %8484 = vmatpush1.bf16.msra.mxu0 %v13529_v49  ;;  %v13610_v49 = vld [vmem:[#allocation28 + $0x50] ss:$20 sps:$4 sm:$0xff]  }
 0xa29   :  { %8485 = vmatprep.subr.bf16.mxu0 %v13537_v51  ;;  %v13618_v51 = vld [vmem:[#allocation28 + $0x7c] ss:$20 sps:$4 sm:$0xff]  }
 0xa2a   :  { %8453 = vmatpush1.bf16.msra.mxu1 %v13532_v52  ;;  %v13585_v52 = vld [vmem:[#allocation25 + $0x628] ss:$20 sps:$4 sm:$0xff]  }
 0xa2b   :  { %8454 = vmatprep.subr.bf16.mxu1 %v13540_v11  ;;  %v13624_v11 = vld [vmem:[#allocation28 + $0xa4] ss:$20 sps:$4 sm:$0xff]  }
 0xa2c   :  { %8486 = vmatpush1.bf16.msra.mxu0 %v13535_v53  ;;  %v13587_v53 = vld [vmem:[#allocation25 + $0x650] ss:$20 sps:$4 sm:$0xff]  }
 0xa2d   :  { %11995 = vmatprep.subr.bf16.mxu0 %v13541_v54  ;;  %v13588_v54 = vld [vmem:[#allocation25 + $0x7b8] ss:$20 sps:$4 sm:$0xff]  }
 0xa2e   :  { %8455 = vmatpush1.bf16.msra.mxu1 %v13538_v61  ;;  %v13622_v61 = vld [vmem:[#allocation28 + $0xa0] ss:$20 sps:$4 sm:$0xff]  }
 0xa2f   :  { %11581 = vmatmul.mubr.msk.bf16.vlgmr.msra.gmra.mrb[60].mxu0 %vm3391_vm0, %v15523_v14  ;;  %8456 = vmatprep.subr.bf16.mxu1 %v13544_v46  ;;  %v13630_v46 = vld [vmem:[#allocation28 + $0xcc] ss:$20 sps:$4 sm:$0xff]  }
 0xa30   :  { %11996 = vmatpush3.bf16.msra.mxu0 %v13545_v21  ;;  %8592 = vmatprep.mubr.bf16.mxu0 %v15505_v33  ;;  %v13557_v33 = vld [vmem:[#allocation25 + $0xa08] ss:$20 sps:$4 sm:$0xff]   ;;  %v13589_v21 = vld [vmem:[#allocation25 + $0x678] ss:$20 sps:$4 sm:$0xff]  }
 0xa31   :  { %11997 = vmatprep.subr.bf16.mxu0 %v13546_v55  ;;  %v13590_v55 = vld [vmem:[#allocation25 + $0x7e0] ss:$20 sps:$4 sm:$0xff]  }
 0xa32   :  { %8457 = vmatpush1.bf16.msra.mxu1 %v13542_v58  ;;  %v13628_v58 = vld [vmem:[#allocation28 + $0xc8] ss:$20 sps:$4 sm:$0xff]  }
 0xa33   :  { %8458 = vmatprep.subr.bf16.mxu1 %v13549_v63  ;;  %v13636_v63 = vld [vmem:[#allocation28 + $0xf4] ss:$20 sps:$4 sm:$0xff]  }
 0xa34   :  { %11998 = vmatpush3.bf16.msra.mxu0 %v13550_v10  ;;  %v13591_v10 = vld [vmem:[#allocation25 + $0x6a0] ss:$20 sps:$4 sm:$0xff]  }
 0xa35   :  { %11999 = vmatprep.subr.bf16.mxu0 %v13551_v35  ;;  %v13592_v35 = vld [vmem:[#allocation25 + $0x808] ss:$20 sps:$4 sm:$0xff]  }
 0xa36   :  { %8459 = vmatpush1.bf16.msra.mxu1 %v13547_v2  ;;  %v13634_v2 = vld [vmem:[#allocation28 + $0xf0] ss:$20 sps:$4 sm:$0xff]  }
 0xa37   :  { %8460 = vmatprep.subr.bf16.mxu1 %v13554_v56  ;;  %v13642_v56 = vld [vmem:[#allocation28 + $0x11c] ss:$20 sps:$4 sm:$0xff]  }
 0xa38   :  { %12000 = vmatpush3.bf16.msra.mxu0 %v13555_v4  ;;  %v13593_v4 = vld [vmem:[#allocation25 + $0x6c8] ss:$20 sps:$4 sm:$0xff]  }
 0xa39   :  { %12001 = vmatprep.subr.bf16.mxu0 %v13556_v5  ;;  %v13640_v5 = vld [vmem:[#allocation28 + $0x118] ss:$20 sps:$4 sm:$0xff]  }
 0xa3a   :  { %8461 = vmatpush1.bf16.msra.mxu1 %v13552_v6  ;;  %v13648_v6 = vld [vmem:[#allocation28 + $0x144] ss:$20 sps:$4 sm:$0xff]  }
 0xa3b   :  { %8462 = vmatprep.subr.bf16.mxu1 %v13559_v37  ;;  %v13594_v37 = vld [vmem:[#allocation25 + $0xab0] ss:$20 sps:$4 sm:$0xff]  }
 0xa3c   :  { %12002 = vmatpush3.bf16.msra.mxu0 %v13560_v62  ;;  %v13646_v62 = vld [vmem:[#allocation28 + $0x140] ss:$20 sps:$4 sm:$0xff]  }
 0xa3d   :  { %12003 = vmatprep.subr.bf16.mxu0 %v13561_v9  ;;  %v13654_v9 = vld [vmem:[#allocation28 + $0x16c] ss:$20 sps:$4 sm:$0xff]  }
 0xa3e   :  { %8463 = vmatpush1.bf16.msra.mxu1 %v13557_v33  ;;  %v13595_v33 = vld [vmem:[#allocation25 + $0xad8] ss:$20 sps:$4 sm:$0xff]  }
 0xa3f   :  { %8464 = vmatprep.subr.bf16.mxu1 %v13564_v19  ;;  %v13652_v19 = vld [vmem:[#allocation28 + $0x168] ss:$20 sps:$4 sm:$0xff]  }
 0xa40   :  { %12004 = vmatpush3.bf16.msra.mxu0 %v13565_v3  ;;  %v13660_v3 = vld [vmem:[#allocation28 + $0x194] ss:$20 sps:$4 sm:$0xff]  }
 0xa41   :  { %12005 = vmatprep.subr.bf16.mxu0 %v13566_v32  ;;  %v13596_v32 = vld [vmem:[#allocation25 + $0xb00] ss:$20 sps:$4 sm:$0xff]  }
 0xa42   :  { %8465 = vmatpush1.bf16.msra.mxu1 %v13562_v31  ;;  %v13658_v31 = vld [vmem:[#allocation28 + $0x190] ss:$20 sps:$4 sm:$0xff]  }
 0xa43   :  { %8466 = vmatprep.subr.bf16.mxu1 %v13569_v41  ;;  %v13597_v41 = vld [vmem:[#allocation25 + $0xb28] ss:$20 sps:$4 sm:$0xff]  }
 0xa44   :  { %12006 = vmatpush3.bf16.msra.mxu0 %v13570_v60  ;;  %v13603_v60 = vld [vmem:[#allocation28 + $0xc] ss:$20 sps:$4 sm:$0xff]  }
 0xa45   :  { %12007 = vmatprep.subr.bf16.mxu0 %v13571_v34  ;;  %v13664_v34 = vld [vmem:[#allocation28 + $0x1b8] ss:$20 sps:$4 sm:$0xff]  }
 0xa46   :  { %8467 = vmatpush1.bf16.msra.mxu1 %v13567_v1  ;;  %v13672_v1 = vld [vmem:[#allocation28 + $0x1e4] ss:$20 sps:$4 sm:$0xff]  }
 0xa47   :  { %8468 = vmatprep.subr.bf16.mxu1 %v13574_v45  ;;  %v13601_v45 = vld [vmem:[#allocation28 + $0x8] ss:$20 sps:$4 sm:$0xff]  }
 0xa48   :  { %12008 = vmatpush3.bf16.msra.mxu0 %v13575_v20  ;;  %v13609_v20 = vld [vmem:[#allocation28 + $0x34] ss:$20 sps:$4 sm:$0xff]  }
 0xa49   :  { %12009 = vmatprep.subr.bf16.mxu0 %v13576_v24  ;;  %v13670_v24 = vld [vmem:[#allocation28 + $0x1e0] ss:$20 sps:$4 sm:$0xff]  }
 0xa4a   :  { %8469 = vmatpush1.bf16.msra.mxu1 %v13572_v36  ;;  %v13678_v36 = vld [vmem:[#allocation28 + $0x20c] ss:$20 sps:$4 sm:$0xff]  }
 0xa4b   :  { %11973 = vmatprep.subr.bf16.mxu1 %v13577_v25  ;;  %v13607_v25 = vld [vmem:[#allocation28 + $0x30] ss:$20 sps:$4 sm:$0xff]  }
 0xa4c   :  { %12010 = vmatpush3.bf16.msra.mxu0 %v13578_v38  ;;  %v13615_v38 = vld [vmem:[#allocation28 + $0x5c] ss:$20 sps:$4 sm:$0xff]  }
 0xa4d   :  { %8471 = vmatmul.mubr.bf16.vlgmr.msra.gmra.mrb[60].mxu1 %v15509_v23  ;;  %9832 = vmatprep.subr.bf16.mxu0 %v13600_v28  ;;  %v13676_v28 = vld [vmem:[#allocation28 + $0x208] ss:$20 sps:$4 sm:$0xff]  }
 0xa4e   :  { %11974 = vmatpush3.bf16.msra.mxu1 %v13579_v30  ;;  %8552 = vmatprep.mubr.bf16.mxu1 %v15503_v0  ;;  %v13586_v0 = vld [vmem:[#allocation25 + $0x790] ss:$20 sps:$4 sm:$0xff]  }
 0xa4f   :  { %8593 = vmatmul.mubr.bf16.vlgmr.msra.gmra.mrb[64].mxu0 %v15509_v23  ;;  %11975 = vmatprep.subr.bf16.mxu1 %v13580_v26  ;;  %v13616_v23 = vld [vmem:[#allocation28 + $0x78] ss:$20 sps:$4 sm:$0xff]   ;;  %v13684_v30 = vld [vmem:[#allocation28 + $0x234] ss:$20 sps:$4 sm:$0xff]  }
 0xa50   :  { %9833 = vmatpush1.bf16.msra.mxu0 %v13598_v29  ;;  %v13613_v26 = vld [vmem:[#allocation28 + $0x58] ss:$20 sps:$4 sm:$0xff]  }
 0xa51   :  { %9834 = vmatprep.subr.bf16.mxu0 %v13606_v40  ;;  %v13621_v29 = vld [vmem:[#allocation28 + $0x84] ss:$20 sps:$4 sm:$0xff]  }
 0xa52   :  { %11976 = vmatpush3.bf16.msra.mxu1 %v13581_v16  ;;  %v13682_v40 = vld [vmem:[#allocation28 + $0x230] ss:$20 sps:$4 sm:$0xff]  }
 0xa53   :  { %11977 = vmatprep.subr.bf16.mxu1 %v13582_v42  ;;  %v13690_v16 = vld [vmem:[#allocation28 + $0x25c] ss:$20 sps:$4 sm:$0xff]   ;;  %v13627_v42 = vld [vmem:[#allocation28 + $0xac] ss:$20 sps:$4 sm:$0xff]  }
 0xa54   :  { %9835 = vmatpush1.bf16.msra.mxu0 %v13604_v18  ;;  %v13688_v18 = vld [vmem:[#allocation28 + $0x258] ss:$20 sps:$4 sm:$0xff]  }
 0xa55   :  { %9836 = vmatprep.subr.bf16.mxu0 %v13612_v43  ;;  %v13696_v43 = vld [vmem:[#allocation28 + $0x284] ss:$20 sps:$4 sm:$0xff]  }
 0xa56   :  { %11978 = vmatpush3.bf16.msra.mxu1 %v13583_v47  ;;  %v13625_v47 = vld [vmem:[#allocation28 + $0xa8] ss:$20 sps:$4 sm:$0xff]  }
 0xa57   :  { %11979 = vmatprep.subr.bf16.mxu1 %v13584_v44  ;;  %v13633_v44 = vld [vmem:[#allocation28 + $0xd4] ss:$20 sps:$4 sm:$0xff]  }
 0xa58   :  { %9837 = vmatpush1.bf16.msra.mxu0 %v13610_v49  ;;  %v13631_v49 = vld [vmem:[#allocation28 + $0xd0] ss:$20 sps:$4 sm:$0xff]  }
 0xa59   :  { %9838 = vmatprep.subr.bf16.mxu0 %v13618_v51  ;;  %v13639_v51 = vld [vmem:[#allocation28 + $0xfc] ss:$20 sps:$4 sm:$0xff]  }
 0xa5a   :  { %11980 = vmatpush3.bf16.msra.mxu1 %v13585_v52  ;;  %v13637_v52 = vld [vmem:[#allocation28 + $0xf8] ss:$20 sps:$4 sm:$0xff]  }
 0xa5b   :  { %11981 = vmatprep.subr.bf16.mxu1 %v13586_v0  ;;  %v13645_v0 = vld [vmem:[#allocation28 + $0x124] ss:$20 sps:$4 sm:$0xff]  }
 0xa5c   :  { %9839 = vmatpush1.bf16.msra.mxu0 %v13616_v23  ;;  %v13643_v23 = vld [vmem:[#allocation28 + $0x120] ss:$20 sps:$4 sm:$0xff]  }
 0xa5d   :  { %9840 = vmatprep.subr.bf16.mxu0 %v13624_v11  ;;  %v13651_v11 = vld [vmem:[#allocation28 + $0x14c] ss:$20 sps:$4 sm:$0xff]  }
 0xa5e   :  { %11982 = vmatpush3.bf16.msra.mxu1 %v13587_v53  ;;  %v13649_v53 = vld [vmem:[#allocation28 + $0x148] ss:$20 sps:$4 sm:$0xff]  }
 0xa5f   :  { %11983 = vmatprep.subr.bf16.mxu1 %v13588_v54  ;;  %v13657_v54 = vld [vmem:[#allocation28 + $0x174] ss:$20 sps:$4 sm:$0xff]  }
 0xa60   :  { %9841 = vmatpush1.bf16.msra.mxu0 %v13622_v61  ;;  %v13655_v61 = vld [vmem:[#allocation28 + $0x170] ss:$20 sps:$4 sm:$0xff]  }
 0xa61   :  { %9842 = vmatprep.subr.bf16.mxu0 %v13630_v46  ;;  %v13663_v46 = vld [vmem:[#allocation28 + $0x19c] ss:$20 sps:$4 sm:$0xff]  }
 0xa62   :  { %11984 = vmatpush3.bf16.msra.mxu1 %v13589_v21  ;;  %v13661_v21 = vld [vmem:[#allocation28 + $0x198] ss:$20 sps:$4 sm:$0xff]  }
 0xa63   :  { %11985 = vmatprep.subr.bf16.mxu1 %v13590_v55  ;;  %v13669_v55 = vld [vmem:[#allocation28 + $0x1c4] ss:$20 sps:$4 sm:$0xff]  }
 0xa64   :  { %9843 = vmatpush1.bf16.msra.mxu0 %v13628_v58  ;;  %v13667_v58 = vld [vmem:[#allocation28 + $0x1c0] ss:$20 sps:$4 sm:$0xff]  }
 0xa65   :  { %9844 = vmatprep.subr.bf16.mxu0 %v13636_v63  ;;  %v13675_v63 = vld [vmem:[#allocation28 + $0x1ec] ss:$20 sps:$4 sm:$0xff]  }
 0xa66   :  { %11986 = vmatpush3.bf16.msra.mxu1 %v13591_v10  ;;  %v13673_v10 = vld [vmem:[#allocation28 + $0x1e8] ss:$20 sps:$4 sm:$0xff]  }
 0xa67   :  { %11987 = vmatprep.subr.bf16.mxu1 %v13592_v35  ;;  %v13681_v35 = vld [vmem:[#allocation28 + $0x214] ss:$20 sps:$4 sm:$0xff]  }
 0xa68   :  { %9845 = vmatpush1.bf16.msra.mxu0 %v13634_v2  ;;  %v15545_v2 = vld [vmem:[#allocation27 + $0x5] sm:$0x1f] }
 0xa69   :  { %9846 = vmatprep.subr.bf16.mxu0 %v13642_v56  ;;  %v13679_v56 = vld [vmem:[#allocation28 + $0x210] ss:$20 sps:$4 sm:$0xff]  }
 0xa6a   :  { %11988 = vmatpush3.bf16.msra.mxu1 %v13593_v4  ;;  %v7313_v4 = vrot.slane %v15545_v2, %v14904_v50 }
 0xa6b   :  { %12156 = vmatprep.subr.bf16.mxu1 %v14406_v27 }
 0xa6c   :  { %9847 = vmatpush1.bf16.msra.mxu0 %v13640_v5  ;;  %v13687_v5 = vld [vmem:[#allocation28 + $0x23c] ss:$20 sps:$4 sm:$0xff]  }
 0xa6d   :  { %8553 = vmatmul.mubr.bf16.vlgmr.msra.gmra.mrb[64].mxu1 %v15507_v57  ;;  %9848 = vmatprep.subr.bf16.mxu0 %v13648_v6  ;;  %v13666_v57 = vld [vmem:[#allocation28 + $0x1bc] ss:$20 sps:$4 sm:$0xff]   ;;  %v7317_v6 = vrot.slane %v15545_v2, %v14890_v13 }
 0xa6e   :  { %12157 = vmatpush3.bf16.msra.mxu1 %v13594_v37  ;;  %12164 = vmatprep.mubr.msk.bf16.mxu1 %vm14407_vm1, %v14406_v27 }
 0xa6f   :  { %12158 = vmatprep.subr.bf16.mxu1 %v14406_v27 }
 0xa70   :  { %9849 = vmatpush1.bf16.msra.mxu0 %v13646_v62 }
 0xa71   :  { %9850 = vmatprep.subr.bf16.mxu0 %v13654_v9  ;;  %v13685_v9 = vld [vmem:[#allocation28 + $0x238] ss:$20 sps:$4 sm:$0xff]  }
 0xa72   :  { %12159 = vmatpush3.bf16.msra.mxu1 %v13595_v33 }
 0xa73   :  { %12160 = vmatprep.subr.bf16.mxu1 %v14406_v27 }
 0xa74   :  { %9851 = vmatpush1.bf16.msra.mxu0 %v13652_v19 }
 0xa75   :  { %9852 = vmatprep.subr.bf16.mxu0 %v13660_v3 }
 0xa76   :  { %12161 = vmatpush3.bf16.msra.mxu1 %v13596_v32  ;;  %v13693_v32 = vld [vmem:[#allocation28 + $0x264] ss:$20 sps:$4 sm:$0xff]  }
 0xa77   :  { %12162 = vmatprep.subr.bf16.mxu1 %v14406_v27 }
 0xa78   :  { %9853 = vmatpush1.bf16.msra.mxu0 %v13658_v31 }
 0xa79   :  { %9854 = vmatprep.subr.bf16.mxu0 %v13666_v57 }
 0xa7a   :  { %12163 = vmatpush3.bf16.msra.mxu1 %v13597_v41 }
 0xa7b   :  { %9955 = vmatprep.subr.bf16.mxu1 %v13603_v60 }
 0xa7c   :  { %9855 = vmatpush1.bf16.msra.mxu0 %v13664_v34 }
 0xa7d   :  { %12165 = vmatmul.mubr.msk.bf16.vlgmr.msra.gmra.mrb[68].mxu1 %vm3391_vm0, %v15523_v14  ;;  %9856 = vmatprep.subr.bf16.mxu0 %v13672_v1  ;;  %v13619_v14 = vld [vmem:[#allocation28 + $0x80] ss:$20 sps:$4 sm:$0xff]  }
 0xa7e   :  { %9956 = vmatpush1.bf16.msra.mxu1 %v13601_v45 }
 0xa7f   :  { %9957 = vmatprep.subr.bf16.mxu1 %v13609_v20  ;;  %v13691_v20 = vld [vmem:[#allocation28 + $0x260] ss:$20 sps:$4 sm:$0xff]  }
 0xa80   :  { %9857 = vmatpush1.bf16.msra.mxu0 %v13670_v24  ;;  %v13699_v24 = vld [vmem:[#allocation28 + $0x28c] ss:$20 sps:$4 sm:$0xff]  }
 0xa81   :  { %9858 = vmatprep.subr.bf16.mxu0 %v13678_v36 }
 0xa82   :  { %9958 = vmatpush1.bf16.msra.mxu1 %v13607_v25 }
 0xa83   :  { %9959 = vmatprep.subr.bf16.mxu1 %v13615_v38 }
 0xa84   :  { %9859 = vmatpush1.bf16.msra.mxu0 %v13676_v28 }
 0xa85   :  { %9860 = vmatprep.subr.bf16.mxu0 %v13684_v30 }
 0xa86   :  { %9960 = vmatpush1.bf16.msra.mxu1 %v13613_v26 }
 0xa87   :  { %9961 = vmatprep.subr.bf16.mxu1 %v13621_v29 }
 0xa88   :  { %9861 = vmatpush1.bf16.msra.mxu0 %v13682_v40 }
 0xa89   :  { %9862 = vmatprep.subr.bf16.mxu0 %v13690_v16 }
 0xa8a   :  { %9962 = vmatpush1.bf16.msra.mxu1 %v13619_v14  ;;  %v13694_v14 = vld [vmem:[#allocation28 + $0x280] ss:$20 sps:$4 sm:$0xff]  }
 0xa8b   :  { %9963 = vmatprep.subr.bf16.mxu1 %v13627_v42  ;;  %v13697_v42 = vld [vmem:[#allocation28 + $0x288] ss:$20 sps:$4 sm:$0xff]  }
 0xa8c   :  { %9863 = vmatpush1.bf16.msra.mxu0 %v13688_v18 }
 0xa8d   :  { %9873 = vmatprep.subr.bf16.mxu0 %v13696_v43  ;;  %v13702_v43 = vld [vmem:[#allocation28 + $0x2ac] ss:$20 sps:$4 sm:$0xff]  }
 0xa8e   :  { %9964 = vmatpush1.bf16.msra.mxu1 %v13625_v47  ;;  %v13705_v47 = vld [vmem:[#allocation28 + $0x2b4] ss:$20 sps:$4 sm:$0xff]  }
 0xa8f   :  { %9965 = vmatprep.subr.bf16.mxu1 %v13633_v44  ;;  %v13708_v44 = vld [vmem:[#allocation28 + $0x2d4] ss:$20 sps:$4 sm:$0xff]  }
 0xa92   :  { %9966 = vmatpush1.bf16.msra.mxu1 %v13631_v49  ;;  %v13711_v49 = vld [vmem:[#allocation28 + $0x2dc] ss:$20 sps:$4 sm:$0xff]  }
 0xa93   :  { %9967 = vmatprep.subr.bf16.mxu1 %v13639_v51  ;;  %v13706_v51 = vld [vmem:[#allocation28 + $0x2d0] ss:$20 sps:$4 sm:$0xff]  }
 0xa96   :  { %9968 = vmatpush1.bf16.msra.mxu1 %v13637_v52  ;;  %v13709_v52 = vld [vmem:[#allocation28 + $0x2d8] ss:$20 sps:$4 sm:$0xff]  }
 0xa97   :  { %9969 = vmatprep.subr.bf16.mxu1 %v13645_v0  ;;  %v13714_v0 = vld [vmem:[#allocation28 + $0x2fc] ss:$20 sps:$4 sm:$0xff]  }
 0xa9a   :  { %9970 = vmatpush1.bf16.msra.mxu1 %v13643_v23  ;;  %v13717_v23 = vld [vmem:[#allocation28 + $0x304] ss:$20 sps:$4 sm:$0xff]  }
 0xa9b   :  { %9971 = vmatprep.subr.bf16.mxu1 %v13651_v11 }
 0xa9e   :  { %9972 = vmatpush1.bf16.msra.mxu1 %v13649_v53  ;;  %v13712_v53 = vld [vmem:[#allocation28 + $0x2f8] ss:$20 sps:$4 sm:$0xff]  }
 0xa9f   :  { %9973 = vmatprep.subr.bf16.mxu1 %v13657_v54  ;;  %v13715_v54 = vld [vmem:[#allocation28 + $0x300] ss:$20 sps:$4 sm:$0xff]  }
 0xaa2   :  { %9974 = vmatpush1.bf16.msra.mxu1 %v13655_v61 }
 0xaa3   :  { %9975 = vmatprep.subr.bf16.mxu1 %v13663_v46  ;;  %v13720_v46 = vld [vmem:[#allocation28 + $0x324] ss:$20 sps:$4 sm:$0xff]  }
 0xaa6   :  { %9976 = vmatpush1.bf16.msra.mxu1 %v13661_v21  ;;  %v13723_v21 = vld [vmem:[#allocation28 + $0x32c] ss:$20 sps:$4 sm:$0xff]  }
 0xaa7   :  { %9977 = vmatprep.subr.bf16.mxu1 %v13669_v55 }
 0xaaa   :  { %9978 = vmatpush1.bf16.msra.mxu1 %v13667_v58 }
 0xaab   :  { %9979 = vmatprep.subr.bf16.mxu1 %v13675_v63  ;;  %v13718_v63 = vld [vmem:[#allocation28 + $0x320] ss:$20 sps:$4 sm:$0xff]  }
 0xaae   :  { %9980 = vmatpush1.bf16.msra.mxu1 %v13673_v10  ;;  %v13721_v10 = vld [vmem:[#allocation28 + $0x328] ss:$20 sps:$4 sm:$0xff]  }
 0xaaf   :  { %9981 = vmatprep.subr.bf16.mxu1 %v13681_v35  ;;  %v13726_v35 = vld [vmem:[#allocation28 + $0x34c] ss:$20 sps:$4 sm:$0xff]  }
 0xab2   :  { %v8308_v37 = vpop.f32.mrb[52].mxu1  ;;  %v8349_v62 = vpop.f32.mrb[52].mxu0  ;;  %9982 = vmatpush1.bf16.msra.mxu1 %v13679_v56  ;;  %v13729_v56 = vld [vmem:[#allocation28 + $0x354] ss:$20 sps:$4 sm:$0xff]  }
 0xab3   :  { %v8309_v33 = vadd.f32 %v8308_v37, %v7313_v4  ;;  %v8310_v19 = vpop.f32.mrb[53].mxu1  ;;  %v8351_v3 = vpop.f32.mrb[53].mxu0  ;;  %9983 = vmatprep.subr.bf16.mxu1 %v13687_v5  ;;  %v13724_v4 = vld [vmem:[#allocation28 + $0x348] ss:$20 sps:$4 sm:$0xff]   ;;  %v13727_v5 = vld [vmem:[#allocation28 + $0x350] ss:$20 sps:$4 sm:$0xff]  }
 0xab4   :  { %v8311_v31 = vadd.f32 %v8310_v19, %v7317_v6  ;;  %v8312_v57 = vpop.f32.mrb[54].mxu1  ;;  %v8353_v41 = vpop.f32.mrb[54].mxu0  ;;  %v13732_v6 = vld [vmem:[#allocation28 + $0x374] ss:$20 sps:$4 sm:$0xff]   ;;  %v13735_v37 = vld [vmem:[#allocation28 + $0x37c] ss:$20 sps:$4 sm:$0xff]  }
 0xab5   :  { %v8350_v60 = vadd.f32 %v8349_v62, %v8309_v33  ;;  %v8313_v34 = vpop.f32.mrb[55].mxu1  ;;  %v8354_v1 = vpop.f32.mrb[55].mxu0  ;;  %v13730_v62 = vld [vmem:[#allocation28 + $0x370] ss:$20 sps:$4 sm:$0xff]  }
 0xab6   :  { %v8352_v45 = vadd.f32 %v8351_v3, %v8311_v31  ;;  %9984 = vmatpush1.bf16.msra.mxu1 %v13685_v9  ;;  %v13733_v9 = vld [vmem:[#allocation28 + $0x378] ss:$20 sps:$4 sm:$0xff]   ;;  %v13738_v33 = vld [vmem:[#allocation28 + $0x39c] ss:$20 sps:$4 sm:$0xff]   ;;  %v13739_v31 = vld [vmem:[#allocation28 + $0x3a0] ss:$20 sps:$4 sm:$0xff]  }
 0xab7   :  { %9985 = vmatprep.subr.bf16.mxu1 %v13693_v32  ;;  %v13741_v19 = vld [vmem:[#allocation28 + $0x3a4] ss:$20 sps:$4 sm:$0xff]  }
 0xab8   :  { %v13736_v32 = vld [vmem:[#allocation28 + $0x398] ss:$20 sps:$4 sm:$0xff]  }
 0xab9   :  { %v13744_v41 = vld [vmem:[#allocation28 + $0x3c4] ss:$20 sps:$4 sm:$0xff]  }
 0xaba   :  { %9986 = vmatpush1.bf16.msra.mxu1 %v13691_v20  ;;  %v13745_v20 = vld [vmem:[#allocation28 + $0x3c8] ss:$20 sps:$4 sm:$0xff]  }
 0xabb   :  { %9996 = vmatprep.subr.bf16.mxu1 %v13699_v24  ;;  %v13750_v24 = vld [vmem:[#allocation28 + $0x3ec] ss:$20 sps:$4 sm:$0xff]  }
 0xae0   :  { %v8390_v36 = vpop.f32.mrb[56].mxu1 }
 0xae1   :  { %v8391_v25 = vadd.f32 %v8390_v36, %v8350_v60  ;;  %v8392_v38 = vpop.f32.mrb[57].mxu1  ;;  %v13747_v60 = vld [vmem:[#allocation28 + $0x3cc] ss:$20 sps:$4 sm:$0xff]   ;;  %v13753_v36 = vld [vmem:[#allocation28 + $0x3f4] ss:$20 sps:$4 sm:$0xff]  }
 0xae2   :  { %v8393_v28 = vadd.f32 %v8392_v38, %v8352_v45  ;;  %v8394_v30 = vpop.f32.mrb[58].mxu1  ;;  %v13742_v45 = vld [vmem:[#allocation28 + $0x3c0] ss:$20 sps:$4 sm:$0xff]   ;;  %v13751_v38 = vld [vmem:[#allocation28 + $0x3f0] ss:$20 sps:$4 sm:$0xff]  }
 0xae3   :  { %v8640_v26 = vadd.f32 %v8391_v25, %v15381_v48  ;;  %v8395_v29 = vpop.f32.mrb[59].mxu1  ;;  %v13700_v48 = vld [vmem:[#allocation28 + $0x2a8] ss:$20 sps:$4 sm:$0xff]  }
 0xae4   :  { %v8641_v40 = vadd.f32 %v8393_v28, %v15386_v8  ;;  %v13703_v8 = vld [vmem:[#allocation28 + $0x2b0] ss:$20 sps:$4 sm:$0xff]   ;;  %v13748_v25 = vld [vmem:[#allocation28 + $0x3e8] ss:$20 sps:$4 sm:$0xff]   ;;  %v13757_v29 = vld [vmem:[#allocation28 + $0x418] ss:$20 sps:$4 sm:$0xff]  }
 0xae5   :  { %v15555_v18 = vpack.c.bf16 %v8640_v26, %v8640_v26  ;;  %v13756_v28 = vld [vmem:[#allocation28 + $0x414] ss:$20 sps:$4 sm:$0xff]   ;;  %v13759_v30 = vld [vmem:[#allocation28 + $0x41c] ss:$20 sps:$4 sm:$0xff]  }
 0xae6   :  { %v15553_v16 = vpack.c.bf16 %v8641_v40, %v8641_v40  ;;  %v13754_v26 = vld [vmem:[#allocation28 + $0x410] ss:$20 sps:$4 sm:$0xff]  }
 0xae7   :  { %v13762_v40 = vld [vmem:[#allocation28 + $0x43c] ss:$20 sps:$4 sm:$0xff]  }
 0xae8   :  { %9864 = vmatprep.mubr.bf16.mxu0 %v15553_v16  ;;  %9987 = vmatprep.mubr.bf16.mxu1 %v15553_v16 }
 0xae9   :  { %9865 = vmatmul.mubr.bf16.vlgmr.msra.gmra.mrb[68].mxu0 %v15555_v18  ;;  %9988 = vmatmul.mubr.bf16.vlgmr.msra.gmra.mrb[72].mxu1 %v15555_v18 }
 0xaea   :  { %9874 = vmatpush1.bf16.msra.mxu0 %v13694_v14  ;;  %9997 = vmatpush1.bf16.msra.mxu1 %v13697_v42  ;;  %v13765_v14 = vld [vmem:[#allocation28 + $0x444] ss:$20 sps:$4 sm:$0xff]  }
 0xaeb   :  { %9875 = vmatprep.subr.bf16.mxu0 %v13702_v43  ;;  %9998 = vmatprep.subr.bf16.mxu1 %v13705_v47  ;;  %v13760_v42 = vld [vmem:[#allocation28 + $0x438] ss:$20 sps:$4 sm:$0xff]   ;;  %v13763_v43 = vld [vmem:[#allocation28 + $0x440] ss:$20 sps:$4 sm:$0xff]  }
 0xaec   :  { %v13768_v47 = vld [vmem:[#allocation28 + $0x464] ss:$20 sps:$4 sm:$0xff]  }
 0xaee   :  { %9876 = vmatpush1.bf16.msra.mxu0 %v13700_v48  ;;  %9999 = vmatpush1.bf16.msra.mxu1 %v13703_v8  ;;  %v13771_v48 = vld [vmem:[#allocation28 + $0x46c] ss:$20 sps:$4 sm:$0xff]  }
 0xaef   :  { %9877 = vmatprep.subr.bf16.mxu0 %v13708_v44  ;;  %10000 = vmatprep.subr.bf16.mxu1 %v13711_v49  ;;  %v13766_v8 = vld [vmem:[#allocation28 + $0x460] ss:$20 sps:$4 sm:$0xff]   ;;  %v13769_v44 = vld [vmem:[#allocation28 + $0x468] ss:$20 sps:$4 sm:$0xff]  }
 0xaf0   :  { %v13774_v49 = vld [vmem:[#allocation28 + $0x48c] ss:$20 sps:$4 sm:$0xff]  }
 0xaf2   :  { %v15561_v11 = vpop.f32.mrb[56].mxu0  ;;  %9878 = vmatpush1.bf16.msra.mxu0 %v13706_v51  ;;  %10001 = vmatpush1.bf16.msra.mxu1 %v13709_v52  ;;  %v13777_v51 = vld [vmem:[#allocation28 + $0x494] ss:$20 sps:$4 sm:$0xff]  }
 0xaf3   :  { %v15563_v61 = vpop.f32.mrb[57].mxu0  ;;  %9879 = vmatprep.subr.bf16.mxu0 %v13714_v0  ;;  %10002 = vmatprep.subr.bf16.mxu1 %v13717_v23  ;;  %v13772_v52 = vld [vmem:[#allocation28 + $0x488] ss:$20 sps:$4 sm:$0xff]   ;;  %v13775_v0 = vld [vmem:[#allocation28 + $0x490] ss:$20 sps:$4 sm:$0xff]   ;;  %v7321_v23 = vrot.slane %v15545_v2, %v15193_v15 }
 0xaf4   :  { %v8435_v55 = vpop.f32.mrb[58].mxu0 }
 0xaf5   :  { %v8436_v58 = vpop.f32.mrb[59].mxu0  ;;  %v13781_v55 = vld [vmem:[#allocation28 + $0x4b8] ss:$20 sps:$4 sm:$0xff]  }
 0xaf6   :  { %9880 = vmatpush1.bf16.msra.mxu0 %v13712_v53  ;;  %10003 = vmatpush1.bf16.msra.mxu1 %v13715_v54  ;;  %v13780_v53 = vld [vmem:[#allocation28 + $0x4b4] ss:$20 sps:$4 sm:$0xff]   ;;  %v13783_v54 = vld [vmem:[#allocation28 + $0x4bc] ss:$20 sps:$4 sm:$0xff]   ;;  %v8432_v58 = vadd.f32 %v15561_v11, %v7321_v23 }
 0xaf7   :  { %9881 = vmatprep.subr.bf16.mxu0 %v13720_v46  ;;  %10004 = vmatprep.subr.bf16.mxu1 %v13723_v21  ;;  %v7325_v46 = vrot.slane %v15545_v2, %v15198_v17  ;;  %v13778_v21 = vld [vmem:[#allocation28 + $0x4b0] ss:$20 sps:$4 sm:$0xff]  }
 0xafa   :  { %9882 = vmatpush1.bf16.msra.mxu0 %v13718_v63  ;;  %10005 = vmatpush1.bf16.msra.mxu1 %v13721_v10  ;;  %v13786_v63 = vld [vmem:[#allocation28 + $0x4dc] ss:$20 sps:$4 sm:$0xff]   ;;  %v13789_v10 = vld [vmem:[#allocation28 + $0x4e4] ss:$20 sps:$4 sm:$0xff]  }
 0xafb   :  { %9883 = vmatprep.subr.bf16.mxu0 %v13726_v35  ;;  %10006 = vmatprep.subr.bf16.mxu1 %v13729_v56  ;;  %v8434_v35 = vadd.f32 %v15563_v61, %v7325_v46 }
 0xafe   :  { %9884 = vmatpush1.bf16.msra.mxu0 %v13724_v4  ;;  %10007 = vmatpush1.bf16.msra.mxu1 %v13727_v5 }
 0xaff   :  { %9885 = vmatprep.subr.bf16.mxu0 %v13732_v6  ;;  %10008 = vmatprep.subr.bf16.mxu1 %v13735_v37 }
 0xb02   :  { %v15565_v3 = vpop.f32.mrb[60].mxu0  ;;  %9886 = vmatpush1.bf16.msra.mxu0 %v13730_v62  ;;  %10009 = vmatpush1.bf16.msra.mxu1 %v13733_v9  ;;  %v13784_v9 = vld [vmem:[#allocation28 + $0x4d8] ss:$20 sps:$4 sm:$0xff]  }
 0xb03   :  { %v15567_v57 = vpop.f32.mrb[61].mxu0  ;;  %9887 = vmatprep.subr.bf16.mxu0 %v13738_v33  ;;  %10010 = vmatprep.subr.bf16.mxu1 %v13741_v19  ;;  %v13787_v33 = vld [vmem:[#allocation28 + $0x4e0] ss:$20 sps:$4 sm:$0xff]  }
 0xb04   :  { %v8517_v34 = vpop.f32.mrb[62].mxu0 }
 0xb05   :  { %v8518_v1 = vpop.f32.mrb[63].mxu0 }
 0xb06   :  { %9888 = vmatpush1.bf16.msra.mxu0 %v13736_v32  ;;  %10011 = vmatpush1.bf16.msra.mxu1 %v13739_v31  ;;  %v13792_v31 = vld [vmem:[#allocation28 + $0x504] ss:$20 sps:$4 sm:$0xff]  }
 0xb07   :  { %9889 = vmatprep.subr.bf16.mxu0 %v13744_v41  ;;  %10012 = vmatprep.subr.bf16.mxu1 %v13747_v60  ;;  %v13795_v41 = vld [vmem:[#allocation28 + $0x50c] ss:$20 sps:$4 sm:$0xff]  }
 0xb0a   :  { %9890 = vmatpush1.bf16.msra.mxu0 %v13742_v45  ;;  %10013 = vmatpush1.bf16.msra.mxu1 %v13745_v20 }
 0xb0b   :  { %9891 = vmatprep.subr.bf16.mxu0 %v13750_v24  ;;  %10014 = vmatprep.subr.bf16.mxu1 %v13753_v36  ;;  %v13790_v24 = vld [vmem:[#allocation28 + $0x500] ss:$20 sps:$4 sm:$0xff]   ;;  %v13793_v36 = vld [vmem:[#allocation28 + $0x508] ss:$20 sps:$4 sm:$0xff]  }
 0xb0e   :  { %9892 = vmatpush1.bf16.msra.mxu0 %v13748_v25  ;;  %10015 = vmatpush1.bf16.msra.mxu1 %v13751_v38  ;;  %v13798_v38 = vld [vmem:[#allocation28 + $0x52c] ss:$20 sps:$4 sm:$0xff]  }
 0xb0f   :  { %9893 = vmatprep.subr.bf16.mxu0 %v13756_v28  ;;  %10016 = vmatprep.subr.bf16.mxu1 %v13759_v30  ;;  %v13801_v28 = vld [vmem:[#allocation28 + $0x534] ss:$20 sps:$4 sm:$0xff]   ;;  %v13807_v30 = vld [vmem:[#allocation28 + $0x55c] ss:$20 sps:$4 sm:$0xff]  }
 0xb12   :  { %9894 = vmatpush1.bf16.msra.mxu0 %v13754_v26  ;;  %10017 = vmatpush1.bf16.msra.mxu1 %v13757_v29  ;;  %v13802_v26 = vld [vmem:[#allocation28 + $0x550] ss:$20 sps:$4 sm:$0xff]   ;;  %v13805_v29 = vld [vmem:[#allocation28 + $0x558] ss:$20 sps:$4 sm:$0xff]  }
 0xb13   :  { %9895 = vmatprep.subr.bf16.mxu0 %v13762_v40  ;;  %10018 = vmatprep.subr.bf16.mxu1 %v13765_v14  ;;  %v13810_v40 = vld [vmem:[#allocation28 + $0x57c] ss:$20 sps:$4 sm:$0xff]   ;;  %v13813_v14 = vld [vmem:[#allocation28 + $0x584] ss:$20 sps:$4 sm:$0xff]  }
 0xb16   :  { %9896 = vmatpush1.bf16.msra.mxu0 %v13760_v42  ;;  %10019 = vmatpush1.bf16.msra.mxu1 %v13763_v43  ;;  %v13808_v42 = vld [vmem:[#allocation28 + $0x578] ss:$20 sps:$4 sm:$0xff]   ;;  %v13811_v43 = vld [vmem:[#allocation28 + $0x580] ss:$20 sps:$4 sm:$0xff]  }
 0xb17   :  { %9897 = vmatprep.subr.bf16.mxu0 %v13768_v47  ;;  %10020 = vmatprep.subr.bf16.mxu1 %v13771_v48  ;;  %v13814_v47 = vld [vmem:[#allocation28 + $0x150] ss:$20 sps:$4 sm:$0xff]  }
 0xb18   :  { %v13815_v48 = vld [vmem:[#allocation28 + $0x3d0] ss:$20 sps:$4 sm:$0xff]  }
 0xb1a   :  { %9898 = vmatpush1.bf16.msra.mxu0 %v13766_v8  ;;  %10021 = vmatpush1.bf16.msra.mxu1 %v13769_v44  ;;  %v7329_v8 = vrot.slane %v15545_v2, %v15255_v22  ;;  %v13820_v2 = vld [vmem:[#allocation28 + $0x38] ss:$20 sps:$4 sm:$0xff]  }
 0xb1b   :  { %9899 = vmatprep.subr.bf16.mxu0 %v13774_v49  ;;  %10022 = vmatprep.subr.bf16.mxu1 %v13777_v51 }
 0xb1e   :  { %9900 = vmatpush1.bf16.msra.mxu0 %v13772_v52  ;;  %10023 = vmatpush1.bf16.msra.mxu1 %v13775_v0 }
 0xb1f   :  { %9901 = vmatprep.subr.bf16.mxu0 %v13780_v53  ;;  %10024 = vmatprep.subr.bf16.mxu1 %v13783_v54 }
 0xb20   :  { %v8472_v56 = vpop.f32.mrb[60].mxu1 }
 0xb21   :  { %v8473_v4 = vadd.f32 %v8472_v56, %v8432_v58  ;;  %v8474_v5 = vpop.f32.mrb[61].mxu1  ;;  %v13818_v56 = vld [vmem:[#allocation28 + $0x178] ss:$20 sps:$4 sm:$0xff]  }
 0xb22   :  { %v8475_v6 = vadd.f32 %v8474_v5, %v8434_v35  ;;  %v8476_v37 = vpop.f32.mrb[62].mxu1  ;;  %v12011_v62 = vpop.f32.mrb[64].mxu0  ;;  %9902 = vmatpush1.bf16.msra.mxu0 %v13778_v21  ;;  %10025 = vmatpush1.bf16.msra.mxu1 %v13781_v55  ;;  %v13821_v5 = vld [vmem:[#allocation28 + $0x2b8] ss:$20 sps:$4 sm:$0xff]  }
 0xb23   :  { %v8514_v19 = vadd.f32 %v15565_v3, %v8473_v4  ;;  %v8477_v32 = vpop.f32.mrb[63].mxu1  ;;  %v12012_v11 = vpop.f32.mrb[65].mxu0  ;;  %9903 = vmatprep.subr.bf16.mxu0 %v13786_v63  ;;  %10026 = vmatprep.subr.bf16.mxu1 %v13789_v10  ;;  %v13816_v63 = vld [vmem:[#allocation28 + $0x10] ss:$20 sps:$4 sm:$0xff]   ;;  %v13819_v4 = vld [vmem:[#allocation28 + $0x3f8] ss:$20 sps:$4 sm:$0xff]  }
 0xb24   :  { %v8516_v61 = vadd.f32 %v15567_v57, %v8475_v6  ;;  %v12013_v60 = vadd.f32 %v12012_v11, %v12011_v62  ;;  %v12014_v34 = vpop.f32.mrb[66].mxu0  ;;  %v13804_v57 = vld [vmem:[#allocation28 + $0x554] ss:$20 sps:$4 sm:$0xff]   ;;  %v13817_v10 = vld [vmem:[#allocation28 + $0x290] ss:$20 sps:$4 sm:$0xff]  }
 0xb25   :  { %v8642_v1 = vadd.f32 %v8514_v19, %v15423_v7  ;;  %v12015_v45 = vpop.f32.mrb[67].mxu0  ;;  %v13796_v7 = vld [vmem:[#allocation28 + $0x528] ss:$20 sps:$4 sm:$0xff]   ;;  %v13823_v6 = vld [vmem:[#allocation28 + $0x420] ss:$20 sps:$4 sm:$0xff]  }
 0xb26   :  { %9904 = vmatpush1.bf16.msra.mxu0 %v13784_v9  ;;  %10027 = vmatpush1.bf16.msra.mxu1 %v13787_v33  ;;  %v8643_v20 = vadd.f32 %v8516_v61, %v15428_v12  ;;  %v13799_v12 = vld [vmem:[#allocation28 + $0x530] ss:$20 sps:$4 sm:$0xff]   ;;  %v13824_v37 = vld [vmem:[#allocation28 + $0x60] ss:$20 sps:$4 sm:$0xff]   ;;  %v13826_v9 = vld [vmem:[#allocation28 + $0x1c8] ss:$20 sps:$4 sm:$0xff]  }
 0xb27   :  { %9914 = vmatprep.subr.bf16.mxu0 %v13792_v31  ;;  %10037 = vmatprep.subr.bf16.mxu1 %v13795_v41  ;;  %v15581_v25 = vpack.c.bf16 %v8642_v1, %v8642_v1  ;;  %v13825_v62 = vld [vmem:[#allocation28 + $0x2e0] ss:$20 sps:$4 sm:$0xff]   ;;  %v13827_v33 = vld [vmem:[#allocation28 + $0x448] ss:$20 sps:$4 sm:$0xff]   ;;  %v13831_v11 = vld [vmem:[#allocation28 + $0x470] ss:$20 sps:$4 sm:$0xff]  }
 0xb28   :  { %v15579_v3 = vpack.c.bf16 %v8643_v20, %v8643_v20  ;;  %v13828_v19 = vld [vmem:[#allocation28 + $0x88] ss:$20 sps:$4 sm:$0xff]   ;;  %v13832_v31 = vld [vmem:[#allocation28 + $0xb0] ss:$20 sps:$4 sm:$0xff]   ;;  %v13834_v61 = vld [vmem:[#allocation28 + $0x218] ss:$20 sps:$4 sm:$0xff]  }
 0xb29   :  { %v13829_v32 = vld [vmem:[#allocation28 + $0x308] ss:$20 sps:$4 sm:$0xff]   ;;  %v13833_v41 = vld [vmem:[#allocation28 + $0x330] ss:$20 sps:$4 sm:$0xff]   ;;  %v13836_v34 = vld [vmem:[#allocation28 + $0xd8] ss:$20 sps:$4 sm:$0xff]  }
 0xb2a   :  { %9905 = vmatprep.mubr.bf16.mxu0 %v15579_v3  ;;  %10028 = vmatprep.mubr.bf16.mxu1 %v15579_v3  ;;  %v13837_v1 = vld [vmem:[#allocation28 + $0x358] ss:$20 sps:$4 sm:$0xff]   ;;  %v13838_v45 = vld [vmem:[#allocation28 + $0x240] ss:$20 sps:$4 sm:$0xff]  }
 0xb2b   :  { %9906 = vmatmul.mubr.bf16.vlgmr.msra.gmra.mrb[68].mxu0 %v15581_v25  ;;  %10029 = vmatmul.mubr.bf16.vlgmr.msra.gmra.mrb[72].mxu1 %v15581_v25  ;;  %v13839_v20 = vld [vmem:[#allocation28 + $0x4c0] ss:$20 sps:$4 sm:$0xff]  }
 0xb2c   :  { %9915 = vmatpush1.bf16.msra.mxu0 %v13790_v24  ;;  %10038 = vmatpush1.bf16.msra.mxu1 %v13793_v36  ;;  %v13841_v24 = vld [vmem:[#allocation28 + $0x380] ss:$20 sps:$4 sm:$0xff]   ;;  %v13842_v36 = vld [vmem:[#allocation28 + $0x268] ss:$20 sps:$4 sm:$0xff]  }
 0xb2d   :  { %9916 = vmatprep.subr.bf16.mxu0 %v13798_v38  ;;  %10039 = vmatprep.subr.bf16.mxu1 %v13801_v28  ;;  %v13843_v38 = vld [vmem:[#allocation28 + $0x4e8] ss:$20 sps:$4 sm:$0xff]  }
 0xb2e   :  { %9946 = vmatprep.mubr.bf16.mxu0 %v14405_v39  ;;  %10069 = vmatprep.mubr.bf16.mxu1 %v14405_v39  ;;  %v13844_v28 = vld [vmem:[#allocation28 + $0x128] ss:$20 sps:$4 sm:$0xff]  }
 0xb30   :  { %9917 = vmatpush1.bf16.msra.mxu0 %v13796_v7  ;;  %10040 = vmatpush1.bf16.msra.mxu1 %v13799_v12  ;;  %v13845_v7 = vld [vmem:[#allocation28 + $0x3a8] ss:$20 sps:$4 sm:$0xff]  }
 0xb31   :  { %9918 = vmatprep.subr.bf16.mxu0 %v13804_v57  ;;  %10041 = vmatprep.subr.bf16.mxu1 %v13807_v30  ;;  %v13850_v12 = vld [vmem:[#allocation31 + $0x40] sm:$0xff]  }
 0xb32   :  { %v13846_v57 = vld [vmem:[#allocation28 + $0x510] ss:$20 sps:$4 sm:$0xff]  }
 0xb33   :  { %v13852_v30 = vld [vmem:[#allocation31] sm:$0xff]  }
 0xb34   :  { %9919 = vmatpush1.bf16.msra.mxu0 %v13802_v26  ;;  %10042 = vmatpush1.bf16.msra.mxu1 %v13805_v29  ;;  %v13854_v26 = vld [vmem:[#allocation31 + $0x48] sm:$0xff]  }
 0xb35   :  { %9920 = vmatprep.subr.bf16.mxu0 %v13810_v40  ;;  %10043 = vmatprep.subr.bf16.mxu1 %v13813_v14  ;;  %v13847_v29 = vld [vmem:[#allocation28 + $0x538] ss:$20 sps:$4 sm:$0xff]  }
 0xb36   :  { %v13856_v40 = vld [vmem:[#allocation31 + $0x8] sm:$0xff]   ;;  %v13858_v14 = vld [vmem:[#allocation31 + $0x50] sm:$0xff]  }
 0xb38   :  { %9921 = vmatpush1.bf16.msra.mxu0 %v13808_v42  ;;  %10044 = vmatpush1.bf16.msra.mxu1 %v13811_v43  ;;  %v13848_v42 = vld [vmem:[#allocation28 + $0x560] ss:$20 sps:$4 sm:$0xff]  }
 0xb39   :  { %12022 = vmatprep.subr.bf16.mxu0 %v13814_v47  ;;  %12044 = vmatprep.subr.bf16.mxu1 %v13815_v48  ;;  %v13860_v43 = vld [vmem:[#allocation31 + $0x10] sm:$0xff]   ;;  %v13851_v47 = vld [vmem:[#allocation31 + $0xc0] sm:$0xff]   ;;  %v13864_v48 = vld [vmem:[#allocation31 + $0x18] sm:$0xff]  }
 0xb40   :  { %v11989_v39 = vpop.f32.mrb[64].mxu1 }
 0xb41   :  { %v11990_v44 = vpop.f32.mrb[65].mxu1 }
 0xb42   :  { %v11991_v49 = vadd.f32 %v11990_v44, %v11989_v39  ;;  %v11992_v51 = vpop.f32.mrb[66].mxu1  ;;  %v13866_v39 = vld [vmem:[#allocation31 + $0x60] sm:$0xff]   ;;  %v13855_v44 = vld [vmem:[#allocation31 + $0xc8] sm:$0xff]  }
 0xb43   :  { %v11993_v52 = vpop.f32.mrb[67].mxu1  ;;  %v13870_v51 = vld [vmem:[#allocation31 + $0x68] sm:$0xff]  }
 0xb44   :  { %v8555_v0 = vadd.f32 %v11991_v49, %v7329_v8  ;;  %v13853_v8 = vld [vmem:[#allocation31 + $0x80] sm:$0xff]   ;;  %v13857_v52 = vld [vmem:[#allocation31 + $0x88] sm:$0xff]  }
 0xb45   :  { %v13868_v49 = vld [vmem:[#allocation31 + $0x20] sm:$0xff]  }
 0xb46   :  { %v8595_v23 = vadd.f32 %v12013_v60, %v8555_v0  ;;  %v13835_v60 = vld [vmem:[#allocation28 + $0x498] ss:$20 sps:$4 sm:$0xff]  }
 0xb47   :  { %v13859_v0 = vld [vmem:[#allocation31 + $0xd0] sm:$0xff]  }
 0xb50   :  { %v8634_v53 = vpop.f32.mrb[68].mxu1 }
 0xb51   :  { %v8635_v54 = vadd.f32 %v8634_v53, %v8595_v23  ;;  %v12166_v46 = vpop.f32.mrb[69].mxu1  ;;  %v13872_v23 = vld [vmem:[#allocation31 + $0x28] sm:$0xff]   ;;  %v13861_v53 = vld [vmem:[#allocation31 + $0x90] sm:$0xff]  }
 0xb52   :  { %v8637_v21 = vpop.f32.mrb[70].mxu1  ;;  %v13865_v46 = vld [vmem:[#allocation31 + $0x98] sm:$0xff]  }
 0xb53   :  { %v8644_v55 = vadd.f32 %v8635_v54, %v15450_v59  ;;  %v12167_v58 = vpop.f32.mrb[71].mxu1  ;;  %v13822_v59 = vld [vmem:[#allocation28 + $0x1a0] ss:$20 sps:$4 sm:$0xff]   ;;  %v13867_v21 = vld [vmem:[#allocation31 + $0xe0] sm:$0xff]  }
 0xb54   :  { %v13863_v54 = vld [vmem:[#allocation31 + $0xd8] sm:$0xff]   ;;  %v13871_v58 = vld [vmem:[#allocation31 + $0xe8] sm:$0xff]  }
 0xb55   :  { %v15592_v35 = vpack.c.bf16 %v8644_v55, %v8644_v55  ;;  %v13869_v55 = vld [vmem:[#allocation31 + $0xa0] sm:$0xff]  }
 0xb57   :  { %11763 = vmatmul.mubr.msk.bf16.vlgmr.msra.gmra.mrb[68].mxu0 %vm3391_vm0, %v15592_v35  ;;  %11764 = vmatmul.mubr.msk.bf16.vlgmr.msra.gmra.mrb[72].mxu1 %vm3391_vm0, %v15592_v35 }
 0xb58   :  { %12023 = vmatpush3.bf16.msra.mxu0 %v13816_v63  ;;  %12045 = vmatpush3.bf16.msra.mxu1 %v13817_v10  ;;  %v13873_v63 = vld [vmem:[#allocation31 + $0xa8] sm:$0xff]   ;;  %v13874_v10 = vld [vmem:[#allocation31 + $0x70] sm:$0xff]  }
 0xb59   :  { %10110 = vmatprep.mubr.bf16.mxu0 %v15553_v16  ;;  %10150 = vmatprep.mubr.bf16.mxu1 %v15579_v3  ;;  %v13830_v16 = vld [vmem:[#allocation28 + $0x1f0] ss:$20 sps:$4 sm:$0xff]   ;;  %v13840_v3 = vld [vmem:[#allocation28 + $0x100] ss:$20 sps:$4 sm:$0xff]  }
 0xb5a   :  { %12024 = vmatprep.subr.bf16.mxu0 %v13818_v56  ;;  %12046 = vmatprep.subr.bf16.mxu1 %v13819_v4  ;;  %v13876_v56 = vld [vmem:[#allocation31 + $0x30] sm:$0xff]  }
 0xb5b   :  { %v13877_v4 = vld [vmem:[#allocation31 + $0xb0] sm:$0xff]  }
 0xb5c   :  { %12025 = vmatpush3.bf16.msra.mxu0 %v13820_v2  ;;  %12047 = vmatpush3.bf16.msra.mxu1 %v13821_v5  ;;  %v13878_v2 = vld [vmem:[#allocation31 + $0x78] sm:$0xff]  }
 0xb5d   :  { %12026 = vmatprep.subr.bf16.mxu0 %v13822_v59  ;;  %12048 = vmatprep.subr.bf16.mxu1 %v13823_v6  ;;  %v13879_v5 = vld [vmem:[#allocation31 + $0xf8] sm:$0xff]  }
 0xb5e   :  { %v13880_v59 = vld [vmem:[#allocation31 + $0x38] sm:$0xff]  }
 0xb5f   :  { %v13881_v6 = vld [vmem:[#allocation31 + $0xb8] sm:$0xff]  }
 0xb60   :  { %12027 = vmatpush3.bf16.msra.mxu0 %v13824_v37  ;;  %12049 = vmatpush3.bf16.msra.mxu1 %v13825_v62  ;;  %v8866_v37 = vld [vmem:[#allocation30] sm:$0x1f] }
 0xb61   :  { %12028 = vmatprep.subr.bf16.mxu0 %v13826_v9  ;;  %12050 = vmatprep.subr.bf16.mxu1 %v13827_v33  ;;  %v8871_v62 = vrot.slane %v8866_v37, %v14904_v50  ;;  %v8879_v9 = vrot.slane %v8866_v37, %v15193_v15  ;;  %v8875_v33 = vrot.slane %v8866_v37, %v14890_v13 }
 0xb64   :  { %12029 = vmatpush3.bf16.msra.mxu0 %v13828_v19  ;;  %12051 = vmatpush3.bf16.msra.mxu1 %v13829_v32  ;;  %v8883_v19 = vrot.slane %v8866_v37, %v15198_v17 }
 0xb65   :  { %12030 = vmatprep.subr.bf16.mxu0 %v13830_v16  ;;  %12052 = vmatprep.subr.bf16.mxu1 %v13831_v11 }
 0xb68   :  { %12031 = vmatpush3.bf16.msra.mxu0 %v13832_v31  ;;  %12053 = vmatpush3.bf16.msra.mxu1 %v13833_v41 }
 0xb69   :  { %12032 = vmatprep.subr.bf16.mxu0 %v13834_v61  ;;  %12054 = vmatprep.subr.bf16.mxu1 %v13835_v60 }
 0xb6c   :  { %12033 = vmatpush3.bf16.msra.mxu0 %v13836_v34  ;;  %12055 = vmatpush3.bf16.msra.mxu1 %v13837_v1 }
 0xb6d   :  { %12034 = vmatprep.subr.bf16.mxu0 %v13838_v45  ;;  %12056 = vmatprep.subr.bf16.mxu1 %v13839_v20 }
 0xb70   :  { %12035 = vmatpush3.bf16.msra.mxu0 %v13840_v3  ;;  %12057 = vmatpush3.bf16.msra.mxu1 %v13841_v24 }
 0xb71   :  { %12036 = vmatprep.subr.bf16.mxu0 %v13842_v36  ;;  %12058 = vmatprep.subr.bf16.mxu1 %v13843_v38 }
 0xb74   :  { %12037 = vmatpush3.bf16.msra.mxu0 %v13844_v28  ;;  %12059 = vmatpush3.bf16.msra.mxu1 %v13845_v7  ;;  %v13882_v28 = vld [vmem:[#allocation31 + $0x100] sm:$0xff]  }
 0xb75   :  { %12168 = vmatprep.subr.bf16.mxu0 %v14406_v27  ;;  %12071 = vmatprep.subr.bf16.mxu1 %v13850_v12  ;;  %v13883_v12 = vld [vmem:[#allocation31 + $0x108] sm:$0xff]  }
 0xb77   :  { %10111 = vmatmul.mubr.bf16.vlgmr.msra.gmra.mrb[72].mxu0 %v15555_v18  ;;  %10151 = vmatmul.mubr.bf16.vlgmr.msra.gmra.mrb[76].mxu1 %v15581_v25  ;;  %v13862_v18 = vld [vmem:[#allocation31 + $0x58] sm:$0xff]  }
 0xb78   :  { %12169 = vmatpush3.bf16.msra.mxu0 %v13846_v57  ;;  %12176 = vmatprep.mubr.msk.bf16.mxu0 %vm14407_vm1, %v14406_v27  ;;  %v13849_v25 = vld [vmem:[#allocation28 + $0x588] ss:$20 sps:$4 sm:$0xff]  }
 0xb79   :  { %12170 = vmatprep.subr.bf16.mxu0 %v14406_v27  ;;  %12072 = vmatpush3.bf16.msra.mxu1 %v13852_v30  ;;  %v13884_v57 = vld [vmem:[#allocation31 + $0x110] sm:$0xff]   ;;  %v13885_v30 = vld [vmem:[#allocation31 + $0x118] sm:$0xff]  }
 0xb7a   :  { %12073 = vmatprep.subr.bf16.mxu1 %v13854_v26 }
 0xb7c   :  { %12171 = vmatpush3.bf16.msra.mxu0 %v13847_v29 }
 0xb7d   :  { %12172 = vmatprep.subr.bf16.mxu0 %v14406_v27  ;;  %12074 = vmatpush3.bf16.msra.mxu1 %v13856_v40  ;;  %v8887_v40 = vrot.slane %v8866_v37, %v15255_v22 }
 0xb7e   :  { %12075 = vmatprep.subr.bf16.mxu1 %v13858_v14 }
 0xb80   :  { %12173 = vmatpush3.bf16.msra.mxu0 %v13848_v42 }
 0xb81   :  { %12174 = vmatprep.subr.bf16.mxu0 %v14406_v27  ;;  %12076 = vmatpush3.bf16.msra.mxu1 %v13860_v43 }
 0xb82   :  { %12077 = vmatprep.subr.bf16.mxu1 %v13862_v18 }
 0xb84   :  { %12175 = vmatpush3.bf16.msra.mxu0 %v13849_v25 }
 0xb85   :  { %12093 = vmatprep.subr.bf16.mxu0 %v13851_v47  ;;  %12078 = vmatpush3.bf16.msra.mxu1 %v13864_v48 }
 0xb86   :  { %12079 = vmatprep.subr.bf16.mxu1 %v13866_v39 }
 0xb87   :  { %12177 = vmatmul.mubr.msk.bf16.vlgmr.msra.gmra.mrb[76].mxu0 %vm3391_vm0, %v15592_v35  ;;  %v13875_v35 = vld [vmem:[#allocation31 + $0xf0] sm:$0xff]  }
 0xb88   :  { %12094 = vmatpush3.bf16.msra.mxu0 %v13853_v8 }
 0xb89   :  { %12095 = vmatprep.subr.bf16.mxu0 %v13855_v44  ;;  %12080 = vmatpush3.bf16.msra.mxu1 %v13868_v49 }
 0xb8a   :  { %12081 = vmatprep.subr.bf16.mxu1 %v13870_v51 }
 0xb8c   :  { %12096 = vmatpush3.bf16.msra.mxu0 %v13857_v52 }
 0xb8d   :  { %12097 = vmatprep.subr.bf16.mxu0 %v13859_v0  ;;  %12082 = vmatpush3.bf16.msra.mxu1 %v13872_v23 }
 0xb8e   :  { %12083 = vmatprep.subr.bf16.mxu1 %v13874_v10 }
 0xb90   :  { %12098 = vmatpush3.bf16.msra.mxu0 %v13861_v53 }
 0xb91   :  { %12099 = vmatprep.subr.bf16.mxu0 %v13863_v54  ;;  %12084 = vmatpush3.bf16.msra.mxu1 %v13876_v56 }
 0xb92   :  { %12085 = vmatprep.subr.bf16.mxu1 %v13878_v2 }
 0xb94   :  { %12100 = vmatpush3.bf16.msra.mxu0 %v13865_v46  ;;  %v11766_v46 = vld [vmem:[#allocation33] ss:$0 sm:$0xff] }
 0xb95   :  { %12101 = vmatprep.subr.bf16.mxu0 %v13867_v21  ;;  %12086 = vmatpush3.bf16.msra.mxu1 %v13880_v59 }
 0xb96   :  { %12180 = vmatprep.subr.bf16.mxu1 %v14406_v27 }
 0xb98   :  { %12102 = vmatpush3.bf16.msra.mxu0 %v13869_v55 }
 0xb99   :  { %12103 = vmatprep.subr.bf16.mxu0 %v13871_v58 }
 0xb9c   :  { %12104 = vmatpush3.bf16.msra.mxu0 %v13873_v63 }
 0xb9d   :  { %12105 = vmatprep.subr.bf16.mxu0 %v13875_v35 }
 0xba0   :  { %12106 = vmatpush3.bf16.msra.mxu0 %v13877_v4 }
 0xba1   :  { %12107 = vmatprep.subr.bf16.mxu0 %v13879_v5 }
 0xba4   :  { %12108 = vmatpush3.bf16.msra.mxu0 %v13881_v6 }
 0xc2a   :  { %v9948_v32 = vpop.f32.mrb[68].mxu0  ;;  %v10071_v16 = vpop.f32.mrb[72].mxu1 }
 0xc2b   :  { %v12200_v11 = vadd.f32 %v9948_v32, %v8871_v62  ;;  %v12202_v31 = vadd.f32 %v10071_v16, %v8879_v9  ;;  %v9950_v41 = vpop.f32.mrb[69].mxu0  ;;  %v10073_v61 = vpop.f32.mrb[73].mxu1 }
 0xc2c   :  { %v12201_v60 = vadd.f32 %v9950_v41, %v8875_v33  ;;  %v12203_v34 = vadd.f32 %v10073_v61, %v8883_v19  ;;  %v9952_v1 = vpop.f32.mrb[70].mxu0  ;;  %v10075_v45 = vpop.f32.mrb[74].mxu1 }
 0xc2d   :  { %v10198_v20 = vmax.f32 %v12200_v11, 0.0  ;;  %v10200_v3 = vmax.f32 %v12202_v31, 0.0  ;;  %v9953_v24 = vpop.f32.mrb[71].mxu0  ;;  %v10076_v50 = vpop.f32.mrb[75].mxu1 }
 0xc2e   :  { %v10199_v36 = vmax.f32 %v12201_v60, 0.0  ;;  %v10201_v15 = vmax.f32 %v12203_v34, 0.0 }
 0xc2f   :  { %v10275_v17 = vpack.c.bf16 %v10198_v20, %v10198_v20  ;;  %v10277_v7 = vpack.c.bf16 %v10200_v3, %v10200_v3 }
 0xc30   :  { %v10276_v38 = vpack.c.bf16 %v10199_v36, %v10199_v36  ;;  %v10278_v13 = vpack.c.bf16 %v10201_v15, %v10201_v15 }
 0xc32   :  { %10538 = vmatprep.mubr.bf16.mxu1 %v10276_v38  ;;  %10578 = vmatprep.mubr.bf16.mxu0 %v10278_v13 }
 0xc33   :  { %10539 = vmatmul.mubr.bf16.vlgmr.msra.gmra.mrb[80].mxu1 %v10275_v17  ;;  %10579 = vmatmul.mubr.bf16.vlgmr.msra.gmra.mrb[80].mxu0 %v10277_v7 }
 0xc34   :  { %12181 = vmatpush3.bf16.msra.mxu1 %v13882_v28  ;;  %12188 = vmatprep.mubr.msk.bf16.mxu1 %vm14407_vm1, %v14406_v27 }
 0xc35   :  { %12182 = vmatprep.subr.bf16.mxu1 %v14406_v27 }
 0xc38   :  { %12183 = vmatpush3.bf16.msra.mxu1 %v13883_v12 }
 0xc39   :  { %12184 = vmatprep.subr.bf16.mxu1 %v14406_v27 }
 0xc3c   :  { %12185 = vmatpush3.bf16.msra.mxu1 %v13884_v57 }
 0xc3d   :  { %12186 = vmatprep.subr.bf16.mxu1 %v14406_v27 }
 0xc40   :  { %12187 = vmatpush3.bf16.msra.mxu1 %v13885_v30 }
 0xc4a   :  { %v12038_v26 = vpop.f32.mrb[72].mxu0  ;;  %v12060_v29 = vpop.f32.mrb[76].mxu1 }
 0xc4b   :  { %v12039_v14 = vpop.f32.mrb[73].mxu0  ;;  %v12061_v42 = vpop.f32.mrb[77].mxu1 }
 0xc4c   :  { %v12040_v43 = vadd.f32 %v12039_v14, %v12038_v26  ;;  %v12062_v18 = vadd.f32 %v12061_v42, %v12060_v29  ;;  %v12041_v25 = vpop.f32.mrb[74].mxu0  ;;  %v12063_v47 = vpop.f32.mrb[78].mxu1 }
 0xc4d   :  { %v12042_v48 = vpop.f32.mrb[75].mxu0  ;;  %v12064_v39 = vpop.f32.mrb[79].mxu1 }
 0xc4e   :  { %v10113_v8 = vadd.f32 %v12040_v43, %v8887_v40 }
 0xc50   :  { %v10153_v44 = vadd.f32 %v12062_v18, %v10113_v8 }
 0xc5a   :  { %v10192_v49 = vpop.f32.mrb[76].mxu0 }
 0xc5b   :  { %v10193_v51 = vadd.f32 %v10192_v49, %v10153_v44  ;;  %v12178_v52 = vpop.f32.mrb[77].mxu0 }
 0xc5c   :  { %v10195_v0 = vpop.f32.mrb[78].mxu0 }
 0xc5d   :  { %v10202_v27 = vmax.f32 %v10193_v51, 0.0  ;;  %v12179_v23 = vpop.f32.mrb[79].mxu0 }
 0xc5f   :  { %v10279_v53 = vpack.c.bf16 %v10202_v27, %v10202_v27 }
 0xc61   :  { %12189 = vmatmul.mubr.msk.bf16.vlgmr.msra.gmra.mrb[84].mxu1 %vm3391_vm0, %v10279_v53 }
 0xd06   :  { %v12087_v22 = vpop.f32.mrb[80].mxu1  ;;  %v12109_v54 = vpop.f32.mrb[80].mxu0 }
 0xd07   :  { %v12088_v21 = vpop.f32.mrb[81].mxu1  ;;  %v12110_v55 = vpop.f32.mrb[81].mxu0 }
 0xd08   :  { %v12089_v58 = vadd.f32 %v12088_v21, %v12087_v22  ;;  %v12111_v63 = vadd.f32 %v12110_v55, %v12109_v54  ;;  %v12090_v10 = vpop.f32.mrb[82].mxu1  ;;  %v12112_v35 = vpop.f32.mrb[82].mxu0 }
 0xd09   :  { %v12091_v56 = vpop.f32.mrb[83].mxu1  ;;  %v12113_v4 = vpop.f32.mrb[83].mxu0 }
 0xd0a   :  { %v10541_v2 = vadd.f32 %v12089_v58, %v11766_v46 }
 0xd0c   :  { %v10581_v5 = vadd.f32 %v12111_v63, %v10541_v2 }
 0xd34   :  { %v10620_v59 = vpop.f32.mrb[84].mxu1 }
 0xd35   :  { %v10621_v6 = vadd.f32 %v10620_v59, %v10581_v5  ;;  %v12190_v37 = vpop.f32.mrb[85].mxu1 }
 0xd36   :  { %v10623_v62 = vpop.f32.mrb[86].mxu1 }
 0xd37   :  { %13886 = vtanh.f32 %v10621_v6  ;;  %v12191_v9 = vpop.f32.mrb[87].mxu1 }
 0xd41   :  { %v13887_v33 = vpop.eup %13886 }
 0xd42   :  { %10627 = vst [vmem:[%s15680_s0] sm:$0xff] %v13887_v33 }
 0xd43   :  { %10632 = vsyncpa [#allocation3], 1 }
 0xd44   :  { %10633 = vsyncpa [#allocation5], 1 }
 0xd45   :  { %10634 = vsyncpa [#allocation8], 1 }
 0xd46   :  { %10635 = vsyncpa [#allocation11], 1 }
 0xd47   :  { %10636 = vsyncpa [#allocation14], 1 }
 0xd48   :  { %10637 = vsyncpa [#allocation17], 1 }
 0xd49   :  { %10638 = vsyncpa [#allocation20], 1 }
 0xd4a   :  { %10639 = vsyncpa [#allocation23], 1 }
 0xd4b   :  { %10640 = vsyncpa [#allocation26], 1 }
 0xd4c   :  { %10641 = vsyncpa [#allocation29], 1 }
 0xd4d   :  { %10642 = vsyncpa [#allocation32], 1 }

</bundles_post_ra>
